<compile_context>
chip_gen: v6e
topology: v6e:2x2x1
jax: 0.10.0
libtpu: 0.0.40
codegen_flags: <defaults>
</compile_context>

<pallas_src>
import jax
import jax.numpy as jnp
from jax.experimental import pallas as pl
from jax.experimental.pallas import tpu as pltpu

VMEM_SPEC = pl.BlockSpec(memory_space=pltpu.MemorySpace.VMEM)
VMEM_LIMIT = 32 * 1024 * 1024  # safe on v5e/v6e (128 MiB) and v7x (64 MiB phys)

GROWTH = 8
BN_SIZE = 4
INIT_FEATURES = 16
BLOCK_CONFIG = (2, 2)
FEATURE_DIM = 1000
FEATURE_PAD = 1024   # lane-aligned classifier/Arc width (extra cols are zero)
NUM_CLASSES = 3


def _m_tile(M):
    for t in (256, 128):
        if M % t == 0:
            return t
    return M


# ---------------------------------------------------------------------------
# Fused conv kernel: (optional BN+ReLU prologue) -> per-tap MXU accumulation
# -> (optional BN+ReLU epilogue).  Output is lane-dense (Cout, M).
# ---------------------------------------------------------------------------

def _make_conv_kernel(num_p, use_pre, use_post, out_dtype):
    def kernel(*refs):
        x_ref, w_ref = refs[0], refs[1]
        i = 2
        if use_pre:
            ps_ref, pb_ref = refs[i], refs[i + 1]
            i += 2
        if use_post:
            qs_ref, qb_ref = refs[i], refs[i + 1]
            i += 2
        o_ref = refs[i]

        acc = jnp.zeros(o_ref.shape, jnp.float32)
        for p in range(num_p):                       # static unrolled tap loop
            x = x_ref[p]                             # (Cin, tm) bf16
            if use_pre:
                xf = x.astype(jnp.float32)
                xf = jnp.maximum(xf * ps_ref[...] + pb_ref[...], 0.0)
                x = xf.astype(jnp.bfloat16)
            acc = acc + jnp.dot(w_ref[p], x, preferred_element_type=jnp.float32)
        if use_post:
            acc = jnp.maximum(acc * qs_ref[...] + qb_ref[...], 0.0)
        o_ref[...] = acc.astype(out_dtype)

    return kernel


def conv_bn_fused(taps, w, pre=None, post=None, out_dtype=jnp.bfloat16):
    """taps: (P, Cin, M) bf16; w: (P, Cout, Cin) bf16; pre/post: (scale, shift) f32."""
    P, Cin, M = taps.shape
    _, Cout, _ = w.shape
    tm = _m_tile(M)
    nm = M // tm
    use_pre, use_post = pre is not None, post is not None

    in_specs = [
        pl.BlockSpec((P, Cin, tm), lambda m: (0, 0, m)),
        pl.BlockSpec((P, Cout, Cin), lambda m: (0, 0, 0)),
    ]
    args = [taps, w]
    if use_pre:
        in_specs.append(pl.BlockSpec((Cin, 1), lambda m: (0, 0)))
        in_specs.append(pl.BlockSpec((Cin, 1), lambda m: (0, 0)))
        args.append(pre[0].reshape(Cin, 1))
        args.append(pre[1].reshape(Cin, 1))
    if use_post:
        in_specs.append(pl.BlockSpec((Cout, 1), lambda m: (0, 0)))
        in_specs.append(pl.BlockSpec((Cout, 1), lambda m: (0, 0)))
        args.append(post[0].reshape(Cout, 1))
        args.append(post[1].reshape(Cout, 1))

    return pl.pallas_call(
        _make_conv_kernel(P, use_pre, use_post, out_dtype),
        out_shape=jax.ShapeDtypeStruct((Cout, M), out_dtype),
        grid_spec=pltpu.PrefetchScalarGridSpec(
            num_scalar_prefetch=0,
            grid=(nm,),
            in_specs=in_specs,
            out_specs=pl.BlockSpec((Cout, tm), lambda m: (0, m)),
        ),
        compiler_params=pltpu.CompilerParams(
            dimension_semantics=("parallel",),
            vmem_limit_bytes=VMEM_LIMIT),
    )(*args)


# ---------------------------------------------------------------------------
# Pooling kernels (lane-dense (C, M) output)
# ---------------------------------------------------------------------------

def _max_pool_kernel(x_ref, o_ref):
    o_ref[...] = jnp.max(x_ref[...], axis=0)


def _mean_pool_kernel(x_ref, o_ref):
    o_ref[...] = jnp.mean(x_ref[...].astype(jnp.float32), axis=0).astype(o_ref.dtype)


def pallas_pool(taps, op):
    # taps: (P, C, M) -> (C, M); avgpool here is always pad=0 so the /P
    # denominator matches PyTorch semantics.
    P, C, M = taps.shape
    tm = _m_tile(M)
    nm = M // tm
    kern = _max_pool_kernel if op == "max" else _mean_pool_kernel
    return pl.pallas_call(
        kern,
        out_shape=jax.ShapeDtypeStruct((C, M), taps.dtype),
        grid_spec=pltpu.PrefetchScalarGridSpec(
            num_scalar_prefetch=0,
            grid=(nm,),
            in_specs=[pl.BlockSpec((P, C, tm), lambda m: (0, 0, m))],
            out_specs=pl.BlockSpec((C, tm), lambda m: (0, m)),
        ),
        compiler_params=pltpu.CompilerParams(
            dimension_semantics=("parallel",),
            vmem_limit_bytes=VMEM_LIMIT),
    )(taps)


# ---------------------------------------------------------------------------
# Head: BN(norm5)+ReLU + global-avg-pool + classifier linear, fused.
# ---------------------------------------------------------------------------

def _head_kernel(x_ref, s_ref, t_ref, w_ref, b_ref, o_ref):
    x = x_ref[...].astype(jnp.float32)          # (C, Bp, S)
    s = s_ref[...][:, :, None]                  # (C, 1, 1)
    t = t_ref[...][:, :, None]
    y = jnp.maximum(x * s + t, 0.0)
    pooled = jnp.mean(y, axis=2)                # (C, Bp)
    f = jnp.dot(pooled.T.astype(jnp.bfloat16), w_ref[...],
                preferred_element_type=jnp.float32)
    o_ref[...] = f + b_ref[...]


def pallas_head(x_cbs, scale, shift, w, b):
    C, Bp, S = x_cbs.shape
    F = w.shape[1]
    return pl.pallas_call(
        _head_kernel,
        out_shape=jax.ShapeDtypeStruct((Bp, F), jnp.float32),
        in_specs=[VMEM_SPEC] * 5,
        out_specs=VMEM_SPEC,
    )(x_cbs, scale.reshape(C, 1), shift.reshape(C, 1), w, b.reshape(1, F))


# ---------------------------------------------------------------------------
# Arc head: cosine logits (weights pre-normalized & pre-transposed in wrapper)
# ---------------------------------------------------------------------------

def _arc_kernel(f_ref, w_ref, o_ref):
    f = f_ref[...]
    fn = f * jax.lax.rsqrt(jnp.sum(f * f, axis=1, keepdims=True) + 1e-12)
    o_ref[...] = jnp.dot(fn, w_ref[...], preferred_element_type=jnp.float32)


def pallas_arc(feature, wn_t):
    Bp, F = feature.shape
    ncls = wn_t.shape[1]
    return pl.pallas_call(
        _arc_kernel,
        out_shape=jax.ShapeDtypeStruct((Bp, ncls), jnp.float32),
        in_specs=[VMEM_SPEC, VMEM_SPEC],
        out_specs=VMEM_SPEC,
    )(feature, wn_t)


# ---------------------------------------------------------------------------
# Plain-JAX glue: channel-major patch extraction & BN folding
# ---------------------------------------------------------------------------

def _extract_taps_cm(x, kh, kw, stride, pad, pad_value=0.0):
    # x: (C, B, H, W) -> taps (kh*kw, C, B*OH*OW)
    C, B, H, W = x.shape
    xp = x
    if pad:
        xp = jnp.pad(x, ((0, 0), (0, 0), (pad, pad), (pad, pad)),
                     constant_values=pad_value)
    OH = (H + 2 * pad - kh) // stride + 1
    OW = (W + 2 * pad - kw) // stride + 1
    taps = []
    for i in range(kh):
        for j in range(kw):
            t = xp[:, :, i:i + stride * OH:stride, j:j + stride * OW:stride]
            taps.append(t.reshape(C, B * OH * OW))
    return jnp.stack(taps, axis=0), (B, OH, OW)


def _fold_bn(p, eps=1e-5):
    scale = p["gamma"] * jax.lax.rsqrt(p["var"] + eps)
    shift = p["beta"] - p["mean"] * scale
    return scale, shift


# ---------------------------------------------------------------------------
# DenseNet-style backbone + classifier + Arc head
# ---------------------------------------------------------------------------

def _init_conv(key, kh, kw, cin, cout):
    fan_in = kh * kw * cin
    w = jax.random.normal(key, (kh * kw, cout, cin), jnp.float32) * (2.0 / fan_in) ** 0.5
    return w.astype(jnp.bfloat16)


def _init_bn(key, c):
    k1, k2, k3, k4 = jax.random.split(key, 4)
    return dict(
        gamma=1.0 + 0.1 * jax.random.normal(k1, (c,), jnp.float32),
        beta=0.1 * jax.random.normal(k2, (c,), jnp.float32),
        mean=0.1 * jax.random.normal(k3, (c,), jnp.float32),
        var=jnp.abs(1.0 + 0.1 * jax.random.normal(k4, (c,), jnp.float32)),
    )


def init_params(key):
    keys = iter(jax.random.split(key, 256))
    p = {}
    p["conv0"] = _init_conv(next(keys), 7, 7, 3, INIT_FEATURES)
    p["norm0"] = _init_bn(next(keys), INIT_FEATURES)
    c = INIT_FEATURES
    blocks, transitions = [], []
    for bi, nlayers in enumerate(BLOCK_CONFIG):
        layers = []
        for _ in range(nlayers):
            layers.append(dict(
                norm1=_init_bn(next(keys), c),
                conv1=_init_conv(next(keys), 1, 1, c, BN_SIZE * GROWTH),
                norm2=_init_bn(next(keys), BN_SIZE * GROWTH),
                conv2=_init_conv(next(keys), 3, 3, BN_SIZE * GROWTH, GROWTH),
            ))
            c += GROWTH
        blocks.append(layers)
        if bi != len(BLOCK_CONFIG) - 1:
            transitions.append(dict(
                norm=_init_bn(next(keys), c),
                conv=_init_conv(next(keys), 1, 1, c, c // 2),
            ))
            c = c // 2
    p["blocks"] = blocks
    p["transitions"] = transitions
    p["norm5"] = _init_bn(next(keys), c)

    npad = FEATURE_PAD - FEATURE_DIM
    cls_w = jax.random.normal(next(keys), (c, FEATURE_DIM), jnp.float32) * (1.0 / c) ** 0.5
    p["classifier_w"] = jnp.pad(cls_w, ((0, 0), (0, npad))).astype(jnp.bfloat16)
    cls_b = 0.01 * jax.random.normal(next(keys), (FEATURE_DIM,), jnp.float32)
    p["classifier_b"] = jnp.pad(cls_b, (0, npad))
    arc_w = jax.random.normal(next(keys), (NUM_CLASSES, FEATURE_DIM), jnp.float32)
    p["arc_w"] = jnp.pad(arc_w, ((0, 0), (0, npad)))
    return p


def _dense_layer(feats, bhw, lp):
    B, H, W = bhw
    # BN1+ReLU fused as prologue and BN2+ReLU as epilogue of the 1x1 conv.
    h = conv_bn_fused(feats[None], lp["conv1"],
                      pre=_fold_bn(lp["norm1"]), post=_fold_bn(lp["norm2"]))
    # 3x3 conv (pad=1) on the already-activated bottleneck (zero pad is correct
    # because padding happens after BN+ReLU in the reference).
    taps, _ = _extract_taps_cm(h.reshape(-1, B, H, W), 3, 3, 1, 1)
    return conv_bn_fused(taps, lp["conv2"])


def densenet_features(p, x_nchw):
    B = x_nchw.shape[0]
    # NCHW -> channel-major (C, B, H, W), bf16 activations.
    x = jnp.transpose(x_nchw, (1, 0, 2, 3)).astype(jnp.bfloat16)

    # stem: 7x7/s2 conv fused with norm0+ReLU epilogue
    taps, (B, H, W) = _extract_taps_cm(x, 7, 7, 2, 3)
    h = conv_bn_fused(taps, p["conv0"], post=_fold_bn(p["norm0"]))

    # 3x3/s2/p1 max pool (input is post-ReLU, so the -1e9 pad never wins)
    taps, (B, H, W) = _extract_taps_cm(h.reshape(-1, B, H, W), 3, 3, 2, 1,
                                       pad_value=-1e9)
    h = pallas_pool(taps, "max")

    for bi, layers in enumerate(p["blocks"]):
        for lp in layers:
            new = _dense_layer(h, (B, H, W), lp)
            h = jnp.concatenate([h, new], axis=0)      # channel-axis concat
        if bi < len(p["transitions"]):
            t = p["transitions"][bi]
            # transition: BN+ReLU prologue fused into the 1x1 conv, then 2x2 avg pool
            h = conv_bn_fused(h[None], t["conv"], pre=_fold_bn(t["norm"]))
            taps, (B, H, W) = _extract_taps_cm(h.reshape(-1, B, H, W), 2, 2, 2, 0)
            h = pallas_pool(taps, "mean")

    C = h.shape[0]
    S = H * W
    x_cbs = h.reshape(C, B, S)
    Bp = ((B + 7) // 8) * 8                            # pad batch to full sublanes
    if Bp != B:
        x_cbs = jnp.pad(x_cbs, ((0, 0), (0, Bp - B), (0, 0)))
    s5, t5 = _fold_bn(p["norm5"])
    feat_pad = pallas_head(x_cbs, s5, t5, p["classifier_w"], p["classifier_b"])
    return feat_pad                                    # (Bp, FEATURE_PAD) f32


def net_forward(p, x_nchw):
    # matches Net.forward: feature = densenet(x); cls = Arc(feature); return both
    B = x_nchw.shape[0]
    feat_pad = densenet_features(p, x_nchw)
    # Arc weight normalization hoisted out of the kernel (constant per forward).
    wn = p["arc_w"] * jax.lax.rsqrt(
        jnp.sum(p["arc_w"] * p["arc_w"], axis=1, keepdims=True) + 1e-12)
    cls_pad = pallas_arc(feat_pad, wn.T)               # (Bp, NUM_CLASSES)
    feature = feat_pad[:B, :FEATURE_DIM]
    cls = cls_pad[:B]
    return feature, cls


if __name__ == "__main__":
    key = jax.random.PRNGKey(0)
    pkey, xkey = jax.random.split(key)
    params = init_params(pkey)
    x = jax.random.normal(xkey, (2, 3, 32, 32), jnp.float32)  # NCHW, like PyTorch

    fwd = jax.jit(net_forward)
    feature, cls = fwd(params, x)
    jax.block_until_ready((feature, cls))

    assert feature.shape == (2, FEATURE_DIM) and feature.dtype == jnp.float32
    assert cls.shape == (2, NUM_CLASSES) and cls.dtype == jnp.float32
    assert bool(jnp.all(jnp.isfinite(feature))) and bool(jnp.all(jnp.isfinite(cls)))
    # Arc head outputs cosines -> bounded in [-1, 1]
    assert bool(jnp.all(jnp.abs(cls) <= 1.0 + 1e-5))
    print("KERNEL_OK")
</pallas_src>

<mosaic_0001>
module attributes {stable_mosaic.version = 11 : i64} {
  func.func @kernel(%arg0: i32, %arg1: memref<49x3x256xbf16, #tpu.memory_space<vmem>>, %arg2: memref<49x16x3xbf16, #tpu.memory_space<vmem>>, %arg3: memref<16x1xf32, #tpu.memory_space<vmem>>, %arg4: memref<16x1xf32, #tpu.memory_space<vmem>>, %arg5: memref<16x256xbf16, #tpu.memory_space<vmem>>) attributes {dimension_semantics = [#tpu.dimension_semantics<parallel>], iteration_bounds = array<i64: 2>, scalar_prefetch = 0 : i64, scratch_operands = 0 : i64, tpu.core_type = #tpu.core_type<tc>, window_params = [{transform_indices = @transform_0, window_bounds = array<i64: 49, 3, 256>}, {pipeline_mode = #tpu.pipeline_mode<synchronous>, transform_indices = @transform_1, window_bounds = array<i64: 49, 16, 3>}, {pipeline_mode = #tpu.pipeline_mode<synchronous>, transform_indices = @transform_2, window_bounds = array<i64: 16, 1>}, {pipeline_mode = #tpu.pipeline_mode<synchronous>, transform_indices = @transform_3, window_bounds = array<i64: 16, 1>}, {transform_indices = @transform_4, window_bounds = array<i64: 16, 256>}]} {
    %cst = arith.constant 0.000000e+00 : f32
    %0 = vector.broadcast %cst : f32 to vector<16x256xf32>
    %c0 = arith.constant 0 : index
    %c0_0 = arith.constant 0 : index
    %c0_1 = arith.constant 0 : index
    %1 = vector.load %arg1[%c0, %c0_0, %c0_1] : memref<49x3x256xbf16, #tpu.memory_space<vmem>>, vector<1x3x256xbf16>
    %2 = vector.shape_cast %1 : vector<1x3x256xbf16> to vector<3x256xbf16>
    %c0_2 = arith.constant 0 : index
    %c0_3 = arith.constant 0 : index
    %c0_4 = arith.constant 0 : index
    %3 = vector.load %arg2[%c0_2, %c0_3, %c0_4] : memref<49x16x3xbf16, #tpu.memory_space<vmem>>, vector<1x16x3xbf16>
    %4 = vector.shape_cast %3 : vector<1x16x3xbf16> to vector<16x3xbf16>
    %cst_5 = arith.constant dense<0.000000e+00> : vector<16x256xf32>
    %5 = tpu.matmul %4, %2, %cst_5 {dimension_numbers = #tpu.dot_dimension_numbers<[1], [0], [0], [1], [0, 0, 1, 1], [], []>} : vector<16x3xbf16>, vector<3x256xbf16>, vector<16x256xf32> -> vector<16x256xf32>
    %6 = arith.addf %0, %5 : vector<16x256xf32>
    %c1 = arith.constant 1 : index
    %c0_6 = arith.constant 0 : index
    %c0_7 = arith.constant 0 : index
    %7 = vector.load %arg1[%c1, %c0_6, %c0_7] : memref<49x3x256xbf16, #tpu.memory_space<vmem>>, vector<1x3x256xbf16>
    %8 = vector.shape_cast %7 : vector<1x3x256xbf16> to vector<3x256xbf16>
    %c1_8 = arith.constant 1 : index
    %c0_9 = arith.constant 0 : index
    %c0_10 = arith.constant 0 : index
    %9 = vector.load %arg2[%c1_8, %c0_9, %c0_10] : memref<49x16x3xbf16, #tpu.memory_space<vmem>>, vector<1x16x3xbf16>
    %10 = vector.shape_cast %9 : vector<1x16x3xbf16> to vector<16x3xbf16>
    %cst_11 = arith.constant dense<0.000000e+00> : vector<16x256xf32>
    %11 = tpu.matmul %10, %8, %cst_11 {dimension_numbers = #tpu.dot_dimension_numbers<[1], [0], [0], [1], [0, 0, 1, 1], [], []>} : vector<16x3xbf16>, vector<3x256xbf16>, vector<16x256xf32> -> vector<16x256xf32>
    %12 = arith.addf %6, %11 : vector<16x256xf32>
    %c2 = arith.constant 2 : index
    %c0_12 = arith.constant 0 : index
    %c0_13 = arith.constant 0 : index
    %13 = vector.load %arg1[%c2, %c0_12, %c0_13] : memref<49x3x256xbf16, #tpu.memory_space<vmem>>, vector<1x3x256xbf16>
    %14 = vector.shape_cast %13 : vector<1x3x256xbf16> to vector<3x256xbf16>
    %c2_14 = arith.constant 2 : index
    %c0_15 = arith.constant 0 : index
    %c0_16 = arith.constant 0 : index
    %15 = vector.load %arg2[%c2_14, %c0_15, %c0_16] : memref<49x16x3xbf16, #tpu.memory_space<vmem>>, vector<1x16x3xbf16>
    %16 = vector.shape_cast %15 : vector<1x16x3xbf16> to vector<16x3xbf16>
    %cst_17 = arith.constant dense<0.000000e+00> : vector<16x256xf32>
    %17 = tpu.matmul %16, %14, %cst_17 {dimension_numbers = #tpu.dot_dimension_numbers<[1], [0], [0], [1], [0, 0, 1, 1], [], []>} : vector<16x3xbf16>, vector<3x256xbf16>, vector<16x256xf32> -> vector<16x256xf32>
    %18 = arith.addf %12, %17 : vector<16x256xf32>
    %c3 = arith.constant 3 : index
    %c0_18 = arith.constant 0 : index
    %c0_19 = arith.constant 0 : index
    %19 = vector.load %arg1[%c3, %c0_18, %c0_19] : memref<49x3x256xbf16, #tpu.memory_space<vmem>>, vector<1x3x256xbf16>
    %20 = vector.shape_cast %19 : vector<1x3x256xbf16> to vector<3x256xbf16>
    %c3_20 = arith.constant 3 : index
    %c0_21 = arith.constant 0 : index
    %c0_22 = arith.constant 0 : index
    %21 = vector.load %arg2[%c3_20, %c0_21, %c0_22] : memref<49x16x3xbf16, #tpu.memory_space<vmem>>, vector<1x16x3xbf16>
    %22 = vector.shape_cast %21 : vector<1x16x3xbf16> to vector<16x3xbf16>
    %cst_23 = arith.constant dense<0.000000e+00> : vector<16x256xf32>
    %23 = tpu.matmul %22, %20, %cst_23 {dimension_numbers = #tpu.dot_dimension_numbers<[1], [0], [0], [1], [0, 0, 1, 1], [], []>} : vector<16x3xbf16>, vector<3x256xbf16>, vector<16x256xf32> -> vector<16x256xf32>
    %24 = arith.addf %18, %23 : vector<16x256xf32>
    %c4 = arith.constant 4 : index
    %c0_24 = arith.constant 0 : index
    %c0_25 = arith.constant 0 : index
    %25 = vector.load %arg1[%c4, %c0_24, %c0_25] : memref<49x3x256xbf16, #tpu.memory_space<vmem>>, vector<1x3x256xbf16>
    %26 = vector.shape_cast %25 : vector<1x3x256xbf16> to vector<3x256xbf16>
    %c4_26 = arith.constant 4 : index
    %c0_27 = arith.constant 0 : index
    %c0_28 = arith.constant 0 : index
    %27 = vector.load %arg2[%c4_26, %c0_27, %c0_28] : memref<49x16x3xbf16, #tpu.memory_space<vmem>>, vector<1x16x3xbf16>
    %28 = vector.shape_cast %27 : vector<1x16x3xbf16> to vector<16x3xbf16>
    %cst_29 = arith.constant dense<0.000000e+00> : vector<16x256xf32>
    %29 = tpu.matmul %28, %26, %cst_29 {dimension_numbers = #tpu.dot_dimension_numbers<[1], [0], [0], [1], [0, 0, 1, 1], [], []>} : vector<16x3xbf16>, vector<3x256xbf16>, vector<16x256xf32> -> vector<16x256xf32>
    %30 = arith.addf %24, %29 : vector<16x256xf32>
    %c5 = arith.constant 5 : index
    %c0_30 = arith.constant 0 : index
    %c0_31 = arith.constant 0 : index
    %31 = vector.load %arg1[%c5, %c0_30, %c0_31] : memref<49x3x256xbf16, #tpu.memory_space<vmem>>, vector<1x3x256xbf16>
    %32 = vector.shape_cast %31 : vector<1x3x256xbf16> to vector<3x256xbf16>
    %c5_32 = arith.constant 5 : index
    %c0_33 = arith.constant 0 : index
    %c0_34 = arith.constant 0 : index
    %33 = vector.load %arg2[%c5_32, %c0_33, %c0_34] : memref<49x16x3xbf16, #tpu.memory_space<vmem>>, vector<1x16x3xbf16>
    %34 = vector.shape_cast %33 : vector<1x16x3xbf16> to vector<16x3xbf16>
    %cst_35 = arith.constant dense<0.000000e+00> : vector<16x256xf32>
    %35 = tpu.matmul %34, %32, %cst_35 {dimension_numbers = #tpu.dot_dimension_numbers<[1], [0], [0], [1], [0, 0, 1, 1], [], []>} : vector<16x3xbf16>, vector<3x256xbf16>, vector<16x256xf32> -> vector<16x256xf32>
    %36 = arith.addf %30, %35 : vector<16x256xf32>
    %c6 = arith.constant 6 : index
    %c0_36 = arith.constant 0 : index
    %c0_37 = arith.constant 0 : index
    %37 = vector.load %arg1[%c6, %c0_36, %c0_37] : memref<49x3x256xbf16, #tpu.memory_space<vmem>>, vector<1x3x256xbf16>
    %38 = vector.shape_cast %37 : vector<1x3x256xbf16> to vector<3x256xbf16>
    %c6_38 = arith.constant 6 : index
    %c0_39 = arith.constant 0 : index
    %c0_40 = arith.constant 0 : index
    %39 = vector.load %arg2[%c6_38, %c0_39, %c0_40] : memref<49x16x3xbf16, #tpu.memory_space<vmem>>, vector<1x16x3xbf16>
    %40 = vector.shape_cast %39 : vector<1x16x3xbf16> to vector<16x3xbf16>
    %cst_41 = arith.constant dense<0.000000e+00> : vector<16x256xf32>
    %41 = tpu.matmul %40, %38, %cst_41 {dimension_numbers = #tpu.dot_dimension_numbers<[1], [0], [0], [1], [0, 0, 1, 1], [], []>} : vector<16x3xbf16>, vector<3x256xbf16>, vector<16x256xf32> -> vector<16x256xf32>
    %42 = arith.addf %36, %41 : vector<16x256xf32>
    %c7 = arith.constant 7 : index
    %c0_42 = arith.constant 0 : index
    %c0_43 = arith.constant 0 : index
    %43 = vector.load %arg1[%c7, %c0_42, %c0_43] : memref<49x3x256xbf16, #tpu.memory_space<vmem>>, vector<1x3x256xbf16>
    %44 = vector.shape_cast %43 : vector<1x3x256xbf16> to vector<3x256xbf16>
    %c7_44 = arith.constant 7 : index
    %c0_45 = arith.constant 0 : index
    %c0_46 = arith.constant 0 : index
    %45 = vector.load %arg2[%c7_44, %c0_45, %c0_46] : memref<49x16x3xbf16, #tpu.memory_space<vmem>>, vector<1x16x3xbf16>
    %46 = vector.shape_cast %45 : vector<1x16x3xbf16> to vector<16x3xbf16>
    %cst_47 = arith.constant dense<0.000000e+00> : vector<16x256xf32>
    %47 = tpu.matmul %46, %44, %cst_47 {dimension_numbers = #tpu.dot_dimension_numbers<[1], [0], [0], [1], [0, 0, 1, 1], [], []>} : vector<16x3xbf16>, vector<3x256xbf16>, vector<16x256xf32> -> vector<16x256xf32>
    %48 = arith.addf %42, %47 : vector<16x256xf32>
    %c8 = arith.constant 8 : index
    %c0_48 = arith.constant 0 : index
    %c0_49 = arith.constant 0 : index
    %49 = vector.load %arg1[%c8, %c0_48, %c0_49] : memref<49x3x256xbf16, #tpu.memory_space<vmem>>, vector<1x3x256xbf16>
    %50 = vector.shape_cast %49 : vector<1x3x256xbf16> to vector<3x256xbf16>
    %c8_50 = arith.constant 8 : index
    %c0_51 = arith.constant 0 : index
    %c0_52 = arith.constant 0 : index
    %51 = vector.load %arg2[%c8_50, %c0_51, %c0_52] : memref<49x16x3xbf16, #tpu.memory_space<vmem>>, vector<1x16x3xbf16>
    %52 = vector.shape_cast %51 : vector<1x16x3xbf16> to vector<16x3xbf16>
    %cst_53 = arith.constant dense<0.000000e+00> : vector<16x256xf32>
    %53 = tpu.matmul %52, %50, %cst_53 {dimension_numbers = #tpu.dot_dimension_numbers<[1], [0], [0], [1], [0, 0, 1, 1], [], []>} : vector<16x3xbf16>, vector<3x256xbf16>, vector<16x256xf32> -> vector<16x256xf32>
    %54 = arith.addf %48, %53 : vector<16x256xf32>
    %c9 = arith.constant 9 : index
    %c0_54 = arith.constant 0 : index
    %c0_55 = arith.constant 0 : index
    %55 = vector.load %arg1[%c9, %c0_54, %c0_55] : memref<49x3x256xbf16, #tpu.memory_space<vmem>>, vector<1x3x256xbf16>
    %56 = vector.shape_cast %55 : vector<1x3x256xbf16> to vector<3x256xbf16>
    %c9_56 = arith.constant 9 : index
    %c0_57 = arith.constant 0 : index
    %c0_58 = arith.constant 0 : index
    %57 = vector.load %arg2[%c9_56, %c0_57, %c0_58] : memref<49x16x3xbf16, #tpu.memory_space<vmem>>, vector<1x16x3xbf16>
    %58 = vector.shape_cast %57 : vector<1x16x3xbf16> to vector<16x3xbf16>
    %cst_59 = arith.constant dense<0.000000e+00> : vector<16x256xf32>
    %59 = tpu.matmul %58, %56, %cst_59 {dimension_numbers = #tpu.dot_dimension_numbers<[1], [0], [0], [1], [0, 0, 1, 1], [], []>} : vector<16x3xbf16>, vector<3x256xbf16>, vector<16x256xf32> -> vector<16x256xf32>
    %60 = arith.addf %54, %59 : vector<16x256xf32>
    %c10 = arith.constant 10 : index
    %c0_60 = arith.constant 0 : index
    %c0_61 = arith.constant 0 : index
    %61 = vector.load %arg1[%c10, %c0_60, %c0_61] : memref<49x3x256xbf16, #tpu.memory_space<vmem>>, vector<1x3x256xbf16>
    %62 = vector.shape_cast %61 : vector<1x3x256xbf16> to vector<3x256xbf16>
    %c10_62 = arith.constant 10 : index
    %c0_63 = arith.constant 0 : index
    %c0_64 = arith.constant 0 : index
    %63 = vector.load %arg2[%c10_62, %c0_63, %c0_64] : memref<49x16x3xbf16, #tpu.memory_space<vmem>>, vector<1x16x3xbf16>
    %64 = vector.shape_cast %63 : vector<1x16x3xbf16> to vector<16x3xbf16>
    %cst_65 = arith.constant dense<0.000000e+00> : vector<16x256xf32>
    %65 = tpu.matmul %64, %62, %cst_65 {dimension_numbers = #tpu.dot_dimension_numbers<[1], [0], [0], [1], [0, 0, 1, 1], [], []>} : vector<16x3xbf16>, vector<3x256xbf16>, vector<16x256xf32> -> vector<16x256xf32>
    %66 = arith.addf %60, %65 : vector<16x256xf32>
    %c11 = arith.constant 11 : index
    %c0_66 = arith.constant 0 : index
    %c0_67 = arith.constant 0 : index
    %67 = vector.load %arg1[%c11, %c0_66, %c0_67] : memref<49x3x256xbf16, #tpu.memory_space<vmem>>, vector<1x3x256xbf16>
    %68 = vector.shape_cast %67 : vector<1x3x256xbf16> to vector<3x256xbf16>
    %c11_68 = arith.constant 11 : index
    %c0_69 = arith.constant 0 : index
    %c0_70 = arith.constant 0 : index
    %69 = vector.load %arg2[%c11_68, %c0_69, %c0_70] : memref<49x16x3xbf16, #tpu.memory_space<vmem>>, vector<1x16x3xbf16>
    %70 = vector.shape_cast %69 : vector<1x16x3xbf16> to vector<16x3xbf16>
    %cst_71 = arith.constant dense<0.000000e+00> : vector<16x256xf32>
    %71 = tpu.matmul %70, %68, %cst_71 {dimension_numbers = #tpu.dot_dimension_numbers<[1], [0], [0], [1], [0, 0, 1, 1], [], []>} : vector<16x3xbf16>, vector<3x256xbf16>, vector<16x256xf32> -> vector<16x256xf32>
    %72 = arith.addf %66, %71 : vector<16x256xf32>
    %c12 = arith.constant 12 : index
    %c0_72 = arith.constant 0 : index
    %c0_73 = arith.constant 0 : index
    %73 = vector.load %arg1[%c12, %c0_72, %c0_73] : memref<49x3x256xbf16, #tpu.memory_space<vmem>>, vector<1x3x256xbf16>
    %74 = vector.shape_cast %73 : vector<1x3x256xbf16> to vector<3x256xbf16>
    %c12_74 = arith.constant 12 : index
    %c0_75 = arith.constant 0 : index
    %c0_76 = arith.constant 0 : index
    %75 = vector.load %arg2[%c12_74, %c0_75, %c0_76] : memref<49x16x3xbf16, #tpu.memory_space<vmem>>, vector<1x16x3xbf16>
    %76 = vector.shape_cast %75 : vector<1x16x3xbf16> to vector<16x3xbf16>
    %cst_77 = arith.constant dense<0.000000e+00> : vector<16x256xf32>
    %77 = tpu.matmul %76, %74, %cst_77 {dimension_numbers = #tpu.dot_dimension_numbers<[1], [0], [0], [1], [0, 0, 1, 1], [], []>} : vector<16x3xbf16>, vector<3x256xbf16>, vector<16x256xf32> -> vector<16x256xf32>
    %78 = arith.addf %72, %77 : vector<16x256xf32>
    %c13 = arith.constant 13 : index
    %c0_78 = arith.constant 0 : index
    %c0_79 = arith.constant 0 : index
    %79 = vector.load %arg1[%c13, %c0_78, %c0_79] : memref<49x3x256xbf16, #tpu.memory_space<vmem>>, vector<1x3x256xbf16>
    %80 = vector.shape_cast %79 : vector<1x3x256xbf16> to vector<3x256xbf16>
    %c13_80 = arith.constant 13 : index
    %c0_81 = arith.constant 0 : index
    %c0_82 = arith.constant 0 : index
    %81 = vector.load %arg2[%c13_80, %c0_81, %c0_82] : memref<49x16x3xbf16, #tpu.memory_space<vmem>>, vector<1x16x3xbf16>
    %82 = vector.shape_cast %81 : vector<1x16x3xbf16> to vector<16x3xbf16>
    %cst_83 = arith.constant dense<0.000000e+00> : vector<16x256xf32>
    %83 = tpu.matmul %82, %80, %cst_83 {dimension_numbers = #tpu.dot_dimension_numbers<[1], [0], [0], [1], [0, 0, 1, 1], [], []>} : vector<16x3xbf16>, vector<3x256xbf16>, vector<16x256xf32> -> vector<16x256xf32>
    %84 = arith.addf %78, %83 : vector<16x256xf32>
    %c14 = arith.constant 14 : index
    %c0_84 = arith.constant 0 : index
    %c0_85 = arith.constant 0 : index
    %85 = vector.load %arg1[%c14, %c0_84, %c0_85] : memref<49x3x256xbf16, #tpu.memory_space<vmem>>, vector<1x3x256xbf16>
    %86 = vector.shape_cast %85 : vector<1x3x256xbf16> to vector<3x256xbf16>
    %c14_86 = arith.constant 14 : index
    %c0_87 = arith.constant 0 : index
    %c0_88 = arith.constant 0 : index
    %87 = vector.load %arg2[%c14_86, %c0_87, %c0_88] : memref<49x16x3xbf16, #tpu.memory_space<vmem>>, vector<1x16x3xbf16>
    %88 = vector.shape_cast %87 : vector<1x16x3xbf16> to vector<16x3xbf16>
    %cst_89 = arith.constant dense<0.000000e+00> : vector<16x256xf32>
    %89 = tpu.matmul %88, %86, %cst_89 {dimension_numbers = #tpu.dot_dimension_numbers<[1], [0], [0], [1], [0, 0, 1, 1], [], []>} : vector<16x3xbf16>, vector<3x256xbf16>, vector<16x256xf32> -> vector<16x256xf32>
    %90 = arith.addf %84, %89 : vector<16x256xf32>
    %c15 = arith.constant 15 : index
    %c0_90 = arith.constant 0 : index
    %c0_91 = arith.constant 0 : index
    %91 = vector.load %arg1[%c15, %c0_90, %c0_91] : memref<49x3x256xbf16, #tpu.memory_space<vmem>>, vector<1x3x256xbf16>
    %92 = vector.shape_cast %91 : vector<1x3x256xbf16> to vector<3x256xbf16>
    %c15_92 = arith.constant 15 : index
    %c0_93 = arith.constant 0 : index
    %c0_94 = arith.constant 0 : index
    %93 = vector.load %arg2[%c15_92, %c0_93, %c0_94] : memref<49x16x3xbf16, #tpu.memory_space<vmem>>, vector<1x16x3xbf16>
    %94 = vector.shape_cast %93 : vector<1x16x3xbf16> to vector<16x3xbf16>
    %cst_95 = arith.constant dense<0.000000e+00> : vector<16x256xf32>
    %95 = tpu.matmul %94, %92, %cst_95 {dimension_numbers = #tpu.dot_dimension_numbers<[1], [0], [0], [1], [0, 0, 1, 1], [], []>} : vector<16x3xbf16>, vector<3x256xbf16>, vector<16x256xf32> -> vector<16x256xf32>
    %96 = arith.addf %90, %95 : vector<16x256xf32>
    %c16 = arith.constant 16 : index
    %c0_96 = arith.constant 0 : index
    %c0_97 = arith.constant 0 : index
    %97 = vector.load %arg1[%c16, %c0_96, %c0_97] : memref<49x3x256xbf16, #tpu.memory_space<vmem>>, vector<1x3x256xbf16>
    %98 = vector.shape_cast %97 : vector<1x3x256xbf16> to vector<3x256xbf16>
    %c16_98 = arith.constant 16 : index
    %c0_99 = arith.constant 0 : index
    %c0_100 = arith.constant 0 : index
    %99 = vector.load %arg2[%c16_98, %c0_99, %c0_100] : memref<49x16x3xbf16, #tpu.memory_space<vmem>>, vector<1x16x3xbf16>
    %100 = vector.shape_cast %99 : vector<1x16x3xbf16> to vector<16x3xbf16>
    %cst_101 = arith.constant dense<0.000000e+00> : vector<16x256xf32>
    %101 = tpu.matmul %100, %98, %cst_101 {dimension_numbers = #tpu.dot_dimension_numbers<[1], [0], [0], [1], [0, 0, 1, 1], [], []>} : vector<16x3xbf16>, vector<3x256xbf16>, vector<16x256xf32> -> vector<16x256xf32>
    %102 = arith.addf %96, %101 : vector<16x256xf32>
    %c17 = arith.constant 17 : index
    %c0_102 = arith.constant 0 : index
    %c0_103 = arith.constant 0 : index
    %103 = vector.load %arg1[%c17, %c0_102, %c0_103] : memref<49x3x256xbf16, #tpu.memory_space<vmem>>, vector<1x3x256xbf16>
    %104 = vector.shape_cast %103 : vector<1x3x256xbf16> to vector<3x256xbf16>
    %c17_104 = arith.constant 17 : index
    %c0_105 = arith.constant 0 : index
    %c0_106 = arith.constant 0 : index
    %105 = vector.load %arg2[%c17_104, %c0_105, %c0_106] : memref<49x16x3xbf16, #tpu.memory_space<vmem>>, vector<1x16x3xbf16>
    %106 = vector.shape_cast %105 : vector<1x16x3xbf16> to vector<16x3xbf16>
    %cst_107 = arith.constant dense<0.000000e+00> : vector<16x256xf32>
    %107 = tpu.matmul %106, %104, %cst_107 {dimension_numbers = #tpu.dot_dimension_numbers<[1], [0], [0], [1], [0, 0, 1, 1], [], []>} : vector<16x3xbf16>, vector<3x256xbf16>, vector<16x256xf32> -> vector<16x256xf32>
    %108 = arith.addf %102, %107 : vector<16x256xf32>
    %c18 = arith.constant 18 : index
    %c0_108 = arith.constant 0 : index
    %c0_109 = arith.constant 0 : index
    %109 = vector.load %arg1[%c18, %c0_108, %c0_109] : memref<49x3x256xbf16, #tpu.memory_space<vmem>>, vector<1x3x256xbf16>
    %110 = vector.shape_cast %109 : vector<1x3x256xbf16> to vector<3x256xbf16>
    %c18_110 = arith.constant 18 : index
    %c0_111 = arith.constant 0 : index
    %c0_112 = arith.constant 0 : index
    %111 = vector.load %arg2[%c18_110, %c0_111, %c0_112] : memref<49x16x3xbf16, #tpu.memory_space<vmem>>, vector<1x16x3xbf16>
    %112 = vector.shape_cast %111 : vector<1x16x3xbf16> to vector<16x3xbf16>
    %cst_113 = arith.constant dense<0.000000e+00> : vector<16x256xf32>
    %113 = tpu.matmul %112, %110, %cst_113 {dimension_numbers = #tpu.dot_dimension_numbers<[1], [0], [0], [1], [0, 0, 1, 1], [], []>} : vector<16x3xbf16>, vector<3x256xbf16>, vector<16x256xf32> -> vector<16x256xf32>
    %114 = arith.addf %108, %113 : vector<16x256xf32>
    %c19 = arith.constant 19 : index
    %c0_114 = arith.constant 0 : index
    %c0_115 = arith.constant 0 : index
    %115 = vector.load %arg1[%c19, %c0_114, %c0_115] : memref<49x3x256xbf16, #tpu.memory_space<vmem>>, vector<1x3x256xbf16>
    %116 = vector.shape_cast %115 : vector<1x3x256xbf16> to vector<3x256xbf16>
    %c19_116 = arith.constant 19 : index
    %c0_117 = arith.constant 0 : index
    %c0_118 = arith.constant 0 : index
    %117 = vector.load %arg2[%c19_116, %c0_117, %c0_118] : memref<49x16x3xbf16, #tpu.memory_space<vmem>>, vector<1x16x3xbf16>
    %118 = vector.shape_cast %117 : vector<1x16x3xbf16> to vector<16x3xbf16>
    %cst_119 = arith.constant dense<0.000000e+00> : vector<16x256xf32>
    %119 = tpu.matmul %118, %116, %cst_119 {dimension_numbers = #tpu.dot_dimension_numbers<[1], [0], [0], [1], [0, 0, 1, 1], [], []>} : vector<16x3xbf16>, vector<3x256xbf16>, vector<16x256xf32> -> vector<16x256xf32>
    %120 = arith.addf %114, %119 : vector<16x256xf32>
    %c20 = arith.constant 20 : index
    %c0_120 = arith.constant 0 : index
    %c0_121 = arith.constant 0 : index
    %121 = vector.load %arg1[%c20, %c0_120, %c0_121] : memref<49x3x256xbf16, #tpu.memory_space<vmem>>, vector<1x3x256xbf16>
    %122 = vector.shape_cast %121 : vector<1x3x256xbf16> to vector<3x256xbf16>
    %c20_122 = arith.constant 20 : index
    %c0_123 = arith.constant 0 : index
    %c0_124 = arith.constant 0 : index
    %123 = vector.load %arg2[%c20_122, %c0_123, %c0_124] : memref<49x16x3xbf16, #tpu.memory_space<vmem>>, vector<1x16x3xbf16>
    %124 = vector.shape_cast %123 : vector<1x16x3xbf16> to vector<16x3xbf16>
    %cst_125 = arith.constant dense<0.000000e+00> : vector<16x256xf32>
    %125 = tpu.matmul %124, %122, %cst_125 {dimension_numbers = #tpu.dot_dimension_numbers<[1], [0], [0], [1], [0, 0, 1, 1], [], []>} : vector<16x3xbf16>, vector<3x256xbf16>, vector<16x256xf32> -> vector<16x256xf32>
    %126 = arith.addf %120, %125 : vector<16x256xf32>
    %c21 = arith.constant 21 : index
    %c0_126 = arith.constant 0 : index
    %c0_127 = arith.constant 0 : index
    %127 = vector.load %arg1[%c21, %c0_126, %c0_127] : memref<49x3x256xbf16, #tpu.memory_space<vmem>>, vector<1x3x256xbf16>
    %128 = vector.shape_cast %127 : vector<1x3x256xbf16> to vector<3x256xbf16>
    %c21_128 = arith.constant 21 : index
    %c0_129 = arith.constant 0 : index
    %c0_130 = arith.constant 0 : index
    %129 = vector.load %arg2[%c21_128, %c0_129, %c0_130] : memref<49x16x3xbf16, #tpu.memory_space<vmem>>, vector<1x16x3xbf16>
    %130 = vector.shape_cast %129 : vector<1x16x3xbf16> to vector<16x3xbf16>
    %cst_131 = arith.constant dense<0.000000e+00> : vector<16x256xf32>
    %131 = tpu.matmul %130, %128, %cst_131 {dimension_numbers = #tpu.dot_dimension_numbers<[1], [0], [0], [1], [0, 0, 1, 1], [], []>} : vector<16x3xbf16>, vector<3x256xbf16>, vector<16x256xf32> -> vector<16x256xf32>
    %132 = arith.addf %126, %131 : vector<16x256xf32>
    %c22 = arith.constant 22 : index
    %c0_132 = arith.constant 0 : index
    %c0_133 = arith.constant 0 : index
    %133 = vector.load %arg1[%c22, %c0_132, %c0_133] : memref<49x3x256xbf16, #tpu.memory_space<vmem>>, vector<1x3x256xbf16>
    %134 = vector.shape_cast %133 : vector<1x3x256xbf16> to vector<3x256xbf16>
    %c22_134 = arith.constant 22 : index
    %c0_135 = arith.constant 0 : index
    %c0_136 = arith.constant 0 : index
    %135 = vector.load %arg2[%c22_134, %c0_135, %c0_136] : memref<49x16x3xbf16, #tpu.memory_space<vmem>>, vector<1x16x3xbf16>
    %136 = vector.shape_cast %135 : vector<1x16x3xbf16> to vector<16x3xbf16>
    %cst_137 = arith.constant dense<0.000000e+00> : vector<16x256xf32>
    %137 = tpu.matmul %136, %134, %cst_137 {dimension_numbers = #tpu.dot_dimension_numbers<[1], [0], [0], [1], [0, 0, 1, 1], [], []>} : vector<16x3xbf16>, vector<3x256xbf16>, vector<16x256xf32> -> vector<16x256xf32>
    %138 = arith.addf %132, %137 : vector<16x256xf32>
    %c23 = arith.constant 23 : index
    %c0_138 = arith.constant 0 : index
    %c0_139 = arith.constant 0 : index
    %139 = vector.load %arg1[%c23, %c0_138, %c0_139] : memref<49x3x256xbf16, #tpu.memory_space<vmem>>, vector<1x3x256xbf16>
    %140 = vector.shape_cast %139 : vector<1x3x256xbf16> to vector<3x256xbf16>
    %c23_140 = arith.constant 23 : index
    %c0_141 = arith.constant 0 : index
    %c0_142 = arith.constant 0 : index
    %141 = vector.load %arg2[%c23_140, %c0_141, %c0_142] : memref<49x16x3xbf16, #tpu.memory_space<vmem>>, vector<1x16x3xbf16>
    %142 = vector.shape_cast %141 : vector<1x16x3xbf16> to vector<16x3xbf16>
    %cst_143 = arith.constant dense<0.000000e+00> : vector<16x256xf32>
    %143 = tpu.matmul %142, %140, %cst_143 {dimension_numbers = #tpu.dot_dimension_numbers<[1], [0], [0], [1], [0, 0, 1, 1], [], []>} : vector<16x3xbf16>, vector<3x256xbf16>, vector<16x256xf32> -> vector<16x256xf32>
    %144 = arith.addf %138, %143 : vector<16x256xf32>
    %c24 = arith.constant 24 : index
    %c0_144 = arith.constant 0 : index
    %c0_145 = arith.constant 0 : index
    %145 = vector.load %arg1[%c24, %c0_144, %c0_145] : memref<49x3x256xbf16, #tpu.memory_space<vmem>>, vector<1x3x256xbf16>
    %146 = vector.shape_cast %145 : vector<1x3x256xbf16> to vector<3x256xbf16>
    %c24_146 = arith.constant 24 : index
    %c0_147 = arith.constant 0 : index
    %c0_148 = arith.constant 0 : index
    %147 = vector.load %arg2[%c24_146, %c0_147, %c0_148] : memref<49x16x3xbf16, #tpu.memory_space<vmem>>, vector<1x16x3xbf16>
    %148 = vector.shape_cast %147 : vector<1x16x3xbf16> to vector<16x3xbf16>
    %cst_149 = arith.constant dense<0.000000e+00> : vector<16x256xf32>
    %149 = tpu.matmul %148, %146, %cst_149 {dimension_numbers = #tpu.dot_dimension_numbers<[1], [0], [0], [1], [0, 0, 1, 1], [], []>} : vector<16x3xbf16>, vector<3x256xbf16>, vector<16x256xf32> -> vector<16x256xf32>
    %150 = arith.addf %144, %149 : vector<16x256xf32>
    %c25 = arith.constant 25 : index
    %c0_150 = arith.constant 0 : index
    %c0_151 = arith.constant 0 : index
    %151 = vector.load %arg1[%c25, %c0_150, %c0_151] : memref<49x3x256xbf16, #tpu.memory_space<vmem>>, vector<1x3x256xbf16>
    %152 = vector.shape_cast %151 : vector<1x3x256xbf16> to vector<3x256xbf16>
    %c25_152 = arith.constant 25 : index
    %c0_153 = arith.constant 0 : index
    %c0_154 = arith.constant 0 : index
    %153 = vector.load %arg2[%c25_152, %c0_153, %c0_154] : memref<49x16x3xbf16, #tpu.memory_space<vmem>>, vector<1x16x3xbf16>
    %154 = vector.shape_cast %153 : vector<1x16x3xbf16> to vector<16x3xbf16>
    %cst_155 = arith.constant dense<0.000000e+00> : vector<16x256xf32>
    %155 = tpu.matmul %154, %152, %cst_155 {dimension_numbers = #tpu.dot_dimension_numbers<[1], [0], [0], [1], [0, 0, 1, 1], [], []>} : vector<16x3xbf16>, vector<3x256xbf16>, vector<16x256xf32> -> vector<16x256xf32>
    %156 = arith.addf %150, %155 : vector<16x256xf32>
    %c26 = arith.constant 26 : index
    %c0_156 = arith.constant 0 : index
    %c0_157 = arith.constant 0 : index
    %157 = vector.load %arg1[%c26, %c0_156, %c0_157] : memref<49x3x256xbf16, #tpu.memory_space<vmem>>, vector<1x3x256xbf16>
    %158 = vector.shape_cast %157 : vector<1x3x256xbf16> to vector<3x256xbf16>
    %c26_158 = arith.constant 26 : index
    %c0_159 = arith.constant 0 : index
    %c0_160 = arith.constant 0 : index
    %159 = vector.load %arg2[%c26_158, %c0_159, %c0_160] : memref<49x16x3xbf16, #tpu.memory_space<vmem>>, vector<1x16x3xbf16>
    %160 = vector.shape_cast %159 : vector<1x16x3xbf16> to vector<16x3xbf16>
    %cst_161 = arith.constant dense<0.000000e+00> : vector<16x256xf32>
    %161 = tpu.matmul %160, %158, %cst_161 {dimension_numbers = #tpu.dot_dimension_numbers<[1], [0], [0], [1], [0, 0, 1, 1], [], []>} : vector<16x3xbf16>, vector<3x256xbf16>, vector<16x256xf32> -> vector<16x256xf32>
    %162 = arith.addf %156, %161 : vector<16x256xf32>
    %c27 = arith.constant 27 : index
    %c0_162 = arith.constant 0 : index
    %c0_163 = arith.constant 0 : index
    %163 = vector.load %arg1[%c27, %c0_162, %c0_163] : memref<49x3x256xbf16, #tpu.memory_space<vmem>>, vector<1x3x256xbf16>
    %164 = vector.shape_cast %163 : vector<1x3x256xbf16> to vector<3x256xbf16>
    %c27_164 = arith.constant 27 : index
    %c0_165 = arith.constant 0 : index
    %c0_166 = arith.constant 0 : index
    %165 = vector.load %arg2[%c27_164, %c0_165, %c0_166] : memref<49x16x3xbf16, #tpu.memory_space<vmem>>, vector<1x16x3xbf16>
    %166 = vector.shape_cast %165 : vector<1x16x3xbf16> to vector<16x3xbf16>
    %cst_167 = arith.constant dense<0.000000e+00> : vector<16x256xf32>
    %167 = tpu.matmul %166, %164, %cst_167 {dimension_numbers = #tpu.dot_dimension_numbers<[1], [0], [0], [1], [0, 0, 1, 1], [], []>} : vector<16x3xbf16>, vector<3x256xbf16>, vector<16x256xf32> -> vector<16x256xf32>
    %168 = arith.addf %162, %167 : vector<16x256xf32>
    %c28 = arith.constant 28 : index
    %c0_168 = arith.constant 0 : index
    %c0_169 = arith.constant 0 : index
    %169 = vector.load %arg1[%c28, %c0_168, %c0_169] : memref<49x3x256xbf16, #tpu.memory_space<vmem>>, vector<1x3x256xbf16>
    %170 = vector.shape_cast %169 : vector<1x3x256xbf16> to vector<3x256xbf16>
    %c28_170 = arith.constant 28 : index
    %c0_171 = arith.constant 0 : index
    %c0_172 = arith.constant 0 : index
    %171 = vector.load %arg2[%c28_170, %c0_171, %c0_172] : memref<49x16x3xbf16, #tpu.memory_space<vmem>>, vector<1x16x3xbf16>
    %172 = vector.shape_cast %171 : vector<1x16x3xbf16> to vector<16x3xbf16>
    %cst_173 = arith.constant dense<0.000000e+00> : vector<16x256xf32>
    %173 = tpu.matmul %172, %170, %cst_173 {dimension_numbers = #tpu.dot_dimension_numbers<[1], [0], [0], [1], [0, 0, 1, 1], [], []>} : vector<16x3xbf16>, vector<3x256xbf16>, vector<16x256xf32> -> vector<16x256xf32>
    %174 = arith.addf %168, %173 : vector<16x256xf32>
    %c29 = arith.constant 29 : index
    %c0_174 = arith.constant 0 : index
    %c0_175 = arith.constant 0 : index
    %175 = vector.load %arg1[%c29, %c0_174, %c0_175] : memref<49x3x256xbf16, #tpu.memory_space<vmem>>, vector<1x3x256xbf16>
    %176 = vector.shape_cast %175 : vector<1x3x256xbf16> to vector<3x256xbf16>
    %c29_176 = arith.constant 29 : index
    %c0_177 = arith.constant 0 : index
    %c0_178 = arith.constant 0 : index
    %177 = vector.load %arg2[%c29_176, %c0_177, %c0_178] : memref<49x16x3xbf16, #tpu.memory_space<vmem>>, vector<1x16x3xbf16>
    %178 = vector.shape_cast %177 : vector<1x16x3xbf16> to vector<16x3xbf16>
    %cst_179 = arith.constant dense<0.000000e+00> : vector<16x256xf32>
    %179 = tpu.matmul %178, %176, %cst_179 {dimension_numbers = #tpu.dot_dimension_numbers<[1], [0], [0], [1], [0, 0, 1, 1], [], []>} : vector<16x3xbf16>, vector<3x256xbf16>, vector<16x256xf32> -> vector<16x256xf32>
    %180 = arith.addf %174, %179 : vector<16x256xf32>
    %c30 = arith.constant 30 : index
    %c0_180 = arith.constant 0 : index
    %c0_181 = arith.constant 0 : index
    %181 = vector.load %arg1[%c30, %c0_180, %c0_181] : memref<49x3x256xbf16, #tpu.memory_space<vmem>>, vector<1x3x256xbf16>
    %182 = vector.shape_cast %181 : vector<1x3x256xbf16> to vector<3x256xbf16>
    %c30_182 = arith.constant 30 : index
    %c0_183 = arith.constant 0 : index
    %c0_184 = arith.constant 0 : index
    %183 = vector.load %arg2[%c30_182, %c0_183, %c0_184] : memref<49x16x3xbf16, #tpu.memory_space<vmem>>, vector<1x16x3xbf16>
    %184 = vector.shape_cast %183 : vector<1x16x3xbf16> to vector<16x3xbf16>
    %cst_185 = arith.constant dense<0.000000e+00> : vector<16x256xf32>
    %185 = tpu.matmul %184, %182, %cst_185 {dimension_numbers = #tpu.dot_dimension_numbers<[1], [0], [0], [1], [0, 0, 1, 1], [], []>} : vector<16x3xbf16>, vector<3x256xbf16>, vector<16x256xf32> -> vector<16x256xf32>
    %186 = arith.addf %180, %185 : vector<16x256xf32>
    %c31 = arith.constant 31 : index
    %c0_186 = arith.constant 0 : index
    %c0_187 = arith.constant 0 : index
    %187 = vector.load %arg1[%c31, %c0_186, %c0_187] : memref<49x3x256xbf16, #tpu.memory_space<vmem>>, vector<1x3x256xbf16>
    %188 = vector.shape_cast %187 : vector<1x3x256xbf16> to vector<3x256xbf16>
    %c31_188 = arith.constant 31 : index
    %c0_189 = arith.constant 0 : index
    %c0_190 = arith.constant 0 : index
    %189 = vector.load %arg2[%c31_188, %c0_189, %c0_190] : memref<49x16x3xbf16, #tpu.memory_space<vmem>>, vector<1x16x3xbf16>
    %190 = vector.shape_cast %189 : vector<1x16x3xbf16> to vector<16x3xbf16>
    %cst_191 = arith.constant dense<0.000000e+00> : vector<16x256xf32>
    %191 = tpu.matmul %190, %188, %cst_191 {dimension_numbers = #tpu.dot_dimension_numbers<[1], [0], [0], [1], [0, 0, 1, 1], [], []>} : vector<16x3xbf16>, vector<3x256xbf16>, vector<16x256xf32> -> vector<16x256xf32>
    %192 = arith.addf %186, %191 : vector<16x256xf32>
    %c32 = arith.constant 32 : index
    %c0_192 = arith.constant 0 : index
    %c0_193 = arith.constant 0 : index
    %193 = vector.load %arg1[%c32, %c0_192, %c0_193] : memref<49x3x256xbf16, #tpu.memory_space<vmem>>, vector<1x3x256xbf16>
    %194 = vector.shape_cast %193 : vector<1x3x256xbf16> to vector<3x256xbf16>
    %c32_194 = arith.constant 32 : index
    %c0_195 = arith.constant 0 : index
    %c0_196 = arith.constant 0 : index
    %195 = vector.load %arg2[%c32_194, %c0_195, %c0_196] : memref<49x16x3xbf16, #tpu.memory_space<vmem>>, vector<1x16x3xbf16>
    %196 = vector.shape_cast %195 : vector<1x16x3xbf16> to vector<16x3xbf16>
    %cst_197 = arith.constant dense<0.000000e+00> : vector<16x256xf32>
    %197 = tpu.matmul %196, %194, %cst_197 {dimension_numbers = #tpu.dot_dimension_numbers<[1], [0], [0], [1], [0, 0, 1, 1], [], []>} : vector<16x3xbf16>, vector<3x256xbf16>, vector<16x256xf32> -> vector<16x256xf32>
    %198 = arith.addf %192, %197 : vector<16x256xf32>
    %c33 = arith.constant 33 : index
    %c0_198 = arith.constant 0 : index
    %c0_199 = arith.constant 0 : index
    %199 = vector.load %arg1[%c33, %c0_198, %c0_199] : memref<49x3x256xbf16, #tpu.memory_space<vmem>>, vector<1x3x256xbf16>
    %200 = vector.shape_cast %199 : vector<1x3x256xbf16> to vector<3x256xbf16>
    %c33_200 = arith.constant 33 : index
    %c0_201 = arith.constant 0 : index
    %c0_202 = arith.constant 0 : index
    %201 = vector.load %arg2[%c33_200, %c0_201, %c0_202] : memref<49x16x3xbf16, #tpu.memory_space<vmem>>, vector<1x16x3xbf16>
    %202 = vector.shape_cast %201 : vector<1x16x3xbf16> to vector<16x3xbf16>
    %cst_203 = arith.constant dense<0.000000e+00> : vector<16x256xf32>
    %203 = tpu.matmul %202, %200, %cst_203 {dimension_numbers = #tpu.dot_dimension_numbers<[1], [0], [0], [1], [0, 0, 1, 1], [], []>} : vector<16x3xbf16>, vector<3x256xbf16>, vector<16x256xf32> -> vector<16x256xf32>
    %204 = arith.addf %198, %203 : vector<16x256xf32>
    %c34 = arith.constant 34 : index
    %c0_204 = arith.constant 0 : index
    %c0_205 = arith.constant 0 : index
    %205 = vector.load %arg1[%c34, %c0_204, %c0_205] : memref<49x3x256xbf16, #tpu.memory_space<vmem>>, vector<1x3x256xbf16>
    %206 = vector.shape_cast %205 : vector<1x3x256xbf16> to vector<3x256xbf16>
    %c34_206 = arith.constant 34 : index
    %c0_207 = arith.constant 0 : index
    %c0_208 = arith.constant 0 : index
    %207 = vector.load %arg2[%c34_206, %c0_207, %c0_208] : memref<49x16x3xbf16, #tpu.memory_space<vmem>>, vector<1x16x3xbf16>
    %208 = vector.shape_cast %207 : vector<1x16x3xbf16> to vector<16x3xbf16>
    %cst_209 = arith.constant dense<0.000000e+00> : vector<16x256xf32>
    %209 = tpu.matmul %208, %206, %cst_209 {dimension_numbers = #tpu.dot_dimension_numbers<[1], [0], [0], [1], [0, 0, 1, 1], [], []>} : vector<16x3xbf16>, vector<3x256xbf16>, vector<16x256xf32> -> vector<16x256xf32>
    %210 = arith.addf %204, %209 : vector<16x256xf32>
    %c35 = arith.constant 35 : index
    %c0_210 = arith.constant 0 : index
    %c0_211 = arith.constant 0 : index
    %211 = vector.load %arg1[%c35, %c0_210, %c0_211] : memref<49x3x256xbf16, #tpu.memory_space<vmem>>, vector<1x3x256xbf16>
    %212 = vector.shape_cast %211 : vector<1x3x256xbf16> to vector<3x256xbf16>
    %c35_212 = arith.constant 35 : index
    %c0_213 = arith.constant 0 : index
    %c0_214 = arith.constant 0 : index
    %213 = vector.load %arg2[%c35_212, %c0_213, %c0_214] : memref<49x16x3xbf16, #tpu.memory_space<vmem>>, vector<1x16x3xbf16>
    %214 = vector.shape_cast %213 : vector<1x16x3xbf16> to vector<16x3xbf16>
    %cst_215 = arith.constant dense<0.000000e+00> : vector<16x256xf32>
    %215 = tpu.matmul %214, %212, %cst_215 {dimension_numbers = #tpu.dot_dimension_numbers<[1], [0], [0], [1], [0, 0, 1, 1], [], []>} : vector<16x3xbf16>, vector<3x256xbf16>, vector<16x256xf32> -> vector<16x256xf32>
    %216 = arith.addf %210, %215 : vector<16x256xf32>
    %c36 = arith.constant 36 : index
    %c0_216 = arith.constant 0 : index
    %c0_217 = arith.constant 0 : index
    %217 = vector.load %arg1[%c36, %c0_216, %c0_217] : memref<49x3x256xbf16, #tpu.memory_space<vmem>>, vector<1x3x256xbf16>
    %218 = vector.shape_cast %217 : vector<1x3x256xbf16> to vector<3x256xbf16>
    %c36_218 = arith.constant 36 : index
    %c0_219 = arith.constant 0 : index
    %c0_220 = arith.constant 0 : index
    %219 = vector.load %arg2[%c36_218, %c0_219, %c0_220] : memref<49x16x3xbf16, #tpu.memory_space<vmem>>, vector<1x16x3xbf16>
    %220 = vector.shape_cast %219 : vector<1x16x3xbf16> to vector<16x3xbf16>
    %cst_221 = arith.constant dense<0.000000e+00> : vector<16x256xf32>
    %221 = tpu.matmul %220, %218, %cst_221 {dimension_numbers = #tpu.dot_dimension_numbers<[1], [0], [0], [1], [0, 0, 1, 1], [], []>} : vector<16x3xbf16>, vector<3x256xbf16>, vector<16x256xf32> -> vector<16x256xf32>
    %222 = arith.addf %216, %221 : vector<16x256xf32>
    %c37 = arith.constant 37 : index
    %c0_222 = arith.constant 0 : index
    %c0_223 = arith.constant 0 : index
    %223 = vector.load %arg1[%c37, %c0_222, %c0_223] : memref<49x3x256xbf16, #tpu.memory_space<vmem>>, vector<1x3x256xbf16>
    %224 = vector.shape_cast %223 : vector<1x3x256xbf16> to vector<3x256xbf16>
    %c37_224 = arith.constant 37 : index
    %c0_225 = arith.constant 0 : index
    %c0_226 = arith.constant 0 : index
    %225 = vector.load %arg2[%c37_224, %c0_225, %c0_226] : memref<49x16x3xbf16, #tpu.memory_space<vmem>>, vector<1x16x3xbf16>
    %226 = vector.shape_cast %225 : vector<1x16x3xbf16> to vector<16x3xbf16>
    %cst_227 = arith.constant dense<0.000000e+00> : vector<16x256xf32>
    %227 = tpu.matmul %226, %224, %cst_227 {dimension_numbers = #tpu.dot_dimension_numbers<[1], [0], [0], [1], [0, 0, 1, 1], [], []>} : vector<16x3xbf16>, vector<3x256xbf16>, vector<16x256xf32> -> vector<16x256xf32>
    %228 = arith.addf %222, %227 : vector<16x256xf32>
    %c38 = arith.constant 38 : index
    %c0_228 = arith.constant 0 : index
    %c0_229 = arith.constant 0 : index
    %229 = vector.load %arg1[%c38, %c0_228, %c0_229] : memref<49x3x256xbf16, #tpu.memory_space<vmem>>, vector<1x3x256xbf16>
    %230 = vector.shape_cast %229 : vector<1x3x256xbf16> to vector<3x256xbf16>
    %c38_230 = arith.constant 38 : index
    %c0_231 = arith.constant 0 : index
    %c0_232 = arith.constant 0 : index
    %231 = vector.load %arg2[%c38_230, %c0_231, %c0_232] : memref<49x16x3xbf16, #tpu.memory_space<vmem>>, vector<1x16x3xbf16>
    %232 = vector.shape_cast %231 : vector<1x16x3xbf16> to vector<16x3xbf16>
    %cst_233 = arith.constant dense<0.000000e+00> : vector<16x256xf32>
    %233 = tpu.matmul %232, %230, %cst_233 {dimension_numbers = #tpu.dot_dimension_numbers<[1], [0], [0], [1], [0, 0, 1, 1], [], []>} : vector<16x3xbf16>, vector<3x256xbf16>, vector<16x256xf32> -> vector<16x256xf32>
    %234 = arith.addf %228, %233 : vector<16x256xf32>
    %c39 = arith.constant 39 : index
    %c0_234 = arith.constant 0 : index
    %c0_235 = arith.constant 0 : index
    %235 = vector.load %arg1[%c39, %c0_234, %c0_235] : memref<49x3x256xbf16, #tpu.memory_space<vmem>>, vector<1x3x256xbf16>
    %236 = vector.shape_cast %235 : vector<1x3x256xbf16> to vector<3x256xbf16>
    %c39_236 = arith.constant 39 : index
    %c0_237 = arith.constant 0 : index
    %c0_238 = arith.constant 0 : index
    %237 = vector.load %arg2[%c39_236, %c0_237, %c0_238] : memref<49x16x3xbf16, #tpu.memory_space<vmem>>, vector<1x16x3xbf16>
    %238 = vector.shape_cast %237 : vector<1x16x3xbf16> to vector<16x3xbf16>
    %cst_239 = arith.constant dense<0.000000e+00> : vector<16x256xf32>
    %239 = tpu.matmul %238, %236, %cst_239 {dimension_numbers = #tpu.dot_dimension_numbers<[1], [0], [0], [1], [0, 0, 1, 1], [], []>} : vector<16x3xbf16>, vector<3x256xbf16>, vector<16x256xf32> -> vector<16x256xf32>
    %240 = arith.addf %234, %239 : vector<16x256xf32>
    %c40 = arith.constant 40 : index
    %c0_240 = arith.constant 0 : index
    %c0_241 = arith.constant 0 : index
    %241 = vector.load %arg1[%c40, %c0_240, %c0_241] : memref<49x3x256xbf16, #tpu.memory_space<vmem>>, vector<1x3x256xbf16>
    %242 = vector.shape_cast %241 : vector<1x3x256xbf16> to vector<3x256xbf16>
    %c40_242 = arith.constant 40 : index
    %c0_243 = arith.constant 0 : index
    %c0_244 = arith.constant 0 : index
    %243 = vector.load %arg2[%c40_242, %c0_243, %c0_244] : memref<49x16x3xbf16, #tpu.memory_space<vmem>>, vector<1x16x3xbf16>
    %244 = vector.shape_cast %243 : vector<1x16x3xbf16> to vector<16x3xbf16>
    %cst_245 = arith.constant dense<0.000000e+00> : vector<16x256xf32>
    %245 = tpu.matmul %244, %242, %cst_245 {dimension_numbers = #tpu.dot_dimension_numbers<[1], [0], [0], [1], [0, 0, 1, 1], [], []>} : vector<16x3xbf16>, vector<3x256xbf16>, vector<16x256xf32> -> vector<16x256xf32>
    %246 = arith.addf %240, %245 : vector<16x256xf32>
    %c41 = arith.constant 41 : index
    %c0_246 = arith.constant 0 : index
    %c0_247 = arith.constant 0 : index
    %247 = vector.load %arg1[%c41, %c0_246, %c0_247] : memref<49x3x256xbf16, #tpu.memory_space<vmem>>, vector<1x3x256xbf16>
    %248 = vector.shape_cast %247 : vector<1x3x256xbf16> to vector<3x256xbf16>
    %c41_248 = arith.constant 41 : index
    %c0_249 = arith.constant 0 : index
    %c0_250 = arith.constant 0 : index
    %249 = vector.load %arg2[%c41_248, %c0_249, %c0_250] : memref<49x16x3xbf16, #tpu.memory_space<vmem>>, vector<1x16x3xbf16>
    %250 = vector.shape_cast %249 : vector<1x16x3xbf16> to vector<16x3xbf16>
    %cst_251 = arith.constant dense<0.000000e+00> : vector<16x256xf32>
    %251 = tpu.matmul %250, %248, %cst_251 {dimension_numbers = #tpu.dot_dimension_numbers<[1], [0], [0], [1], [0, 0, 1, 1], [], []>} : vector<16x3xbf16>, vector<3x256xbf16>, vector<16x256xf32> -> vector<16x256xf32>
    %252 = arith.addf %246, %251 : vector<16x256xf32>
    %c42 = arith.constant 42 : index
    %c0_252 = arith.constant 0 : index
    %c0_253 = arith.constant 0 : index
    %253 = vector.load %arg1[%c42, %c0_252, %c0_253] : memref<49x3x256xbf16, #tpu.memory_space<vmem>>, vector<1x3x256xbf16>
    %254 = vector.shape_cast %253 : vector<1x3x256xbf16> to vector<3x256xbf16>
    %c42_254 = arith.constant 42 : index
    %c0_255 = arith.constant 0 : index
    %c0_256 = arith.constant 0 : index
    %255 = vector.load %arg2[%c42_254, %c0_255, %c0_256] : memref<49x16x3xbf16, #tpu.memory_space<vmem>>, vector<1x16x3xbf16>
    %256 = vector.shape_cast %255 : vector<1x16x3xbf16> to vector<16x3xbf16>
    %cst_257 = arith.constant dense<0.000000e+00> : vector<16x256xf32>
    %257 = tpu.matmul %256, %254, %cst_257 {dimension_numbers = #tpu.dot_dimension_numbers<[1], [0], [0], [1], [0, 0, 1, 1], [], []>} : vector<16x3xbf16>, vector<3x256xbf16>, vector<16x256xf32> -> vector<16x256xf32>
    %258 = arith.addf %252, %257 : vector<16x256xf32>
    %c43 = arith.constant 43 : index
    %c0_258 = arith.constant 0 : index
    %c0_259 = arith.constant 0 : index
    %259 = vector.load %arg1[%c43, %c0_258, %c0_259] : memref<49x3x256xbf16, #tpu.memory_space<vmem>>, vector<1x3x256xbf16>
    %260 = vector.shape_cast %259 : vector<1x3x256xbf16> to vector<3x256xbf16>
    %c43_260 = arith.constant 43 : index
    %c0_261 = arith.constant 0 : index
    %c0_262 = arith.constant 0 : index
    %261 = vector.load %arg2[%c43_260, %c0_261, %c0_262] : memref<49x16x3xbf16, #tpu.memory_space<vmem>>, vector<1x16x3xbf16>
    %262 = vector.shape_cast %261 : vector<1x16x3xbf16> to vector<16x3xbf16>
    %cst_263 = arith.constant dense<0.000000e+00> : vector<16x256xf32>
    %263 = tpu.matmul %262, %260, %cst_263 {dimension_numbers = #tpu.dot_dimension_numbers<[1], [0], [0], [1], [0, 0, 1, 1], [], []>} : vector<16x3xbf16>, vector<3x256xbf16>, vector<16x256xf32> -> vector<16x256xf32>
    %264 = arith.addf %258, %263 : vector<16x256xf32>
    %c44 = arith.constant 44 : index
    %c0_264 = arith.constant 0 : index
    %c0_265 = arith.constant 0 : index
    %265 = vector.load %arg1[%c44, %c0_264, %c0_265] : memref<49x3x256xbf16, #tpu.memory_space<vmem>>, vector<1x3x256xbf16>
    %266 = vector.shape_cast %265 : vector<1x3x256xbf16> to vector<3x256xbf16>
    %c44_266 = arith.constant 44 : index
    %c0_267 = arith.constant 0 : index
    %c0_268 = arith.constant 0 : index
    %267 = vector.load %arg2[%c44_266, %c0_267, %c0_268] : memref<49x16x3xbf16, #tpu.memory_space<vmem>>, vector<1x16x3xbf16>
    %268 = vector.shape_cast %267 : vector<1x16x3xbf16> to vector<16x3xbf16>
    %cst_269 = arith.constant dense<0.000000e+00> : vector<16x256xf32>
    %269 = tpu.matmul %268, %266, %cst_269 {dimension_numbers = #tpu.dot_dimension_numbers<[1], [0], [0], [1], [0, 0, 1, 1], [], []>} : vector<16x3xbf16>, vector<3x256xbf16>, vector<16x256xf32> -> vector<16x256xf32>
    %270 = arith.addf %264, %269 : vector<16x256xf32>
    %c45 = arith.constant 45 : index
    %c0_270 = arith.constant 0 : index
    %c0_271 = arith.constant 0 : index
    %271 = vector.load %arg1[%c45, %c0_270, %c0_271] : memref<49x3x256xbf16, #tpu.memory_space<vmem>>, vector<1x3x256xbf16>
    %272 = vector.shape_cast %271 : vector<1x3x256xbf16> to vector<3x256xbf16>
    %c45_272 = arith.constant 45 : index
    %c0_273 = arith.constant 0 : index
    %c0_274 = arith.constant 0 : index
    %273 = vector.load %arg2[%c45_272, %c0_273, %c0_274] : memref<49x16x3xbf16, #tpu.memory_space<vmem>>, vector<1x16x3xbf16>
    %274 = vector.shape_cast %273 : vector<1x16x3xbf16> to vector<16x3xbf16>
    %cst_275 = arith.constant dense<0.000000e+00> : vector<16x256xf32>
    %275 = tpu.matmul %274, %272, %cst_275 {dimension_numbers = #tpu.dot_dimension_numbers<[1], [0], [0], [1], [0, 0, 1, 1], [], []>} : vector<16x3xbf16>, vector<3x256xbf16>, vector<16x256xf32> -> vector<16x256xf32>
    %276 = arith.addf %270, %275 : vector<16x256xf32>
    %c46 = arith.constant 46 : index
    %c0_276 = arith.constant 0 : index
    %c0_277 = arith.constant 0 : index
    %277 = vector.load %arg1[%c46, %c0_276, %c0_277] : memref<49x3x256xbf16, #tpu.memory_space<vmem>>, vector<1x3x256xbf16>
    %278 = vector.shape_cast %277 : vector<1x3x256xbf16> to vector<3x256xbf16>
    %c46_278 = arith.constant 46 : index
    %c0_279 = arith.constant 0 : index
    %c0_280 = arith.constant 0 : index
    %279 = vector.load %arg2[%c46_278, %c0_279, %c0_280] : memref<49x16x3xbf16, #tpu.memory_space<vmem>>, vector<1x16x3xbf16>
    %280 = vector.shape_cast %279 : vector<1x16x3xbf16> to vector<16x3xbf16>
    %cst_281 = arith.constant dense<0.000000e+00> : vector<16x256xf32>
    %281 = tpu.matmul %280, %278, %cst_281 {dimension_numbers = #tpu.dot_dimension_numbers<[1], [0], [0], [1], [0, 0, 1, 1], [], []>} : vector<16x3xbf16>, vector<3x256xbf16>, vector<16x256xf32> -> vector<16x256xf32>
    %282 = arith.addf %276, %281 : vector<16x256xf32>
    %c47 = arith.constant 47 : index
    %c0_282 = arith.constant 0 : index
    %c0_283 = arith.constant 0 : index
    %283 = vector.load %arg1[%c47, %c0_282, %c0_283] : memref<49x3x256xbf16, #tpu.memory_space<vmem>>, vector<1x3x256xbf16>
    %284 = vector.shape_cast %283 : vector<1x3x256xbf16> to vector<3x256xbf16>
    %c47_284 = arith.constant 47 : index
    %c0_285 = arith.constant 0 : index
    %c0_286 = arith.constant 0 : index
    %285 = vector.load %arg2[%c47_284, %c0_285, %c0_286] : memref<49x16x3xbf16, #tpu.memory_space<vmem>>, vector<1x16x3xbf16>
    %286 = vector.shape_cast %285 : vector<1x16x3xbf16> to vector<16x3xbf16>
    %cst_287 = arith.constant dense<0.000000e+00> : vector<16x256xf32>
    %287 = tpu.matmul %286, %284, %cst_287 {dimension_numbers = #tpu.dot_dimension_numbers<[1], [0], [0], [1], [0, 0, 1, 1], [], []>} : vector<16x3xbf16>, vector<3x256xbf16>, vector<16x256xf32> -> vector<16x256xf32>
    %288 = arith.addf %282, %287 : vector<16x256xf32>
    %c48 = arith.constant 48 : index
    %c0_288 = arith.constant 0 : index
    %c0_289 = arith.constant 0 : index
    %289 = vector.load %arg1[%c48, %c0_288, %c0_289] : memref<49x3x256xbf16, #tpu.memory_space<vmem>>, vector<1x3x256xbf16>
    %290 = vector.shape_cast %289 : vector<1x3x256xbf16> to vector<3x256xbf16>
    %c48_290 = arith.constant 48 : index
    %c0_291 = arith.constant 0 : index
    %c0_292 = arith.constant 0 : index
    %291 = vector.load %arg2[%c48_290, %c0_291, %c0_292] : memref<49x16x3xbf16, #tpu.memory_space<vmem>>, vector<1x16x3xbf16>
    %292 = vector.shape_cast %291 : vector<1x16x3xbf16> to vector<16x3xbf16>
    %cst_293 = arith.constant dense<0.000000e+00> : vector<16x256xf32>
    %293 = tpu.matmul %292, %290, %cst_293 {dimension_numbers = #tpu.dot_dimension_numbers<[1], [0], [0], [1], [0, 0, 1, 1], [], []>} : vector<16x3xbf16>, vector<3x256xbf16>, vector<16x256xf32> -> vector<16x256xf32>
    %294 = arith.addf %288, %293 : vector<16x256xf32>
    %c0_294 = arith.constant 0 : index
    %c0_295 = arith.constant 0 : index
    %295 = vector.load %arg3[%c0_294, %c0_295] : memref<16x1xf32, #tpu.memory_space<vmem>>, vector<16x1xf32>
    %296 = vector.broadcast %295 : vector<16x1xf32> to vector<16x256xf32>
    %297 = arith.mulf %294, %296 : vector<16x256xf32>
    %c0_296 = arith.constant 0 : index
    %c0_297 = arith.constant 0 : index
    %298 = vector.load %arg4[%c0_296, %c0_297] : memref<16x1xf32, #tpu.memory_space<vmem>>, vector<16x1xf32>
    %299 = vector.broadcast %298 : vector<16x1xf32> to vector<16x256xf32>
    %300 = arith.addf %297, %299 : vector<16x256xf32>
    %cst_298 = arith.constant 0.000000e+00 : f32
    %301 = vector.broadcast %cst_298 : f32 to vector<16x256xf32>
    %302 = arith.maximumf %300, %301 : vector<16x256xf32>
    %303 = arith.truncf %302 : vector<16x256xf32> to vector<16x256xbf16>
    %c0_299 = arith.constant 0 : index
    %c0_300 = arith.constant 0 : index
    %304 = vector.load %arg5[%c0_299, %c0_300] : memref<16x256xbf16, #tpu.memory_space<vmem>>, vector<16x256xbf16>
    tpu.vector_store %arg5[%c0_299, %c0_300], %303 {strides = array<i32>} : memref<16x256xbf16, #tpu.memory_space<vmem>>, vector<16x256xbf16>,
    return
  }
  func.func @transform_0(%arg0: i32) -> (i32, i32, i32) {
    %c0_i32 = arith.constant 0 : i32
    %c0_i32_0 = arith.constant 0 : i32
    %c0_i32_1 = arith.constant 0 : i32
    return %c0_i32, %c0_i32_0, %arg0 : i32, i32, i32
  }
  func.func @transform_1(%arg0: i32) -> (i32, i32, i32) {
    %c0_i32 = arith.constant 0 : i32
    %c0_i32_0 = arith.constant 0 : i32
    %c0_i32_1 = arith.constant 0 : i32
    %c0_i32_2 = arith.constant 0 : i32
    return %c0_i32, %c0_i32_0, %c0_i32_1 : i32, i32, i32
  }
  func.func @transform_2(%arg0: i32) -> (i32, i32) {
    %c0_i32 = arith.constant 0 : i32
    %c0_i32_0 = arith.constant 0 : i32
    %c0_i32_1 = arith.constant 0 : i32
    return %c0_i32, %c0_i32_0 : i32, i32
  }
  func.func @transform_3(%arg0: i32) -> (i32, i32) {
    %c0_i32 = arith.constant 0 : i32
    %c0_i32_0 = arith.constant 0 : i32
    %c0_i32_1 = arith.constant 0 : i32
    return %c0_i32, %c0_i32_0 : i32, i32
  }
  func.func @transform_4(%arg0: i32) -> (i32, i32) {
    %c0_i32 = arith.constant 0 : i32
    %c0_i32_0 = arith.constant 0 : i32
    return %c0_i32, %arg0 : i32, i32
  }
}

module attributes {stable_mosaic.version = 11 : i64} {
  func.func @_max_pool_kernel(%arg0: i32, %arg1: memref<9x16x128xbf16, #tpu.memory_space<vmem>>, %arg2: memref<16x128xbf16, #tpu.memory_space<vmem>>) attributes {dimension_semantics = [#tpu.dimension_semantics<parallel>], iteration_bounds = array<i64: 1>, scalar_prefetch = 0 : i64, scratch_operands = 0 : i64, tpu.core_type = #tpu.core_type<tc>, window_params = [{transform_indices = @transform_0, window_bounds = array<i64: 9, 16, 128>}, {transform_indices = @transform_1, window_bounds = array<i64: 16, 128>}]} {
    %c0 = arith.constant 0 : index
    %c0_0 = arith.constant 0 : index
    %c0_1 = arith.constant 0 : index
    %0 = vector.load %arg1[%c0, %c0_0, %c0_1] : memref<9x16x128xbf16, #tpu.memory_space<vmem>>, vector<9x16x128xbf16>
    %cst = arith.constant dense<0xFF80> : vector<16x128xbf16>
    %1 = vector.multi_reduction <maximumf>, %0, %cst [0] : vector<9x16x128xbf16> to vector<16x128xbf16>
    %c0_2 = arith.constant 0 : index
    %c0_3 = arith.constant 0 : index
    %2 = vector.load %arg2[%c0_2, %c0_3] : memref<16x128xbf16, #tpu.memory_space<vmem>>, vector<16x128xbf16>
    tpu.vector_store %arg2[%c0_2, %c0_3], %1 {strides = array<i32>} : memref<16x128xbf16, #tpu.memory_space<vmem>>, vector<16x128xbf16>,
    return
  }
  func.func @transform_0(%arg0: i32) -> (i32, i32, i32) {
    %c0_i32 = arith.constant 0 : i32
    %c0_i32_0 = arith.constant 0 : i32
    %c0_i32_1 = arith.constant 0 : i32
    return %c0_i32, %c0_i32_0, %arg0 : i32, i32, i32
  }
  func.func @transform_1(%arg0: i32) -> (i32, i32) {
    %c0_i32 = arith.constant 0 : i32
    %c0_i32_0 = arith.constant 0 : i32
    return %c0_i32, %arg0 : i32, i32
  }
}

module attributes {stable_mosaic.version = 11 : i64} {
  func.func @kernel(%arg0: i32, %arg1: memref<1x16x128xbf16, #tpu.memory_space<vmem>>, %arg2: memref<1x32x16xbf16, #tpu.memory_space<vmem>>, %arg3: memref<16x1xf32, #tpu.memory_space<vmem>>, %arg4: memref<16x1xf32, #tpu.memory_space<vmem>>, %arg5: memref<32x1xf32, #tpu.memory_space<vmem>>, %arg6: memref<32x1xf32, #tpu.memory_space<vmem>>, %arg7: memref<32x128xbf16, #tpu.memory_space<vmem>>) attributes {dimension_semantics = [#tpu.dimension_semantics<parallel>], iteration_bounds = array<i64: 1>, scalar_prefetch = 0 : i64, scratch_operands = 0 : i64, tpu.core_type = #tpu.core_type<tc>, window_params = [{transform_indices = @transform_0, window_bounds = array<i64: 1, 16, 128>}, {pipeline_mode = #tpu.pipeline_mode<synchronous>, transform_indices = @transform_1, window_bounds = array<i64: 1, 32, 16>}, {pipeline_mode = #tpu.pipeline_mode<synchronous>, transform_indices = @transform_2, window_bounds = array<i64: 16, 1>}, {pipeline_mode = #tpu.pipeline_mode<synchronous>, transform_indices = @transform_3, window_bounds = array<i64: 16, 1>}, {pipeline_mode = #tpu.pipeline_mode<synchronous>, transform_indices = @transform_4, window_bounds = array<i64: 32, 1>}, {pipeline_mode = #tpu.pipeline_mode<synchronous>, transform_indices = @transform_5, window_bounds = array<i64: 32, 1>}, {transform_indices = @transform_6, window_bounds = array<i64: 32, 128>}]} {
    %cst = arith.constant 0.000000e+00 : f32
    %0 = vector.broadcast %cst : f32 to vector<32x128xf32>
    %c0 = arith.constant 0 : index
    %c0_0 = arith.constant 0 : index
    %c0_1 = arith.constant 0 : index
    %1 = vector.load %arg1[%c0, %c0_0, %c0_1] : memref<1x16x128xbf16, #tpu.memory_space<vmem>>, vector<1x16x128xbf16>
    %2 = vector.shape_cast %1 : vector<1x16x128xbf16> to vector<16x128xbf16>
    %3 = arith.extf %2 : vector<16x128xbf16> to vector<16x128xf32>
    %c0_2 = arith.constant 0 : index
    %c0_3 = arith.constant 0 : index
    %4 = vector.load %arg3[%c0_2, %c0_3] : memref<16x1xf32, #tpu.memory_space<vmem>>, vector<16x1xf32>
    %5 = vector.broadcast %4 : vector<16x1xf32> to vector<16x128xf32>
    %6 = arith.mulf %3, %5 : vector<16x128xf32>
    %c0_4 = arith.constant 0 : index
    %c0_5 = arith.constant 0 : index
    %7 = vector.load %arg4[%c0_4, %c0_5] : memref<16x1xf32, #tpu.memory_space<vmem>>, vector<16x1xf32>
    %8 = vector.broadcast %7 : vector<16x1xf32> to vector<16x128xf32>
    %9 = arith.addf %6, %8 : vector<16x128xf32>
    %cst_6 = arith.constant 0.000000e+00 : f32
    %10 = vector.broadcast %cst_6 : f32 to vector<16x128xf32>
    %11 = arith.maximumf %9, %10 : vector<16x128xf32>
    %12 = arith.truncf %11 : vector<16x128xf32> to vector<16x128xbf16>
    %c0_7 = arith.constant 0 : index
    %c0_8 = arith.constant 0 : index
    %c0_9 = arith.constant 0 : index
    %13 = vector.load %arg2[%c0_7, %c0_8, %c0_9] : memref<1x32x16xbf16, #tpu.memory_space<vmem>>, vector<1x32x16xbf16>
    %14 = vector.shape_cast %13 : vector<1x32x16xbf16> to vector<32x16xbf16>
    %cst_10 = arith.constant dense<0.000000e+00> : vector<32x128xf32>
    %15 = tpu.matmul %14, %12, %cst_10 {dimension_numbers = #tpu.dot_dimension_numbers<[1], [0], [0], [1], [0, 0, 1, 1], [], []>} : vector<32x16xbf16>, vector<16x128xbf16>, vector<32x128xf32> -> vector<32x128xf32>
    %16 = arith.addf %0, %15 : vector<32x128xf32>
    %c0_11 = arith.constant 0 : index
    %c0_12 = arith.constant 0 : index
    %17 = vector.load %arg5[%c0_11, %c0_12] : memref<32x1xf32, #tpu.memory_space<vmem>>, vector<32x1xf32>
    %18 = vector.broadcast %17 : vector<32x1xf32> to vector<32x128xf32>
    %19 = arith.mulf %16, %18 : vector<32x128xf32>
    %c0_13 = arith.constant 0 : index
    %c0_14 = arith.constant 0 : index
    %20 = vector.load %arg6[%c0_13, %c0_14] : memref<32x1xf32, #tpu.memory_space<vmem>>, vector<32x1xf32>
    %21 = vector.broadcast %20 : vector<32x1xf32> to vector<32x128xf32>
    %22 = arith.addf %19, %21 : vector<32x128xf32>
    %cst_15 = arith.constant 0.000000e+00 : f32
    %23 = vector.broadcast %cst_15 : f32 to vector<32x128xf32>
    %24 = arith.maximumf %22, %23 : vector<32x128xf32>
    %25 = arith.truncf %24 : vector<32x128xf32> to vector<32x128xbf16>
    %c0_16 = arith.constant 0 : index
    %c0_17 = arith.constant 0 : index
    %26 = vector.load %arg7[%c0_16, %c0_17] : memref<32x128xbf16, #tpu.memory_space<vmem>>, vector<32x128xbf16>
    tpu.vector_store %arg7[%c0_16, %c0_17], %25 {strides = array<i32>} : memref<32x128xbf16, #tpu.memory_space<vmem>>, vector<32x128xbf16>,
    return
  }
  func.func @transform_0(%arg0: i32) -> (i32, i32, i32) {
    %c0_i32 = arith.constant 0 : i32
    %c0_i32_0 = arith.constant 0 : i32
    %c0_i32_1 = arith.constant 0 : i32
    return %c0_i32, %c0_i32_0, %arg0 : i32, i32, i32
  }
  func.func @transform_1(%arg0: i32) -> (i32, i32, i32) {
    %c0_i32 = arith.constant 0 : i32
    %c0_i32_0 = arith.constant 0 : i32
    %c0_i32_1 = arith.constant 0 : i32
    %c0_i32_2 = arith.constant 0 : i32
    return %c0_i32, %c0_i32_0, %c0_i32_1 : i32, i32, i32
  }
  func.func @transform_2(%arg0: i32) -> (i32, i32) {
    %c0_i32 = arith.constant 0 : i32
    %c0_i32_0 = arith.constant 0 : i32
    %c0_i32_1 = arith.constant 0 : i32
    return %c0_i32, %c0_i32_0 : i32, i32
  }
  func.func @transform_3(%arg0: i32) -> (i32, i32) {
    %c0_i32 = arith.constant 0 : i32
    %c0_i32_0 = arith.constant 0 : i32
    %c0_i32_1 = arith.constant 0 : i32
    return %c0_i32, %c0_i32_0 : i32, i32
  }
  func.func @transform_4(%arg0: i32) -> (i32, i32) {
    %c0_i32 = arith.constant 0 : i32
    %c0_i32_0 = arith.constant 0 : i32
    %c0_i32_1 = arith.constant 0 : i32
    return %c0_i32, %c0_i32_0 : i32, i32
  }
  func.func @transform_5(%arg0: i32) -> (i32, i32) {
    %c0_i32 = arith.constant 0 : i32
    %c0_i32_0 = arith.constant 0 : i32
    %c0_i32_1 = arith.constant 0 : i32
    return %c0_i32, %c0_i32_0 : i32, i32
  }
  func.func @transform_6(%arg0: i32) -> (i32, i32) {
    %c0_i32 = arith.constant 0 : i32
    %c0_i32_0 = arith.constant 0 : i32
    return %c0_i32, %arg0 : i32, i32
  }
}

module attributes {stable_mosaic.version = 11 : i64} {
  func.func @kernel(%arg0: i32, %arg1: memref<9x32x128xbf16, #tpu.memory_space<vmem>>, %arg2: memref<9x8x32xbf16, #tpu.memory_space<vmem>>, %arg3: memref<8x128xbf16, #tpu.memory_space<vmem>>) attributes {dimension_semantics = [#tpu.dimension_semantics<parallel>], iteration_bounds = array<i64: 1>, scalar_prefetch = 0 : i64, scratch_operands = 0 : i64, tpu.core_type = #tpu.core_type<tc>, window_params = [{transform_indices = @transform_0, window_bounds = array<i64: 9, 32, 128>}, {pipeline_mode = #tpu.pipeline_mode<synchronous>, transform_indices = @transform_1, window_bounds = array<i64: 9, 8, 32>}, {transform_indices = @transform_2, window_bounds = array<i64: 8, 128>}]} {
    %cst = arith.constant 0.000000e+00 : f32
    %0 = vector.broadcast %cst : f32 to vector<8x128xf32>
    %c0 = arith.constant 0 : index
    %c0_0 = arith.constant 0 : index
    %c0_1 = arith.constant 0 : index
    %1 = vector.load %arg1[%c0, %c0_0, %c0_1] : memref<9x32x128xbf16, #tpu.memory_space<vmem>>, vector<1x32x128xbf16>
    %2 = vector.shape_cast %1 : vector<1x32x128xbf16> to vector<32x128xbf16>
    %c0_2 = arith.constant 0 : index
    %c0_3 = arith.constant 0 : index
    %c0_4 = arith.constant 0 : index
    %3 = vector.load %arg2[%c0_2, %c0_3, %c0_4] : memref<9x8x32xbf16, #tpu.memory_space<vmem>>, vector<1x8x32xbf16>
    %4 = vector.shape_cast %3 : vector<1x8x32xbf16> to vector<8x32xbf16>
    %cst_5 = arith.constant dense<0.000000e+00> : vector<8x128xf32>
    %5 = tpu.matmul %4, %2, %cst_5 {dimension_numbers = #tpu.dot_dimension_numbers<[1], [0], [0], [1], [0, 0, 1, 1], [], []>} : vector<8x32xbf16>, vector<32x128xbf16>, vector<8x128xf32> -> vector<8x128xf32>
    %6 = arith.addf %0, %5 : vector<8x128xf32>
    %c1 = arith.constant 1 : index
    %c0_6 = arith.constant 0 : index
    %c0_7 = arith.constant 0 : index
    %7 = vector.load %arg1[%c1, %c0_6, %c0_7] : memref<9x32x128xbf16, #tpu.memory_space<vmem>>, vector<1x32x128xbf16>
    %8 = vector.shape_cast %7 : vector<1x32x128xbf16> to vector<32x128xbf16>
    %c1_8 = arith.constant 1 : index
    %c0_9 = arith.constant 0 : index
    %c0_10 = arith.constant 0 : index
    %9 = vector.load %arg2[%c1_8, %c0_9, %c0_10] : memref<9x8x32xbf16, #tpu.memory_space<vmem>>, vector<1x8x32xbf16>
    %10 = vector.shape_cast %9 : vector<1x8x32xbf16> to vector<8x32xbf16>
    %cst_11 = arith.constant dense<0.000000e+00> : vector<8x128xf32>
    %11 = tpu.matmul %10, %8, %cst_11 {dimension_numbers = #tpu.dot_dimension_numbers<[1], [0], [0], [1], [0, 0, 1, 1], [], []>} : vector<8x32xbf16>, vector<32x128xbf16>, vector<8x128xf32> -> vector<8x128xf32>
    %12 = arith.addf %6, %11 : vector<8x128xf32>
    %c2 = arith.constant 2 : index
    %c0_12 = arith.constant 0 : index
    %c0_13 = arith.constant 0 : index
    %13 = vector.load %arg1[%c2, %c0_12, %c0_13] : memref<9x32x128xbf16, #tpu.memory_space<vmem>>, vector<1x32x128xbf16>
    %14 = vector.shape_cast %13 : vector<1x32x128xbf16> to vector<32x128xbf16>
    %c2_14 = arith.constant 2 : index
    %c0_15 = arith.constant 0 : index
    %c0_16 = arith.constant 0 : index
    %15 = vector.load %arg2[%c2_14, %c0_15, %c0_16] : memref<9x8x32xbf16, #tpu.memory_space<vmem>>, vector<1x8x32xbf16>
    %16 = vector.shape_cast %15 : vector<1x8x32xbf16> to vector<8x32xbf16>
    %cst_17 = arith.constant dense<0.000000e+00> : vector<8x128xf32>
    %17 = tpu.matmul %16, %14, %cst_17 {dimension_numbers = #tpu.dot_dimension_numbers<[1], [0], [0], [1], [0, 0, 1, 1], [], []>} : vector<8x32xbf16>, vector<32x128xbf16>, vector<8x128xf32> -> vector<8x128xf32>
    %18 = arith.addf %12, %17 : vector<8x128xf32>
    %c3 = arith.constant 3 : index
    %c0_18 = arith.constant 0 : index
    %c0_19 = arith.constant 0 : index
    %19 = vector.load %arg1[%c3, %c0_18, %c0_19] : memref<9x32x128xbf16, #tpu.memory_space<vmem>>, vector<1x32x128xbf16>
    %20 = vector.shape_cast %19 : vector<1x32x128xbf16> to vector<32x128xbf16>
    %c3_20 = arith.constant 3 : index
    %c0_21 = arith.constant 0 : index
    %c0_22 = arith.constant 0 : index
    %21 = vector.load %arg2[%c3_20, %c0_21, %c0_22] : memref<9x8x32xbf16, #tpu.memory_space<vmem>>, vector<1x8x32xbf16>
    %22 = vector.shape_cast %21 : vector<1x8x32xbf16> to vector<8x32xbf16>
    %cst_23 = arith.constant dense<0.000000e+00> : vector<8x128xf32>
    %23 = tpu.matmul %22, %20, %cst_23 {dimension_numbers = #tpu.dot_dimension_numbers<[1], [0], [0], [1], [0, 0, 1, 1], [], []>} : vector<8x32xbf16>, vector<32x128xbf16>, vector<8x128xf32> -> vector<8x128xf32>
    %24 = arith.addf %18, %23 : vector<8x128xf32>
    %c4 = arith.constant 4 : index
    %c0_24 = arith.constant 0 : index
    %c0_25 = arith.constant 0 : index
    %25 = vector.load %arg1[%c4, %c0_24, %c0_25] : memref<9x32x128xbf16, #tpu.memory_space<vmem>>, vector<1x32x128xbf16>
    %26 = vector.shape_cast %25 : vector<1x32x128xbf16> to vector<32x128xbf16>
    %c4_26 = arith.constant 4 : index
    %c0_27 = arith.constant 0 : index
    %c0_28 = arith.constant 0 : index
    %27 = vector.load %arg2[%c4_26, %c0_27, %c0_28] : memref<9x8x32xbf16, #tpu.memory_space<vmem>>, vector<1x8x32xbf16>
    %28 = vector.shape_cast %27 : vector<1x8x32xbf16> to vector<8x32xbf16>
    %cst_29 = arith.constant dense<0.000000e+00> : vector<8x128xf32>
    %29 = tpu.matmul %28, %26, %cst_29 {dimension_numbers = #tpu.dot_dimension_numbers<[1], [0], [0], [1], [0, 0, 1, 1], [], []>} : vector<8x32xbf16>, vector<32x128xbf16>, vector<8x128xf32> -> vector<8x128xf32>
    %30 = arith.addf %24, %29 : vector<8x128xf32>
    %c5 = arith.constant 5 : index
    %c0_30 = arith.constant 0 : index
    %c0_31 = arith.constant 0 : index
    %31 = vector.load %arg1[%c5, %c0_30, %c0_31] : memref<9x32x128xbf16, #tpu.memory_space<vmem>>, vector<1x32x128xbf16>
    %32 = vector.shape_cast %31 : vector<1x32x128xbf16> to vector<32x128xbf16>
    %c5_32 = arith.constant 5 : index
    %c0_33 = arith.constant 0 : index
    %c0_34 = arith.constant 0 : index
    %33 = vector.load %arg2[%c5_32, %c0_33, %c0_34] : memref<9x8x32xbf16, #tpu.memory_space<vmem>>, vector<1x8x32xbf16>
    %34 = vector.shape_cast %33 : vector<1x8x32xbf16> to vector<8x32xbf16>
    %cst_35 = arith.constant dense<0.000000e+00> : vector<8x128xf32>
    %35 = tpu.matmul %34, %32, %cst_35 {dimension_numbers = #tpu.dot_dimension_numbers<[1], [0], [0], [1], [0, 0, 1, 1], [], []>} : vector<8x32xbf16>, vector<32x128xbf16>, vector<8x128xf32> -> vector<8x128xf32>
    %36 = arith.addf %30, %35 : vector<8x128xf32>
    %c6 = arith.constant 6 : index
    %c0_36 = arith.constant 0 : index
    %c0_37 = arith.constant 0 : index
    %37 = vector.load %arg1[%c6, %c0_36, %c0_37] : memref<9x32x128xbf16, #tpu.memory_space<vmem>>, vector<1x32x128xbf16>
    %38 = vector.shape_cast %37 : vector<1x32x128xbf16> to vector<32x128xbf16>
    %c6_38 = arith.constant 6 : index
    %c0_39 = arith.constant 0 : index
    %c0_40 = arith.constant 0 : index
    %39 = vector.load %arg2[%c6_38, %c0_39, %c0_40] : memref<9x8x32xbf16, #tpu.memory_space<vmem>>, vector<1x8x32xbf16>
    %40 = vector.shape_cast %39 : vector<1x8x32xbf16> to vector<8x32xbf16>
    %cst_41 = arith.constant dense<0.000000e+00> : vector<8x128xf32>
    %41 = tpu.matmul %40, %38, %cst_41 {dimension_numbers = #tpu.dot_dimension_numbers<[1], [0], [0], [1], [0, 0, 1, 1], [], []>} : vector<8x32xbf16>, vector<32x128xbf16>, vector<8x128xf32> -> vector<8x128xf32>
    %42 = arith.addf %36, %41 : vector<8x128xf32>
    %c7 = arith.constant 7 : index
    %c0_42 = arith.constant 0 : index
    %c0_43 = arith.constant 0 : index
    %43 = vector.load %arg1[%c7, %c0_42, %c0_43] : memref<9x32x128xbf16, #tpu.memory_space<vmem>>, vector<1x32x128xbf16>
    %44 = vector.shape_cast %43 : vector<1x32x128xbf16> to vector<32x128xbf16>
    %c7_44 = arith.constant 7 : index
    %c0_45 = arith.constant 0 : index
    %c0_46 = arith.constant 0 : index
    %45 = vector.load %arg2[%c7_44, %c0_45, %c0_46] : memref<9x8x32xbf16, #tpu.memory_space<vmem>>, vector<1x8x32xbf16>
    %46 = vector.shape_cast %45 : vector<1x8x32xbf16> to vector<8x32xbf16>
    %cst_47 = arith.constant dense<0.000000e+00> : vector<8x128xf32>
    %47 = tpu.matmul %46, %44, %cst_47 {dimension_numbers = #tpu.dot_dimension_numbers<[1], [0], [0], [1], [0, 0, 1, 1], [], []>} : vector<8x32xbf16>, vector<32x128xbf16>, vector<8x128xf32> -> vector<8x128xf32>
    %48 = arith.addf %42, %47 : vector<8x128xf32>
    %c8 = arith.constant 8 : index
    %c0_48 = arith.constant 0 : index
    %c0_49 = arith.constant 0 : index
    %49 = vector.load %arg1[%c8, %c0_48, %c0_49] : memref<9x32x128xbf16, #tpu.memory_space<vmem>>, vector<1x32x128xbf16>
    %50 = vector.shape_cast %49 : vector<1x32x128xbf16> to vector<32x128xbf16>
    %c8_50 = arith.constant 8 : index
    %c0_51 = arith.constant 0 : index
    %c0_52 = arith.constant 0 : index
    %51 = vector.load %arg2[%c8_50, %c0_51, %c0_52] : memref<9x8x32xbf16, #tpu.memory_space<vmem>>, vector<1x8x32xbf16>
    %52 = vector.shape_cast %51 : vector<1x8x32xbf16> to vector<8x32xbf16>
    %cst_53 = arith.constant dense<0.000000e+00> : vector<8x128xf32>
    %53 = tpu.matmul %52, %50, %cst_53 {dimension_numbers = #tpu.dot_dimension_numbers<[1], [0], [0], [1], [0, 0, 1, 1], [], []>} : vector<8x32xbf16>, vector<32x128xbf16>, vector<8x128xf32> -> vector<8x128xf32>
    %54 = arith.addf %48, %53 : vector<8x128xf32>
    %55 = arith.truncf %54 : vector<8x128xf32> to vector<8x128xbf16>
    %c0_54 = arith.constant 0 : index
    %c0_55 = arith.constant 0 : index
    %56 = vector.load %arg3[%c0_54, %c0_55] : memref<8x128xbf16, #tpu.memory_space<vmem>>, vector<8x128xbf16>
    tpu.vector_store %arg3[%c0_54, %c0_55], %55 {strides = array<i32>} : memref<8x128xbf16, #tpu.memory_space<vmem>>, vector<8x128xbf16>,
    return
  }
  func.func @transform_0(%arg0: i32) -> (i32, i32, i32) {
    %c0_i32 = arith.constant 0 : i32
    %c0_i32_0 = arith.constant 0 : i32
    %c0_i32_1 = arith.constant 0 : i32
    return %c0_i32, %c0_i32_0, %arg0 : i32, i32, i32
  }
  func.func @transform_1(%arg0: i32) -> (i32, i32, i32) {
    %c0_i32 = arith.constant 0 : i32
    %c0_i32_0 = arith.constant 0 : i32
    %c0_i32_1 = arith.constant 0 : i32
    %c0_i32_2 = arith.constant 0 : i32
    return %c0_i32, %c0_i32_0, %c0_i32_1 : i32, i32, i32
  }
  func.func @transform_2(%arg0: i32) -> (i32, i32) {
    %c0_i32 = arith.constant 0 : i32
    %c0_i32_0 = arith.constant 0 : i32
    return %c0_i32, %arg0 : i32, i32
  }
}

module attributes {stable_mosaic.version = 11 : i64} {
  func.func @kernel(%arg0: i32, %arg1: memref<1x24x128xbf16, #tpu.memory_space<vmem>>, %arg2: memref<1x32x24xbf16, #tpu.memory_space<vmem>>, %arg3: memref<24x1xf32, #tpu.memory_space<vmem>>, %arg4: memref<24x1xf32, #tpu.memory_space<vmem>>, %arg5: memref<32x1xf32, #tpu.memory_space<vmem>>, %arg6: memref<32x1xf32, #tpu.memory_space<vmem>>, %arg7: memref<32x128xbf16, #tpu.memory_space<vmem>>) attributes {dimension_semantics = [#tpu.dimension_semantics<parallel>], iteration_bounds = array<i64: 1>, scalar_prefetch = 0 : i64, scratch_operands = 0 : i64, tpu.core_type = #tpu.core_type<tc>, window_params = [{transform_indices = @transform_0, window_bounds = array<i64: 1, 24, 128>}, {pipeline_mode = #tpu.pipeline_mode<synchronous>, transform_indices = @transform_1, window_bounds = array<i64: 1, 32, 24>}, {pipeline_mode = #tpu.pipeline_mode<synchronous>, transform_indices = @transform_2, window_bounds = array<i64: 24, 1>}, {pipeline_mode = #tpu.pipeline_mode<synchronous>, transform_indices = @transform_3, window_bounds = array<i64: 24, 1>}, {pipeline_mode = #tpu.pipeline_mode<synchronous>, transform_indices = @transform_4, window_bounds = array<i64: 32, 1>}, {pipeline_mode = #tpu.pipeline_mode<synchronous>, transform_indices = @transform_5, window_bounds = array<i64: 32, 1>}, {transform_indices = @transform_6, window_bounds = array<i64: 32, 128>}]} {
    %cst = arith.constant 0.000000e+00 : f32
    %0 = vector.broadcast %cst : f32 to vector<32x128xf32>
    %c0 = arith.constant 0 : index
    %c0_0 = arith.constant 0 : index
    %c0_1 = arith.constant 0 : index
    %1 = vector.load %arg1[%c0, %c0_0, %c0_1] : memref<1x24x128xbf16, #tpu.memory_space<vmem>>, vector<1x24x128xbf16>
    %2 = vector.shape_cast %1 : vector<1x24x128xbf16> to vector<24x128xbf16>
    %3 = arith.extf %2 : vector<24x128xbf16> to vector<24x128xf32>
    %c0_2 = arith.constant 0 : index
    %c0_3 = arith.constant 0 : index
    %4 = vector.load %arg3[%c0_2, %c0_3] : memref<24x1xf32, #tpu.memory_space<vmem>>, vector<24x1xf32>
    %5 = vector.broadcast %4 : vector<24x1xf32> to vector<24x128xf32>
    %6 = arith.mulf %3, %5 : vector<24x128xf32>
    %c0_4 = arith.constant 0 : index
    %c0_5 = arith.constant 0 : index
    %7 = vector.load %arg4[%c0_4, %c0_5] : memref<24x1xf32, #tpu.memory_space<vmem>>, vector<24x1xf32>
    %8 = vector.broadcast %7 : vector<24x1xf32> to vector<24x128xf32>
    %9 = arith.addf %6, %8 : vector<24x128xf32>
    %cst_6 = arith.constant 0.000000e+00 : f32
    %10 = vector.broadcast %cst_6 : f32 to vector<24x128xf32>
    %11 = arith.maximumf %9, %10 : vector<24x128xf32>
    %12 = arith.truncf %11 : vector<24x128xf32> to vector<24x128xbf16>
    %c0_7 = arith.constant 0 : index
    %c0_8 = arith.constant 0 : index
    %c0_9 = arith.constant 0 : index
    %13 = vector.load %arg2[%c0_7, %c0_8, %c0_9] : memref<1x32x24xbf16, #tpu.memory_space<vmem>>, vector<1x32x24xbf16>
    %14 = vector.shape_cast %13 : vector<1x32x24xbf16> to vector<32x24xbf16>
    %cst_10 = arith.constant dense<0.000000e+00> : vector<32x128xf32>
    %15 = tpu.matmul %14, %12, %cst_10 {dimension_numbers = #tpu.dot_dimension_numbers<[1], [0], [0], [1], [0, 0, 1, 1], [], []>} : vector<32x24xbf16>, vector<24x128xbf16>, vector<32x128xf32> -> vector<32x128xf32>
    %16 = arith.addf %0, %15 : vector<32x128xf32>
    %c0_11 = arith.constant 0 : index
    %c0_12 = arith.constant 0 : index
    %17 = vector.load %arg5[%c0_11, %c0_12] : memref<32x1xf32, #tpu.memory_space<vmem>>, vector<32x1xf32>
    %18 = vector.broadcast %17 : vector<32x1xf32> to vector<32x128xf32>
    %19 = arith.mulf %16, %18 : vector<32x128xf32>
    %c0_13 = arith.constant 0 : index
    %c0_14 = arith.constant 0 : index
    %20 = vector.load %arg6[%c0_13, %c0_14] : memref<32x1xf32, #tpu.memory_space<vmem>>, vector<32x1xf32>
    %21 = vector.broadcast %20 : vector<32x1xf32> to vector<32x128xf32>
    %22 = arith.addf %19, %21 : vector<32x128xf32>
    %cst_15 = arith.constant 0.000000e+00 : f32
    %23 = vector.broadcast %cst_15 : f32 to vector<32x128xf32>
    %24 = arith.maximumf %22, %23 : vector<32x128xf32>
    %25 = arith.truncf %24 : vector<32x128xf32> to vector<32x128xbf16>
    %c0_16 = arith.constant 0 : index
    %c0_17 = arith.constant 0 : index
    %26 = vector.load %arg7[%c0_16, %c0_17] : memref<32x128xbf16, #tpu.memory_space<vmem>>, vector<32x128xbf16>
    tpu.vector_store %arg7[%c0_16, %c0_17], %25 {strides = array<i32>} : memref<32x128xbf16, #tpu.memory_space<vmem>>, vector<32x128xbf16>,
    return
  }
  func.func @transform_0(%arg0: i32) -> (i32, i32, i32) {
    %c0_i32 = arith.constant 0 : i32
    %c0_i32_0 = arith.constant 0 : i32
    %c0_i32_1 = arith.constant 0 : i32
    return %c0_i32, %c0_i32_0, %arg0 : i32, i32, i32
  }
  func.func @transform_1(%arg0: i32) -> (i32, i32, i32) {
    %c0_i32 = arith.constant 0 : i32
    %c0_i32_0 = arith.constant 0 : i32
    %c0_i32_1 = arith.constant 0 : i32
    %c0_i32_2 = arith.constant 0 : i32
    return %c0_i32, %c0_i32_0, %c0_i32_1 : i32, i32, i32
  }
  func.func @transform_2(%arg0: i32) -> (i32, i32) {
    %c0_i32 = arith.constant 0 : i32
    %c0_i32_0 = arith.constant 0 : i32
    %c0_i32_1 = arith.constant 0 : i32
    return %c0_i32, %c0_i32_0 : i32, i32
  }
  func.func @transform_3(%arg0: i32) -> (i32, i32) {
    %c0_i32 = arith.constant 0 : i32
    %c0_i32_0 = arith.constant 0 : i32
    %c0_i32_1 = arith.constant 0 : i32
    return %c0_i32, %c0_i32_0 : i32, i32
  }
  func.func @transform_4(%arg0: i32) -> (i32, i32) {
    %c0_i32 = arith.constant 0 : i32
    %c0_i32_0 = arith.constant 0 : i32
    %c0_i32_1 = arith.constant 0 : i32
    return %c0_i32, %c0_i32_0 : i32, i32
  }
  func.func @transform_5(%arg0: i32) -> (i32, i32) {
    %c0_i32 = arith.constant 0 : i32
    %c0_i32_0 = arith.constant 0 : i32
    %c0_i32_1 = arith.constant 0 : i32
    return %c0_i32, %c0_i32_0 : i32, i32
  }
  func.func @transform_6(%arg0: i32) -> (i32, i32) {
    %c0_i32 = arith.constant 0 : i32
    %c0_i32_0 = arith.constant 0 : i32
    return %c0_i32, %arg0 : i32, i32
  }
}

module attributes {stable_mosaic.version = 11 : i64} {
  func.func @kernel(%arg0: i32, %arg1: memref<1x32x128xbf16, #tpu.memory_space<vmem>>, %arg2: memref<1x16x32xbf16, #tpu.memory_space<vmem>>, %arg3: memref<32x1xf32, #tpu.memory_space<vmem>>, %arg4: memref<32x1xf32, #tpu.memory_space<vmem>>, %arg5: memref<16x128xbf16, #tpu.memory_space<vmem>>) attributes {dimension_semantics = [#tpu.dimension_semantics<parallel>], iteration_bounds = array<i64: 1>, scalar_prefetch = 0 : i64, scratch_operands = 0 : i64, tpu.core_type = #tpu.core_type<tc>, window_params = [{transform_indices = @transform_0, window_bounds = array<i64: 1, 32, 128>}, {pipeline_mode = #tpu.pipeline_mode<synchronous>, transform_indices = @transform_1, window_bounds = array<i64: 1, 16, 32>}, {pipeline_mode = #tpu.pipeline_mode<synchronous>, transform_indices = @transform_2, window_bounds = array<i64: 32, 1>}, {pipeline_mode = #tpu.pipeline_mode<synchronous>, transform_indices = @transform_3, window_bounds = array<i64: 32, 1>}, {transform_indices = @transform_4, window_bounds = array<i64: 16, 128>}]} {
    %cst = arith.constant 0.000000e+00 : f32
    %0 = vector.broadcast %cst : f32 to vector<16x128xf32>
    %c0 = arith.constant 0 : index
    %c0_0 = arith.constant 0 : index
    %c0_1 = arith.constant 0 : index
    %1 = vector.load %arg1[%c0, %c0_0, %c0_1] : memref<1x32x128xbf16, #tpu.memory_space<vmem>>, vector<1x32x128xbf16>
    %2 = vector.shape_cast %1 : vector<1x32x128xbf16> to vector<32x128xbf16>
    %3 = arith.extf %2 : vector<32x128xbf16> to vector<32x128xf32>
    %c0_2 = arith.constant 0 : index
    %c0_3 = arith.constant 0 : index
    %4 = vector.load %arg3[%c0_2, %c0_3] : memref<32x1xf32, #tpu.memory_space<vmem>>, vector<32x1xf32>
    %5 = vector.broadcast %4 : vector<32x1xf32> to vector<32x128xf32>
    %6 = arith.mulf %3, %5 : vector<32x128xf32>
    %c0_4 = arith.constant 0 : index
    %c0_5 = arith.constant 0 : index
    %7 = vector.load %arg4[%c0_4, %c0_5] : memref<32x1xf32, #tpu.memory_space<vmem>>, vector<32x1xf32>
    %8 = vector.broadcast %7 : vector<32x1xf32> to vector<32x128xf32>
    %9 = arith.addf %6, %8 : vector<32x128xf32>
    %cst_6 = arith.constant 0.000000e+00 : f32
    %10 = vector.broadcast %cst_6 : f32 to vector<32x128xf32>
    %11 = arith.maximumf %9, %10 : vector<32x128xf32>
    %12 = arith.truncf %11 : vector<32x128xf32> to vector<32x128xbf16>
    %c0_7 = arith.constant 0 : index
    %c0_8 = arith.constant 0 : index
    %c0_9 = arith.constant 0 : index
    %13 = vector.load %arg2[%c0_7, %c0_8, %c0_9] : memref<1x16x32xbf16, #tpu.memory_space<vmem>>, vector<1x16x32xbf16>
    %14 = vector.shape_cast %13 : vector<1x16x32xbf16> to vector<16x32xbf16>
    %cst_10 = arith.constant dense<0.000000e+00> : vector<16x128xf32>
    %15 = tpu.matmul %14, %12, %cst_10 {dimension_numbers = #tpu.dot_dimension_numbers<[1], [0], [0], [1], [0, 0, 1, 1], [], []>} : vector<16x32xbf16>, vector<32x128xbf16>, vector<16x128xf32> -> vector<16x128xf32>
    %16 = arith.addf %0, %15 : vector<16x128xf32>
    %17 = arith.truncf %16 : vector<16x128xf32> to vector<16x128xbf16>
    %c0_11 = arith.constant 0 : index
    %c0_12 = arith.constant 0 : index
    %18 = vector.load %arg5[%c0_11, %c0_12] : memref<16x128xbf16, #tpu.memory_space<vmem>>, vector<16x128xbf16>
    tpu.vector_store %arg5[%c0_11, %c0_12], %17 {strides = array<i32>} : memref<16x128xbf16, #tpu.memory_space<vmem>>, vector<16x128xbf16>,
    return
  }
  func.func @transform_0(%arg0: i32) -> (i32, i32, i32) {
    %c0_i32 = arith.constant 0 : i32
    %c0_i32_0 = arith.constant 0 : i32
    %c0_i32_1 = arith.constant 0 : i32
    return %c0_i32, %c0_i32_0, %arg0 : i32, i32, i32
  }
  func.func @transform_1(%arg0: i32) -> (i32, i32, i32) {
    %c0_i32 = arith.constant 0 : i32
    %c0_i32_0 = arith.constant 0 : i32
    %c0_i32_1 = arith.constant 0 : i32
    %c0_i32_2 = arith.constant 0 : i32
    return %c0_i32, %c0_i32_0, %c0_i32_1 : i32, i32, i32
  }
  func.func @transform_2(%arg0: i32) -> (i32, i32) {
    %c0_i32 = arith.constant 0 : i32
    %c0_i32_0 = arith.constant 0 : i32
    %c0_i32_1 = arith.constant 0 : i32
    return %c0_i32, %c0_i32_0 : i32, i32
  }
  func.func @transform_3(%arg0: i32) -> (i32, i32) {
    %c0_i32 = arith.constant 0 : i32
    %c0_i32_0 = arith.constant 0 : i32
    %c0_i32_1 = arith.constant 0 : i32
    return %c0_i32, %c0_i32_0 : i32, i32
  }
  func.func @transform_4(%arg0: i32) -> (i32, i32) {
    %c0_i32 = arith.constant 0 : i32
    %c0_i32_0 = arith.constant 0 : i32
    return %c0_i32, %arg0 : i32, i32
  }
}

module attributes {stable_mosaic.version = 11 : i64} {
  func.func @_mean_pool_kernel(%arg0: i32, %arg1: memref<4x16x32xbf16, #tpu.memory_space<vmem>>, %arg2: memref<16x32xbf16, #tpu.memory_space<vmem>>) attributes {dimension_semantics = [#tpu.dimension_semantics<parallel>], iteration_bounds = array<i64: 1>, scalar_prefetch = 0 : i64, scratch_operands = 0 : i64, tpu.core_type = #tpu.core_type<tc>, window_params = [{transform_indices = @transform_0, window_bounds = array<i64: 4, 16, 32>}, {transform_indices = @transform_1, window_bounds = array<i64: 16, 32>}]} {
    %c0 = arith.constant 0 : index
    %c0_0 = arith.constant 0 : index
    %c0_1 = arith.constant 0 : index
    %0 = vector.load %arg1[%c0, %c0_0, %c0_1] : memref<4x16x32xbf16, #tpu.memory_space<vmem>>, vector<4x16x32xbf16>
    %1 = arith.extf %0 : vector<4x16x32xbf16> to vector<4x16x32xf32>
    %cst = arith.constant dense<0.000000e+00> : vector<16x32xf32>
    %2 = vector.multi_reduction <add>, %1, %cst [0] : vector<4x16x32xf32> to vector<16x32xf32>
    %cst_2 = arith.constant 4.000000e+00 : f32
    %3 = vector.broadcast %cst_2 : f32 to vector<16x32xf32>
    %4 = arith.divf %2, %3 : vector<16x32xf32>
    %5 = arith.truncf %4 : vector<16x32xf32> to vector<16x32xbf16>
    %c0_3 = arith.constant 0 : index
    %c0_4 = arith.constant 0 : index
    %6 = vector.load %arg2[%c0_3, %c0_4] : memref<16x32xbf16, #tpu.memory_space<vmem>>, vector<16x32xbf16>
    tpu.vector_store %arg2[%c0_3, %c0_4], %5 {strides = array<i32>} : memref<16x32xbf16, #tpu.memory_space<vmem>>, vector<16x32xbf16>,
    return
  }
  func.func @transform_0(%arg0: i32) -> (i32, i32, i32) {
    %c0_i32 = arith.constant 0 : i32
    %c0_i32_0 = arith.constant 0 : i32
    %c0_i32_1 = arith.constant 0 : i32
    return %c0_i32, %c0_i32_0, %arg0 : i32, i32, i32
  }
  func.func @transform_1(%arg0: i32) -> (i32, i32) {
    %c0_i32 = arith.constant 0 : i32
    %c0_i32_0 = arith.constant 0 : i32
    return %c0_i32, %arg0 : i32, i32
  }
}

module attributes {stable_mosaic.version = 11 : i64} {
  func.func @kernel(%arg0: i32, %arg1: memref<1x16x32xbf16, #tpu.memory_space<vmem>>, %arg2: memref<1x32x16xbf16, #tpu.memory_space<vmem>>, %arg3: memref<16x1xf32, #tpu.memory_space<vmem>>, %arg4: memref<16x1xf32, #tpu.memory_space<vmem>>, %arg5: memref<32x1xf32, #tpu.memory_space<vmem>>, %arg6: memref<32x1xf32, #tpu.memory_space<vmem>>, %arg7: memref<32x32xbf16, #tpu.memory_space<vmem>>) attributes {dimension_semantics = [#tpu.dimension_semantics<parallel>], iteration_bounds = array<i64: 1>, scalar_prefetch = 0 : i64, scratch_operands = 0 : i64, tpu.core_type = #tpu.core_type<tc>, window_params = [{transform_indices = @transform_0, window_bounds = array<i64: 1, 16, 32>}, {pipeline_mode = #tpu.pipeline_mode<synchronous>, transform_indices = @transform_1, window_bounds = array<i64: 1, 32, 16>}, {pipeline_mode = #tpu.pipeline_mode<synchronous>, transform_indices = @transform_2, window_bounds = array<i64: 16, 1>}, {pipeline_mode = #tpu.pipeline_mode<synchronous>, transform_indices = @transform_3, window_bounds = array<i64: 16, 1>}, {pipeline_mode = #tpu.pipeline_mode<synchronous>, transform_indices = @transform_4, window_bounds = array<i64: 32, 1>}, {pipeline_mode = #tpu.pipeline_mode<synchronous>, transform_indices = @transform_5, window_bounds = array<i64: 32, 1>}, {transform_indices = @transform_6, window_bounds = array<i64: 32, 32>}]} {
    %cst = arith.constant 0.000000e+00 : f32
    %0 = vector.broadcast %cst : f32 to vector<32x32xf32>
    %c0 = arith.constant 0 : index
    %c0_0 = arith.constant 0 : index
    %c0_1 = arith.constant 0 : index
    %1 = vector.load %arg1[%c0, %c0_0, %c0_1] : memref<1x16x32xbf16, #tpu.memory_space<vmem>>, vector<1x16x32xbf16>
    %2 = vector.shape_cast %1 : vector<1x16x32xbf16> to vector<16x32xbf16>
    %3 = arith.extf %2 : vector<16x32xbf16> to vector<16x32xf32>
    %c0_2 = arith.constant 0 : index
    %c0_3 = arith.constant 0 : index
    %4 = vector.load %arg3[%c0_2, %c0_3] : memref<16x1xf32, #tpu.memory_space<vmem>>, vector<16x1xf32>
    %5 = vector.broadcast %4 : vector<16x1xf32> to vector<16x32xf32>
    %6 = arith.mulf %3, %5 : vector<16x32xf32>
    %c0_4 = arith.constant 0 : index
    %c0_5 = arith.constant 0 : index
    %7 = vector.load %arg4[%c0_4, %c0_5] : memref<16x1xf32, #tpu.memory_space<vmem>>, vector<16x1xf32>
    %8 = vector.broadcast %7 : vector<16x1xf32> to vector<16x32xf32>
    %9 = arith.addf %6, %8 : vector<16x32xf32>
    %cst_6 = arith.constant 0.000000e+00 : f32
    %10 = vector.broadcast %cst_6 : f32 to vector<16x32xf32>
    %11 = arith.maximumf %9, %10 : vector<16x32xf32>
    %12 = arith.truncf %11 : vector<16x32xf32> to vector<16x32xbf16>
    %c0_7 = arith.constant 0 : index
    %c0_8 = arith.constant 0 : index
    %c0_9 = arith.constant 0 : index
    %13 = vector.load %arg2[%c0_7, %c0_8, %c0_9] : memref<1x32x16xbf16, #tpu.memory_space<vmem>>, vector<1x32x16xbf16>
    %14 = vector.shape_cast %13 : vector<1x32x16xbf16> to vector<32x16xbf16>
    %cst_10 = arith.constant dense<0.000000e+00> : vector<32x32xf32>
    %15 = tpu.matmul %14, %12, %cst_10 {dimension_numbers = #tpu.dot_dimension_numbers<[1], [0], [0], [1], [0, 0, 1, 1], [], []>} : vector<32x16xbf16>, vector<16x32xbf16>, vector<32x32xf32> -> vector<32x32xf32>
    %16 = arith.addf %0, %15 : vector<32x32xf32>
    %c0_11 = arith.constant 0 : index
    %c0_12 = arith.constant 0 : index
    %17 = vector.load %arg5[%c0_11, %c0_12] : memref<32x1xf32, #tpu.memory_space<vmem>>, vector<32x1xf32>
    %18 = vector.broadcast %17 : vector<32x1xf32> to vector<32x32xf32>
    %19 = arith.mulf %16, %18 : vector<32x32xf32>
    %c0_13 = arith.constant 0 : index
    %c0_14 = arith.constant 0 : index
    %20 = vector.load %arg6[%c0_13, %c0_14] : memref<32x1xf32, #tpu.memory_space<vmem>>, vector<32x1xf32>
    %21 = vector.broadcast %20 : vector<32x1xf32> to vector<32x32xf32>
    %22 = arith.addf %19, %21 : vector<32x32xf32>
    %cst_15 = arith.constant 0.000000e+00 : f32
    %23 = vector.broadcast %cst_15 : f32 to vector<32x32xf32>
    %24 = arith.maximumf %22, %23 : vector<32x32xf32>
    %25 = arith.truncf %24 : vector<32x32xf32> to vector<32x32xbf16>
    %c0_16 = arith.constant 0 : index
    %c0_17 = arith.constant 0 : index
    %26 = vector.load %arg7[%c0_16, %c0_17] : memref<32x32xbf16, #tpu.memory_space<vmem>>, vector<32x32xbf16>
    tpu.vector_store %arg7[%c0_16, %c0_17], %25 {strides = array<i32>} : memref<32x32xbf16, #tpu.memory_space<vmem>>, vector<32x32xbf16>,
    return
  }
  func.func @transform_0(%arg0: i32) -> (i32, i32, i32) {
    %c0_i32 = arith.constant 0 : i32
    %c0_i32_0 = arith.constant 0 : i32
    %c0_i32_1 = arith.constant 0 : i32
    return %c0_i32, %c0_i32_0, %arg0 : i32, i32, i32
  }
  func.func @transform_1(%arg0: i32) -> (i32, i32, i32) {
    %c0_i32 = arith.constant 0 : i32
    %c0_i32_0 = arith.constant 0 : i32
    %c0_i32_1 = arith.constant 0 : i32
    %c0_i32_2 = arith.constant 0 : i32
    return %c0_i32, %c0_i32_0, %c0_i32_1 : i32, i32, i32
  }
  func.func @transform_2(%arg0: i32) -> (i32, i32) {
    %c0_i32 = arith.constant 0 : i32
    %c0_i32_0 = arith.constant 0 : i32
    %c0_i32_1 = arith.constant 0 : i32
    return %c0_i32, %c0_i32_0 : i32, i32
  }
  func.func @transform_3(%arg0: i32) -> (i32, i32) {
    %c0_i32 = arith.constant 0 : i32
    %c0_i32_0 = arith.constant 0 : i32
    %c0_i32_1 = arith.constant 0 : i32
    return %c0_i32, %c0_i32_0 : i32, i32
  }
  func.func @transform_4(%arg0: i32) -> (i32, i32) {
    %c0_i32 = arith.constant 0 : i32
    %c0_i32_0 = arith.constant 0 : i32
    %c0_i32_1 = arith.constant 0 : i32
    return %c0_i32, %c0_i32_0 : i32, i32
  }
  func.func @transform_5(%arg0: i32) -> (i32, i32) {
    %c0_i32 = arith.constant 0 : i32
    %c0_i32_0 = arith.constant 0 : i32
    %c0_i32_1 = arith.constant 0 : i32
    return %c0_i32, %c0_i32_0 : i32, i32
  }
  func.func @transform_6(%arg0: i32) -> (i32, i32) {
    %c0_i32 = arith.constant 0 : i32
    %c0_i32_0 = arith.constant 0 : i32
    return %c0_i32, %arg0 : i32, i32
  }
}

module attributes {stable_mosaic.version = 11 : i64} {
  func.func @kernel(%arg0: i32, %arg1: memref<9x32x32xbf16, #tpu.memory_space<vmem>>, %arg2: memref<9x8x32xbf16, #tpu.memory_space<vmem>>, %arg3: memref<8x32xbf16, #tpu.memory_space<vmem>>) attributes {dimension_semantics = [#tpu.dimension_semantics<parallel>], iteration_bounds = array<i64: 1>, scalar_prefetch = 0 : i64, scratch_operands = 0 : i64, tpu.core_type = #tpu.core_type<tc>, window_params = [{transform_indices = @transform_0, window_bounds = array<i64: 9, 32, 32>}, {pipeline_mode = #tpu.pipeline_mode<synchronous>, transform_indices = @transform_1, window_bounds = array<i64: 9, 8, 32>}, {transform_indices = @transform_2, window_bounds = array<i64: 8, 32>}]} {
    %cst = arith.constant 0.000000e+00 : f32
    %0 = vector.broadcast %cst : f32 to vector<8x32xf32>
    %c0 = arith.constant 0 : index
    %c0_0 = arith.constant 0 : index
    %c0_1 = arith.constant 0 : index
    %1 = vector.load %arg1[%c0, %c0_0, %c0_1] : memref<9x32x32xbf16, #tpu.memory_space<vmem>>, vector<1x32x32xbf16>
    %2 = vector.shape_cast %1 : vector<1x32x32xbf16> to vector<32x32xbf16>
    %c0_2 = arith.constant 0 : index
    %c0_3 = arith.constant 0 : index
    %c0_4 = arith.constant 0 : index
    %3 = vector.load %arg2[%c0_2, %c0_3, %c0_4] : memref<9x8x32xbf16, #tpu.memory_space<vmem>>, vector<1x8x32xbf16>
    %4 = vector.shape_cast %3 : vector<1x8x32xbf16> to vector<8x32xbf16>
    %cst_5 = arith.constant dense<0.000000e+00> : vector<8x32xf32>
    %5 = tpu.matmul %4, %2, %cst_5 {dimension_numbers = #tpu.dot_dimension_numbers<[1], [0], [0], [1], [0, 0, 1, 1], [], []>} : vector<8x32xbf16>, vector<32x32xbf16>, vector<8x32xf32> -> vector<8x32xf32>
    %6 = arith.addf %0, %5 : vector<8x32xf32>
    %c1 = arith.constant 1 : index
    %c0_6 = arith.constant 0 : index
    %c0_7 = arith.constant 0 : index
    %7 = vector.load %arg1[%c1, %c0_6, %c0_7] : memref<9x32x32xbf16, #tpu.memory_space<vmem>>, vector<1x32x32xbf16>
    %8 = vector.shape_cast %7 : vector<1x32x32xbf16> to vector<32x32xbf16>
    %c1_8 = arith.constant 1 : index
    %c0_9 = arith.constant 0 : index
    %c0_10 = arith.constant 0 : index
    %9 = vector.load %arg2[%c1_8, %c0_9, %c0_10] : memref<9x8x32xbf16, #tpu.memory_space<vmem>>, vector<1x8x32xbf16>
    %10 = vector.shape_cast %9 : vector<1x8x32xbf16> to vector<8x32xbf16>
    %cst_11 = arith.constant dense<0.000000e+00> : vector<8x32xf32>
    %11 = tpu.matmul %10, %8, %cst_11 {dimension_numbers = #tpu.dot_dimension_numbers<[1], [0], [0], [1], [0, 0, 1, 1], [], []>} : vector<8x32xbf16>, vector<32x32xbf16>, vector<8x32xf32> -> vector<8x32xf32>
    %12 = arith.addf %6, %11 : vector<8x32xf32>
    %c2 = arith.constant 2 : index
    %c0_12 = arith.constant 0 : index
    %c0_13 = arith.constant 0 : index
    %13 = vector.load %arg1[%c2, %c0_12, %c0_13] : memref<9x32x32xbf16, #tpu.memory_space<vmem>>, vector<1x32x32xbf16>
    %14 = vector.shape_cast %13 : vector<1x32x32xbf16> to vector<32x32xbf16>
    %c2_14 = arith.constant 2 : index
    %c0_15 = arith.constant 0 : index
    %c0_16 = arith.constant 0 : index
    %15 = vector.load %arg2[%c2_14, %c0_15, %c0_16] : memref<9x8x32xbf16, #tpu.memory_space<vmem>>, vector<1x8x32xbf16>
    %16 = vector.shape_cast %15 : vector<1x8x32xbf16> to vector<8x32xbf16>
    %cst_17 = arith.constant dense<0.000000e+00> : vector<8x32xf32>
    %17 = tpu.matmul %16, %14, %cst_17 {dimension_numbers = #tpu.dot_dimension_numbers<[1], [0], [0], [1], [0, 0, 1, 1], [], []>} : vector<8x32xbf16>, vector<32x32xbf16>, vector<8x32xf32> -> vector<8x32xf32>
    %18 = arith.addf %12, %17 : vector<8x32xf32>
    %c3 = arith.constant 3 : index
    %c0_18 = arith.constant 0 : index
    %c0_19 = arith.constant 0 : index
    %19 = vector.load %arg1[%c3, %c0_18, %c0_19] : memref<9x32x32xbf16, #tpu.memory_space<vmem>>, vector<1x32x32xbf16>
    %20 = vector.shape_cast %19 : vector<1x32x32xbf16> to vector<32x32xbf16>
    %c3_20 = arith.constant 3 : index
    %c0_21 = arith.constant 0 : index
    %c0_22 = arith.constant 0 : index
    %21 = vector.load %arg2[%c3_20, %c0_21, %c0_22] : memref<9x8x32xbf16, #tpu.memory_space<vmem>>, vector<1x8x32xbf16>
    %22 = vector.shape_cast %21 : vector<1x8x32xbf16> to vector<8x32xbf16>
    %cst_23 = arith.constant dense<0.000000e+00> : vector<8x32xf32>
    %23 = tpu.matmul %22, %20, %cst_23 {dimension_numbers = #tpu.dot_dimension_numbers<[1], [0], [0], [1], [0, 0, 1, 1], [], []>} : vector<8x32xbf16>, vector<32x32xbf16>, vector<8x32xf32> -> vector<8x32xf32>
    %24 = arith.addf %18, %23 : vector<8x32xf32>
    %c4 = arith.constant 4 : index
    %c0_24 = arith.constant 0 : index
    %c0_25 = arith.constant 0 : index
    %25 = vector.load %arg1[%c4, %c0_24, %c0_25] : memref<9x32x32xbf16, #tpu.memory_space<vmem>>, vector<1x32x32xbf16>
    %26 = vector.shape_cast %25 : vector<1x32x32xbf16> to vector<32x32xbf16>
    %c4_26 = arith.constant 4 : index
    %c0_27 = arith.constant 0 : index
    %c0_28 = arith.constant 0 : index
    %27 = vector.load %arg2[%c4_26, %c0_27, %c0_28] : memref<9x8x32xbf16, #tpu.memory_space<vmem>>, vector<1x8x32xbf16>
    %28 = vector.shape_cast %27 : vector<1x8x32xbf16> to vector<8x32xbf16>
    %cst_29 = arith.constant dense<0.000000e+00> : vector<8x32xf32>
    %29 = tpu.matmul %28, %26, %cst_29 {dimension_numbers = #tpu.dot_dimension_numbers<[1], [0], [0], [1], [0, 0, 1, 1], [], []>} : vector<8x32xbf16>, vector<32x32xbf16>, vector<8x32xf32> -> vector<8x32xf32>
    %30 = arith.addf %24, %29 : vector<8x32xf32>
    %c5 = arith.constant 5 : index
    %c0_30 = arith.constant 0 : index
    %c0_31 = arith.constant 0 : index
    %31 = vector.load %arg1[%c5, %c0_30, %c0_31] : memref<9x32x32xbf16, #tpu.memory_space<vmem>>, vector<1x32x32xbf16>
    %32 = vector.shape_cast %31 : vector<1x32x32xbf16> to vector<32x32xbf16>
    %c5_32 = arith.constant 5 : index
    %c0_33 = arith.constant 0 : index
    %c0_34 = arith.constant 0 : index
    %33 = vector.load %arg2[%c5_32, %c0_33, %c0_34] : memref<9x8x32xbf16, #tpu.memory_space<vmem>>, vector<1x8x32xbf16>
    %34 = vector.shape_cast %33 : vector<1x8x32xbf16> to vector<8x32xbf16>
    %cst_35 = arith.constant dense<0.000000e+00> : vector<8x32xf32>
    %35 = tpu.matmul %34, %32, %cst_35 {dimension_numbers = #tpu.dot_dimension_numbers<[1], [0], [0], [1], [0, 0, 1, 1], [], []>} : vector<8x32xbf16>, vector<32x32xbf16>, vector<8x32xf32> -> vector<8x32xf32>
    %36 = arith.addf %30, %35 : vector<8x32xf32>
    %c6 = arith.constant 6 : index
    %c0_36 = arith.constant 0 : index
    %c0_37 = arith.constant 0 : index
    %37 = vector.load %arg1[%c6, %c0_36, %c0_37] : memref<9x32x32xbf16, #tpu.memory_space<vmem>>, vector<1x32x32xbf16>
    %38 = vector.shape_cast %37 : vector<1x32x32xbf16> to vector<32x32xbf16>
    %c6_38 = arith.constant 6 : index
    %c0_39 = arith.constant 0 : index
    %c0_40 = arith.constant 0 : index
    %39 = vector.load %arg2[%c6_38, %c0_39, %c0_40] : memref<9x8x32xbf16, #tpu.memory_space<vmem>>, vector<1x8x32xbf16>
    %40 = vector.shape_cast %39 : vector<1x8x32xbf16> to vector<8x32xbf16>
    %cst_41 = arith.constant dense<0.000000e+00> : vector<8x32xf32>
    %41 = tpu.matmul %40, %38, %cst_41 {dimension_numbers = #tpu.dot_dimension_numbers<[1], [0], [0], [1], [0, 0, 1, 1], [], []>} : vector<8x32xbf16>, vector<32x32xbf16>, vector<8x32xf32> -> vector<8x32xf32>
    %42 = arith.addf %36, %41 : vector<8x32xf32>
    %c7 = arith.constant 7 : index
    %c0_42 = arith.constant 0 : index
    %c0_43 = arith.constant 0 : index
    %43 = vector.load %arg1[%c7, %c0_42, %c0_43] : memref<9x32x32xbf16, #tpu.memory_space<vmem>>, vector<1x32x32xbf16>
    %44 = vector.shape_cast %43 : vector<1x32x32xbf16> to vector<32x32xbf16>
    %c7_44 = arith.constant 7 : index
    %c0_45 = arith.constant 0 : index
    %c0_46 = arith.constant 0 : index
    %45 = vector.load %arg2[%c7_44, %c0_45, %c0_46] : memref<9x8x32xbf16, #tpu.memory_space<vmem>>, vector<1x8x32xbf16>
    %46 = vector.shape_cast %45 : vector<1x8x32xbf16> to vector<8x32xbf16>
    %cst_47 = arith.constant dense<0.000000e+00> : vector<8x32xf32>
    %47 = tpu.matmul %46, %44, %cst_47 {dimension_numbers = #tpu.dot_dimension_numbers<[1], [0], [0], [1], [0, 0, 1, 1], [], []>} : vector<8x32xbf16>, vector<32x32xbf16>, vector<8x32xf32> -> vector<8x32xf32>
    %48 = arith.addf %42, %47 : vector<8x32xf32>
    %c8 = arith.constant 8 : index
    %c0_48 = arith.constant 0 : index
    %c0_49 = arith.constant 0 : index
    %49 = vector.load %arg1[%c8, %c0_48, %c0_49] : memref<9x32x32xbf16, #tpu.memory_space<vmem>>, vector<1x32x32xbf16>
    %50 = vector.shape_cast %49 : vector<1x32x32xbf16> to vector<32x32xbf16>
    %c8_50 = arith.constant 8 : index
    %c0_51 = arith.constant 0 : index
    %c0_52 = arith.constant 0 : index
    %51 = vector.load %arg2[%c8_50, %c0_51, %c0_52] : memref<9x8x32xbf16, #tpu.memory_space<vmem>>, vector<1x8x32xbf16>
    %52 = vector.shape_cast %51 : vector<1x8x32xbf16> to vector<8x32xbf16>
    %cst_53 = arith.constant dense<0.000000e+00> : vector<8x32xf32>
    %53 = tpu.matmul %52, %50, %cst_53 {dimension_numbers = #tpu.dot_dimension_numbers<[1], [0], [0], [1], [0, 0, 1, 1], [], []>} : vector<8x32xbf16>, vector<32x32xbf16>, vector<8x32xf32> -> vector<8x32xf32>
    %54 = arith.addf %48, %53 : vector<8x32xf32>
    %55 = arith.truncf %54 : vector<8x32xf32> to vector<8x32xbf16>
    %c0_54 = arith.constant 0 : index
    %c0_55 = arith.constant 0 : index
    %56 = vector.load %arg3[%c0_54, %c0_55] : memref<8x32xbf16, #tpu.memory_space<vmem>>, vector<8x32xbf16>
    tpu.vector_store %arg3[%c0_54, %c0_55], %55 {strides = array<i32>} : memref<8x32xbf16, #tpu.memory_space<vmem>>, vector<8x32xbf16>,
    return
  }
  func.func @transform_0(%arg0: i32) -> (i32, i32, i32) {
    %c0_i32 = arith.constant 0 : i32
    %c0_i32_0 = arith.constant 0 : i32
    %c0_i32_1 = arith.constant 0 : i32
    return %c0_i32, %c0_i32_0, %arg0 : i32, i32, i32
  }
  func.func @transform_1(%arg0: i32) -> (i32, i32, i32) {
    %c0_i32 = arith.constant 0 : i32
    %c0_i32_0 = arith.constant 0 : i32
    %c0_i32_1 = arith.constant 0 : i32
    %c0_i32_2 = arith.constant 0 : i32
    return %c0_i32, %c0_i32_0, %c0_i32_1 : i32, i32, i32
  }
  func.func @transform_2(%arg0: i32) -> (i32, i32) {
    %c0_i32 = arith.constant 0 : i32
    %c0_i32_0 = arith.constant 0 : i32
    return %c0_i32, %arg0 : i32, i32
  }
}

module attributes {stable_mosaic.version = 11 : i64} {
  func.func @kernel(%arg0: i32, %arg1: memref<1x24x32xbf16, #tpu.memory_space<vmem>>, %arg2: memref<1x32x24xbf16, #tpu.memory_space<vmem>>, %arg3: memref<24x1xf32, #tpu.memory_space<vmem>>, %arg4: memref<24x1xf32, #tpu.memory_space<vmem>>, %arg5: memref<32x1xf32, #tpu.memory_space<vmem>>, %arg6: memref<32x1xf32, #tpu.memory_space<vmem>>, %arg7: memref<32x32xbf16, #tpu.memory_space<vmem>>) attributes {dimension_semantics = [#tpu.dimension_semantics<parallel>], iteration_bounds = array<i64: 1>, scalar_prefetch = 0 : i64, scratch_operands = 0 : i64, tpu.core_type = #tpu.core_type<tc>, window_params = [{transform_indices = @transform_0, window_bounds = array<i64: 1, 24, 32>}, {pipeline_mode = #tpu.pipeline_mode<synchronous>, transform_indices = @transform_1, window_bounds = array<i64: 1, 32, 24>}, {pipeline_mode = #tpu.pipeline_mode<synchronous>, transform_indices = @transform_2, window_bounds = array<i64: 24, 1>}, {pipeline_mode = #tpu.pipeline_mode<synchronous>, transform_indices = @transform_3, window_bounds = array<i64: 24, 1>}, {pipeline_mode = #tpu.pipeline_mode<synchronous>, transform_indices = @transform_4, window_bounds = array<i64: 32, 1>}, {pipeline_mode = #tpu.pipeline_mode<synchronous>, transform_indices = @transform_5, window_bounds = array<i64: 32, 1>}, {transform_indices = @transform_6, window_bounds = array<i64: 32, 32>}]} {
    %cst = arith.constant 0.000000e+00 : f32
    %0 = vector.broadcast %cst : f32 to vector<32x32xf32>
    %c0 = arith.constant 0 : index
    %c0_0 = arith.constant 0 : index
    %c0_1 = arith.constant 0 : index
    %1 = vector.load %arg1[%c0, %c0_0, %c0_1] : memref<1x24x32xbf16, #tpu.memory_space<vmem>>, vector<1x24x32xbf16>
    %2 = vector.shape_cast %1 : vector<1x24x32xbf16> to vector<24x32xbf16>
    %3 = arith.extf %2 : vector<24x32xbf16> to vector<24x32xf32>
    %c0_2 = arith.constant 0 : index
    %c0_3 = arith.constant 0 : index
    %4 = vector.load %arg3[%c0_2, %c0_3] : memref<24x1xf32, #tpu.memory_space<vmem>>, vector<24x1xf32>
    %5 = vector.broadcast %4 : vector<24x1xf32> to vector<24x32xf32>
    %6 = arith.mulf %3, %5 : vector<24x32xf32>
    %c0_4 = arith.constant 0 : index
    %c0_5 = arith.constant 0 : index
    %7 = vector.load %arg4[%c0_4, %c0_5] : memref<24x1xf32, #tpu.memory_space<vmem>>, vector<24x1xf32>
    %8 = vector.broadcast %7 : vector<24x1xf32> to vector<24x32xf32>
    %9 = arith.addf %6, %8 : vector<24x32xf32>
    %cst_6 = arith.constant 0.000000e+00 : f32
    %10 = vector.broadcast %cst_6 : f32 to vector<24x32xf32>
    %11 = arith.maximumf %9, %10 : vector<24x32xf32>
    %12 = arith.truncf %11 : vector<24x32xf32> to vector<24x32xbf16>
    %c0_7 = arith.constant 0 : index
    %c0_8 = arith.constant 0 : index
    %c0_9 = arith.constant 0 : index
    %13 = vector.load %arg2[%c0_7, %c0_8, %c0_9] : memref<1x32x24xbf16, #tpu.memory_space<vmem>>, vector<1x32x24xbf16>
    %14 = vector.shape_cast %13 : vector<1x32x24xbf16> to vector<32x24xbf16>
    %cst_10 = arith.constant dense<0.000000e+00> : vector<32x32xf32>
    %15 = tpu.matmul %14, %12, %cst_10 {dimension_numbers = #tpu.dot_dimension_numbers<[1], [0], [0], [1], [0, 0, 1, 1], [], []>} : vector<32x24xbf16>, vector<24x32xbf16>, vector<32x32xf32> -> vector<32x32xf32>
    %16 = arith.addf %0, %15 : vector<32x32xf32>
    %c0_11 = arith.constant 0 : index
    %c0_12 = arith.constant 0 : index
    %17 = vector.load %arg5[%c0_11, %c0_12] : memref<32x1xf32, #tpu.memory_space<vmem>>, vector<32x1xf32>
    %18 = vector.broadcast %17 : vector<32x1xf32> to vector<32x32xf32>
    %19 = arith.mulf %16, %18 : vector<32x32xf32>
    %c0_13 = arith.constant 0 : index
    %c0_14 = arith.constant 0 : index
    %20 = vector.load %arg6[%c0_13, %c0_14] : memref<32x1xf32, #tpu.memory_space<vmem>>, vector<32x1xf32>
    %21 = vector.broadcast %20 : vector<32x1xf32> to vector<32x32xf32>
    %22 = arith.addf %19, %21 : vector<32x32xf32>
    %cst_15 = arith.constant 0.000000e+00 : f32
    %23 = vector.broadcast %cst_15 : f32 to vector<32x32xf32>
    %24 = arith.maximumf %22, %23 : vector<32x32xf32>
    %25 = arith.truncf %24 : vector<32x32xf32> to vector<32x32xbf16>
    %c0_16 = arith.constant 0 : index
    %c0_17 = arith.constant 0 : index
    %26 = vector.load %arg7[%c0_16, %c0_17] : memref<32x32xbf16, #tpu.memory_space<vmem>>, vector<32x32xbf16>
    tpu.vector_store %arg7[%c0_16, %c0_17], %25 {strides = array<i32>} : memref<32x32xbf16, #tpu.memory_space<vmem>>, vector<32x32xbf16>,
    return
  }
  func.func @transform_0(%arg0: i32) -> (i32, i32, i32) {
    %c0_i32 = arith.constant 0 : i32
    %c0_i32_0 = arith.constant 0 : i32
    %c0_i32_1 = arith.constant 0 : i32
    return %c0_i32, %c0_i32_0, %arg0 : i32, i32, i32
  }
  func.func @transform_1(%arg0: i32) -> (i32, i32, i32) {
    %c0_i32 = arith.constant 0 : i32
    %c0_i32_0 = arith.constant 0 : i32
    %c0_i32_1 = arith.constant 0 : i32
    %c0_i32_2 = arith.constant 0 : i32
    return %c0_i32, %c0_i32_0, %c0_i32_1 : i32, i32, i32
  }
  func.func @transform_2(%arg0: i32) -> (i32, i32) {
    %c0_i32 = arith.constant 0 : i32
    %c0_i32_0 = arith.constant 0 : i32
    %c0_i32_1 = arith.constant 0 : i32
    return %c0_i32, %c0_i32_0 : i32, i32
  }
  func.func @transform_3(%arg0: i32) -> (i32, i32) {
    %c0_i32 = arith.constant 0 : i32
    %c0_i32_0 = arith.constant 0 : i32
    %c0_i32_1 = arith.constant 0 : i32
    return %c0_i32, %c0_i32_0 : i32, i32
  }
  func.func @transform_4(%arg0: i32) -> (i32, i32) {
    %c0_i32 = arith.constant 0 : i32
    %c0_i32_0 = arith.constant 0 : i32
    %c0_i32_1 = arith.constant 0 : i32
    return %c0_i32, %c0_i32_0 : i32, i32
  }
  func.func @transform_5(%arg0: i32) -> (i32, i32) {
    %c0_i32 = arith.constant 0 : i32
    %c0_i32_0 = arith.constant 0 : i32
    %c0_i32_1 = arith.constant 0 : i32
    return %c0_i32, %c0_i32_0 : i32, i32
  }
  func.func @transform_6(%arg0: i32) -> (i32, i32) {
    %c0_i32 = arith.constant 0 : i32
    %c0_i32_0 = arith.constant 0 : i32
    return %c0_i32, %arg0 : i32, i32
  }
}

module attributes {stable_mosaic.version = 11 : i64} {
  func.func @_head_kernel(%arg0: memref<32x8x16xbf16, #tpu.memory_space<vmem>>, %arg1: memref<32x1xf32, #tpu.memory_space<vmem>>, %arg2: memref<32x1xf32, #tpu.memory_space<vmem>>, %arg3: memref<32x1024xbf16, #tpu.memory_space<vmem>>, %arg4: memref<1x1024xf32, #tpu.memory_space<vmem>>, %arg5: memref<8x1024xf32, #tpu.memory_space<vmem>>) attributes {dimension_semantics = [], scalar_prefetch = 0 : i64, scratch_operands = 0 : i64, tpu.core_type = #tpu.core_type<tc>} {
    %c0 = arith.constant 0 : index
    %c0_0 = arith.constant 0 : index
    %c0_1 = arith.constant 0 : index
    %0 = vector.load %arg0[%c0, %c0_0, %c0_1] : memref<32x8x16xbf16, #tpu.memory_space<vmem>>, vector<32x8x16xbf16>
    %1 = arith.extf %0 : vector<32x8x16xbf16> to vector<32x8x16xf32>
    %c0_2 = arith.constant 0 : index
    %c0_3 = arith.constant 0 : index
    %2 = vector.load %arg1[%c0_2, %c0_3] : memref<32x1xf32, #tpu.memory_space<vmem>>, vector<32x1xf32>
    %3 = vector.shape_cast %2 : vector<32x1xf32> to vector<32x1x1xf32>
    %c0_4 = arith.constant 0 : index
    %c0_5 = arith.constant 0 : index
    %4 = vector.load %arg2[%c0_4, %c0_5] : memref<32x1xf32, #tpu.memory_space<vmem>>, vector<32x1xf32>
    %5 = vector.shape_cast %4 : vector<32x1xf32> to vector<32x1x1xf32>
    %6 = vector.broadcast %3 : vector<32x1x1xf32> to vector<32x8x16xf32>
    %7 = arith.mulf %1, %6 : vector<32x8x16xf32>
    %8 = vector.broadcast %5 : vector<32x1x1xf32> to vector<32x8x16xf32>
    %9 = arith.addf %7, %8 : vector<32x8x16xf32>
    %cst = arith.constant 0.000000e+00 : f32
    %10 = vector.broadcast %cst : f32 to vector<32x8x16xf32>
    %11 = arith.maximumf %9, %10 : vector<32x8x16xf32>
    %cst_6 = arith.constant dense<0.000000e+00> : vector<32x8xf32>
    %12 = vector.multi_reduction <add>, %11, %cst_6 [2] : vector<32x8x16xf32> to vector<32x8xf32>
    %cst_7 = arith.constant 1.600000e+01 : f32
    %13 = vector.broadcast %cst_7 : f32 to vector<32x8xf32>
    %14 = arith.divf %12, %13 : vector<32x8xf32>
    %15 = tpu.transpose %14, [1, 0] : vector<32x8xf32> -> vector<8x32xf32>
    %16 = arith.truncf %15 : vector<8x32xf32> to vector<8x32xbf16>
    %c0_8 = arith.constant 0 : index
    %c0_9 = arith.constant 0 : index
    %17 = vector.load %arg3[%c0_8, %c0_9] : memref<32x1024xbf16, #tpu.memory_space<vmem>>, vector<32x1024xbf16>
    %cst_10 = arith.constant dense<0.000000e+00> : vector<8x1024xf32>
    %18 = tpu.matmul %16, %17, %cst_10 {dimension_numbers = #tpu.dot_dimension_numbers<[1], [0], [0], [1], [0, 0, 1, 1], [], []>} : vector<8x32xbf16>, vector<32x1024xbf16>, vector<8x1024xf32> -> vector<8x1024xf32>
    %c0_11 = arith.constant 0 : index
    %c0_12 = arith.constant 0 : index
    %19 = vector.load %arg4[%c0_11, %c0_12] : memref<1x1024xf32, #tpu.memory_space<vmem>>, vector<1x1024xf32>
    %20 = vector.broadcast %19 : vector<1x1024xf32> to vector<8x1024xf32>
    %21 = arith.addf %18, %20 : vector<8x1024xf32>
    %c0_13 = arith.constant 0 : index
    %c0_14 = arith.constant 0 : index
    %22 = vector.load %arg5[%c0_13, %c0_14] : memref<8x1024xf32, #tpu.memory_space<vmem>>, vector<8x1024xf32>
    tpu.vector_store %arg5[%c0_13, %c0_14], %21 {strides = array<i32>} : memref<8x1024xf32, #tpu.memory_space<vmem>>, vector<8x1024xf32>,
    return
  }
}

module attributes {stable_mosaic.version = 11 : i64} {
  func.func @_arc_kernel(%arg0: memref<8x1024xf32, #tpu.memory_space<vmem>>, %arg1: memref<1024x3xf32, #tpu.memory_space<vmem>>, %arg2: memref<8x3xf32, #tpu.memory_space<vmem>>) attributes {dimension_semantics = [], scalar_prefetch = 0 : i64, scratch_operands = 0 : i64, tpu.core_type = #tpu.core_type<tc>} {
    %c0 = arith.constant 0 : index
    %c0_0 = arith.constant 0 : index
    %0 = vector.load %arg0[%c0, %c0_0] : memref<8x1024xf32, #tpu.memory_space<vmem>>, vector<8x1024xf32>
    %1 = arith.mulf %0, %0 : vector<8x1024xf32>
    %cst = arith.constant dense<0.000000e+00> : vector<8xf32>
    %2 = vector.multi_reduction <add>, %1, %cst [1] : vector<8x1024xf32> to vector<8xf32>
    %3 = vector.shape_cast %2 : vector<8xf32> to vector<8x1xf32>
    %cst_1 = arith.constant 9.99999996E-13 : f32
    %4 = vector.broadcast %cst_1 : f32 to vector<8x1xf32>
    %5 = arith.addf %3, %4 : vector<8x1xf32>
    %6 = math.rsqrt %5 : vector<8x1xf32>
    %7 = vector.broadcast %6 : vector<8x1xf32> to vector<8x1024xf32>
    %8 = arith.mulf %0, %7 : vector<8x1024xf32>
    %c0_2 = arith.constant 0 : index
    %c0_3 = arith.constant 0 : index
    %9 = vector.load %arg1[%c0_2, %c0_3] : memref<1024x3xf32, #tpu.memory_space<vmem>>, vector<1024x3xf32>
    %cst_4 = arith.constant dense<0.000000e+00> : vector<8x3xf32>
    %10 = tpu.matmul %8, %9, %cst_4 {dimension_numbers = #tpu.dot_dimension_numbers<[1], [0], [0], [1], [0, 0, 1, 1], [], []>} : vector<8x1024xf32>, vector<1024x3xf32>, vector<8x3xf32> -> vector<8x3xf32>
    %c0_5 = arith.constant 0 : index
    %c0_6 = arith.constant 0 : index
    %11 = vector.load %arg2[%c0_5, %c0_6] : memref<8x3xf32, #tpu.memory_space<vmem>>, vector<8x3xf32>
    tpu.vector_store %arg2[%c0_5, %c0_6], %10 {strides = array<i32>} : memref<8x3xf32, #tpu.memory_space<vmem>>, vector<8x3xf32>,
    return
  }
}

</mosaic_0001>

<bundles_post_ra>
// kernel: net_forward.15
= control target key start
LH: loop header
LB: loop body
LE: loop exit
PB: predicated region body
PF: predicated region fallthrough
CT: control target
= control target key end

     0   :  { %vm27_vm0 = vcmask 1043456   ;;  %s196_s0 = inlined_call_operand.vmem [shape: bf16[9,16,128], index: 0, kind: input, shape index: {}]   ;;  %s197_s1 = inlined_call_operand.vmem [shape: bf16[16,128], index: 1, kind: output, shape index: {}]  }
   0x1   :  { %v9_v0 = vld [vmem:[%s196_s0] sm:$0xf]  ;;  %v11_v1 = vld [vmem:[%s196_s0 + $0x8] sm:$0xf]  ;;  %v13_v2 = vld [vmem:[%s196_s0 + $0x10] sm:$0xf] }
   0x2   :  { %v10_v3 = vld [vmem:[%s196_s0 + $0x4] sm:$0xf]  ;;  %v12_v4 = vld [vmem:[%s196_s0 + $0xc] sm:$0xf]  ;;  %v14_v5 = vld [vmem:[%s196_s0 + $0x14] sm:$0xf] }
   0x3   :  { %v15_v6 = vld [vmem:[%s196_s0 + $0x18] sm:$0xf]  ;;  %v17_v7 = vld [vmem:[%s196_s0 + $0x20] sm:$0xf]  ;;  %v19_v8 = vld [vmem:[%s196_s0 + $0x28] sm:$0xf] }
   0x4   :  { %v16_v9 = vld [vmem:[%s196_s0 + $0x1c] sm:$0xf]  ;;  %v18_v10 = vld [vmem:[%s196_s0 + $0x24] sm:$0xf]  ;;  %v21_v11 = vld [vmem:[%s196_s0 + $0x30] sm:$0xf] }
   0x5   :  { %v23_v12 = vld [vmem:[%s196_s0 + $0x38] sm:$0xf]  ;;  %v25_v13 = vld [vmem:[%s196_s0 + $0x40] sm:$0xf]  ;;  %v20_v14 = vld [vmem:[%s196_s0 + $0x2c] sm:$0xf] }
   0x6   :  { %v22_v15 = vld [vmem:[%s196_s0 + $0x34] sm:$0xf]  ;;  %v30_v16 = vsel %vm27_vm0, %v9_v0, 4286644096  ;;  %v33_v17 = vsel %vm27_vm0, %v11_v1, 4286644096 }
   0x7   :  { %v36_v18 = vsel %vm27_vm0, %v13_v2, 4286644096  ;;  %v24_v19 = vld [vmem:[%s196_s0 + $0x3c] sm:$0xf]  ;;  %v40_v21 = vsel %vm27_vm0, %v15_v6, 4286644096 }
   0x8   :  { %v38_v20 = vmax.bf16 %v36_v18, %v30_v16  ;;  %v44_v22 = vsel %vm27_vm0, %v17_v7, 4286644096  ;;  %v48_v23 = vsel %vm27_vm0, %v19_v8, 4286644096  ;;  %v42_v24 = vmax.bf16 %v40_v21, %v33_v17  ;;  %v26_v32 = vld [vmem:[%s196_s0 + $0x44] sm:$0xf] }
   0x9   :  { %v52_v25 = vsel %vm27_vm0, %v21_v11, 4286644096  ;;  %v56_v26 = vsel %vm27_vm0, %v23_v12, 4286644096  ;;  %v60_v27 = vsel %vm27_vm0, %v25_v13, 4286644096 }
   0xa   :  { %v46_v28 = vmax.bf16 %v44_v22, %v38_v20  ;;  %v65_v29 = vsel %vm27_vm0, %v10_v3, 4286644096  ;;  %v68_v30 = vsel %vm27_vm0, %v12_v4, 4286644096  ;;  %v71_v31 = vsel %vm27_vm0, %v14_v5, 4286644096 }
   0xb   :  { %v50_v33 = vmax.bf16 %v48_v23, %v42_v24  ;;  %v73_v34 = vmax.bf16 %v71_v31, %v65_v29  ;;  %v75_v35 = vsel %vm27_vm0, %v16_v9, 4286644096  ;;  %v79_v36 = vsel %vm27_vm0, %v18_v10, 4286644096 }
   0xc   :  { %v54_v37 = vmax.bf16 %v52_v25, %v46_v28  ;;  %v77_v38 = vmax.bf16 %v75_v35, %v68_v30  ;;  %v83_v39 = vsel %vm27_vm0, %v20_v14, 4286644096  ;;  %v87_v40 = vsel %vm27_vm0, %v22_v15, 4286644096 }
   0xd   :  { %v58_v41 = vmax.bf16 %v56_v26, %v50_v33  ;;  %v81_v42 = vmax.bf16 %v79_v36, %v73_v34  ;;  %v91_v43 = vsel %vm27_vm0, %v24_v19, 4286644096  ;;  %v95_v46 = vsel %vm27_vm0, %v26_v32, 4286644096 }
   0xe   :  { %v62_v44 = vmax.bf16 %v60_v27, %v54_v37  ;;  %v85_v45 = vmax.bf16 %v83_v39, %v77_v38 }
   0xf   :  { %v89_v47 = vmax.bf16 %v87_v40, %v81_v42 }
  0x10   :  { %v93_v48 = vmax.bf16 %v91_v43, %v85_v45  ;;  %v63_v49 = vmax.bf16 %v62_v44, %v58_v41 }
  0x11   :  { %v97_v50 = vmax.bf16 %v95_v46, %v89_v47 }
  0x13   :  { %v98_v51 = vmax.bf16 %v97_v50, %v93_v48 }
  0x15   :  { %v110_v52 = vcombine.low %v63_v49, %v98_v51 }
  0x17   :  { %109 = vst [vmem:[%s197_s1] sm:$0xff] %v110_v52  }

// kernel: net_forward.16
= control target key start
LH: loop header
LB: loop body
LE: loop exit
PB: predicated region body
PF: predicated region fallthrough
CT: control target
= control target key end

     0   :  { %v254_v0 = vmov 0   ;;  %vm73_vm0 = vcmask 130048   ;;  %s343_s3 = inlined_call_operand.vmem [shape: f32[16,1], index: 3, kind: input, shape index: {}]   ;;  %s344_s2 = inlined_call_operand.vmem [shape: f32[16,1], index: 2, kind: input, shape index: {}]   ;;  %s345_s4 = inlined_call_operand.vmem [shape: f32[32,1], index: 4, kind: input, shape index: {}]   ;;  %s346_s1 = inlined_call_operand.vmem [shape: bf16[1,32,16], index: 1, kind: input, shape index: {}]   ;;  %s347_s5 = inlined_call_operand.vmem [shape: f32[32,1], index: 5, kind: input, shape index: {}]   ;;  %s348_s0 = inlined_call_operand.vmem [shape: bf16[1,16,128], index: 0, kind: input, shape index: {}]   ;;  %s349_s6 = inlined_call_operand.vmem [shape: bf16[32,128], index: 6, kind: output, shape index: {}]  }
   0x1   :  { %251 = vset.pattern.permute.xlu1 %v254_v0  ;;  %250 = vset.pattern.permute.xlu0 %v254_v0  ;;  %v42_v1 = vld [vmem:[%s343_s3] sm:$0xff]  ;;  %v43_v3 = vld [vmem:[%s343_s3 + $0x8] sm:$0xff]  ;;  %v132_v7 = vld [vmem:[%s345_s4 + $0x18] sm:$0xff] }
   0x2   :  { %v28_v2 = vld [vmem:[%s344_s2] sm:$0xff]  ;;  %46 = vperm.xlu1 %251, %v42_v1   ;;  %v29_v4 = vld [vmem:[%s344_s2 + $0x8] sm:$0xff]  ;;  %v131_v8 = vld [vmem:[%s345_s4 + $0x10] sm:$0xff] }
   0x3   :  { %32 = vperm.xlu0 %250, %v28_v2   ;;  %v130_v5 = vld [vmem:[%s345_s4 + $0x8] sm:$0xff]  ;;  %v129_v6 = vld [vmem:[%s345_s4] sm:$0xff]  ;;  %v160_v12 = vld [vmem:[%s347_s5 + $0x18] sm:$0xff] }
   0x4   :  { %v252_v9 = vld [vmem:[%s346_s1] sm:$0xff]   ;;  %v158_v10 = vld [vmem:[%s347_s5 + $0x8] sm:$0xff]  ;;  %v159_v13 = vld [vmem:[%s347_s5 + $0x10] sm:$0xff] }
   0x5   :  { %245 = vmatprep.mubr.msk.bf16.mxu0 %vm73_vm0, %v252_v9  ;;  %v157_v11 = vld [vmem:[%s347_s5] sm:$0xff]  ;;  %v253_v28 = vld [vmem:[%s346_s1 + $0x8] sm:$0xff]  }
   0x6   :  { %51 = vperm.xlu1 %251, %v43_v3   ;;  %v226_v14 = vld [vmem:[%s348_s0] sm:$0xff]  }
   0x7   :  { %37 = vperm.xlu0 %250, %v29_v4   ;;  %v227_v15 = vunpack.c.l.bf16 %v226_v14  ;;  %v228_v19 = vunpack.c.h.bf16 %v226_v14 }
   0xa   :  { %140 = vperm.xlu1 %251, %v130_v5  }
   0xb   :  { %135 = vperm.xlu0 %250, %v129_v6  }
   0xe   :  { %150 = vperm.xlu1 %251, %v132_v7  }
   0xf   :  { %145 = vperm.xlu0 %250, %v131_v8  }
  0x12   :  { %168 = vperm.xlu1 %251, %v158_v10  }
  0x13   :  { %163 = vperm.xlu0 %250, %v157_v11  }
  0x16   :  { %178 = vperm.xlu1 %251, %v160_v12  }
  0x17   :  { %173 = vperm.xlu0 %250, %v159_v13  }
  0x7d   :  { %v47_v16 = vpop.permute.xlu1 %46 }
  0x7e   :  { %v33_v17 = vpop.permute.xlu0 %32 }
  0x7f   :  { %v40_v18 = vmul.f32 %v227_v15, %v33_v17 }
  0x81   :  { %v54_v21 = vadd.f32 %v47_v16, %v40_v18  ;;  %v52_v23 = vpop.permute.xlu1 %51 }
  0x82   :  { %v38_v20 = vpop.permute.xlu0 %37 }
  0x83   :  { %v41_v22 = vmul.f32 %v228_v19, %v38_v20  ;;  %v56_v25 = vmax.f32 %v54_v21, 0.0 }
  0x85   :  { %v55_v24 = vadd.f32 %v52_v23, %v41_v22  ;;  %v141_v30 = vpop.permute.xlu1 %140 }
  0x86   :  { %v136_v29 = vpop.permute.xlu0 %135 }
  0x87   :  { %v57_v26 = vmax.f32 %v55_v24, 0.0 }
  0x89   :  { %v58_v27 = vpack.c.bf16 %v57_v26, %v56_v25  ;;  %v151_v32 = vpop.permute.xlu1 %150 }
  0x8a   :  { %v146_v31 = vpop.permute.xlu0 %145 }
  0x8b   :  { %243 = vmatprep.subr.bf16.mxu0 %v58_v27 }
  0x8c   :  { %244 = vmatpush3.bf16.msra.mxu0 %v58_v27 }
  0x8d   :  { %v169_v34 = vpop.permute.xlu1 %168 }
  0x8e   :  { %v164_v33 = vpop.permute.xlu0 %163 }
  0x8f   :  { %246 = vmatmul.mubr.msk.bf16.vlgmr.msra.gmra.mxu0 %vm73_vm0, %v253_v28 }
  0x91   :  { %v179_v43 = vpop.permute.xlu1 %178 }
  0x92   :  { %v174_v39 = vpop.permute.xlu0 %173 }
 0x14f   :  { %v247_v35 = vpop.f32.mrf.mxu0 }
 0x150   :  { %v155_v36 = vmul.f32 %v247_v35, %v146_v31 }
 0x151   :  { %v114_v37 = vpop.f32.mrf.mxu0 }
 0x152   :  { %v153_v38 = vmul.f32 %v136_v29, %v114_v37  ;;  %v183_v41 = vadd.f32 %v174_v39, %v155_v36 }
 0x153   :  { %v248_v40 = vpop.f32.mrf.mxu0 }
 0x154   :  { %v156_v42 = vmul.f32 %v248_v40, %v151_v32  ;;  %v181_v45 = vadd.f32 %v164_v33, %v153_v38  ;;  %v187_v48 = vmax.f32 %v183_v41, 0.0 }
 0x155   :  { %v117_v44 = vpop.f32.mrf.mxu0 }
 0x156   :  { %v184_v46 = vadd.f32 %v179_v43, %v156_v42  ;;  %v154_v47 = vmul.f32 %v141_v30, %v117_v44  ;;  %v185_v51 = vmax.f32 %v181_v45, 0.0 }
 0x158   :  { %v188_v49 = vmax.f32 %v184_v46, 0.0  ;;  %v182_v50 = vadd.f32 %v169_v34, %v154_v47 }
 0x15a   :  { %v237_v52 = vpack.c.bf16 %v188_v49, %v187_v48  ;;  %v186_v53 = vmax.f32 %v182_v50, 0.0 }
 0x15c   :  { %239 = vst [vmem:[%s349_s6 + $0x8] sm:$0xff] %v237_v52   ;;  %v232_v54 = vpack.c.bf16 %v186_v53, %v185_v51 }
 0x15e   :  { %233 = vst [vmem:[%s349_s6] sm:$0xff] %v232_v54  }

// kernel: net_forward.14
= control target key start
LH: loop header
LB: loop body
LE: loop exit
PB: predicated region body
PF: predicated region fallthrough
CT: control target
= control target key end

     0   :  { %s4694_s15 = smov 0   ;;  %s4696_s16 = smov 0   ;;  %s5270_s0 = inlined_call_operand.vmem [shape: bf16[49,3,512], index: 0, kind: input, shape index: {}]   ;;  %s5271_s1 = inlined_call_operand.vmem [shape: bf16[49,16,3], index: 1, kind: input, shape index: {}]   ;;  %s5272_s2 = inlined_call_operand.vmem [shape: f32[16,1], index: 2, kind: input, shape index: {}]   ;;  %s5273_s3 = inlined_call_operand.vmem [shape: f32[16,1], index: 3, kind: input, shape index: {}]   ;;  %s5274_s4 = inlined_call_operand.vmem [shape: bf16[16,512], index: 4, kind: output, shape index: {}]  }
   0x1   :  { %s4698_s17 = smov 0  }
   0x2 LB: > { %s4254_s18 = sadd.s32 4294967295, %s4665_s17   ;;  %s4711_s19 = sadd.s32 1, %s4665_s17   ;;  %s4665_s17 = sphi %s4698_s17, %s5278_s17   ;;  %s4661_s16 = sphi %s4696_s16, %s5277_s16   ;;  %s4657_s15 = sphi %s4694_s15, %s5276_s15  }
   0x3   : > { %s18_s20 = ssub.s32 %s4665_s17, %s4711_s19  ;;  %s21_s21 = sadd.s32 1, %s4661_s16 }
   0x4   : > { %p19_p0 = scmp.eq.s32.totalorder %s18_s20, 0  ;;  %p28_p1 = scmp.ne.s32.totalorder %s4661_s16, %s4657_s15 }
   0x5   : > { %p29_p2 = scmp.eq.s32.totalorder %s4665_s17, 0  ;;  %p121_p3 = scmp.eq.s32.totalorder %s4254_s18, 1 }
   0x6   : > { %s4722_s22 = scalar_select %p19_p0, %s4661_s16, %s21_s21  }
   0x7   : > { %p30_p4 = por %p29_p2, %p28_p1  ;;  %p4724_p5 = por %p121_p3, %p28_p1 }
   0x8   : > { %p4257_p6 = scmp.ge.s32.totalorder %s4665_s17, 2 }
   0xa   : > { %152 = sbr.rel (%p4257_p6) target bundleno = 52 (0x34), region = 28 }
   0xf   : > { %155 = sbr.rel (!%p30_p4) target bundleno = 52 (0x34), region = 32  ;;  %s157_s24 = sand.u32 (%p30_p4), 1, %s4661_s16  }
  0x10   : > { %s4560_s25 = sshll.u32 (%p30_p4), %s4665_s17, 2  ;;  %s4564_s26 = smul.u32 (%p30_p4), 196, %s157_s24 }
  0x11   : > { %s4734_s29 = scalar_lea.vmem (%p30_p4), %s5270_s0, %s4560_s25 }
  0x12   : > { %v179_v0 = vld [vmem:[%s4734_s29] sm:$0xf] (%p30_p4)  ;;  %v181_v1 = vld [vmem:[%s4734_s29 + $0x8] sm:$0xf] (%p30_p4)  ;;  %v183_v2 = vld [vmem:[%s4734_s29 + $0x10] sm:$0xf] (%p30_p4) }
  0x13   : > { %v185_v3 = vld [vmem:[%s4734_s29 + $0x18] sm:$0xf] (%p30_p4)  ;;  %v187_v4 = vld [vmem:[%s4734_s29 + $0x20] sm:$0xf] (%p30_p4)  ;;  %s4741_s30 = scalar_lea.vmem (%p30_p4), [#allocation2], %s4564_s26 }
  0x14   : > { %180 = vst [vmem:[%s4741_s30] sm:$0xf] %v179_v0  ;;  %182 = vst [vmem:[%s4741_s30 + $0x4] sm:$0xf] %v181_v1  ;;  %v189_v5 = vld [vmem:[%s4734_s29 + $0x28] sm:$0xf] }
  0x15   : > { %184 = vst [vmem:[%s4741_s30 + $0x8] sm:$0xf] %v183_v2  ;;  %186 = vst [vmem:[%s4741_s30 + $0xc] sm:$0xf] %v185_v3  ;;  %v191_v6 = vld [vmem:[%s4734_s29 + $0x30] sm:$0xf] }
  0x16   : > { %188 = vst [vmem:[%s4741_s30 + $0x10] sm:$0xf] %v187_v4  ;;  %v193_v7 = vld [vmem:[%s4734_s29 + $0x38] sm:$0xf]  ;;  %190 = vst [vmem:[%s4741_s30 + $0x14] sm:$0xf] %v189_v5 }
  0x17   : > { %192 = vst [vmem:[%s4741_s30 + $0x18] sm:$0xf] %v191_v6  ;;  %194 = vst [vmem:[%s4741_s30 + $0x1c] sm:$0xf] %v193_v7  ;;  %v195_v8 = vld [vmem:[%s4734_s29 + $0x40] sm:$0xf] }
  0x18   : > { %v197_v9 = vld [vmem:[%s4734_s29 + $0x48] sm:$0xf]  ;;  %v199_v10 = vld [vmem:[%s4734_s29 + $0x50] sm:$0xf]  ;;  %196 = vst [vmem:[%s4741_s30 + $0x20] sm:$0xf] %v195_v8 }
  0x19   : > { %198 = vst [vmem:[%s4741_s30 + $0x24] sm:$0xf] %v197_v9  ;;  %200 = vst [vmem:[%s4741_s30 + $0x28] sm:$0xf] %v199_v10  ;;  %v201_v11 = vld [vmem:[%s4734_s29 + $0x58] sm:$0xf] }
  0x1a   : > { %v203_v12 = vld [vmem:[%s4734_s29 + $0x60] sm:$0xf]  ;;  %v205_v13 = vld [vmem:[%s4734_s29 + $0x68] sm:$0xf]  ;;  %202 = vst [vmem:[%s4741_s30 + $0x2c] sm:$0xf] %v201_v11 }
  0x1b   : > { %204 = vst [vmem:[%s4741_s30 + $0x30] sm:$0xf] %v203_v12  ;;  %206 = vst [vmem:[%s4741_s30 + $0x34] sm:$0xf] %v205_v13  ;;  %v207_v14 = vld [vmem:[%s4734_s29 + $0x70] sm:$0xf] }
  0x1c   : > { %v209_v15 = vld [vmem:[%s4734_s29 + $0x78] sm:$0xf]  ;;  %v211_v16 = vld [vmem:[%s4734_s29 + $0x80] sm:$0xf]  ;;  %208 = vst [vmem:[%s4741_s30 + $0x38] sm:$0xf] %v207_v14 }
  0x1d   : > { %210 = vst [vmem:[%s4741_s30 + $0x3c] sm:$0xf] %v209_v15  ;;  %212 = vst [vmem:[%s4741_s30 + $0x40] sm:$0xf] %v211_v16  ;;  %v213_v17 = vld [vmem:[%s4734_s29 + $0x88] sm:$0xf] }
  0x1e   : > { %v215_v18 = vld [vmem:[%s4734_s29 + $0x90] sm:$0xf]  ;;  %v217_v19 = vld [vmem:[%s4734_s29 + $0x98] sm:$0xf]  ;;  %214 = vst [vmem:[%s4741_s30 + $0x44] sm:$0xf] %v213_v17 }
  0x1f   : > { %216 = vst [vmem:[%s4741_s30 + $0x48] sm:$0xf] %v215_v18  ;;  %218 = vst [vmem:[%s4741_s30 + $0x4c] sm:$0xf] %v217_v19  ;;  %v219_v20 = vld [vmem:[%s4734_s29 + $0xa0] sm:$0xf] }
  0x20   : > { %v221_v21 = vld [vmem:[%s4734_s29 + $0xa8] sm:$0xf]  ;;  %v223_v22 = vld [vmem:[%s4734_s29 + $0xb0] sm:$0xf]  ;;  %220 = vst [vmem:[%s4741_s30 + $0x50] sm:$0xf] %v219_v20 }
  0x21   : > { %222 = vst [vmem:[%s4741_s30 + $0x54] sm:$0xf] %v221_v21  ;;  %224 = vst [vmem:[%s4741_s30 + $0x58] sm:$0xf] %v223_v22  ;;  %v225_v23 = vld [vmem:[%s4734_s29 + $0xb8] sm:$0xf] }
  0x22   : > { %v227_v24 = vld [vmem:[%s4734_s29 + $0xc0] sm:$0xf]  ;;  %v229_v25 = vld [vmem:[%s4734_s29 + $0xc8] sm:$0xf]  ;;  %226 = vst [vmem:[%s4741_s30 + $0x5c] sm:$0xf] %v225_v23 }
  0x23   : > { %228 = vst [vmem:[%s4741_s30 + $0x60] sm:$0xf] %v227_v24  ;;  %230 = vst [vmem:[%s4741_s30 + $0x64] sm:$0xf] %v229_v25  ;;  %v231_v26 = vld [vmem:[%s4734_s29 + $0xd0] sm:$0xf] }
  0x24   : > { %v233_v27 = vld [vmem:[%s4734_s29 + $0xd8] sm:$0xf]  ;;  %v235_v28 = vld [vmem:[%s4734_s29 + $0xe0] sm:$0xf]  ;;  %232 = vst [vmem:[%s4741_s30 + $0x68] sm:$0xf] %v231_v26 }
  0x25   : > { %234 = vst [vmem:[%s4741_s30 + $0x6c] sm:$0xf] %v233_v27  ;;  %236 = vst [vmem:[%s4741_s30 + $0x70] sm:$0xf] %v235_v28  ;;  %v237_v29 = vld [vmem:[%s4734_s29 + $0xe8] sm:$0xf] }
  0x26   : > { %v239_v30 = vld [vmem:[%s4734_s29 + $0xf0] sm:$0xf]  ;;  %v241_v31 = vld [vmem:[%s4734_s29 + $0xf8] sm:$0xf]  ;;  %238 = vst [vmem:[%s4741_s30 + $0x74] sm:$0xf] %v237_v29 }
  0x27   : > { %240 = vst [vmem:[%s4741_s30 + $0x78] sm:$0xf] %v239_v30  ;;  %242 = vst [vmem:[%s4741_s30 + $0x7c] sm:$0xf] %v241_v31  ;;  %v243_v32 = vld [vmem:[%s4734_s29 + $0x100] sm:$0xf] }
  0x28   : > { %v245_v33 = vld [vmem:[%s4734_s29 + $0x108] sm:$0xf]  ;;  %v247_v34 = vld [vmem:[%s4734_s29 + $0x110] sm:$0xf]  ;;  %244 = vst [vmem:[%s4741_s30 + $0x80] sm:$0xf] %v243_v32 }
  0x29   : > { %246 = vst [vmem:[%s4741_s30 + $0x84] sm:$0xf] %v245_v33  ;;  %248 = vst [vmem:[%s4741_s30 + $0x88] sm:$0xf] %v247_v34  ;;  %v249_v35 = vld [vmem:[%s4734_s29 + $0x118] sm:$0xf] }
  0x2a   : > { %v251_v36 = vld [vmem:[%s4734_s29 + $0x120] sm:$0xf]  ;;  %v253_v37 = vld [vmem:[%s4734_s29 + $0x128] sm:$0xf]  ;;  %250 = vst [vmem:[%s4741_s30 + $0x8c] sm:$0xf] %v249_v35 }
  0x2b   : > { %252 = vst [vmem:[%s4741_s30 + $0x90] sm:$0xf] %v251_v36  ;;  %254 = vst [vmem:[%s4741_s30 + $0x94] sm:$0xf] %v253_v37  ;;  %v255_v38 = vld [vmem:[%s4734_s29 + $0x130] sm:$0xf] }
  0x2c   : > { %v257_v39 = vld [vmem:[%s4734_s29 + $0x138] sm:$0xf]  ;;  %v259_v40 = vld [vmem:[%s4734_s29 + $0x140] sm:$0xf]  ;;  %256 = vst [vmem:[%s4741_s30 + $0x98] sm:$0xf] %v255_v38 }
  0x2d   : > { %258 = vst [vmem:[%s4741_s30 + $0x9c] sm:$0xf] %v257_v39  ;;  %260 = vst [vmem:[%s4741_s30 + $0xa0] sm:$0xf] %v259_v40  ;;  %v261_v41 = vld [vmem:[%s4734_s29 + $0x148] sm:$0xf] }
  0x2e   : > { %v263_v42 = vld [vmem:[%s4734_s29 + $0x150] sm:$0xf]  ;;  %v265_v43 = vld [vmem:[%s4734_s29 + $0x158] sm:$0xf]  ;;  %262 = vst [vmem:[%s4741_s30 + $0xa4] sm:$0xf] %v261_v41 }
  0x2f   : > { %264 = vst [vmem:[%s4741_s30 + $0xa8] sm:$0xf] %v263_v42  ;;  %266 = vst [vmem:[%s4741_s30 + $0xac] sm:$0xf] %v265_v43  ;;  %v267_v44 = vld [vmem:[%s4734_s29 + $0x160] sm:$0xf] }
  0x30   : > { %v269_v45 = vld [vmem:[%s4734_s29 + $0x168] sm:$0xf]  ;;  %v271_v46 = vld [vmem:[%s4734_s29 + $0x170] sm:$0xf]  ;;  %268 = vst [vmem:[%s4741_s30 + $0xb0] sm:$0xf] %v267_v44 }
  0x31   : > { %270 = vst [vmem:[%s4741_s30 + $0xb4] sm:$0xf] %v269_v45  ;;  %272 = vst [vmem:[%s4741_s30 + $0xb8] sm:$0xf] %v271_v46  ;;  %v273_v47 = vld [vmem:[%s4734_s29 + $0x178] sm:$0xf] }
  0x32   : > { %v275_v48 = vld [vmem:[%s4734_s29 + $0x180] sm:$0xf]  ;;  %274 = vst [vmem:[%s4741_s30 + $0xbc] sm:$0xf] %v273_v47 }
  0x33   : > { %276 = vst [vmem:[%s4741_s30 + $0xc0] sm:$0xf] %v275_v48 }
  0x34 PF: > { %p4260_p7 = scmp.ge.s32.totalorder %s4665_s17, 1  ;;  %p397_p8 = scmp.lt.s32.totalorder %s4665_s17, 3 }
  0x36   : > { %p398_p9 = pnand %p4260_p7, %p397_p8 }
  0x37   : > { %s404_s5 = sand.u32 (!%p398_p9), 1, %s4657_s15  }
  0x38   : > { %401 = sbr.rel (%p398_p9) target bundleno = 481 (0x1e1), region = 73  ;;  %s4261_s11 = sshll.u32 (!%p398_p9), %s404_s5, 4 }
  0x39   : > { %s4565_s6 = smul.u32 (!%p398_p9), 196, %s404_s5  ;;  %s427_s12 = scalar_lea.vmem (!%p398_p9), [#allocation3], %s4261_s11 }
  0x3b   : > { %s4847_s7 = scalar_lea.vmem (!%p398_p9), [#allocation2], %s4565_s6 }
  0x3d   : > { %vm457_vm0 = vcmask 1040384   ;;  %vm458_vm1 = vcmask 1041408   ;;  %v4667_v49 = vmov 65535   ;;  %v4668_v51 = vmov 0   ;;  %v4594_v2 = vld [vmem:[%s5271_s1 + $0x8] sm:$0xff]   ;;  %v4595_v6 = vld [vmem:[%s5271_s1] sm:$0xff]  }
  0x3e   : > { %v459_v50 = vsel %vm457_vm0, 4294967295, %v4667_v49  ;;  %499 = vmatprep.mubr.bf16.mxu0 %v4668_v51  ;;  %565 = vmatprep.mubr.bf16.mxu1 %v4668_v51  ;;  %v4266_v53 = vld.sshfl [vmem:[%s4847_s7 + $0x4] sm:$0x33 pattern:$0x76325410]  ;;  %vm453_vm2 = vcmask 23552  }
  0x3f   : > { %4592 = vset.pattern.permute.xlu0 %v4668_v51  ;;  %4593 = vset.pattern.permute.xlu1 %v4668_v51  ;;  %v4845_v52 = vsel %vm458_vm1, %v459_v50, 0  ;;  %v452_v54 = vcombine.high %v4266_v53, %v4266_v53  ;;  %v4269_v55 = vld.sshfl [vmem:[%s4847_s7] sm:$0x33 pattern:$0x76325410]  ;;  %v4596_v15 = vld [vmem:[%s5271_s1 + $0x10] sm:$0xff]  }
  0x40   : > { %v523_v56 = vcombine.high %v4269_v55, %v4269_v55  ;;  %v462_v57 = vand.u32 %v4266_v53, %v4845_v52  ;;  %v4275_v58 = vld.sshfl [vmem:[%s4847_s7 + $0x8] sm:$0x33 pattern:$0x76325410]  ;;  %v528_v60 = vand.u32 %v4269_v55, %v4845_v52  ;;  %v4597_v18 = vld [vmem:[%s5271_s1 + $0x18] sm:$0xff]   ;;  %v4598_v26 = vld [vmem:[%s5271_s1 + $0x20] sm:$0xff]  }
  0x41   : > { %v465_v59 = vand.u32 %v4845_v52, %v452_v54  ;;  %v594_v61 = vcombine.high %v4275_v58, %v4275_v58  ;;  %v4281_v62 = vld.sshfl [vmem:[%s4847_s7 + $0xc] sm:$0x33 pattern:$0x76325410]  ;;  %v599_v7 = vand.u32 %v4275_v58, %v4845_v52  ;;  %v4601_v38 = vld [vmem:[%s5271_s1 + $0x38] sm:$0xff]   ;;  %v4602_v45 = vld [vmem:[%s5271_s1 + $0x40] sm:$0xff]  }
  0x42   : > { %v531_v63 = vand.u32 %v523_v56, %v4845_v52  ;;  %v669_v0 = vcombine.high %v4281_v62, %v4281_v62  ;;  %v4287_v1 = vld.sshfl [vmem:[%s4847_s7 + $0x10] sm:$0x33 pattern:$0x76325410]  ;;  %v674_v10 = vand.u32 %v4281_v62, %v4845_v52  ;;  %v4599_v27 = vld [vmem:[%s5271_s1 + $0x28] sm:$0xff]   ;;  %s4563_s15 = sshll.u32 (%p4724_p5), %s4254_s18, 3 }
  0x43   : > { %481 = vmatprep.subr.bf16.mxu0 %v465_v59  ;;  %v602_v3 = vand.u32 %v594_v61, %v4845_v52  ;;  %v744_v4 = vcombine.high %v4287_v1, %v4287_v1  ;;  %v4293_v5 = vld.sshfl [vmem:[%s4847_s7 + $0x14] sm:$0x33 pattern:$0x76325410]  ;;  %v749_v19 = vand.u32 %v4287_v1, %v4845_v52  ;;  %v4603_v48 = vld [vmem:[%s5271_s1 + $0x48] sm:$0xff]   ;;  %s4160_s14 = scalar_lea.vmem (%p4724_p5), %s5274_s4, %s4563_s15 }
  0x44   : > { %547 = vmatprep.subr.bf16.mxu1 %v531_v63  ;;  %482 = vmatpush1.bf16.msra.mxu0 %v462_v57  ;;  %v677_v8 = vand.u32 %v669_v0, %v4845_v52  ;;  %v819_v9 = vcombine.high %v4293_v5, %v4293_v5  ;;  %v4299_v11 = vld.sshfl [vmem:[%s4847_s7 + $0x18] sm:$0x33 pattern:$0x76325410]  ;;  %v824_v20 = vand.u32 %v4293_v5, %v4845_v52  ;;  %v4600_v36 = vld [vmem:[%s5271_s1 + $0x30] sm:$0xff]  }
  0x45   : > { %548 = vmatpush1.bf16.msra.mxu1 %v528_v60  ;;  %618 = vmatprep.subr.bf16.mxu0 %v602_v3  ;;  %v752_v12 = vand.u32 %v744_v4, %v4845_v52  ;;  %v4305_v14 = vld.sshfl [vmem:[%s4847_s7 + $0x1c] sm:$0x33 pattern:$0x76325410]  ;;  %v894_v16 = vcombine.high %v4299_v11, %v4299_v11  ;;  %v899_v29 = vand.u32 %v4299_v11, %v4845_v52  ;;  %v4604_v58 = vld [vmem:[%s5271_s1 + $0x50] sm:$0xff]  }
  0x46   : > { %693 = vmatprep.subr.bf16.mxu1 %v677_v8  ;;  %v827_v13 = vand.u32 %v819_v9, %v4845_v52  ;;  %v969_v17 = vcombine.high %v4305_v14, %v4305_v14  ;;  %v4311_v23 = vld.sshfl [vmem:[%s4847_s7 + $0x20] sm:$0x33 pattern:$0x76325410]  ;;  %v974_v30 = vand.u32 %v4305_v14, %v4845_v52  ;;  %v4605_v59 = vld [vmem:[%s5271_s1 + $0x58] sm:$0xff]  }
  0x47   : > { %4267 = vmatmul.mubr.msk.bf16.vlgmr.msra.gmra.mxu0 %vm453_vm2, %v4594_v2  ;;  %v902_v21 = vand.u32 %v894_v16, %v4845_v52  ;;  %v4317_v24 = vld.sshfl [vmem:[%s4847_s7 + $0x24] sm:$0x33 pattern:$0x76325410]  ;;  %v1044_v25 = vcombine.high %v4311_v23, %v4311_v23  ;;  %v1049_v39 = vand.u32 %v4311_v23, %v4845_v52  ;;  %v4609_v16 = vld [vmem:[%s5271_s1 + $0x78] sm:$0xff]  }
  0x48   : > { %4270 = vmatmul.mubr.msk.bf16.vlgmr.msra.gmra.mxu1 %vm453_vm2, %v4595_v6  ;;  %619 = vmatpush1.bf16.msra.mxu0 %v599_v7  ;;  %v977_v22 = vand.u32 %v969_v17, %v4845_v52  ;;  %v1119_v28 = vcombine.high %v4317_v24, %v4317_v24  ;;  %v4323_v32 = vld.sshfl [vmem:[%s4847_s7 + $0x28] sm:$0x33 pattern:$0x76325410]  ;;  %v1124_v40 = vand.u32 %v4317_v24, %v4845_v52  ;;  %v4606_v4 = vld [vmem:[%s5271_s1 + $0x60] sm:$0xff]  }
  0x49   : > { %694 = vmatpush1.bf16.msra.mxu1 %v674_v10  ;;  %636 = vmatprep.mubr.bf16.mxu0 %v4668_v51  ;;  %v1052_v31 = vand.u32 %v1044_v25, %v4845_v52  ;;  %v4329_v34 = vld.sshfl [vmem:[%s4847_s7 + $0x2c] sm:$0x33 pattern:$0x76325410]  ;;  %v1194_v35 = vcombine.high %v4323_v32, %v4323_v32  ;;  %v1199_v49 = vand.u32 %v4323_v32, %v4845_v52  ;;  %v4610_v24 = vld [vmem:[%s5271_s1 + $0x80] sm:$0xff]  }
  0x4a   : > { %711 = vmatprep.mubr.bf16.mxu1 %v4668_v51  ;;  %768 = vmatprep.subr.bf16.mxu0 %v752_v12  ;;  %v1127_v33 = vand.u32 %v1119_v28, %v4845_v52  ;;  %v1269_v37 = vcombine.high %v4329_v34, %v4329_v34  ;;  %v4335_v42 = vld.sshfl [vmem:[%s4847_s7 + $0x30] sm:$0x33 pattern:$0x76325410]  ;;  %v1274_v50 = vand.u32 %v4329_v34, %v4845_v52  ;;  %v4607_v6 = vld [vmem:[%s5271_s1 + $0x68] sm:$0xff]  }
  0x4b   : > { %843 = vmatprep.subr.bf16.mxu1 %v827_v13  ;;  %v1202_v41 = vand.u32 %v1194_v35, %v4845_v52  ;;  %v4341_v44 = vld.sshfl [vmem:[%s4847_s7 + $0x34] sm:$0x33 pattern:$0x76325410]  ;;  %v1344_v46 = vcombine.high %v4335_v42, %v4335_v42  ;;  %v1349_v61 = vand.u32 %v4335_v42, %v4845_v52  ;;  %v4611_v25 = vld [vmem:[%s5271_s1 + $0x88] sm:$0xff]  }
  0x4c   : > { %v1277_v43 = vand.u32 %v1269_v37, %v4845_v52  ;;  %v1419_v47 = vcombine.high %v4341_v44, %v4341_v44  ;;  %v4347_v55 = vld.sshfl [vmem:[%s4847_s7 + $0x38] sm:$0x33 pattern:$0x76325410]  ;;  %v1424_v62 = vand.u32 %v4341_v44, %v4845_v52  ;;  %v4608_v13 = vld [vmem:[%s5271_s1 + $0x70] sm:$0xff]   ;;  %v4614_v44 = vld [vmem:[%s5271_s1 + $0xa0] sm:$0xff]  }
  0x4d   : > { %v1352_v53 = vand.u32 %v1344_v46, %v4845_v52  ;;  %v4353_v56 = vld.sshfl [vmem:[%s4847_s7 + $0x3c] sm:$0x33 pattern:$0x76325410]  ;;  %v1494_v57 = vcombine.high %v4347_v55, %v4347_v55  ;;  %v1499_v7 = vand.u32 %v4347_v55, %v4845_v52  ;;  %v4612_v34 = vld [vmem:[%s5271_s1 + $0x90] sm:$0xff]   ;;  %v4615_v46 = vld [vmem:[%s5271_s1 + $0xa8] sm:$0xff]  }
  0x4e   : > { %v1427_v54 = vand.u32 %v1419_v47, %v4845_v52  ;;  %v1569_v60 = vcombine.high %v4353_v56, %v4353_v56  ;;  %v4359_v0 = vld.sshfl [vmem:[%s4847_s7 + $0x40] sm:$0x33 pattern:$0x76325410]  ;;  %v1574_v8 = vand.u32 %v4353_v56, %v4845_v52  ;;  %v4616_v56 = vld [vmem:[%s5271_s1 + $0xb0] sm:$0xff]  }
  0x4f   : > { %4276 = vmatmul.mubr.msk.bf16.vlgmr.msra.gmra.mxu0 %vm453_vm2, %v4596_v15  ;;  %v1502_v63 = vand.u32 %v1494_v57, %v4845_v52  ;;  %v4365_v2 = vld.sshfl [vmem:[%s4847_s7 + $0x44] sm:$0x33 pattern:$0x76325410]  ;;  %v1644_v3 = vcombine.high %v4359_v0, %v4359_v0  ;;  %v1649_v17 = vand.u32 %v4359_v0, %v4845_v52 }
  0x50   : > { %4282 = vmatmul.mubr.msk.bf16.vlgmr.msra.gmra.mxu1 %vm453_vm2, %v4597_v18  ;;  %769 = vmatpush1.bf16.msra.mxu0 %v749_v19  ;;  %v1577_v1 = vand.u32 %v1569_v60, %v4845_v52  ;;  %v1719_v5 = vcombine.high %v4365_v2, %v4365_v2  ;;  %v4371_v10 = vld.sshfl [vmem:[%s4847_s7 + $0x48] sm:$0x33 pattern:$0x76325410]  ;;  %v1724_v18 = vand.u32 %v4365_v2, %v4845_v52  ;;  %v4618_v2 = vld [vmem:[%s5271_s1 + $0xc0] sm:$0xff]  }
  0x51   : > { %844 = vmatpush1.bf16.msra.mxu1 %v824_v20  ;;  %786 = vmatprep.mubr.bf16.mxu0 %v4668_v51  ;;  %v1652_v9 = vand.u32 %v1644_v3, %v4845_v52  ;;  %v4377_v12 = vld.sshfl [vmem:[%s4847_s7 + $0x4c] sm:$0x33 pattern:$0x76325410]  ;;  %v1794_v14 = vcombine.high %v4371_v10, %v4371_v10 }
  0x52   : > { %861 = vmatprep.mubr.bf16.mxu1 %v4668_v51  ;;  %918 = vmatprep.subr.bf16.mxu0 %v902_v21  ;;  %v1727_v11 = vand.u32 %v1719_v5, %v4845_v52  ;;  %v1869_v15 = vcombine.high %v4377_v12, %v4377_v12  ;;  %v4383_v21 = vld.sshfl [vmem:[%s4847_s7 + $0x50] sm:$0x33 pattern:$0x76325410]  ;;  %v1874_v28 = vand.u32 %v4377_v12, %v4845_v52 }
  0x53   : > { %993 = vmatprep.subr.bf16.mxu1 %v977_v22  ;;  %v1802_v19 = vand.u32 %v1794_v14, %v4845_v52  ;;  %v4389_v22 = vld.sshfl [vmem:[%s4847_s7 + $0x54] sm:$0x33 pattern:$0x76325410]  ;;  %v1944_v23 = vcombine.high %v4383_v21, %v4383_v21  ;;  %v1949_v37 = vand.u32 %v4383_v21, %v4845_v52 }
  0x54   : > { %v1877_v20 = vand.u32 %v1869_v15, %v4845_v52  ;;  %v4401_v32 = vld.sshfl [vmem:[%s4847_s7 + $0x5c] sm:$0x33 pattern:$0x76325410]  ;;  %v4620_v12 = vld [vmem:[%s5271_s1 + $0xd0] sm:$0xff]  }
  0x55   : > { %v2169_v35 = vcombine.high %v4401_v32, %v4401_v32  ;;  %v4413_v42 = vld.sshfl [vmem:[%s4847_s7 + $0x64] sm:$0x33 pattern:$0x76325410]  ;;  %v4621_v14 = vld [vmem:[%s5271_s1 + $0xd8] sm:$0xff]  }
  0x56   : > { %v2324_v60 = vand.u32 %v4413_v42, %v4845_v52  ;;  %v4437_v0 = vld.sshfl [vmem:[%s4847_s7 + $0x74] sm:$0x33 pattern:$0x76325410] }
  0x57   : > { %4288 = vmatmul.mubr.msk.bf16.vlgmr.msra.gmra.mxu0 %vm453_vm2, %v4598_v26  ;;  %v2019_v26 = vcombine.high %v4389_v22, %v4389_v22  ;;  %v2619_v3 = vcombine.high %v4437_v0, %v4437_v0 }
  0x58   : > { %4294 = vmatmul.mubr.msk.bf16.vlgmr.msra.gmra.mxu1 %vm453_vm2, %v4599_v27  ;;  %919 = vmatpush1.bf16.msra.mxu0 %v899_v29  ;;  %v1799_v27 = vand.u32 %v4371_v10, %v4845_v52  ;;  %v1952_v29 = vand.u32 %v1944_v23, %v4845_v52  ;;  %v4449_v10 = vld.sshfl [vmem:[%s4847_s7 + $0x7c] sm:$0x33 pattern:$0x76325410] }
  0x59   : > { %994 = vmatpush1.bf16.msra.mxu1 %v974_v30  ;;  %936 = vmatprep.mubr.bf16.mxu0 %v4668_v51  ;;  %v2027_v30 = vand.u32 %v2019_v26, %v4845_v52  ;;  %v2774_v26 = vand.u32 %v4449_v10, %v4845_v52 }
  0x5a   : > { %1011 = vmatprep.mubr.bf16.mxu1 %v4668_v51  ;;  %1068 = vmatprep.subr.bf16.mxu0 %v1052_v31  ;;  %v4395_v31 = vld.sshfl [vmem:[%s4847_s7 + $0x58] sm:$0x33 pattern:$0x76325410] }
  0x5b   : > { %1143 = vmatprep.subr.bf16.mxu1 %v1127_v33  ;;  %v2094_v33 = vcombine.high %v4395_v31, %v4395_v31  ;;  %v2099_v47 = vand.u32 %v4395_v31, %v4845_v52 }
  0x5f   : > { %4300 = vmatmul.mubr.msk.bf16.vlgmr.msra.gmra.mxu0 %vm453_vm2, %v4600_v36  ;;  %v4613_v36 = vld [vmem:[%s5271_s1 + $0x98] sm:$0xff]  }
  0x60   : > { %4306 = vmatmul.mubr.msk.bf16.vlgmr.msra.gmra.mxu1 %vm453_vm2, %v4601_v38  ;;  %1069 = vmatpush1.bf16.msra.mxu0 %v1049_v39  ;;  %v2024_v38 = vand.u32 %v4389_v22, %v4845_v52  ;;  %v2102_v39 = vand.u32 %v2094_v33, %v4845_v52  ;;  %v4622_v22 = vld [vmem:[%s5271_s1 + $0xe0] sm:$0xff]  }
  0x61   : > { %1144 = vmatpush1.bf16.msra.mxu1 %v1124_v40  ;;  %1086 = vmatprep.mubr.bf16.mxu0 %v4668_v51  ;;  %v2177_v40 = vand.u32 %v2169_v35, %v4845_v52 }
  0x62   : > { %1161 = vmatprep.mubr.bf16.mxu1 %v4668_v51  ;;  %1218 = vmatprep.subr.bf16.mxu0 %v1202_v41  ;;  %v4407_v41 = vld.sshfl [vmem:[%s4847_s7 + $0x60] sm:$0x33 pattern:$0x76325410] }
  0x63   : > { %1293 = vmatprep.subr.bf16.mxu1 %v1277_v43  ;;  %v2244_v43 = vcombine.high %v4407_v41, %v4407_v41 }
  0x67   : > { %4312 = vmatmul.mubr.msk.bf16.vlgmr.msra.gmra.mxu0 %vm453_vm2, %v4602_v45  ;;  %v2319_v45 = vcombine.high %v4413_v42, %v4413_v42  ;;  %v4626_v42 = vld [vmem:[%s5271_s1 + $0x100] sm:$0xff]  }
  0x68   : > { %4318 = vmatmul.mubr.msk.bf16.vlgmr.msra.gmra.mxu1 %vm453_vm2, %v4603_v48  ;;  %1219 = vmatpush1.bf16.msra.mxu0 %v1199_v49  ;;  %v2174_v48 = vand.u32 %v4401_v32, %v4845_v52  ;;  %v2252_v49 = vand.u32 %v2244_v43, %v4845_v52  ;;  %v4624_v32 = vld [vmem:[%s5271_s1 + $0xf0] sm:$0xff]  }
  0x69   : > { %1294 = vmatpush1.bf16.msra.mxu1 %v1274_v50  ;;  %1236 = vmatprep.mubr.bf16.mxu0 %v4668_v51  ;;  %v2327_v50 = vand.u32 %v2319_v45, %v4845_v52 }
  0x6a   : > { %1311 = vmatprep.mubr.bf16.mxu1 %v4668_v51  ;;  %1368 = vmatprep.subr.bf16.mxu0 %v1352_v53  ;;  %v4419_v53 = vld.sshfl [vmem:[%s4847_s7 + $0x68] sm:$0x33 pattern:$0x76325410] }
  0x6b   : > { %1443 = vmatprep.subr.bf16.mxu1 %v1427_v54  ;;  %v4425_v54 = vld.sshfl [vmem:[%s4847_s7 + $0x6c] sm:$0x33 pattern:$0x76325410]  ;;  %v2394_v55 = vcombine.high %v4419_v53, %v4419_v53  ;;  %v2399_v5 = vand.u32 %v4419_v53, %v4845_v52 }
  0x6c   : > { %v2469_v57 = vcombine.high %v4425_v54, %v4425_v54 }
  0x6f   : > { %4324 = vmatmul.mubr.msk.bf16.vlgmr.msra.gmra.mxu0 %vm453_vm2, %v4604_v58  ;;  %v4617_v58 = vld [vmem:[%s5271_s1 + $0xb8] sm:$0xff]  }
  0x70   : > { %4330 = vmatmul.mubr.msk.bf16.vlgmr.msra.gmra.mxu1 %vm453_vm2, %v4605_v59  ;;  %1369 = vmatpush1.bf16.msra.mxu0 %v1349_v61  ;;  %v2249_v59 = vand.u32 %v4407_v41, %v4845_v52  ;;  %v2402_v61 = vand.u32 %v2394_v55, %v4845_v52 }
  0x71   : > { %1444 = vmatpush1.bf16.msra.mxu1 %v1424_v62  ;;  %1386 = vmatprep.mubr.bf16.mxu0 %v4668_v51  ;;  %v2477_v62 = vand.u32 %v2469_v57, %v4845_v52 }
  0x72   : > { %1461 = vmatprep.mubr.bf16.mxu1 %v4668_v51  ;;  %1518 = vmatprep.subr.bf16.mxu0 %v1502_v63  ;;  %v4431_v63 = vld.sshfl [vmem:[%s4847_s7 + $0x70] sm:$0x33 pattern:$0x76325410] }
  0x73   : > { %1593 = vmatprep.subr.bf16.mxu1 %v1577_v1  ;;  %v2544_v1 = vcombine.high %v4431_v63, %v4431_v63  ;;  %v2549_v15 = vand.u32 %v4431_v63, %v4845_v52  ;;  %v4503_v63 = vld.sshfl [vmem:[%s4847_s7 + $0xa0] sm:$0x33 pattern:$0x76325410] }
  0x77   : > { %4336 = vmatmul.mubr.msk.bf16.vlgmr.msra.gmra.mxu0 %vm453_vm2, %v4606_v4  ;;  %v4619_v4 = vld [vmem:[%s5271_s1 + $0xc8] sm:$0xff]  }
  0x78   : > { %4342 = vmatmul.mubr.msk.bf16.vlgmr.msra.gmra.mxu1 %vm453_vm2, %v4607_v6  ;;  %1519 = vmatpush1.bf16.msra.mxu0 %v1499_v7  ;;  %v2474_v6 = vand.u32 %v4425_v54, %v4845_v52  ;;  %v2552_v7 = vand.u32 %v2544_v1, %v4845_v52  ;;  %v4628_v54 = vld [vmem:[%s5271_s1 + $0x110] sm:$0xff]   ;;  %v4102_v1 = vld [vmem:[%s5272_s2 + $0x8] sm:$0xff] }
  0x79   : > { %1594 = vmatpush1.bf16.msra.mxu1 %v1574_v8  ;;  %1536 = vmatprep.mubr.bf16.mxu0 %v4668_v51  ;;  %v2627_v8 = vand.u32 %v2619_v3, %v4845_v52  ;;  %v4118_v3 = vld [vmem:[%s5273_s3 + $0x8] sm:$0xff] }
  0x7a   : > { %1611 = vmatprep.mubr.bf16.mxu1 %v4668_v51  ;;  %1668 = vmatprep.subr.bf16.mxu0 %v1652_v9  ;;  %v4443_v9 = vld.sshfl [vmem:[%s4847_s7 + $0x78] sm:$0x33 pattern:$0x76325410] }
  0x7b   : > { %1743 = vmatprep.subr.bf16.mxu1 %v1727_v11  ;;  %v2694_v11 = vcombine.high %v4443_v9, %v4443_v9 }
  0x7f   : > { %4348 = vmatmul.mubr.msk.bf16.vlgmr.msra.gmra.mxu0 %vm453_vm2, %v4608_v13  ;;  %v2769_v13 = vcombine.high %v4449_v10, %v4449_v10 }
  0x80   : > { %4354 = vmatmul.mubr.msk.bf16.vlgmr.msra.gmra.mxu1 %vm453_vm2, %v4609_v16  ;;  %1669 = vmatpush1.bf16.msra.mxu0 %v1649_v17  ;;  %v2624_v16 = vand.u32 %v4437_v0, %v4845_v52  ;;  %v2702_v17 = vand.u32 %v2694_v11, %v4845_v52  ;;  %v4509_v0 = vld.sshfl [vmem:[%s4847_s7 + $0xa4] sm:$0x33 pattern:$0x76325410] }
  0x81   : > { %1744 = vmatpush1.bf16.msra.mxu1 %v1724_v18  ;;  %1686 = vmatprep.mubr.bf16.mxu0 %v4668_v51  ;;  %v2777_v18 = vand.u32 %v2769_v13, %v4845_v52  ;;  %v4515_v11 = vld.sshfl [vmem:[%s4847_s7 + $0xa8] sm:$0x33 pattern:$0x76325410] }
  0x82   : > { %1761 = vmatprep.mubr.bf16.mxu1 %v4668_v51  ;;  %1818 = vmatprep.subr.bf16.mxu0 %v1802_v19  ;;  %v4455_v19 = vld.sshfl [vmem:[%s4847_s7 + $0x80] sm:$0x33 pattern:$0x76325410]  ;;  %v3594_v13 = vcombine.high %v4515_v11, %v4515_v11 }
  0x83   : > { %1893 = vmatprep.subr.bf16.mxu1 %v1877_v20  ;;  %v4461_v20 = vld.sshfl [vmem:[%s4847_s7 + $0x84] sm:$0x33 pattern:$0x76325410]  ;;  %v2844_v21 = vcombine.high %v4455_v19, %v4455_v19  ;;  %v2849_v35 = vand.u32 %v4455_v19, %v4845_v52 }
  0x84   : > { %v2919_v23 = vcombine.high %v4461_v20, %v4461_v20  ;;  %v3602_v19 = vand.u32 %v3594_v13, %v4845_v52 }
  0x87   : > { %4360 = vmatmul.mubr.msk.bf16.vlgmr.msra.gmra.mxu0 %vm453_vm2, %v4610_v24  ;;  %v4623_v24 = vld [vmem:[%s5271_s1 + $0xe8] sm:$0xff]  }
  0x88   : > { %4366 = vmatmul.mubr.msk.bf16.vlgmr.msra.gmra.mxu1 %vm453_vm2, %v4611_v25  ;;  %1819 = vmatpush1.bf16.msra.mxu0 %v1799_v27  ;;  %v2699_v25 = vand.u32 %v4443_v9, %v4845_v52  ;;  %v2852_v27 = vand.u32 %v2844_v21, %v4845_v52  ;;  %v4527_v21 = vld.sshfl [vmem:[%s4847_s7 + $0xb0] sm:$0x33 pattern:$0x76325410] }
  0x89   : > { %1894 = vmatpush1.bf16.msra.mxu1 %v1874_v28  ;;  %1836 = vmatprep.mubr.bf16.mxu0 %v4668_v51  ;;  %v2927_v28 = vand.u32 %v2919_v23, %v4845_v52  ;;  %v3744_v23 = vcombine.high %v4527_v21, %v4527_v21 }
  0x8a   : > { %1911 = vmatprep.mubr.bf16.mxu1 %v4668_v51  ;;  %1968 = vmatprep.subr.bf16.mxu0 %v1952_v29  ;;  %v4467_v29 = vld.sshfl [vmem:[%s4847_s7 + $0x88] sm:$0x33 pattern:$0x76325410] }
  0x8b   : > { %2043 = vmatprep.subr.bf16.mxu1 %v2027_v30  ;;  %v4473_v30 = vld.sshfl [vmem:[%s4847_s7 + $0x8c] sm:$0x33 pattern:$0x76325410]  ;;  %v2994_v31 = vcombine.high %v4467_v29, %v4467_v29  ;;  %v2999_v45 = vand.u32 %v4467_v29, %v4845_v52  ;;  %v3752_v29 = vand.u32 %v3744_v23, %v4845_v52 }
  0x8c   : > { %v3069_v33 = vcombine.high %v4473_v30, %v4473_v30 }
  0x8f   : > { %4372 = vmatmul.mubr.msk.bf16.vlgmr.msra.gmra.mxu0 %vm453_vm2, %v4612_v34  ;;  %v4625_v34 = vld [vmem:[%s5271_s1 + $0xf8] sm:$0xff]  }
  0x90   : > { %4378 = vmatmul.mubr.msk.bf16.vlgmr.msra.gmra.mxu1 %vm453_vm2, %v4613_v36  ;;  %1969 = vmatpush1.bf16.msra.mxu0 %v1949_v37  ;;  %v2924_v36 = vand.u32 %v4461_v20, %v4845_v52  ;;  %v3002_v37 = vand.u32 %v2994_v31, %v4845_v52  ;;  %v4539_v31 = vld.sshfl [vmem:[%s4847_s7 + $0xb8] sm:$0x33 pattern:$0x76325410] }
  0x91   : > { %2044 = vmatpush1.bf16.msra.mxu1 %v2024_v38  ;;  %1986 = vmatprep.mubr.bf16.mxu0 %v4668_v51  ;;  %v3077_v38 = vand.u32 %v3069_v33, %v4845_v52  ;;  %v3894_v33 = vcombine.high %v4539_v31, %v4539_v31 }
  0x92   : > { %2061 = vmatprep.mubr.bf16.mxu1 %v4668_v51  ;;  %2118 = vmatprep.subr.bf16.mxu0 %v2102_v39  ;;  %v4479_v39 = vld.sshfl [vmem:[%s4847_s7 + $0x90] sm:$0x33 pattern:$0x76325410] }
  0x93   : > { %2193 = vmatprep.subr.bf16.mxu1 %v2177_v40  ;;  %v4485_v40 = vld.sshfl [vmem:[%s4847_s7 + $0x94] sm:$0x33 pattern:$0x76325410]  ;;  %v3144_v41 = vcombine.high %v4479_v39, %v4479_v39  ;;  %v3149_v57 = vand.u32 %v4479_v39, %v4845_v52  ;;  %v3902_v39 = vand.u32 %v3894_v33, %v4845_v52 }
  0x94   : > { %v3219_v43 = vcombine.high %v4485_v40, %v4485_v40 }
  0x97   : > { %4384 = vmatmul.mubr.msk.bf16.vlgmr.msra.gmra.mxu0 %vm453_vm2, %v4614_v44  ;;  %v4627_v44 = vld [vmem:[%s5271_s1 + $0x108] sm:$0xff]  }
  0x98   : > { %4390 = vmatmul.mubr.msk.bf16.vlgmr.msra.gmra.mxu1 %vm453_vm2, %v4615_v46  ;;  %2119 = vmatpush1.bf16.msra.mxu0 %v2099_v47  ;;  %v3074_v46 = vand.u32 %v4473_v30, %v4845_v52  ;;  %v3152_v47 = vand.u32 %v3144_v41, %v4845_v52  ;;  %v4551_v41 = vld.sshfl [vmem:[%s4847_s7 + $0xc0] sm:$0x33 pattern:$0x76325410] }
  0x99   : > { %2194 = vmatpush1.bf16.msra.mxu1 %v2174_v48  ;;  %2136 = vmatprep.mubr.bf16.mxu0 %v4668_v51  ;;  %v3227_v48 = vand.u32 %v3219_v43, %v4845_v52  ;;  %v4638_v43 = vld [vmem:[%s5271_s1 + $0x160] sm:$0xff]  }
  0x9a   : > { %2211 = vmatprep.mubr.bf16.mxu1 %v4668_v51  ;;  %2268 = vmatprep.subr.bf16.mxu0 %v2252_v49  ;;  %v4491_v49 = vld.sshfl [vmem:[%s4847_s7 + $0x98] sm:$0x33 pattern:$0x76325410] }
  0x9b   : > { %2343 = vmatprep.subr.bf16.mxu1 %v2327_v50  ;;  %v4497_v50 = vld.sshfl [vmem:[%s4847_s7 + $0x9c] sm:$0x33 pattern:$0x76325410]  ;;  %v3294_v53 = vcombine.high %v4491_v49, %v4491_v49 }
  0x9c   : > { %v3369_v55 = vcombine.high %v4497_v50, %v4497_v50 }
  0x9f   : > { %4396 = vmatmul.mubr.msk.bf16.vlgmr.msra.gmra.mxu0 %vm453_vm2, %v4616_v56  ;;  %v4629_v56 = vld [vmem:[%s5271_s1 + $0x118] sm:$0xff]  }
  0xa0   : > { %4402 = vmatmul.mubr.msk.bf16.vlgmr.msra.gmra.mxu1 %vm453_vm2, %v4617_v58  ;;  %2269 = vmatpush1.bf16.msra.mxu0 %v2249_v59  ;;  %v4101_v58 = vld [vmem:[%s5272_s2] sm:$0xff]  ;;  %v3224_v59 = vand.u32 %v4485_v40, %v4845_v52 }
  0xa1   : > { %2344 = vmatpush1.bf16.msra.mxu1 %v2324_v60  ;;  %2286 = vmatprep.mubr.bf16.mxu0 %v4668_v51  ;;  %v3302_v60 = vand.u32 %v3294_v53, %v4845_v52  ;;  %v4642_v53 = vld [vmem:[%s5271_s1 + $0x180] sm:$0xff]  }
  0xa2   : > { %2361 = vmatprep.mubr.bf16.mxu1 %v4668_v51  ;;  %2418 = vmatprep.subr.bf16.mxu0 %v2402_v61  ;;  %v4117_v61 = vld [vmem:[%s5273_s3] sm:$0xff] }
  0xa3   : > { %2493 = vmatprep.subr.bf16.mxu1 %v2477_v62  ;;  %4105 = vperm.xlu0 %4592, %v4101_v58   ;;  %v3377_v62 = vand.u32 %v3369_v55, %v4845_v52 }
  0xa4   : > { %4121 = vperm.xlu1 %4593, %v4117_v61  }
  0xa7   : > { %4408 = vmatmul.mubr.msk.bf16.vlgmr.msra.gmra.mxu0 %vm453_vm2, %v4618_v2  ;;  %v3444_v2 = vcombine.high %v4503_v63, %v4503_v63  ;;  %4110 = vperm.xlu0 %4592, %v4102_v1  }
  0xa8   : > { %4414 = vmatmul.mubr.msk.bf16.vlgmr.msra.gmra.mxu1 %vm453_vm2, %v4619_v4  ;;  %2419 = vmatpush1.bf16.msra.mxu0 %v2399_v5  ;;  %v4630_v4 = vld [vmem:[%s5271_s1 + $0x120] sm:$0xff]   ;;  %v3519_v5 = vcombine.high %v4509_v0, %v4509_v0 }
  0xa9   : > { %2494 = vmatpush1.bf16.msra.mxu1 %v2474_v6  ;;  %2436 = vmatprep.mubr.bf16.mxu0 %v4668_v51  ;;  %v4631_v6 = vld [vmem:[%s5271_s1 + $0x128] sm:$0xff]   ;;  %v3452_v9 = vand.u32 %v3444_v2, %v4845_v52 }
  0xaa   : > { %2511 = vmatprep.mubr.bf16.mxu1 %v4668_v51  ;;  %2568 = vmatprep.subr.bf16.mxu0 %v2552_v7  ;;  %v3299_v7 = vand.u32 %v4491_v49, %v4845_v52  ;;  %v3527_v10 = vand.u32 %v3519_v5, %v4845_v52  ;;  %v4641_v49 = vld [vmem:[%s5271_s1 + $0x178] sm:$0xff]  }
  0xab   : > { %2643 = vmatprep.subr.bf16.mxu1 %v2627_v8  ;;  %4126 = vperm.xlu1 %4593, %v4118_v3   ;;  %v3374_v8 = vand.u32 %v4497_v50, %v4845_v52  ;;  %v4049_v50 = vand.u32 %v4551_v41, %v4845_v52 }
  0xaf   : > { %4420 = vmatmul.mubr.msk.bf16.vlgmr.msra.gmra.mxu0 %vm453_vm2, %v4620_v12  ;;  %v4521_v12 = vld.sshfl [vmem:[%s4847_s7 + $0xac] sm:$0x33 pattern:$0x76325410] }
  0xb0   : > { %4426 = vmatmul.mubr.msk.bf16.vlgmr.msra.gmra.mxu1 %vm453_vm2, %v4621_v14  ;;  %2569 = vmatpush1.bf16.msra.mxu0 %v2549_v15  ;;  %v4632_v14 = vld [vmem:[%s5271_s1 + $0x130] sm:$0xff]   ;;  %v3669_v15 = vcombine.high %v4521_v12, %v4521_v12 }
  0xb1   : > { %2644 = vmatpush1.bf16.msra.mxu1 %v2624_v16  ;;  %2586 = vmatprep.mubr.bf16.mxu0 %v4668_v51  ;;  %v4633_v16 = vld [vmem:[%s5271_s1 + $0x138] sm:$0xff]  }
  0xb2   : > { %2661 = vmatprep.mubr.bf16.mxu1 %v4668_v51  ;;  %2718 = vmatprep.subr.bf16.mxu0 %v2702_v17  ;;  %v3449_v17 = vand.u32 %v4503_v63, %v4845_v52  ;;  %v3677_v20 = vand.u32 %v3669_v15, %v4845_v52 }
  0xb3   : > { %2793 = vmatprep.subr.bf16.mxu1 %v2777_v18  ;;  %v3524_v18 = vand.u32 %v4509_v0, %v4845_v52 }
  0xb7   : > { %4432 = vmatmul.mubr.msk.bf16.vlgmr.msra.gmra.mxu0 %vm453_vm2, %v4622_v22  ;;  %v4533_v22 = vld.sshfl [vmem:[%s4847_s7 + $0xb4] sm:$0x33 pattern:$0x76325410] }
  0xb8   : > { %4438 = vmatmul.mubr.msk.bf16.vlgmr.msra.gmra.mxu1 %vm453_vm2, %v4623_v24  ;;  %2719 = vmatpush1.bf16.msra.mxu0 %v2699_v25  ;;  %v4634_v24 = vld [vmem:[%s5271_s1 + $0x140] sm:$0xff]   ;;  %v3819_v25 = vcombine.high %v4533_v22, %v4533_v22 }
  0xb9   : > { %2794 = vmatpush1.bf16.msra.mxu1 %v2774_v26  ;;  %2736 = vmatprep.mubr.bf16.mxu0 %v4668_v51  ;;  %v4635_v26 = vld [vmem:[%s5271_s1 + $0x148] sm:$0xff]  }
  0xba   : > { %2811 = vmatprep.mubr.bf16.mxu1 %v4668_v51  ;;  %2868 = vmatprep.subr.bf16.mxu0 %v2852_v27  ;;  %v3599_v27 = vand.u32 %v4515_v11, %v4845_v52  ;;  %v3827_v30 = vand.u32 %v3819_v25, %v4845_v52 }
  0xbb   : > { %2943 = vmatprep.subr.bf16.mxu1 %v2927_v28  ;;  %v3674_v28 = vand.u32 %v4521_v12, %v4845_v52 }
  0xbf   : > { %4444 = vmatmul.mubr.msk.bf16.vlgmr.msra.gmra.mxu0 %vm453_vm2, %v4624_v32  ;;  %v4545_v32 = vld.sshfl [vmem:[%s4847_s7 + $0xbc] sm:$0x33 pattern:$0x76325410] }
  0xc0   : > { %4450 = vmatmul.mubr.msk.bf16.vlgmr.msra.gmra.mxu1 %vm453_vm2, %v4625_v34  ;;  %2869 = vmatpush1.bf16.msra.mxu0 %v2849_v35  ;;  %v4636_v34 = vld [vmem:[%s5271_s1 + $0x150] sm:$0xff]   ;;  %v3969_v35 = vcombine.high %v4545_v32, %v4545_v32 }
  0xc1   : > { %2944 = vmatpush1.bf16.msra.mxu1 %v2924_v36  ;;  %2886 = vmatprep.mubr.bf16.mxu0 %v4668_v51  ;;  %v4637_v36 = vld [vmem:[%s5271_s1 + $0x158] sm:$0xff]  }
  0xc2   : > { %2961 = vmatprep.mubr.bf16.mxu1 %v4668_v51  ;;  %3018 = vmatprep.subr.bf16.mxu0 %v3002_v37  ;;  %v3749_v37 = vand.u32 %v4527_v21, %v4845_v52  ;;  %v3977_v40 = vand.u32 %v3969_v35, %v4845_v52 }
  0xc3   : > { %3093 = vmatprep.subr.bf16.mxu1 %v3077_v38  ;;  %v3824_v38 = vand.u32 %v4533_v22, %v4845_v52 }
  0xc7   : > { %4456 = vmatmul.mubr.msk.bf16.vlgmr.msra.gmra.mxu0 %vm453_vm2, %v4626_v42  ;;  %v4044_v42 = vcombine.high %v4551_v41, %v4551_v41 }
  0xc8   : > { %4462 = vmatmul.mubr.msk.bf16.vlgmr.msra.gmra.mxu1 %vm453_vm2, %v4627_v44  ;;  %3019 = vmatpush1.bf16.msra.mxu0 %v2999_v45  ;;  %v4639_v44 = vld [vmem:[%s5271_s1 + $0x168] sm:$0xff]   ;;  %v3899_v45 = vand.u32 %v4539_v31, %v4845_v52 }
  0xc9   : > { %3094 = vmatpush1.bf16.msra.mxu1 %v3074_v46  ;;  %3036 = vmatprep.mubr.bf16.mxu0 %v4668_v51  ;;  %v3974_v46 = vand.u32 %v4545_v32, %v4845_v52 }
  0xca   : > { %3111 = vmatprep.mubr.bf16.mxu1 %v4668_v51  ;;  %3168 = vmatprep.subr.bf16.mxu0 %v3152_v47  ;;  %v4052_v47 = vand.u32 %v4044_v42, %v4845_v52 }
  0xcb   : > { %3243 = vmatprep.subr.bf16.mxu1 %v3227_v48  ;;  %v4640_v48 = vld [vmem:[%s5271_s1 + $0x170] sm:$0xff]  }
  0xcf   : > { %4468 = vmatmul.mubr.msk.bf16.vlgmr.msra.gmra.mxu0 %vm453_vm2, %v4628_v54 }
  0xd0   : > { %4474 = vmatmul.mubr.msk.bf16.vlgmr.msra.gmra.mxu1 %vm453_vm2, %v4629_v56  ;;  %3169 = vmatpush1.bf16.msra.mxu0 %v3149_v57 }
  0xd1   : > { %3244 = vmatpush1.bf16.msra.mxu1 %v3224_v59  ;;  %3186 = vmatprep.mubr.bf16.mxu0 %v4668_v51 }
  0xd2   : > { %3261 = vmatprep.mubr.bf16.mxu1 %v4668_v51  ;;  %3318 = vmatprep.subr.bf16.mxu0 %v3302_v60 }
  0xd3   : > { %3393 = vmatprep.subr.bf16.mxu1 %v3377_v62 }
  0xd7   : > { %4480 = vmatmul.mubr.msk.bf16.vlgmr.msra.gmra.mxu0 %vm453_vm2, %v4630_v4 }
  0xd8   : > { %4486 = vmatmul.mubr.msk.bf16.vlgmr.msra.gmra.mxu1 %vm453_vm2, %v4631_v6  ;;  %3319 = vmatpush1.bf16.msra.mxu0 %v3299_v7 }
  0xd9   : > { %3394 = vmatpush1.bf16.msra.mxu1 %v3374_v8  ;;  %3336 = vmatprep.mubr.bf16.mxu0 %v4668_v51 }
  0xda   : > { %3411 = vmatprep.mubr.bf16.mxu1 %v4668_v51  ;;  %3468 = vmatprep.subr.bf16.mxu0 %v3452_v9 }
  0xdb   : > { %3543 = vmatprep.subr.bf16.mxu1 %v3527_v10 }
  0xdf   : > { %4492 = vmatmul.mubr.msk.bf16.vlgmr.msra.gmra.mxu0 %vm453_vm2, %v4632_v14 }
  0xe0   : > { %4498 = vmatmul.mubr.msk.bf16.vlgmr.msra.gmra.mxu1 %vm453_vm2, %v4633_v16  ;;  %3469 = vmatpush1.bf16.msra.mxu0 %v3449_v17 }
  0xe1   : > { %3544 = vmatpush1.bf16.msra.mxu1 %v3524_v18  ;;  %3486 = vmatprep.mubr.bf16.mxu0 %v4668_v51 }
  0xe2   : > { %3561 = vmatprep.mubr.bf16.mxu1 %v4668_v51  ;;  %3618 = vmatprep.subr.bf16.mxu0 %v3602_v19 }
  0xe3   : > { %3693 = vmatprep.subr.bf16.mxu1 %v3677_v20 }
  0xe7   : > { %4504 = vmatmul.mubr.msk.bf16.vlgmr.msra.gmra.mxu0 %vm453_vm2, %v4634_v24 }
  0xe8   : > { %4510 = vmatmul.mubr.msk.bf16.vlgmr.msra.gmra.mxu1 %vm453_vm2, %v4635_v26  ;;  %3619 = vmatpush1.bf16.msra.mxu0 %v3599_v27 }
  0xe9   : > { %3694 = vmatpush1.bf16.msra.mxu1 %v3674_v28  ;;  %3636 = vmatprep.mubr.bf16.mxu0 %v4668_v51 }
  0xea   : > { %3711 = vmatprep.mubr.bf16.mxu1 %v4668_v51  ;;  %3768 = vmatprep.subr.bf16.mxu0 %v3752_v29 }
  0xeb   : > { %3843 = vmatprep.subr.bf16.mxu1 %v3827_v30 }
  0xef   : > { %4516 = vmatmul.mubr.msk.bf16.vlgmr.msra.gmra.mxu0 %vm453_vm2, %v4636_v34 }
  0xf0   : > { %4522 = vmatmul.mubr.msk.bf16.vlgmr.msra.gmra.mxu1 %vm453_vm2, %v4637_v36  ;;  %3769 = vmatpush1.bf16.msra.mxu0 %v3749_v37 }
  0xf1   : > { %3844 = vmatpush1.bf16.msra.mxu1 %v3824_v38  ;;  %3786 = vmatprep.mubr.bf16.mxu0 %v4668_v51 }
  0xf2   : > { %3861 = vmatprep.mubr.bf16.mxu1 %v4668_v51  ;;  %3918 = vmatprep.subr.bf16.mxu0 %v3902_v39 }
  0xf3   : > { %3993 = vmatprep.subr.bf16.mxu1 %v3977_v40 }
  0xf7   : > { %4528 = vmatmul.mubr.msk.bf16.vlgmr.msra.gmra.mxu0 %vm453_vm2, %v4638_v43 }
  0xf8   : > { %4534 = vmatmul.mubr.msk.bf16.vlgmr.msra.gmra.mxu1 %vm453_vm2, %v4639_v44  ;;  %3919 = vmatpush1.bf16.msra.mxu0 %v3899_v45 }
  0xf9   : > { %3994 = vmatpush1.bf16.msra.mxu1 %v3974_v46  ;;  %3936 = vmatprep.mubr.bf16.mxu0 %v4668_v51 }
  0xfa   : > { %4011 = vmatprep.mubr.bf16.mxu1 %v4668_v51  ;;  %4068 = vmatprep.subr.bf16.mxu0 %v4052_v47 }
  0xff   : > { %4540 = vmatmul.mubr.msk.bf16.vlgmr.msra.gmra.mxu0 %vm453_vm2, %v4640_v48 }
 0x100   : > { %4546 = vmatmul.mubr.msk.bf16.vlgmr.msra.gmra.mxu1 %vm453_vm2, %v4641_v49  ;;  %4069 = vmatpush1.bf16.msra.mxu0 %v4049_v50 }
 0x101   : > { %4086 = vmatprep.mubr.bf16.mxu0 %v4668_v51 }
 0x107   : > { %v501_v54 = vpop.f32.mrf.mxu0  ;;  %4552 = vmatmul.mubr.msk.bf16.vlgmr.msra.gmra.mxu0 %vm453_vm2, %v4642_v53 }
 0x108   : > { %v567_v55 = vpop.f32.mrf.mxu1 }
 0x109   : > { %v568_v56 = vadd.f32 %v567_v55, %v501_v54  ;;  %v503_v57 = vpop.f32.mrf.mxu0 }
 0x10a   : > { %v569_v58 = vpop.f32.mrf.mxu1 }
 0x10b   : > { %v570_v59 = vadd.f32 %v569_v58, %v503_v57  ;;  %v505_v52 = vpop.f32.mrf.mxu0 }
 0x10c   : > { %v571_v60 = vpop.f32.mrf.mxu1 }
 0x10d   : > { %v572_v61 = vadd.f32 %v571_v60, %v505_v52  ;;  %v507_v62 = vpop.f32.mrf.mxu0 }
 0x10e   : > { %v573_v63 = vpop.f32.mrf.mxu1 }
 0x10f   : > { %v574_v0 = vadd.f32 %v573_v63, %v507_v62  ;;  %v638_v1 = vpop.f32.mrf.mxu0 }
 0x110   : > { %v647_v51 = vadd.f32 %v638_v1, %v568_v56  ;;  %v713_v2 = vpop.f32.mrf.mxu1 }
 0x111   : > { %v640_v3 = vpop.f32.mrf.mxu0 }
 0x112   : > { %v722_v4 = vadd.f32 %v713_v2, %v647_v51  ;;  %v648_v5 = vadd.f32 %v640_v3, %v570_v59  ;;  %v715_v6 = vpop.f32.mrf.mxu1 }
 0x113   : > { %v642_v7 = vpop.f32.mrf.mxu0 }
 0x114   : > { %v723_v8 = vadd.f32 %v715_v6, %v648_v5  ;;  %v649_v9 = vadd.f32 %v642_v7, %v572_v61  ;;  %v717_v10 = vpop.f32.mrf.mxu1 }
 0x115   : > { %v644_v11 = vpop.f32.mrf.mxu0 }
 0x116   : > { %v724_v12 = vadd.f32 %v717_v10, %v649_v9  ;;  %v650_v13 = vadd.f32 %v644_v11, %v574_v0  ;;  %v719_v14 = vpop.f32.mrf.mxu1 }
 0x117   : > { %v788_v15 = vpop.f32.mrf.mxu0 }
 0x118   : > { %v725_v16 = vadd.f32 %v719_v14, %v650_v13  ;;  %v797_v17 = vadd.f32 %v788_v15, %v722_v4  ;;  %v863_v18 = vpop.f32.mrf.mxu1 }
 0x119   : > { %v790_v19 = vpop.f32.mrf.mxu0 }
 0x11a   : > { %v872_v20 = vadd.f32 %v863_v18, %v797_v17  ;;  %v798_v21 = vadd.f32 %v790_v19, %v723_v8  ;;  %v865_v22 = vpop.f32.mrf.mxu1 }
 0x11b   : > { %v792_v23 = vpop.f32.mrf.mxu0 }
 0x11c   : > { %v873_v24 = vadd.f32 %v865_v22, %v798_v21  ;;  %v799_v25 = vadd.f32 %v792_v23, %v724_v12  ;;  %v867_v26 = vpop.f32.mrf.mxu1 }
 0x11d   : > { %v794_v27 = vpop.f32.mrf.mxu0 }
 0x11e   : > { %v874_v28 = vadd.f32 %v867_v26, %v799_v25  ;;  %v800_v29 = vadd.f32 %v794_v27, %v725_v16  ;;  %v869_v30 = vpop.f32.mrf.mxu1 }
 0x11f   : > { %v938_v31 = vpop.f32.mrf.mxu0 }
 0x120   : > { %v875_v32 = vadd.f32 %v869_v30, %v800_v29  ;;  %v947_v33 = vadd.f32 %v938_v31, %v872_v20  ;;  %v1013_v34 = vpop.f32.mrf.mxu1 }
 0x121   : > { %v940_v35 = vpop.f32.mrf.mxu0 }
 0x122   : > { %v1022_v36 = vadd.f32 %v1013_v34, %v947_v33  ;;  %v948_v37 = vadd.f32 %v940_v35, %v873_v24  ;;  %v1015_v38 = vpop.f32.mrf.mxu1 }
 0x123   : > { %v942_v39 = vpop.f32.mrf.mxu0 }
 0x124   : > { %v1023_v40 = vadd.f32 %v1015_v38, %v948_v37  ;;  %v949_v41 = vadd.f32 %v942_v39, %v874_v28  ;;  %v1017_v42 = vpop.f32.mrf.mxu1 }
 0x125   : > { %v944_v43 = vpop.f32.mrf.mxu0 }
 0x126   : > { %v1024_v44 = vadd.f32 %v1017_v42, %v949_v41  ;;  %v950_v45 = vadd.f32 %v944_v43, %v875_v32  ;;  %v1019_v46 = vpop.f32.mrf.mxu1 }
 0x127   : > { %v1088_v47 = vpop.f32.mrf.mxu0 }
 0x128   : > { %v1025_v48 = vadd.f32 %v1019_v46, %v950_v45  ;;  %v1097_v49 = vadd.f32 %v1088_v47, %v1022_v36  ;;  %v1163_v50 = vpop.f32.mrf.mxu1 }
 0x129   : > { %v1090_v53 = vpop.f32.mrf.mxu0 }
 0x12a   : > { %v1172_v54 = vadd.f32 %v1163_v50, %v1097_v49  ;;  %v1098_v55 = vadd.f32 %v1090_v53, %v1023_v40  ;;  %v1165_v56 = vpop.f32.mrf.mxu1 }
 0x12b   : > { %v1092_v57 = vpop.f32.mrf.mxu0 }
 0x12c   : > { %v1173_v58 = vadd.f32 %v1165_v56, %v1098_v55  ;;  %v1099_v59 = vadd.f32 %v1092_v57, %v1024_v44  ;;  %v1167_v52 = vpop.f32.mrf.mxu1 }
 0x12d   : > { %v1094_v60 = vpop.f32.mrf.mxu0 }
 0x12e   : > { %v1174_v61 = vadd.f32 %v1167_v52, %v1099_v59  ;;  %v1100_v62 = vadd.f32 %v1094_v60, %v1025_v48  ;;  %v1169_v63 = vpop.f32.mrf.mxu1 }
 0x12f   : > { %v1238_v0 = vpop.f32.mrf.mxu0 }
 0x130   : > { %v1175_v1 = vadd.f32 %v1169_v63, %v1100_v62  ;;  %v1247_v51 = vadd.f32 %v1238_v0, %v1172_v54  ;;  %v1313_v2 = vpop.f32.mrf.mxu1 }
 0x131   : > { %v1240_v3 = vpop.f32.mrf.mxu0 }
 0x132   : > { %v1322_v4 = vadd.f32 %v1313_v2, %v1247_v51  ;;  %v1248_v5 = vadd.f32 %v1240_v3, %v1173_v58  ;;  %v1315_v6 = vpop.f32.mrf.mxu1 }
 0x133   : > { %v1242_v7 = vpop.f32.mrf.mxu0 }
 0x134   : > { %v1323_v8 = vadd.f32 %v1315_v6, %v1248_v5  ;;  %v1249_v9 = vadd.f32 %v1242_v7, %v1174_v61  ;;  %v1317_v10 = vpop.f32.mrf.mxu1 }
 0x135   : > { %v1244_v11 = vpop.f32.mrf.mxu0 }
 0x136   : > { %v1324_v12 = vadd.f32 %v1317_v10, %v1249_v9  ;;  %v1250_v13 = vadd.f32 %v1244_v11, %v1175_v1  ;;  %v1319_v14 = vpop.f32.mrf.mxu1 }
 0x137   : > { %v1388_v15 = vpop.f32.mrf.mxu0 }
 0x138   : > { %v1325_v16 = vadd.f32 %v1319_v14, %v1250_v13  ;;  %v1397_v17 = vadd.f32 %v1388_v15, %v1322_v4  ;;  %v1463_v18 = vpop.f32.mrf.mxu1 }
 0x139   : > { %v1390_v19 = vpop.f32.mrf.mxu0 }
 0x13a   : > { %v1472_v20 = vadd.f32 %v1463_v18, %v1397_v17  ;;  %v1398_v21 = vadd.f32 %v1390_v19, %v1323_v8  ;;  %v1465_v22 = vpop.f32.mrf.mxu1 }
 0x13b   : > { %v1392_v23 = vpop.f32.mrf.mxu0 }
 0x13c   : > { %v1473_v24 = vadd.f32 %v1465_v22, %v1398_v21  ;;  %v1399_v25 = vadd.f32 %v1392_v23, %v1324_v12  ;;  %v1467_v26 = vpop.f32.mrf.mxu1 }
 0x13d   : > { %v1394_v27 = vpop.f32.mrf.mxu0 }
 0x13e   : > { %v1474_v28 = vadd.f32 %v1467_v26, %v1399_v25  ;;  %v1400_v29 = vadd.f32 %v1394_v27, %v1325_v16  ;;  %v1469_v30 = vpop.f32.mrf.mxu1 }
 0x13f   : > { %v1538_v31 = vpop.f32.mrf.mxu0 }
 0x140   : > { %v1475_v32 = vadd.f32 %v1469_v30, %v1400_v29  ;;  %v1547_v33 = vadd.f32 %v1538_v31, %v1472_v20  ;;  %v1613_v34 = vpop.f32.mrf.mxu1 }
 0x141   : > { %v1540_v35 = vpop.f32.mrf.mxu0 }
 0x142   : > { %v1622_v36 = vadd.f32 %v1613_v34, %v1547_v33  ;;  %v1548_v37 = vadd.f32 %v1540_v35, %v1473_v24  ;;  %v1615_v38 = vpop.f32.mrf.mxu1 }
 0x143   : > { %v1542_v39 = vpop.f32.mrf.mxu0 }
 0x144   : > { %v1623_v40 = vadd.f32 %v1615_v38, %v1548_v37  ;;  %v1549_v41 = vadd.f32 %v1542_v39, %v1474_v28  ;;  %v1617_v42 = vpop.f32.mrf.mxu1 }
 0x145   : > { %v1544_v43 = vpop.f32.mrf.mxu0 }
 0x146   : > { %v1624_v44 = vadd.f32 %v1617_v42, %v1549_v41  ;;  %v1550_v45 = vadd.f32 %v1544_v43, %v1475_v32  ;;  %v1619_v46 = vpop.f32.mrf.mxu1 }
 0x147   : > { %v1688_v47 = vpop.f32.mrf.mxu0 }
 0x148   : > { %v1625_v48 = vadd.f32 %v1619_v46, %v1550_v45  ;;  %v1697_v49 = vadd.f32 %v1688_v47, %v1622_v36  ;;  %v1763_v50 = vpop.f32.mrf.mxu1 }
 0x149   : > { %v1690_v53 = vpop.f32.mrf.mxu0 }
 0x14a   : > { %v1698_v54 = vadd.f32 %v1690_v53, %v1623_v40  ;;  %v1765_v55 = vpop.f32.mrf.mxu1  ;;  %v1772_v25 = vadd.f32 %v1763_v50, %v1697_v49 }
 0x14b   : > { %v1692_v56 = vpop.f32.mrf.mxu0 }
 0x14c   : > { %v1699_v57 = vadd.f32 %v1692_v56, %v1624_v44  ;;  %v1767_v58 = vpop.f32.mrf.mxu1  ;;  %v1773_v28 = vadd.f32 %v1765_v55, %v1698_v54 }
 0x14d   : > { %v1694_v59 = vpop.f32.mrf.mxu0 }
 0x14e   : > { %v1700_v52 = vadd.f32 %v1694_v59, %v1625_v48  ;;  %v1769_v60 = vpop.f32.mrf.mxu1  ;;  %v1774_v32 = vadd.f32 %v1767_v58, %v1699_v57 }
 0x14f   : > { %v1838_v61 = vpop.f32.mrf.mxu0 }
 0x150   : > { %v1913_v62 = vpop.f32.mrf.mxu1  ;;  %v1847_v29 = vadd.f32 %v1838_v61, %v1772_v25  ;;  %v1775_v36 = vadd.f32 %v1769_v60, %v1700_v52 }
 0x151   : > { %v1840_v63 = vpop.f32.mrf.mxu0 }
 0x152   : > { %v1915_v0 = vpop.f32.mrf.mxu1  ;;  %v1848_v33 = vadd.f32 %v1840_v63, %v1773_v28  ;;  %v1922_v37 = vadd.f32 %v1913_v62, %v1847_v29 }
 0x153   : > { %v1842_v1 = vpop.f32.mrf.mxu0 }
 0x154   : > { %v1917_v51 = vpop.f32.mrf.mxu1  ;;  %v1849_v38 = vadd.f32 %v1842_v1, %v1774_v32  ;;  %v1923_v41 = vadd.f32 %v1915_v0, %v1848_v33 }
 0x155   : > { %v1844_v2 = vpop.f32.mrf.mxu0 }
 0x156   : > { %v1919_v3 = vpop.f32.mrf.mxu1  ;;  %v1850_v42 = vadd.f32 %v1844_v2, %v1775_v36  ;;  %v1924_v46 = vadd.f32 %v1917_v51, %v1849_v38 }
 0x157   : > { %v1988_v4 = vpop.f32.mrf.mxu0 }
 0x158   : > { %v2063_v5 = vpop.f32.mrf.mxu1  ;;  %v1997_v43 = vadd.f32 %v1988_v4, %v1922_v37  ;;  %v1925_v50 = vadd.f32 %v1919_v3, %v1850_v42 }
 0x159   : > { %v1990_v6 = vpop.f32.mrf.mxu0 }
 0x15a   : > { %v2065_v7 = vpop.f32.mrf.mxu1  ;;  %v1998_v47 = vadd.f32 %v1990_v6, %v1923_v41  ;;  %v2072_v53 = vadd.f32 %v2063_v5, %v1997_v43 }
 0x15b   : > { %v1992_v8 = vpop.f32.mrf.mxu0 }
 0x15c   : > { %v2067_v9 = vpop.f32.mrf.mxu1  ;;  %v1999_v54 = vadd.f32 %v1992_v8, %v1924_v46  ;;  %v2073_v57 = vadd.f32 %v2065_v7, %v1998_v47 }
 0x15d   : > { %v1994_v10 = vpop.f32.mrf.mxu0 }
 0x15e   : > { %v2069_v11 = vpop.f32.mrf.mxu1  ;;  %v2000_v58 = vadd.f32 %v1994_v10, %v1925_v50  ;;  %v2074_v61 = vadd.f32 %v2067_v9, %v1999_v54 }
 0x15f   : > { %v2138_v12 = vpop.f32.mrf.mxu0 }
 0x160   : > { %v2213_v13 = vpop.f32.mrf.mxu1  ;;  %v2147_v59 = vadd.f32 %v2138_v12, %v2072_v53  ;;  %v2075_v1 = vadd.f32 %v2069_v11, %v2000_v58 }
 0x161   : > { %v2140_v14 = vpop.f32.mrf.mxu0 }
 0x162   : > { %v2215_v15 = vpop.f32.mrf.mxu1  ;;  %v2148_v62 = vadd.f32 %v2140_v14, %v2073_v57  ;;  %v2222_v2 = vadd.f32 %v2213_v13, %v2147_v59 }
 0x163   : > { %v2142_v16 = vpop.f32.mrf.mxu0 }
 0x164   : > { %v2217_v17 = vpop.f32.mrf.mxu1  ;;  %v2149_v51 = vadd.f32 %v2142_v16, %v2074_v61  ;;  %v2223_v25 = vadd.f32 %v2215_v15, %v2148_v62 }
 0x165   : > { %v2144_v18 = vpop.f32.mrf.mxu0 }
 0x166   : > { %v2219_v19 = vpop.f32.mrf.mxu1  ;;  %v2150_v3 = vadd.f32 %v2144_v18, %v2075_v1  ;;  %v2224_v29 = vadd.f32 %v2217_v17, %v2149_v51 }
 0x167   : > { %v2288_v20 = vpop.f32.mrf.mxu0 }
 0x168   : > { %v2363_v21 = vpop.f32.mrf.mxu1  ;;  %v2297_v5 = vadd.f32 %v2288_v20, %v2222_v2  ;;  %v2225_v32 = vadd.f32 %v2219_v19, %v2150_v3 }
 0x169   : > { %v2290_v22 = vpop.f32.mrf.mxu0 }
 0x16a   : > { %v2365_v23 = vpop.f32.mrf.mxu1  ;;  %v2298_v7 = vadd.f32 %v2290_v22, %v2223_v25  ;;  %v2372_v33 = vadd.f32 %v2363_v21, %v2297_v5 }
 0x16b   : > { %v2292_v24 = vpop.f32.mrf.mxu0 }
 0x16c   : > { %v2367_v26 = vpop.f32.mrf.mxu1  ;;  %v2299_v9 = vadd.f32 %v2292_v24, %v2224_v29  ;;  %v2373_v37 = vadd.f32 %v2365_v23, %v2298_v7 }
 0x16d   : > { %v2294_v27 = vpop.f32.mrf.mxu0 }
 0x16e   : > { %v2369_v30 = vpop.f32.mrf.mxu1  ;;  %v2300_v11 = vadd.f32 %v2294_v27, %v2225_v32  ;;  %v2374_v41 = vadd.f32 %v2367_v26, %v2299_v9 }
 0x16f   : > { %v2438_v31 = vpop.f32.mrf.mxu0 }
 0x170   : > { %v2513_v34 = vpop.f32.mrf.mxu1  ;;  %v2447_v13 = vadd.f32 %v2438_v31, %v2372_v33  ;;  %v2375_v42 = vadd.f32 %v2369_v30, %v2300_v11 }
 0x171   : > { %v2440_v35 = vpop.f32.mrf.mxu0 }
 0x172   : > { %v2515_v39 = vpop.f32.mrf.mxu1  ;;  %v2448_v15 = vadd.f32 %v2440_v35, %v2373_v37  ;;  %v2522_v43 = vadd.f32 %v2513_v34, %v2447_v13 }
 0x173   : > { %v2442_v40 = vpop.f32.mrf.mxu0 }
 0x174   : > { %v2517_v44 = vpop.f32.mrf.mxu1  ;;  %v2449_v17 = vadd.f32 %v2442_v40, %v2374_v41  ;;  %v2523_v47 = vadd.f32 %v2515_v39, %v2448_v15 }
 0x175   : > { %v2444_v45 = vpop.f32.mrf.mxu0 }
 0x176   : > { %v2519_v48 = vpop.f32.mrf.mxu1  ;;  %v2450_v19 = vadd.f32 %v2444_v45, %v2375_v42  ;;  %v2524_v53 = vadd.f32 %v2517_v44, %v2449_v17 }
 0x177   : > { %v2588_v49 = vpop.f32.mrf.mxu0 }
 0x178   : > { %v2663_v55 = vpop.f32.mrf.mxu1  ;;  %v2597_v21 = vadd.f32 %v2588_v49, %v2522_v43  ;;  %v2525_v54 = vadd.f32 %v2519_v48, %v2450_v19 }
 0x179   : > { %v2590_v56 = vpop.f32.mrf.mxu0 }
 0x17a   : > { %v2665_v52 = vpop.f32.mrf.mxu1  ;;  %v2598_v23 = vadd.f32 %v2590_v56, %v2523_v47  ;;  %v2672_v57 = vadd.f32 %v2663_v55, %v2597_v21 }
 0x17b   : > { %v2592_v60 = vpop.f32.mrf.mxu0 }
 0x17c   : > { %v2667_v63 = vpop.f32.mrf.mxu1  ;;  %v2599_v26 = vadd.f32 %v2592_v60, %v2524_v53  ;;  %v2673_v59 = vadd.f32 %v2665_v52, %v2598_v23 }
 0x17d   : > { %v2594_v0 = vpop.f32.mrf.mxu0 }
 0x17e   : > { %v2669_v4 = vpop.f32.mrf.mxu1  ;;  %v2600_v30 = vadd.f32 %v2594_v0, %v2525_v54  ;;  %v2674_v62 = vadd.f32 %v2667_v63, %v2599_v26 }
 0x17f   : > { %v2738_v6 = vpop.f32.mrf.mxu0 }
 0x180   : > { %v2813_v8 = vpop.f32.mrf.mxu1  ;;  %v2747_v34 = vadd.f32 %v2738_v6, %v2672_v57  ;;  %v2675_v1 = vadd.f32 %v2669_v4, %v2600_v30 }
 0x181   : > { %v2740_v28 = vpop.f32.mrf.mxu0 }
 0x182   : > { %v2815_v10 = vpop.f32.mrf.mxu1  ;;  %v2748_v39 = vadd.f32 %v2740_v28, %v2673_v59  ;;  %v2822_v2 = vadd.f32 %v2813_v8, %v2747_v34 }
 0x183   : > { %v2742_v12 = vpop.f32.mrf.mxu0 }
 0x184   : > { %v2817_v14 = vpop.f32.mrf.mxu1  ;;  %v2749_v44 = vadd.f32 %v2742_v12, %v2674_v62  ;;  %v2823_v25 = vadd.f32 %v2815_v10, %v2748_v39 }
 0x185   : > { %v2744_v36 = vpop.f32.mrf.mxu0 }
 0x186   : > { %v2819_v16 = vpop.f32.mrf.mxu1  ;;  %v2750_v48 = vadd.f32 %v2744_v36, %v2675_v1  ;;  %v2824_v5 = vadd.f32 %v2817_v14, %v2749_v44 }
 0x187   : > { %v2888_v38 = vpop.f32.mrf.mxu0 }
 0x188   : > { %v2963_v18 = vpop.f32.mrf.mxu1  ;;  %v2897_v55 = vadd.f32 %v2888_v38, %v2822_v2  ;;  %v2825_v29 = vadd.f32 %v2819_v16, %v2750_v48 }
 0x189   : > { %v2890_v20 = vpop.f32.mrf.mxu0 }
 0x18a   : > { %v2965_v22 = vpop.f32.mrf.mxu1  ;;  %v2898_v52 = vadd.f32 %v2890_v20, %v2823_v25  ;;  %v2972_v7 = vadd.f32 %v2963_v18, %v2897_v55 }
 0x18b   : > { %v2892_v46 = vpop.f32.mrf.mxu0 }
 0x18c   : > { %v2967_v24 = vpop.f32.mrf.mxu1  ;;  %v2899_v63 = vadd.f32 %v2892_v46, %v2824_v5  ;;  %v2973_v33 = vadd.f32 %v2965_v22, %v2898_v52 }
 0x18d   : > { %v2894_v50 = vpop.f32.mrf.mxu0 }
 0x18e   : > { %v2969_v27 = vpop.f32.mrf.mxu1  ;;  %v2900_v4 = vadd.f32 %v2894_v50, %v2825_v29  ;;  %v2974_v37 = vadd.f32 %v2967_v24, %v2899_v63 }
 0x18f   : > { %v3038_v31 = vpop.f32.mrf.mxu0 }
 0x190   : > { %v3113_v35 = vpop.f32.mrf.mxu1  ;;  %v3047_v8 = vadd.f32 %v3038_v31, %v2972_v7  ;;  %v2975_v13 = vadd.f32 %v2969_v27, %v2900_v4 }
 0x191   : > { %v3040_v58 = vpop.f32.mrf.mxu0 }
 0x192   : > { %v3115_v40 = vpop.f32.mrf.mxu1  ;;  %v3048_v10 = vadd.f32 %v3040_v58, %v2973_v33  ;;  %v3122_v38 = vadd.f32 %v3113_v35, %v3047_v8 }
 0x193   : > { %v3042_v61 = vpop.f32.mrf.mxu0 }
 0x194   : > { %v3117_v45 = vpop.f32.mrf.mxu1  ;;  %v3049_v14 = vadd.f32 %v3042_v61, %v2974_v37  ;;  %v3123_v20 = vadd.f32 %v3115_v40, %v3048_v10 }
 0x195   : > { %v3044_v49 = vpop.f32.mrf.mxu0 }
 0x196   : > { %v3119_v56 = vpop.f32.mrf.mxu1  ;;  %v3050_v16 = vadd.f32 %v3044_v49, %v2975_v13  ;;  %v3124_v17 = vadd.f32 %v3117_v45, %v3049_v14 }
 0x197   : > { %v3188_v51 = vpop.f32.mrf.mxu0 }
 0x198   : > { %v3263_v60 = vpop.f32.mrf.mxu1  ;;  %v3197_v18 = vadd.f32 %v3188_v51, %v3122_v38  ;;  %v3125_v19 = vadd.f32 %v3119_v56, %v3050_v16 }
 0x199   : > { %v3190_v3 = vpop.f32.mrf.mxu0 }
 0x19a   : > { %v3265_v0 = vpop.f32.mrf.mxu1  ;;  %v3198_v22 = vadd.f32 %v3190_v3, %v3123_v20  ;;  %v3272_v21 = vadd.f32 %v3263_v60, %v3197_v18 }
 0x19b   : > { %v3192_v6 = vpop.f32.mrf.mxu0 }
 0x19c   : > { %v3267_v28 = vpop.f32.mrf.mxu1  ;;  %v3199_v24 = vadd.f32 %v3192_v6, %v3124_v17  ;;  %v3273_v23 = vadd.f32 %v3265_v0, %v3198_v22 }
 0x19d   : > { %v3194_v32 = vpop.f32.mrf.mxu0 }
 0x19e   : > { %v3269_v12 = vpop.f32.mrf.mxu1  ;;  %v3200_v27 = vadd.f32 %v3194_v32, %v3125_v19  ;;  %v3274_v26 = vadd.f32 %v3267_v28, %v3199_v24 }
 0x19f   : > { %v3338_v9 = vpop.f32.mrf.mxu0 }
 0x1a0   : > { %v3413_v36 = vpop.f32.mrf.mxu1  ;;  %v3347_v31 = vadd.f32 %v3338_v9, %v3272_v21  ;;  %v3275_v30 = vadd.f32 %v3269_v12, %v3200_v27 }
 0x1a1   : > { %v3340_v11 = vpop.f32.mrf.mxu0 }
 0x1a2   : > { %v3415_v41 = vpop.f32.mrf.mxu1  ;;  %v3348_v35 = vadd.f32 %v3340_v11, %v3273_v23  ;;  %v3422_v34 = vadd.f32 %v3413_v36, %v3347_v31 }
 0x1a3   : > { %v3342_v15 = vpop.f32.mrf.mxu0 }
 0x1a4   : > { %v3417_v42 = vpop.f32.mrf.mxu1  ;;  %v3349_v40 = vadd.f32 %v3342_v15, %v3274_v26  ;;  %v3423_v39 = vadd.f32 %v3415_v41, %v3348_v35 }
 0x1a5   : > { %v3344_v43 = vpop.f32.mrf.mxu0 }
 0x1a6   : > { %v3419_v46 = vpop.f32.mrf.mxu1  ;;  %v3350_v45 = vadd.f32 %v3344_v43, %v3275_v30  ;;  %v3424_v44 = vadd.f32 %v3417_v42, %v3349_v40 }
 0x1a7   : > { %v3488_v47 = vpop.f32.mrf.mxu0 }
 0x1a8   : > { %v3563_v50 = vpop.f32.mrf.mxu1  ;;  %v3497_v49 = vadd.f32 %v3488_v47, %v3422_v34  ;;  %v3425_v48 = vadd.f32 %v3419_v46, %v3350_v45  ;;  %v4122_v34 = vpop.permute.xlu1 %4121 }
 0x1a9   : > { %v3490_v53 = vpop.f32.mrf.mxu0 }
 0x1aa   : > { %v3565_v54 = vpop.f32.mrf.mxu1  ;;  %v3498_v56 = vadd.f32 %v3490_v53, %v3423_v39  ;;  %v3572_v55 = vadd.f32 %v3563_v50, %v3497_v49 }
 0x1ab   : > { %v3492_v57 = vpop.f32.mrf.mxu0 }
 0x1ac   : > { %v3567_v58 = vpop.f32.mrf.mxu1  ;;  %v3499_v60 = vadd.f32 %v3492_v57, %v3424_v44  ;;  %v3573_v52 = vadd.f32 %v3565_v54, %v3498_v56  ;;  %v4106_v54 = vpop.permute.xlu0 %4105 }
 0x1ad   : > { %v3494_v59 = vpop.f32.mrf.mxu0 }
 0x1ae   : > { %v3569_v61 = vpop.f32.mrf.mxu1  ;;  %v3500_v0 = vadd.f32 %v3494_v59, %v3425_v48  ;;  %v3574_v63 = vadd.f32 %v3567_v58, %v3499_v60  ;;  %v4127_v60 = vpop.permute.xlu1 %4126 }
 0x1af   : > { %v3638_v62 = vpop.f32.mrf.mxu0 }
 0x1b0   : > { %v3713_v1 = vpop.f32.mrf.mxu1  ;;  %v3647_v6 = vadd.f32 %v3638_v62, %v3572_v55  ;;  %v3575_v4 = vadd.f32 %v3569_v61, %v3500_v0  ;;  %v4111_v56 = vpop.permute.xlu0 %4110 }
 0x1b1   : > { %v3640_v2 = vpop.f32.mrf.mxu0 }
 0x1b2   : > { %v3715_v51 = vpop.f32.mrf.mxu1  ;;  %v3648_v28 = vadd.f32 %v3640_v2, %v3573_v52  ;;  %v3722_v8 = vadd.f32 %v3713_v1, %v3647_v6 }
 0x1b3   : > { %v3642_v25 = vpop.f32.mrf.mxu0 }
 0x1b4   : > { %v3717_v3 = vpop.f32.mrf.mxu1  ;;  %v3649_v12 = vadd.f32 %v3642_v25, %v3574_v63  ;;  %v3723_v10 = vadd.f32 %v3715_v51, %v3648_v28 }
 0x1b5   : > { %v3644_v5 = vpop.f32.mrf.mxu0 }
 0x1b6   : > { %v3719_v29 = vpop.f32.mrf.mxu1  ;;  %v3650_v36 = vadd.f32 %v3644_v5, %v3575_v4  ;;  %v3724_v14 = vadd.f32 %v3717_v3, %v3649_v12 }
 0x1b7   : > { %v3788_v7 = vpop.f32.mrf.mxu0 }
 0x1b8   : > { %v3863_v32 = vpop.f32.mrf.mxu1  ;;  %v3797_v11 = vadd.f32 %v3788_v7, %v3722_v8  ;;  %v3725_v16 = vadd.f32 %v3719_v29, %v3650_v36 }
 0x1b9   : > { %v3790_v33 = vpop.f32.mrf.mxu0 }
 0x1ba   : > { %v3865_v9 = vpop.f32.mrf.mxu1  ;;  %v3798_v41 = vadd.f32 %v3790_v33, %v3723_v10  ;;  %v3872_v18 = vadd.f32 %v3863_v32, %v3797_v11 }
 0x1bb   : > { %v3792_v37 = vpop.f32.mrf.mxu0 }
 0x1bc   : > { %v3867_v13 = vpop.f32.mrf.mxu1  ;;  %v3799_v42 = vadd.f32 %v3792_v37, %v3724_v14  ;;  %v3873_v22 = vadd.f32 %v3865_v9, %v3798_v41 }
 0x1bd   : > { %v3794_v38 = vpop.f32.mrf.mxu0 }
 0x1be   : > { %v3869_v15 = vpop.f32.mrf.mxu1  ;;  %v3800_v46 = vadd.f32 %v3794_v38, %v3725_v16  ;;  %v3874_v24 = vadd.f32 %v3867_v13, %v3799_v42 }
 0x1bf   : > { %v3938_v20 = vpop.f32.mrf.mxu0 }
 0x1c0   : > { %v4013_v43 = vpop.f32.mrf.mxu1  ;;  %v3947_v47 = vadd.f32 %v3938_v20, %v3872_v18  ;;  %v3875_v23 = vadd.f32 %v3869_v15, %v3800_v46 }
 0x1c1   : > { %v3940_v17 = vpop.f32.mrf.mxu0 }
 0x1c2   : > { %v4015_v19 = vpop.f32.mrf.mxu1  ;;  %v3948_v50 = vadd.f32 %v3940_v17, %v3873_v22  ;;  %v4022_v27 = vadd.f32 %v4013_v43, %v3947_v47 }
 0x1c3   : > { %v3942_v21 = vpop.f32.mrf.mxu0 }
 0x1c4   : > { %v3949_v31 = vadd.f32 %v3942_v21, %v3874_v24  ;;  %v4017_v57 = vpop.f32.mrf.mxu1  ;;  %v4023_v35 = vadd.f32 %v4015_v19, %v3948_v50 }
 0x1c5   : > { %v3944_v53 = vpop.f32.mrf.mxu0 }
 0x1c6   : > { %v3950_v58 = vadd.f32 %v3944_v53, %v3875_v23  ;;  %v4024_v40 = vadd.f32 %v4017_v57, %v3949_v31  ;;  %v4019_v39 = vpop.f32.mrf.mxu1 }
 0x1c7   : > { %v4088_v26 = vpop.f32.mrf.mxu0 }
 0x1c8   : > { %v4097_v59 = vadd.f32 %v4088_v26, %v4022_v27  ;;  %v4025_v49 = vadd.f32 %v4019_v39, %v3950_v58 }
 0x1c9   : > { %v4090_v30 = vpop.f32.mrf.mxu0 }
 0x1ca   : > { %v4113_v61 = vmul.f32 %v4106_v54, %v4097_v59  ;;  %v4098_v62 = vadd.f32 %v4090_v30, %v4023_v35 }
 0x1cb   : > { %v4092_v45 = vpop.f32.mrf.mxu0 }
 0x1cc   : > { %v4114_v1 = vmul.f32 %v4106_v54, %v4098_v62  ;;  %v4129_v2 = vadd.f32 %v4122_v34, %v4113_v61  ;;  %v4099_v44 = vadd.f32 %v4092_v45, %v4024_v40 }
 0x1cd   : > { %v4094_v51 = vpop.f32.mrf.mxu0 }
 0x1ce   : > { %v4130_v25 = vadd.f32 %v4122_v34, %v4114_v1  ;;  %v4115_v48 = vmul.f32 %v4111_v56, %v4099_v44  ;;  %v4100_v55 = vadd.f32 %v4094_v51, %v4025_v49  ;;  %v4133_v3 = vmax.f32 %v4129_v2, 0.0 }
 0x1d0   : > { %v4134_v5 = vmax.f32 %v4130_v25, 0.0  ;;  %v4116_v52 = vmul.f32 %v4111_v56, %v4100_v55  ;;  %v4131_v0 = vadd.f32 %v4127_v60, %v4115_v48 }
 0x1d2   : > { %v4561_v6 = vpack.c.bf16 %v4134_v5, %v4133_v3  ;;  %v4132_v29 = vadd.f32 %v4127_v60, %v4116_v52  ;;  %v4135_v7 = vmax.f32 %v4131_v0, 0.0 }
 0x1d4   : > { %v4136_v63 = vmax.f32 %v4132_v29, 0.0  ;;  %4149 = vst [vmem:[%s427_s12] sm:$0xff] %v4561_v6  ;;  %4157 = sbr.rel (!%p4724_p5) target bundleno = 481 (0x1e1), region = 81 }
 0x1d6   : > { %v4562_v28 = vpack.c.bf16 %v4136_v63, %v4135_v7 }
 0x1d8   : > { %4150 = vst [vmem:[%s427_s12 + $0x8] sm:$0xff] %v4562_v28 }
 0x1db   : > { %v4191_v32 = vld [vmem:[%s427_s12] sm:$0xff] }
 0x1dc   : > { %4192 = vst [vmem:[%s4160_s14] sm:$0xff] %v4191_v32 }
 0x1df   : > { %v4193_v33 = vld [vmem:[%s427_s12 + $0x8] sm:$0xff] }
 0x1e0   : > { %4194 = vst [vmem:[%s4160_s14 + $0x10] sm:$0xff] %v4193_v33 }
 0x1e1 PF: > { %p11_p10 = scmp.ge.s32.totalorder %s4711_s19, 4   ;;  %s5276_s15 = smov %s4661_s16 }
 0x1e2   : > { %s5277_s16 = smov %s4722_s22  ;;  %s5278_s17 = smov %s4711_s19 }
 0x1e3   :  { %13 = sbr.rel (!%p11_p10) target bundleno = 2 (0x2), region = 246 }

// kernel: net_forward.17
= control target key start
LH: loop header
LB: loop body
LE: loop exit
PB: predicated region body
PF: predicated region fallthrough
CT: control target
= control target key end

     0   :  { %v768_v0 = vmov 0.0   ;;  %vm769_vm0 = vmmov 0   ;;  %vm36_vm1 = vcmask 261120   ;;  %s914_s0 = inlined_call_operand.vmem [shape: bf16[9,32,128], index: 0, kind: input, shape index: {}]   ;;  %s915_s1 = inlined_call_operand.vmem [shape: bf16[9,8,32], index: 1, kind: input, shape index: {}]   ;;  %s916_s2 = inlined_call_operand.vmem [shape: bf16[8,128], index: 2, kind: output, shape index: {}]  }
   0x1   :  { %676 = vmatprep.subr.bf16.mxu0 %v768_v0  ;;  %v750_v1 = vld [vmem:[%s914_s0 + $0x18] sm:$0xff]   ;;  %684 = vmatprep.subr.bf16.mxu1 %v768_v0  ;;  %v751_v2 = vld [vmem:[%s914_s0 + $0x8] sm:$0xff]   ;;  %v752_v3 = vld [vmem:[%s914_s0 + $0x10] sm:$0xff]  }
   0x2   :  { %680 = vmatprep.mubr.msk.bf16.mxu0 %vm769_vm0, %v768_v0  ;;  %688 = vmatprep.mubr.msk.bf16.mxu1 %vm769_vm0, %v768_v0  ;;  %v753_v4 = vld [vmem:[%s914_s0] sm:$0xff]   ;;  %v754_v7 = vld [vmem:[%s914_s0 + $0x28] sm:$0xff]   ;;  %v755_v8 = vld [vmem:[%s914_s0 + $0x38] sm:$0xff]  }
   0x3   :  { %677 = vmatpush3.bf16.msra.mxu0 %v750_v1  ;;  %685 = vmatpush3.bf16.msra.mxu1 %v751_v2  ;;  %v586_v5 = vld [vmem:[%s915_s1 + $0x4] sm:$0xf]  ;;  %v16_v6 = vld [vmem:[%s915_s1] sm:$0xf]  ;;  %v757_v10 = vld [vmem:[%s914_s0 + $0x30] sm:$0xff]  }
   0x4   :  { %678 = vmatprep.subr.bf16.mxu0 %v768_v0  ;;  %686 = vmatprep.subr.bf16.mxu1 %v768_v0  ;;  %v756_v9 = vld [vmem:[%s914_s0 + $0x20] sm:$0xff]   ;;  %v597_v11 = vld [vmem:[%s915_s1 + $0x8] sm:$0xf]  ;;  %v605_v13 = vld [vmem:[%s915_s1 + $0xc] sm:$0xf] }
   0x5   :  { %v758_v12 = vld [vmem:[%s914_s0 + $0x48] sm:$0xff]   ;;  %v759_v14 = vld [vmem:[%s914_s0 + $0x58] sm:$0xff]   ;;  %v760_v15 = vld [vmem:[%s914_s0 + $0x40] sm:$0xff]  }
   0x6   :  { %v761_v16 = vld [vmem:[%s914_s0 + $0x50] sm:$0xff]   ;;  %v762_v18 = vld [vmem:[%s914_s0 + $0x68] sm:$0xff]   ;;  %v763_v20 = vld [vmem:[%s914_s0 + $0x78] sm:$0xff]  }
   0x7   :  { %679 = vmatpush3.bf16.msra.mxu0 %v752_v3  ;;  %687 = vmatpush3.bf16.msra.mxu1 %v753_v4  ;;  %v613_v17 = vld [vmem:[%s915_s1 + $0x10] sm:$0xf]  ;;  %v621_v19 = vld [vmem:[%s915_s1 + $0x14] sm:$0xf]  ;;  %v764_v21 = vld [vmem:[%s914_s0 + $0x60] sm:$0xff]  }
   0x8   :  { %692 = vmatprep.subr.bf16.mxu0 %v768_v0  ;;  %700 = vmatprep.subr.bf16.mxu1 %v768_v0  ;;  %v765_v22 = vld [vmem:[%s914_s0 + $0x70] sm:$0xff]   ;;  %v629_v23 = vld [vmem:[%s915_s1 + $0x18] sm:$0xf]  ;;  %v766_v24 = vld [vmem:[%s914_s0 + $0x88] sm:$0xff]  }
   0x9   :  { %v637_v25 = vld [vmem:[%s915_s1 + $0x1c] sm:$0xf]  ;;  %v767_v26 = vld [vmem:[%s914_s0 + $0x80] sm:$0xff]  }
   0xa   :  { %681 = vmatmul.mubr.msk.bf16.vlgmr.msra.gmra.mxu0 %vm36_vm1, %v586_v5  ;;  %689 = vmatmul.mubr.msk.bf16.vlgmr.msra.gmra.mxu1 %vm36_vm1, %v16_v6  ;;  %v645_v27 = vld [vmem:[%s915_s1 + $0x20] sm:$0xf] }
   0xb   :  { %693 = vmatpush3.bf16.msra.mxu0 %v754_v7  ;;  %701 = vmatpush3.bf16.msra.mxu1 %v755_v8 }
   0xc   :  { %694 = vmatprep.subr.bf16.mxu0 %v768_v0  ;;  %702 = vmatprep.subr.bf16.mxu1 %v768_v0 }
   0xd   :  { %696 = vmatprep.mubr.msk.bf16.mxu0 %vm769_vm0, %v768_v0  ;;  %704 = vmatprep.mubr.msk.bf16.mxu1 %vm769_vm0, %v768_v0 }
   0xf   :  { %695 = vmatpush3.bf16.msra.mxu0 %v756_v9  ;;  %703 = vmatpush3.bf16.msra.mxu1 %v757_v10 }
  0x10   :  { %708 = vmatprep.subr.bf16.mxu0 %v768_v0  ;;  %716 = vmatprep.subr.bf16.mxu1 %v768_v0 }
  0x12   :  { %697 = vmatmul.mubr.msk.bf16.vlgmr.msra.gmra.mxu0 %vm36_vm1, %v597_v11  ;;  %705 = vmatmul.mubr.msk.bf16.vlgmr.msra.gmra.mxu1 %vm36_vm1, %v605_v13 }
  0x13   :  { %709 = vmatpush3.bf16.msra.mxu0 %v758_v12  ;;  %717 = vmatpush3.bf16.msra.mxu1 %v759_v14 }
  0x14   :  { %710 = vmatprep.subr.bf16.mxu0 %v768_v0  ;;  %718 = vmatprep.subr.bf16.mxu1 %v768_v0 }
  0x15   :  { %712 = vmatprep.mubr.msk.bf16.mxu0 %vm769_vm0, %v768_v0  ;;  %720 = vmatprep.mubr.msk.bf16.mxu1 %vm769_vm0, %v768_v0 }
  0x17   :  { %711 = vmatpush3.bf16.msra.mxu0 %v760_v15  ;;  %719 = vmatpush3.bf16.msra.mxu1 %v761_v16 }
  0x18   :  { %724 = vmatprep.subr.bf16.mxu0 %v768_v0  ;;  %732 = vmatprep.subr.bf16.mxu1 %v768_v0 }
  0x1a   :  { %713 = vmatmul.mubr.msk.bf16.vlgmr.msra.gmra.mxu0 %vm36_vm1, %v613_v17  ;;  %721 = vmatmul.mubr.msk.bf16.vlgmr.msra.gmra.mxu1 %vm36_vm1, %v621_v19 }
  0x1b   :  { %725 = vmatpush3.bf16.msra.mxu0 %v762_v18  ;;  %733 = vmatpush3.bf16.msra.mxu1 %v763_v20 }
  0x1c   :  { %726 = vmatprep.subr.bf16.mxu0 %v768_v0  ;;  %734 = vmatprep.subr.bf16.mxu1 %v768_v0 }
  0x1d   :  { %728 = vmatprep.mubr.msk.bf16.mxu0 %vm769_vm0, %v768_v0  ;;  %736 = vmatprep.mubr.msk.bf16.mxu1 %vm769_vm0, %v768_v0 }
  0x1f   :  { %727 = vmatpush3.bf16.msra.mxu0 %v764_v21  ;;  %735 = vmatpush3.bf16.msra.mxu1 %v765_v22 }
  0x20   :  { %740 = vmatprep.subr.bf16.mxu0 %v768_v0 }
  0x22   :  { %729 = vmatmul.mubr.msk.bf16.vlgmr.msra.gmra.mxu0 %vm36_vm1, %v629_v23  ;;  %737 = vmatmul.mubr.msk.bf16.vlgmr.msra.gmra.mxu1 %vm36_vm1, %v637_v25 }
  0x23   :  { %741 = vmatpush3.bf16.msra.mxu0 %v766_v24  ;;  %744 = vmatprep.mubr.msk.bf16.mxu0 %vm769_vm0, %v768_v0 }
  0x24   :  { %742 = vmatprep.subr.bf16.mxu0 %v768_v0 }
  0x27   :  { %743 = vmatpush3.bf16.msra.mxu0 %v767_v26 }
  0x2a   :  { %745 = vmatmul.mubr.msk.bf16.vlgmr.msra.gmra.mxu0 %vm36_vm1, %v645_v27 }
  0xca   :  { %v74_v28 = vpop.f32.mrf.mxu0  ;;  %v129_v29 = vpop.f32.mrf.mxu1 }
  0xcb   :  { %v130_v41 = vadd.f32 %v129_v29, %v74_v28 }
  0xcc   :  { %v682_v30 = vpop.f32.mrf.mxu0  ;;  %v690_v31 = vpop.f32.mrf.mxu1 }
  0xce   :  { %v77_v32 = vpop.f32.mrf.mxu0  ;;  %v132_v33 = vpop.f32.mrf.mxu1 }
  0xd0   :  { %v683_v34 = vpop.f32.mrf.mxu0  ;;  %v691_v35 = vpop.f32.mrf.mxu1 }
  0xd2   :  { %v191_v36 = vpop.f32.mrf.mxu0  ;;  %v254_v37 = vpop.f32.mrf.mxu1 }
  0xd3   :  { %v197_v44 = vadd.f32 %v191_v36, %v130_v41 }
  0xd4   :  { %v698_v38 = vpop.f32.mrf.mxu0  ;;  %v706_v39 = vpop.f32.mrf.mxu1 }
  0xd5   :  { %v260_v49 = vadd.f32 %v254_v37, %v197_v44 }
  0xd6   :  { %v194_v40 = vpop.f32.mrf.mxu0  ;;  %v257_v42 = vpop.f32.mrf.mxu1 }
  0xd8   :  { %v699_v43 = vpop.f32.mrf.mxu0  ;;  %v707_v45 = vpop.f32.mrf.mxu1 }
  0xda   :  { %v317_v46 = vpop.f32.mrf.mxu0  ;;  %v380_v47 = vpop.f32.mrf.mxu1 }
  0xdb   :  { %v323_v52 = vadd.f32 %v317_v46, %v260_v49 }
  0xdc   :  { %v714_v48 = vpop.f32.mrf.mxu0  ;;  %v722_v50 = vpop.f32.mrf.mxu1 }
  0xdd   :  { %v386_v57 = vadd.f32 %v380_v47, %v323_v52 }
  0xde   :  { %v320_v51 = vpop.f32.mrf.mxu0  ;;  %v383_v53 = vpop.f32.mrf.mxu1 }
  0xe0   :  { %v715_v54 = vpop.f32.mrf.mxu0  ;;  %v723_v55 = vpop.f32.mrf.mxu1 }
  0xe2   :  { %v443_v56 = vpop.f32.mrf.mxu0  ;;  %v506_v58 = vpop.f32.mrf.mxu1 }
  0xe3   :  { %v449_v60 = vadd.f32 %v443_v56, %v386_v57 }
  0xe4   :  { %v730_v59 = vpop.f32.mrf.mxu0  ;;  %v738_v61 = vpop.f32.mrf.mxu1 }
  0xe5   :  { %v512_v1 = vadd.f32 %v506_v58, %v449_v60 }
  0xe6   :  { %v446_v62 = vpop.f32.mrf.mxu0  ;;  %v509_v63 = vpop.f32.mrf.mxu1 }
  0xe8   :  { %v731_v0 = vpop.f32.mrf.mxu0  ;;  %v739_v2 = vpop.f32.mrf.mxu1 }
  0xea   :  { %v569_v3 = vpop.f32.mrf.mxu0 }
  0xeb   :  { %v575_v4 = vadd.f32 %v569_v3, %v512_v1 }
  0xec   :  { %v746_v5 = vpop.f32.mrf.mxu0 }
  0xed   :  { %v576_v6 = vpack.c.bf16 %v575_v4, %v575_v4 }
  0xee   :  { %v572_v7 = vpop.f32.mrf.mxu0 }
  0xef   :  { %577 = vst [vmem:[%s916_s2] sm:$0xf] %v576_v6 }
  0xf0   :  { %v747_v8 = vpop.f32.mrf.mxu0 }

// kernel: net_forward.18
= control target key start
LH: loop header
LB: loop body
LE: loop exit
PB: predicated region body
PF: predicated region fallthrough
CT: control target
= control target key end

     0   :  { %v280_v0 = vmov 0   ;;  %vm91_vm0 = vcmask 195584   ;;  %vm98_vm1 = vcmask 1043456   ;;  %s378_s2 = inlined_call_operand.vmem [shape: f32[24,1], index: 2, kind: input, shape index: {}]   ;;  %s379_s3 = inlined_call_operand.vmem [shape: f32[24,1], index: 3, kind: input, shape index: {}]   ;;  %s380_s4 = inlined_call_operand.vmem [shape: f32[32,1], index: 4, kind: input, shape index: {}]   ;;  %s381_s1 = inlined_call_operand.vmem [shape: bf16[1,32,24], index: 1, kind: input, shape index: {}]   ;;  %s382_s5 = inlined_call_operand.vmem [shape: f32[32,1], index: 5, kind: input, shape index: {}]   ;;  %s383_s0 = inlined_call_operand.vmem [shape: bf16[1,24,128], index: 0, kind: input, shape index: {}]   ;;  %s384_s6 = inlined_call_operand.vmem [shape: bf16[32,128], index: 6, kind: output, shape index: {}]  }
   0x1   :  { %277 = vset.pattern.permute.xlu1 %v280_v0  ;;  %276 = vset.pattern.permute.xlu0 %v280_v0  ;;  %v32_v1 = vld [vmem:[%s378_s2 + $0x10] sm:$0xff]  ;;  %v30_v2 = vld [vmem:[%s378_s2] sm:$0xff]  ;;  %v31_v4 = vld [vmem:[%s378_s2 + $0x8] sm:$0xff] }
   0x2   :  { %45 = vperm.xlu0 %276, %v32_v1   ;;  %35 = vperm.xlu1 %277, %v30_v2   ;;  %v53_v3 = vld [vmem:[%s379_s3 + $0x10] sm:$0xff]  ;;  %v51_v5 = vld [vmem:[%s379_s3] sm:$0xff]  ;;  %v52_v6 = vld [vmem:[%s379_s3 + $0x8] sm:$0xff] }
   0x3   :  { %v151_v7 = vld [vmem:[%s380_s4] sm:$0xff]  ;;  %v152_v8 = vld [vmem:[%s380_s4 + $0x8] sm:$0xff]  ;;  %v153_v10 = vld [vmem:[%s380_s4 + $0x10] sm:$0xff] }
   0x4   :  { %v278_v9 = vld [vmem:[%s381_s1] sm:$0xff]   ;;  %v154_v11 = vld [vmem:[%s380_s4 + $0x18] sm:$0xff]  ;;  %v180_v13 = vld [vmem:[%s382_s5 + $0x8] sm:$0xff] }
   0x5   :  { %270 = vmatprep.mubr.msk.bf16.mxu0 %vm91_vm0, %v278_v9  ;;  %v179_v12 = vld [vmem:[%s382_s5] sm:$0xff]  ;;  %v181_v14 = vld [vmem:[%s382_s5 + $0x10] sm:$0xff]  ;;  %v182_v15 = vld [vmem:[%s382_s5 + $0x18] sm:$0xff] }
   0x6   :  { %66 = vperm.xlu0 %276, %v53_v3   ;;  %40 = vperm.xlu1 %277, %v31_v4   ;;  %v26_v16 = vld [vmem:[%s383_s0 + $0x8] sm:$0xf]  ;;  %v248_v20 = vld [vmem:[%s383_s0] sm:$0xff]  }
   0x7   :  { %v29_v17 = vunpack.c.l.bf16 %v26_v16  ;;  %v249_v22 = vunpack.c.l.bf16 %v248_v20  ;;  %v250_v23 = vunpack.c.h.bf16 %v248_v20  ;;  %v279_v39 = vld [vmem:[%s381_s1 + $0x8] sm:$0xff]  }
   0xa   :  { %56 = vperm.xlu0 %276, %v51_v5   ;;  %61 = vperm.xlu1 %277, %v52_v6  }
   0xe   :  { %157 = vperm.xlu0 %276, %v151_v7   ;;  %162 = vperm.xlu1 %277, %v152_v8  }
  0x12   :  { %167 = vperm.xlu0 %276, %v153_v10   ;;  %172 = vperm.xlu1 %277, %v154_v11  }
  0x16   :  { %185 = vperm.xlu0 %276, %v179_v12   ;;  %190 = vperm.xlu1 %277, %v180_v13  }
  0x1a   :  { %195 = vperm.xlu0 %276, %v181_v14   ;;  %200 = vperm.xlu1 %277, %v182_v15  }
  0x7d   :  { %v46_v18 = vpop.permute.xlu0 %45  ;;  %v36_v19 = vpop.permute.xlu1 %35 }
  0x7e   :  { %v50_v21 = vmul.f32 %v46_v18, %v29_v17  ;;  %v48_v27 = vmul.f32 %v249_v22, %v36_v19 }
  0x81   :  { %v67_v24 = vpop.permute.xlu0 %66  ;;  %v41_v25 = vpop.permute.xlu1 %40 }
  0x82   :  { %v71_v26 = vadd.f32 %v67_v24, %v50_v21  ;;  %v49_v29 = vmul.f32 %v250_v23, %v41_v25 }
  0x84   :  { %v74_v28 = vmax.f32 %v71_v26, 0.0 }
  0x85   :  { %v57_v30 = vpop.permute.xlu0 %56  ;;  %v62_v31 = vpop.permute.xlu1 %61 }
  0x86   :  { %v69_v32 = vadd.f32 %v57_v30, %v48_v27  ;;  %v70_v33 = vadd.f32 %v62_v31, %v49_v29  ;;  %v76_v34 = vpack.c.bf16 %v74_v28, %v74_v28 }
  0x88   :  { %v72_v35 = vmax.f32 %v69_v32, 0.0  ;;  %v73_v36 = vmax.f32 %v70_v33, 0.0  ;;  %274 = vmatprep.subr.msk.bf16.mxu0 %vm98_vm1, %v76_v34  ;;  %v100_v37 = vsel %vm98_vm1, %v76_v34, 0 }
  0x89   :  { %267 = vmatpush3.bf16.msra.mxu0 %v100_v37  ;;  %v158_v40 = vpop.permute.xlu0 %157  ;;  %v163_v41 = vpop.permute.xlu1 %162 }
  0x8a   :  { %v75_v38 = vpack.c.bf16 %v73_v36, %v72_v35 }
  0x8c   :  { %268 = vmatprep.subr.bf16.mxu0 %v75_v38 }
  0x8d   :  { %269 = vmatpush3.bf16.msra.mxu0 %v75_v38  ;;  %v168_v42 = vpop.permute.xlu0 %167  ;;  %v173_v43 = vpop.permute.xlu1 %172 }
  0x90   :  { %271 = vmatmul.mubr.msk.bf16.vlgmr.msra.gmra.mxu0 %vm91_vm0, %v279_v39 }
  0x91   :  { %v186_v44 = vpop.permute.xlu0 %185  ;;  %v191_v45 = vpop.permute.xlu1 %190 }
  0x95   :  { %v196_v50 = vpop.permute.xlu0 %195  ;;  %v201_v54 = vpop.permute.xlu1 %200 }
 0x150   :  { %v272_v46 = vpop.f32.mrf.mxu0 }
 0x151   :  { %v177_v47 = vmul.f32 %v272_v46, %v168_v42 }
 0x152   :  { %v136_v48 = vpop.f32.mrf.mxu0 }
 0x153   :  { %v175_v49 = vmul.f32 %v158_v40, %v136_v48  ;;  %v205_v52 = vadd.f32 %v196_v50, %v177_v47 }
 0x154   :  { %v273_v51 = vpop.f32.mrf.mxu0 }
 0x155   :  { %v178_v53 = vmul.f32 %v273_v51, %v173_v43  ;;  %v203_v56 = vadd.f32 %v186_v44, %v175_v49  ;;  %v209_v59 = vmax.f32 %v205_v52, 0.0 }
 0x156   :  { %v139_v55 = vpop.f32.mrf.mxu0 }
 0x157   :  { %v206_v57 = vadd.f32 %v201_v54, %v178_v53  ;;  %v176_v58 = vmul.f32 %v163_v41, %v139_v55  ;;  %v207_v62 = vmax.f32 %v203_v56, 0.0 }
 0x159   :  { %v210_v60 = vmax.f32 %v206_v57, 0.0  ;;  %v204_v61 = vadd.f32 %v191_v45, %v176_v58 }
 0x15b   :  { %v259_v63 = vpack.c.bf16 %v210_v60, %v209_v59  ;;  %v208_v0 = vmax.f32 %v204_v61, 0.0 }
 0x15d   :  { %261 = vst [vmem:[%s384_s6 + $0x8] sm:$0xff] %v259_v63   ;;  %v254_v1 = vpack.c.bf16 %v208_v0, %v207_v62 }
 0x15f   :  { %255 = vst [vmem:[%s384_s6] sm:$0xff] %v254_v1  }

// kernel: net_forward.20
= control target key start
LH: loop header
LB: loop body
LE: loop exit
PB: predicated region body
PF: predicated region fallthrough
CT: control target
= control target key end

     0   :  { %v191_v0 = vmov 0   ;;  %v192_v7 = vmov 0.0   ;;  %vm193_vm0 = vmmov 0   ;;  %vm95_vm1 = vcmask 261120   ;;  %s255_s3 = inlined_call_operand.vmem [shape: f32[32,1], index: 3, kind: input, shape index: {}]   ;;  %s256_s2 = inlined_call_operand.vmem [shape: f32[32,1], index: 2, kind: input, shape index: {}]   ;;  %s257_s1 = inlined_call_operand.vmem [shape: bf16[1,16,32], index: 1, kind: input, shape index: {}]   ;;  %s258_s0 = inlined_call_operand.vmem [shape: bf16[1,32,128], index: 0, kind: input, shape index: {}]   ;;  %s259_s4 = inlined_call_operand.vmem [shape: bf16[16,128], index: 4, kind: output, shape index: {}]  }
   0x1   :  { %189 = vset.pattern.permute.xlu1 %v191_v0  ;;  %188 = vset.pattern.permute.xlu0 %v191_v0  ;;  %v56_v1 = vld [vmem:[%s255_s3 + $0x10] sm:$0xff]  ;;  %v57_v3 = vld [vmem:[%s255_s3 + $0x18] sm:$0xff]  ;;  %v27_v5 = vld [vmem:[%s256_s2 + $0x8] sm:$0xff] }
   0x2   :  { %v28_v2 = vld [vmem:[%s256_s2 + $0x10] sm:$0xff]  ;;  %70 = vperm.xlu1 %189, %v56_v1   ;;  %v29_v4 = vld [vmem:[%s256_s2 + $0x18] sm:$0xff]  ;;  %v26_v6 = vld [vmem:[%s256_s2] sm:$0xff]  ;;  %177 = vmatprep.subr.bf16.mxu0 %v192_v7 }
   0x3   :  { %42 = vperm.xlu0 %188, %v28_v2   ;;  %v55_v8 = vld [vmem:[%s255_s3 + $0x8] sm:$0xff]  ;;  %v54_v9 = vld [vmem:[%s255_s3] sm:$0xff]  ;;  %181 = vmatprep.mubr.msk.bf16.mxu0 %vm193_vm0, %v192_v7 }
   0x4   :  { %v173_v10 = vld [vmem:[%s258_s0 + $0x8] sm:$0xff]   ;;  %v161_v18 = vld [vmem:[%s258_s0] sm:$0xff]  }
   0x5   :  { %v166_v11 = vunpack.c.l.bf16 %v173_v10  ;;  %v167_v15 = vunpack.c.h.bf16 %v173_v10  ;;  %v163_v22 = vunpack.c.h.bf16 %v161_v18  ;;  %v162_v23 = vunpack.c.l.bf16 %v161_v18  ;;  %v190_v38 = vld [vmem:[%s257_s1] sm:$0xff]  }
   0x6   :  { %75 = vperm.xlu1 %189, %v57_v3  }
   0x7   :  { %47 = vperm.xlu0 %188, %v29_v4  }
   0xa   :  { %37 = vperm.xlu1 %189, %v27_v5  }
   0xb   :  { %32 = vperm.xlu0 %188, %v26_v6  }
   0xe   :  { %65 = vperm.xlu1 %189, %v55_v8  }
   0xf   :  { %60 = vperm.xlu0 %188, %v54_v9  }
  0x7d   :  { %v71_v12 = vpop.permute.xlu1 %70 }
  0x7e   :  { %v43_v13 = vpop.permute.xlu0 %42 }
  0x7f   :  { %v52_v14 = vmul.f32 %v166_v11, %v43_v13 }
  0x81   :  { %v76_v16 = vpop.permute.xlu1 %75  ;;  %v80_v19 = vadd.f32 %v71_v12, %v52_v14 }
  0x82   :  { %v48_v17 = vpop.permute.xlu0 %47 }
  0x83   :  { %v53_v20 = vmul.f32 %v167_v15, %v48_v17  ;;  %v84_v26 = vmax.f32 %v80_v19, 0.0 }
  0x85   :  { %v81_v21 = vadd.f32 %v76_v16, %v53_v20  ;;  %v38_v24 = vpop.permute.xlu1 %37 }
  0x86   :  { %v33_v25 = vpop.permute.xlu0 %32  ;;  %v51_v28 = vmul.f32 %v163_v22, %v38_v24 }
  0x87   :  { %v85_v27 = vmax.f32 %v81_v21, 0.0  ;;  %v50_v29 = vmul.f32 %v162_v23, %v33_v25 }
  0x89   :  { %v87_v30 = vpack.c.bf16 %v85_v27, %v84_v26  ;;  %v66_v31 = vpop.permute.xlu1 %65 }
  0x8a   :  { %v61_v32 = vpop.permute.xlu0 %60  ;;  %v79_v33 = vadd.f32 %v66_v31, %v51_v28 }
  0x8b   :  { %v78_v34 = vadd.f32 %v61_v32, %v50_v29  ;;  %178 = vmatpush3.bf16.msra.mxu0 %v87_v30 }
  0x8c   :  { %179 = vmatprep.subr.bf16.mxu0 %v192_v7  ;;  %v83_v35 = vmax.f32 %v79_v33, 0.0 }
  0x8d   :  { %v82_v36 = vmax.f32 %v78_v34, 0.0 }
  0x8f   :  { %v86_v37 = vpack.c.bf16 %v83_v35, %v82_v36 }
  0x91   :  { %180 = vmatpush3.bf16.msra.mxu0 %v86_v37 }
  0x94   :  { %182 = vmatmul.mubr.msk.bf16.vlgmr.msra.gmra.mxu0 %vm95_vm1, %v190_v38 }
 0x154   :  { %v133_v39 = vpop.f32.mrf.mxu0 }
 0x156   :  { %v183_v40 = vpop.f32.mrf.mxu0 }
 0x158   :  { %v136_v41 = vpop.f32.mrf.mxu0 }
 0x159   :  { %v171_v42 = vpack.c.bf16 %v136_v41, %v133_v39 }
 0x15a   :  { %v184_v43 = vpop.f32.mrf.mxu0 }
 0x15b   :  { %172 = vst [vmem:[%s259_s4] sm:$0xff] %v171_v42  }

// kernel: net_forward.21
= control target key start
LH: loop header
LB: loop body
LE: loop exit
PB: predicated region body
PF: predicated region fallthrough
CT: control target
= control target key end

     0   :  { %vm24_vm0 = vcmask 261120   ;;  %vm50_vm1 = vcmask 257024   ;;  %s116_s0 = inlined_call_operand.vmem [shape: bf16[4,16,32], index: 0, kind: input, shape index: {}]   ;;  %s117_s1 = inlined_call_operand.vmem [shape: bf16[16,32], index: 1, kind: output, shape index: {}]  }
   0x1   :  { %v62_v0 = vld [vmem:[%s116_s0] sm:$0xff]   ;;  %v77_v1 = vld [vmem:[%s116_s0 + $0x8] sm:$0xff]   ;;  %v78_v2 = vld [vmem:[%s116_s0 + $0x10] sm:$0xff]  }
   0x2   :  { %v63_v3 = vunpack.c.l.bf16 %v62_v0  ;;  %v67_v4 = vunpack.c.l.bf16 %v77_v1  ;;  %v71_v5 = vunpack.c.l.bf16 %v78_v2  ;;  %v79_v6 = vld [vmem:[%s116_s0 + $0x18] sm:$0xff]   ;;  %v64_v7 = vunpack.c.h.bf16 %v62_v0 }
   0x3   :  { %v75_v8 = vunpack.c.l.bf16 %v79_v6  ;;  %v68_v9 = vunpack.c.h.bf16 %v77_v1  ;;  %v72_v10 = vunpack.c.h.bf16 %v78_v2  ;;  %v76_v11 = vunpack.c.h.bf16 %v79_v6 }
   0x4   :  { %v25_v12 = vsel %vm24_vm0, %v63_v3, 0.0  ;;  %v26_v13 = vsel %vm24_vm0, %v67_v4, 0.0  ;;  %v28_v14 = vsel %vm24_vm0, %v71_v5, 0.0  ;;  %v32_v15 = vsel %vm24_vm0, %v64_v7, 0.0 }
   0x5   :  { %v27_v16 = vadd.f32 %v26_v13, %v25_v12  ;;  %v33_v17 = vsel %vm24_vm0, %v68_v9, 0.0  ;;  %v35_v18 = vsel %vm24_vm0, %v72_v10, 0.0  ;;  %v30_v19 = vsel %vm24_vm0, %v75_v8, 0.0 }
   0x6   :  { %v34_v20 = vadd.f32 %v33_v17, %v32_v15  ;;  %v37_v22 = vsel %vm24_vm0, %v76_v11, 0.0 }
   0x7   :  { %v29_v21 = vadd.f32 %v28_v14, %v27_v16 }
   0x8   :  { %v36_v23 = vadd.f32 %v35_v18, %v34_v20 }
   0x9   :  { %v31_v24 = vadd.f32 %v30_v19, %v29_v21 }
   0xa   :  { %v38_v25 = vadd.f32 %v37_v22, %v36_v23 }
   0xb   :  { %v40_v26 = vmul.f32 0.25, %v31_v24 }
   0xc   :  { %v41_v27 = vmul.f32 0.25, %v38_v25 }
   0xd   :  { %v59_v28 = vpack.c.bf16 %v40_v26, %v40_v26 }
   0xe   :  { %v60_v29 = vpack.c.bf16 %v41_v27, %v41_v27 }
   0xf   :  { %51 = vst.msk [vmem:[%s117_s1] sm:$0xf] %vm50_vm1, %v59_v28 }
  0x10   :  { %52 = vst.msk [vmem:[%s117_s1 + $0x4] sm:$0xf] %vm50_vm1, %v60_v29 }

// kernel: net_forward.22
= control target key start
LH: loop header
LB: loop body
LE: loop exit
PB: predicated region body
PF: predicated region fallthrough
CT: control target
= control target key end

     0   :  { %v244_v0 = vmov 0   ;;  %vm73_vm0 = vcmask 130048   ;;  %vm205_vm1 = vcmask 257024   ;;  %s339_s3 = inlined_call_operand.vmem [shape: f32[16,1], index: 3, kind: input, shape index: {}]   ;;  %s340_s2 = inlined_call_operand.vmem [shape: f32[16,1], index: 2, kind: input, shape index: {}]   ;;  %s341_s4 = inlined_call_operand.vmem [shape: f32[32,1], index: 4, kind: input, shape index: {}]   ;;  %s342_s1 = inlined_call_operand.vmem [shape: bf16[1,32,16], index: 1, kind: input, shape index: {}]   ;;  %s343_s5 = inlined_call_operand.vmem [shape: f32[32,1], index: 5, kind: input, shape index: {}]   ;;  %s344_s0 = inlined_call_operand.vmem [shape: bf16[1,16,32], index: 0, kind: input, shape index: {}]   ;;  %s345_s6 = inlined_call_operand.vmem [shape: bf16[32,32], index: 6, kind: output, shape index: {}]  }
   0x1   :  { %241 = vset.pattern.permute.xlu1 %v244_v0  ;;  %240 = vset.pattern.permute.xlu0 %v244_v0  ;;  %v42_v1 = vld [vmem:[%s339_s3] sm:$0xff]  ;;  %v43_v3 = vld [vmem:[%s339_s3 + $0x8] sm:$0xff]  ;;  %v132_v7 = vld [vmem:[%s341_s4 + $0x18] sm:$0xff] }
   0x2   :  { %v28_v2 = vld [vmem:[%s340_s2] sm:$0xff]  ;;  %46 = vperm.xlu1 %241, %v42_v1   ;;  %v29_v4 = vld [vmem:[%s340_s2 + $0x8] sm:$0xff]  ;;  %v131_v8 = vld [vmem:[%s341_s4 + $0x10] sm:$0xff] }
   0x3   :  { %32 = vperm.xlu0 %240, %v28_v2   ;;  %v130_v5 = vld [vmem:[%s341_s4 + $0x8] sm:$0xff]  ;;  %v129_v6 = vld [vmem:[%s341_s4] sm:$0xff]  ;;  %v160_v12 = vld [vmem:[%s343_s5 + $0x18] sm:$0xff] }
   0x4   :  { %v242_v9 = vld [vmem:[%s342_s1] sm:$0xff]   ;;  %v158_v10 = vld [vmem:[%s343_s5 + $0x8] sm:$0xff]  ;;  %v159_v13 = vld [vmem:[%s343_s5 + $0x10] sm:$0xff] }
   0x5   :  { %235 = vmatprep.mubr.msk.bf16.mxu0 %vm73_vm0, %v242_v9  ;;  %v157_v11 = vld [vmem:[%s343_s5] sm:$0xff]  ;;  %v243_v28 = vld [vmem:[%s342_s1 + $0x8] sm:$0xff]  }
   0x6   :  { %51 = vperm.xlu1 %241, %v43_v3   ;;  %v227_v14 = vld [vmem:[%s344_s0] sm:$0xff]  }
   0x7   :  { %37 = vperm.xlu0 %240, %v29_v4   ;;  %v228_v15 = vunpack.c.l.bf16 %v227_v14  ;;  %v229_v19 = vunpack.c.h.bf16 %v227_v14 }
   0xa   :  { %140 = vperm.xlu1 %241, %v130_v5  }
   0xb   :  { %135 = vperm.xlu0 %240, %v129_v6  }
   0xe   :  { %150 = vperm.xlu1 %241, %v132_v7  }
   0xf   :  { %145 = vperm.xlu0 %240, %v131_v8  }
  0x12   :  { %168 = vperm.xlu1 %241, %v158_v10  }
  0x13   :  { %163 = vperm.xlu0 %240, %v157_v11  }
  0x16   :  { %178 = vperm.xlu1 %241, %v160_v12  }
  0x17   :  { %173 = vperm.xlu0 %240, %v159_v13  }
  0x7d   :  { %v47_v16 = vpop.permute.xlu1 %46 }
  0x7e   :  { %v33_v17 = vpop.permute.xlu0 %32 }
  0x7f   :  { %v40_v18 = vmul.f32 %v228_v15, %v33_v17 }
  0x81   :  { %v54_v21 = vadd.f32 %v47_v16, %v40_v18  ;;  %v52_v23 = vpop.permute.xlu1 %51 }
  0x82   :  { %v38_v20 = vpop.permute.xlu0 %37 }
  0x83   :  { %v41_v22 = vmul.f32 %v229_v19, %v38_v20  ;;  %v56_v25 = vmax.f32 %v54_v21, 0.0 }
  0x85   :  { %v55_v24 = vadd.f32 %v52_v23, %v41_v22  ;;  %v141_v30 = vpop.permute.xlu1 %140 }
  0x86   :  { %v136_v29 = vpop.permute.xlu0 %135 }
  0x87   :  { %v57_v26 = vmax.f32 %v55_v24, 0.0 }
  0x89   :  { %v58_v27 = vpack.c.bf16 %v57_v26, %v56_v25  ;;  %v151_v32 = vpop.permute.xlu1 %150 }
  0x8a   :  { %v146_v31 = vpop.permute.xlu0 %145 }
  0x8b   :  { %233 = vmatprep.subr.bf16.mxu0 %v58_v27 }
  0x8c   :  { %234 = vmatpush3.bf16.msra.mxu0 %v58_v27 }
  0x8d   :  { %v169_v34 = vpop.permute.xlu1 %168 }
  0x8e   :  { %v164_v33 = vpop.permute.xlu0 %163 }
  0x8f   :  { %236 = vmatmul.mubr.msk.bf16.vlgmr.msra.gmra.mxu0 %vm73_vm0, %v243_v28 }
  0x91   :  { %v179_v45 = vpop.permute.xlu1 %178 }
  0x92   :  { %v174_v37 = vpop.permute.xlu0 %173 }
 0x14f   :  { %v237_v35 = vpop.f32.mrf.mxu0 }
 0x150   :  { %v155_v36 = vmul.f32 %v237_v35, %v146_v31 }
 0x151   :  { %v114_v38 = vpop.f32.mrf.mxu0 }
 0x152   :  { %v183_v39 = vadd.f32 %v174_v37, %v155_v36  ;;  %v153_v40 = vmul.f32 %v136_v29, %v114_v38 }
 0x153   :  { %v238_v41 = vpop.f32.mrf.mxu0 }
 0x154   :  { %v187_v42 = vmax.f32 %v183_v39, 0.0  ;;  %v181_v43 = vadd.f32 %v164_v33, %v153_v40  ;;  %v156_v44 = vmul.f32 %v238_v41, %v151_v32 }
 0x155   :  { %v117_v46 = vpop.f32.mrf.mxu0 }
 0x156   :  { %v224_v47 = vpack.c.bf16 %v187_v42, %v187_v42  ;;  %v185_v48 = vmax.f32 %v181_v43, 0.0  ;;  %v184_v49 = vadd.f32 %v179_v45, %v156_v44  ;;  %v154_v50 = vmul.f32 %v141_v30, %v117_v46 }
 0x158   :  { %208 = vst.msk [vmem:[%s345_s6 + $0x8] sm:$0xf] %vm205_vm1, %v224_v47  ;;  %v222_v51 = vpack.c.bf16 %v185_v48, %v185_v48  ;;  %v188_v52 = vmax.f32 %v184_v49, 0.0  ;;  %v182_v53 = vadd.f32 %v169_v34, %v154_v50 }
 0x15a   :  { %206 = vst.msk [vmem:[%s345_s6] sm:$0xf] %vm205_vm1, %v222_v51  ;;  %v225_v54 = vpack.c.bf16 %v188_v52, %v188_v52  ;;  %v186_v55 = vmax.f32 %v182_v53, 0.0 }
 0x15c   :  { %209 = vst.msk [vmem:[%s345_s6 + $0xc] sm:$0xf] %vm205_vm1, %v225_v54  ;;  %v223_v56 = vpack.c.bf16 %v186_v55, %v186_v55 }
 0x15e   :  { %207 = vst.msk [vmem:[%s345_s6 + $0x4] sm:$0xf] %vm205_vm1, %v223_v56 }

// kernel: net_forward.23
= control target key start
LH: loop header
LB: loop body
LE: loop exit
PB: predicated region body
PF: predicated region fallthrough
CT: control target
= control target key end

     0   :  { %v769_v0 = vmov 0.0   ;;  %vm770_vm0 = vmmov 0   ;;  %vm36_vm1 = vcmask 261120   ;;  %vm577_vm2 = vcmask 257024   ;;  %s915_s0 = inlined_call_operand.vmem [shape: bf16[9,32,32], index: 0, kind: input, shape index: {}]   ;;  %s916_s1 = inlined_call_operand.vmem [shape: bf16[9,8,32], index: 1, kind: input, shape index: {}]   ;;  %s917_s2 = inlined_call_operand.vmem [shape: bf16[8,32], index: 2, kind: output, shape index: {}]  }
   0x1   :  { %677 = vmatprep.subr.bf16.mxu0 %v769_v0  ;;  %v751_v1 = vld [vmem:[%s915_s0 + $0x18] sm:$0xff]   ;;  %685 = vmatprep.subr.bf16.mxu1 %v769_v0  ;;  %v752_v2 = vld [vmem:[%s915_s0 + $0x8] sm:$0xff]   ;;  %v753_v3 = vld [vmem:[%s915_s0 + $0x10] sm:$0xff]  }
   0x2   :  { %681 = vmatprep.mubr.msk.bf16.mxu0 %vm770_vm0, %v769_v0  ;;  %689 = vmatprep.mubr.msk.bf16.mxu1 %vm770_vm0, %v769_v0  ;;  %v754_v4 = vld [vmem:[%s915_s0] sm:$0xff]   ;;  %v755_v7 = vld [vmem:[%s915_s0 + $0x28] sm:$0xff]   ;;  %v756_v8 = vld [vmem:[%s915_s0 + $0x38] sm:$0xff]  }
   0x3   :  { %678 = vmatpush3.bf16.msra.mxu0 %v751_v1  ;;  %686 = vmatpush3.bf16.msra.mxu1 %v752_v2  ;;  %v587_v5 = vld [vmem:[%s916_s1 + $0x4] sm:$0xf]  ;;  %v16_v6 = vld [vmem:[%s916_s1] sm:$0xf]  ;;  %v758_v10 = vld [vmem:[%s915_s0 + $0x30] sm:$0xff]  }
   0x4   :  { %679 = vmatprep.subr.bf16.mxu0 %v769_v0  ;;  %687 = vmatprep.subr.bf16.mxu1 %v769_v0  ;;  %v757_v9 = vld [vmem:[%s915_s0 + $0x20] sm:$0xff]   ;;  %v598_v11 = vld [vmem:[%s916_s1 + $0x8] sm:$0xf]  ;;  %v606_v13 = vld [vmem:[%s916_s1 + $0xc] sm:$0xf] }
   0x5   :  { %v759_v12 = vld [vmem:[%s915_s0 + $0x48] sm:$0xff]   ;;  %v760_v14 = vld [vmem:[%s915_s0 + $0x58] sm:$0xff]   ;;  %v761_v15 = vld [vmem:[%s915_s0 + $0x40] sm:$0xff]  }
   0x6   :  { %v762_v16 = vld [vmem:[%s915_s0 + $0x50] sm:$0xff]   ;;  %v763_v18 = vld [vmem:[%s915_s0 + $0x68] sm:$0xff]   ;;  %v764_v20 = vld [vmem:[%s915_s0 + $0x78] sm:$0xff]  }
   0x7   :  { %680 = vmatpush3.bf16.msra.mxu0 %v753_v3  ;;  %688 = vmatpush3.bf16.msra.mxu1 %v754_v4  ;;  %v614_v17 = vld [vmem:[%s916_s1 + $0x10] sm:$0xf]  ;;  %v622_v19 = vld [vmem:[%s916_s1 + $0x14] sm:$0xf]  ;;  %v765_v21 = vld [vmem:[%s915_s0 + $0x60] sm:$0xff]  }
   0x8   :  { %693 = vmatprep.subr.bf16.mxu0 %v769_v0  ;;  %701 = vmatprep.subr.bf16.mxu1 %v769_v0  ;;  %v766_v22 = vld [vmem:[%s915_s0 + $0x70] sm:$0xff]   ;;  %v630_v23 = vld [vmem:[%s916_s1 + $0x18] sm:$0xf]  ;;  %v767_v24 = vld [vmem:[%s915_s0 + $0x88] sm:$0xff]  }
   0x9   :  { %v638_v25 = vld [vmem:[%s916_s1 + $0x1c] sm:$0xf]  ;;  %v768_v26 = vld [vmem:[%s915_s0 + $0x80] sm:$0xff]  }
   0xa   :  { %682 = vmatmul.mubr.msk.bf16.vlgmr.msra.gmra.mxu0 %vm36_vm1, %v587_v5  ;;  %690 = vmatmul.mubr.msk.bf16.vlgmr.msra.gmra.mxu1 %vm36_vm1, %v16_v6  ;;  %v646_v27 = vld [vmem:[%s916_s1 + $0x20] sm:$0xf] }
   0xb   :  { %694 = vmatpush3.bf16.msra.mxu0 %v755_v7  ;;  %702 = vmatpush3.bf16.msra.mxu1 %v756_v8 }
   0xc   :  { %695 = vmatprep.subr.bf16.mxu0 %v769_v0  ;;  %703 = vmatprep.subr.bf16.mxu1 %v769_v0 }
   0xd   :  { %697 = vmatprep.mubr.msk.bf16.mxu0 %vm770_vm0, %v769_v0  ;;  %705 = vmatprep.mubr.msk.bf16.mxu1 %vm770_vm0, %v769_v0 }
   0xf   :  { %696 = vmatpush3.bf16.msra.mxu0 %v757_v9  ;;  %704 = vmatpush3.bf16.msra.mxu1 %v758_v10 }
  0x10   :  { %709 = vmatprep.subr.bf16.mxu0 %v769_v0  ;;  %717 = vmatprep.subr.bf16.mxu1 %v769_v0 }
  0x12   :  { %698 = vmatmul.mubr.msk.bf16.vlgmr.msra.gmra.mxu0 %vm36_vm1, %v598_v11  ;;  %706 = vmatmul.mubr.msk.bf16.vlgmr.msra.gmra.mxu1 %vm36_vm1, %v606_v13 }
  0x13   :  { %710 = vmatpush3.bf16.msra.mxu0 %v759_v12  ;;  %718 = vmatpush3.bf16.msra.mxu1 %v760_v14 }
  0x14   :  { %711 = vmatprep.subr.bf16.mxu0 %v769_v0  ;;  %719 = vmatprep.subr.bf16.mxu1 %v769_v0 }
  0x15   :  { %713 = vmatprep.mubr.msk.bf16.mxu0 %vm770_vm0, %v769_v0  ;;  %721 = vmatprep.mubr.msk.bf16.mxu1 %vm770_vm0, %v769_v0 }
  0x17   :  { %712 = vmatpush3.bf16.msra.mxu0 %v761_v15  ;;  %720 = vmatpush3.bf16.msra.mxu1 %v762_v16 }
  0x18   :  { %725 = vmatprep.subr.bf16.mxu0 %v769_v0  ;;  %733 = vmatprep.subr.bf16.mxu1 %v769_v0 }
  0x1a   :  { %714 = vmatmul.mubr.msk.bf16.vlgmr.msra.gmra.mxu0 %vm36_vm1, %v614_v17  ;;  %722 = vmatmul.mubr.msk.bf16.vlgmr.msra.gmra.mxu1 %vm36_vm1, %v622_v19 }
  0x1b   :  { %726 = vmatpush3.bf16.msra.mxu0 %v763_v18  ;;  %734 = vmatpush3.bf16.msra.mxu1 %v764_v20 }
  0x1c   :  { %727 = vmatprep.subr.bf16.mxu0 %v769_v0  ;;  %735 = vmatprep.subr.bf16.mxu1 %v769_v0 }
  0x1d   :  { %729 = vmatprep.mubr.msk.bf16.mxu0 %vm770_vm0, %v769_v0  ;;  %737 = vmatprep.mubr.msk.bf16.mxu1 %vm770_vm0, %v769_v0 }
  0x1f   :  { %728 = vmatpush3.bf16.msra.mxu0 %v765_v21  ;;  %736 = vmatpush3.bf16.msra.mxu1 %v766_v22 }
  0x20   :  { %741 = vmatprep.subr.bf16.mxu0 %v769_v0 }
  0x22   :  { %730 = vmatmul.mubr.msk.bf16.vlgmr.msra.gmra.mxu0 %vm36_vm1, %v630_v23  ;;  %738 = vmatmul.mubr.msk.bf16.vlgmr.msra.gmra.mxu1 %vm36_vm1, %v638_v25 }
  0x23   :  { %742 = vmatpush3.bf16.msra.mxu0 %v767_v24  ;;  %745 = vmatprep.mubr.msk.bf16.mxu0 %vm770_vm0, %v769_v0 }
  0x24   :  { %743 = vmatprep.subr.bf16.mxu0 %v769_v0 }
  0x27   :  { %744 = vmatpush3.bf16.msra.mxu0 %v768_v26 }
  0x2a   :  { %746 = vmatmul.mubr.msk.bf16.vlgmr.msra.gmra.mxu0 %vm36_vm1, %v646_v27 }
  0xca   :  { %v74_v28 = vpop.f32.mrf.mxu0  ;;  %v129_v29 = vpop.f32.mrf.mxu1 }
  0xcb   :  { %v130_v41 = vadd.f32 %v129_v29, %v74_v28 }
  0xcc   :  { %v683_v30 = vpop.f32.mrf.mxu0  ;;  %v691_v31 = vpop.f32.mrf.mxu1 }
  0xce   :  { %v77_v32 = vpop.f32.mrf.mxu0  ;;  %v132_v33 = vpop.f32.mrf.mxu1 }
  0xd0   :  { %v684_v34 = vpop.f32.mrf.mxu0  ;;  %v692_v35 = vpop.f32.mrf.mxu1 }
  0xd2   :  { %v191_v36 = vpop.f32.mrf.mxu0  ;;  %v254_v37 = vpop.f32.mrf.mxu1 }
  0xd3   :  { %v197_v44 = vadd.f32 %v191_v36, %v130_v41 }
  0xd4   :  { %v699_v38 = vpop.f32.mrf.mxu0  ;;  %v707_v39 = vpop.f32.mrf.mxu1 }
  0xd5   :  { %v260_v49 = vadd.f32 %v254_v37, %v197_v44 }
  0xd6   :  { %v194_v40 = vpop.f32.mrf.mxu0  ;;  %v257_v42 = vpop.f32.mrf.mxu1 }
  0xd8   :  { %v700_v43 = vpop.f32.mrf.mxu0  ;;  %v708_v45 = vpop.f32.mrf.mxu1 }
  0xda   :  { %v317_v46 = vpop.f32.mrf.mxu0  ;;  %v380_v47 = vpop.f32.mrf.mxu1 }
  0xdb   :  { %v323_v52 = vadd.f32 %v317_v46, %v260_v49 }
  0xdc   :  { %v715_v48 = vpop.f32.mrf.mxu0  ;;  %v723_v50 = vpop.f32.mrf.mxu1 }
  0xdd   :  { %v386_v57 = vadd.f32 %v380_v47, %v323_v52 }
  0xde   :  { %v320_v51 = vpop.f32.mrf.mxu0  ;;  %v383_v53 = vpop.f32.mrf.mxu1 }
  0xe0   :  { %v716_v54 = vpop.f32.mrf.mxu0  ;;  %v724_v55 = vpop.f32.mrf.mxu1 }
  0xe2   :  { %v443_v56 = vpop.f32.mrf.mxu0  ;;  %v506_v58 = vpop.f32.mrf.mxu1 }
  0xe3   :  { %v449_v60 = vadd.f32 %v443_v56, %v386_v57 }
  0xe4   :  { %v731_v59 = vpop.f32.mrf.mxu0  ;;  %v739_v61 = vpop.f32.mrf.mxu1 }
  0xe5   :  { %v512_v1 = vadd.f32 %v506_v58, %v449_v60 }
  0xe6   :  { %v446_v62 = vpop.f32.mrf.mxu0  ;;  %v509_v63 = vpop.f32.mrf.mxu1 }
  0xe8   :  { %v732_v0 = vpop.f32.mrf.mxu0  ;;  %v740_v2 = vpop.f32.mrf.mxu1 }
  0xea   :  { %v569_v3 = vpop.f32.mrf.mxu0 }
  0xeb   :  { %v575_v4 = vadd.f32 %v569_v3, %v512_v1 }
  0xec   :  { %v747_v5 = vpop.f32.mrf.mxu0 }
  0xed   :  { %v576_v6 = vpack.c.bf16 %v575_v4, %v575_v4 }
  0xee   :  { %v572_v7 = vpop.f32.mrf.mxu0 }
  0xef   :  { %578 = vst.msk [vmem:[%s917_s2] sm:$0xf] %vm577_vm2, %v576_v6 }
  0xf0   :  { %v748_v8 = vpop.f32.mrf.mxu0 }

// kernel: net_forward.24
= control target key start
LH: loop header
LB: loop body
LE: loop exit
PB: predicated region body
PF: predicated region fallthrough
CT: control target
= control target key end

     0   :  { %v270_v0 = vmov 0   ;;  %vm91_vm0 = vcmask 195584   ;;  %vm98_vm1 = vcmask 1043456   ;;  %vm227_vm2 = vcmask 257024   ;;  %s374_s2 = inlined_call_operand.vmem [shape: f32[24,1], index: 2, kind: input, shape index: {}]   ;;  %s375_s3 = inlined_call_operand.vmem [shape: f32[24,1], index: 3, kind: input, shape index: {}]   ;;  %s376_s4 = inlined_call_operand.vmem [shape: f32[32,1], index: 4, kind: input, shape index: {}]   ;;  %s377_s1 = inlined_call_operand.vmem [shape: bf16[1,32,24], index: 1, kind: input, shape index: {}]   ;;  %s378_s5 = inlined_call_operand.vmem [shape: f32[32,1], index: 5, kind: input, shape index: {}]   ;;  %s379_s0 = inlined_call_operand.vmem [shape: bf16[1,24,32], index: 0, kind: input, shape index: {}]   ;;  %s380_s6 = inlined_call_operand.vmem [shape: bf16[32,32], index: 6, kind: output, shape index: {}]  }
   0x1   :  { %267 = vset.pattern.permute.xlu1 %v270_v0  ;;  %266 = vset.pattern.permute.xlu0 %v270_v0  ;;  %v32_v1 = vld [vmem:[%s374_s2 + $0x10] sm:$0xff]  ;;  %v30_v2 = vld [vmem:[%s374_s2] sm:$0xff]  ;;  %v31_v4 = vld [vmem:[%s374_s2 + $0x8] sm:$0xff] }
   0x2   :  { %45 = vperm.xlu0 %266, %v32_v1   ;;  %35 = vperm.xlu1 %267, %v30_v2   ;;  %v53_v3 = vld [vmem:[%s375_s3 + $0x10] sm:$0xff]  ;;  %v51_v5 = vld [vmem:[%s375_s3] sm:$0xff]  ;;  %v52_v6 = vld [vmem:[%s375_s3 + $0x8] sm:$0xff] }
   0x3   :  { %v151_v7 = vld [vmem:[%s376_s4] sm:$0xff]  ;;  %v152_v8 = vld [vmem:[%s376_s4 + $0x8] sm:$0xff]  ;;  %v153_v10 = vld [vmem:[%s376_s4 + $0x10] sm:$0xff] }
   0x4   :  { %v268_v9 = vld [vmem:[%s377_s1] sm:$0xff]   ;;  %v154_v11 = vld [vmem:[%s376_s4 + $0x18] sm:$0xff]  ;;  %v180_v13 = vld [vmem:[%s378_s5 + $0x8] sm:$0xff] }
   0x5   :  { %260 = vmatprep.mubr.msk.bf16.mxu0 %vm91_vm0, %v268_v9  ;;  %v179_v12 = vld [vmem:[%s378_s5] sm:$0xff]  ;;  %v181_v14 = vld [vmem:[%s378_s5 + $0x10] sm:$0xff]  ;;  %v182_v15 = vld [vmem:[%s378_s5 + $0x18] sm:$0xff] }
   0x6   :  { %66 = vperm.xlu0 %266, %v53_v3   ;;  %40 = vperm.xlu1 %267, %v31_v4   ;;  %v26_v16 = vld [vmem:[%s379_s0 + $0x8] sm:$0xf]  ;;  %v249_v20 = vld [vmem:[%s379_s0] sm:$0xff]  }
   0x7   :  { %v29_v17 = vunpack.c.l.bf16 %v26_v16  ;;  %v250_v22 = vunpack.c.l.bf16 %v249_v20  ;;  %v251_v23 = vunpack.c.h.bf16 %v249_v20  ;;  %v269_v39 = vld [vmem:[%s377_s1 + $0x8] sm:$0xff]  }
   0xa   :  { %56 = vperm.xlu0 %266, %v51_v5   ;;  %61 = vperm.xlu1 %267, %v52_v6  }
   0xe   :  { %157 = vperm.xlu0 %266, %v151_v7   ;;  %162 = vperm.xlu1 %267, %v152_v8  }
  0x12   :  { %167 = vperm.xlu0 %266, %v153_v10   ;;  %172 = vperm.xlu1 %267, %v154_v11  }
  0x16   :  { %185 = vperm.xlu0 %266, %v179_v12   ;;  %190 = vperm.xlu1 %267, %v180_v13  }
  0x1a   :  { %195 = vperm.xlu0 %266, %v181_v14   ;;  %200 = vperm.xlu1 %267, %v182_v15  }
  0x7d   :  { %v46_v18 = vpop.permute.xlu0 %45  ;;  %v36_v19 = vpop.permute.xlu1 %35 }
  0x7e   :  { %v50_v21 = vmul.f32 %v46_v18, %v29_v17  ;;  %v48_v27 = vmul.f32 %v250_v22, %v36_v19 }
  0x81   :  { %v67_v24 = vpop.permute.xlu0 %66  ;;  %v41_v25 = vpop.permute.xlu1 %40 }
  0x82   :  { %v71_v26 = vadd.f32 %v67_v24, %v50_v21  ;;  %v49_v29 = vmul.f32 %v251_v23, %v41_v25 }
  0x84   :  { %v74_v28 = vmax.f32 %v71_v26, 0.0 }
  0x85   :  { %v57_v30 = vpop.permute.xlu0 %56  ;;  %v62_v31 = vpop.permute.xlu1 %61 }
  0x86   :  { %v69_v32 = vadd.f32 %v57_v30, %v48_v27  ;;  %v70_v33 = vadd.f32 %v62_v31, %v49_v29  ;;  %v76_v34 = vpack.c.bf16 %v74_v28, %v74_v28 }
  0x88   :  { %v72_v35 = vmax.f32 %v69_v32, 0.0  ;;  %v73_v36 = vmax.f32 %v70_v33, 0.0  ;;  %264 = vmatprep.subr.msk.bf16.mxu0 %vm98_vm1, %v76_v34  ;;  %v100_v37 = vsel %vm98_vm1, %v76_v34, 0 }
  0x89   :  { %257 = vmatpush3.bf16.msra.mxu0 %v100_v37  ;;  %v158_v40 = vpop.permute.xlu0 %157  ;;  %v163_v41 = vpop.permute.xlu1 %162 }
  0x8a   :  { %v75_v38 = vpack.c.bf16 %v73_v36, %v72_v35 }
  0x8c   :  { %258 = vmatprep.subr.bf16.mxu0 %v75_v38 }
  0x8d   :  { %259 = vmatpush3.bf16.msra.mxu0 %v75_v38  ;;  %v168_v42 = vpop.permute.xlu0 %167  ;;  %v173_v43 = vpop.permute.xlu1 %172 }
  0x90   :  { %261 = vmatmul.mubr.msk.bf16.vlgmr.msra.gmra.mxu0 %vm91_vm0, %v269_v39 }
  0x91   :  { %v186_v44 = vpop.permute.xlu0 %185  ;;  %v191_v45 = vpop.permute.xlu1 %190 }
  0x95   :  { %v196_v48 = vpop.permute.xlu0 %195  ;;  %v201_v56 = vpop.permute.xlu1 %200 }
 0x150   :  { %v262_v46 = vpop.f32.mrf.mxu0 }
 0x151   :  { %v177_v47 = vmul.f32 %v262_v46, %v168_v42 }
 0x152   :  { %v136_v49 = vpop.f32.mrf.mxu0 }
 0x153   :  { %v205_v50 = vadd.f32 %v196_v48, %v177_v47  ;;  %v175_v51 = vmul.f32 %v158_v40, %v136_v49 }
 0x154   :  { %v263_v52 = vpop.f32.mrf.mxu0 }
 0x155   :  { %v209_v53 = vmax.f32 %v205_v50, 0.0  ;;  %v203_v54 = vadd.f32 %v186_v44, %v175_v51  ;;  %v178_v55 = vmul.f32 %v263_v52, %v173_v43 }
 0x156   :  { %v139_v57 = vpop.f32.mrf.mxu0 }
 0x157   :  { %v246_v58 = vpack.c.bf16 %v209_v53, %v209_v53  ;;  %v207_v59 = vmax.f32 %v203_v54, 0.0  ;;  %v206_v60 = vadd.f32 %v201_v56, %v178_v55  ;;  %v176_v61 = vmul.f32 %v163_v41, %v139_v57 }
 0x159   :  { %230 = vst.msk [vmem:[%s380_s6 + $0x8] sm:$0xf] %vm227_vm2, %v246_v58  ;;  %v244_v62 = vpack.c.bf16 %v207_v59, %v207_v59  ;;  %v210_v63 = vmax.f32 %v206_v60, 0.0  ;;  %v204_v0 = vadd.f32 %v191_v45, %v176_v61 }
 0x15b   :  { %228 = vst.msk [vmem:[%s380_s6] sm:$0xf] %vm227_vm2, %v244_v62  ;;  %v247_v1 = vpack.c.bf16 %v210_v63, %v210_v63  ;;  %v208_v2 = vmax.f32 %v204_v0, 0.0 }
 0x15d   :  { %231 = vst.msk [vmem:[%s380_s6 + $0xc] sm:$0xf] %vm227_vm2, %v247_v1  ;;  %v245_v3 = vpack.c.bf16 %v208_v2, %v208_v2 }
 0x15f   :  { %229 = vst.msk [vmem:[%s380_s6 + $0x4] sm:$0xf] %vm227_vm2, %v245_v3 }

// kernel: net_forward.26
= control target key start
LH: loop header
LB: loop body
LE: loop exit
PB: predicated region body
PF: predicated region fallthrough
CT: control target
= control target key end

     0   :  { %v97_v0 = vlaneseq  ;;  %v1895_v1 = vmov 0   ;;  %v1896_v2 = vmov 1966171168   ;;  %vm1101_vm0 = vcmask 130048   ;;  %s2424_s1 = inlined_call_operand.vmem [shape: f32[32,1], index: 1, kind: input, shape index: {}]   ;;  %s2425_s2 = inlined_call_operand.vmem [shape: f32[32,1], index: 2, kind: input, shape index: {}]   ;;  %s2426_s0 = inlined_call_operand.vmem [shape: bf16[32,8,16], index: 0, kind: input, shape index: {}]   ;;  %s2427_s3 = inlined_call_operand.vmem [shape: bf16[32,1024], index: 3, kind: input, shape index: {}]   ;;  %s2428_s4 = inlined_call_operand.vmem [shape: f32[1,1024], index: 4, kind: input, shape index: {}]   ;;  %s2429_s5 = inlined_call_operand.vmem [shape: f32[8,1024], index: 5, kind: output, shape index: {}]  }
   0x1   :  { %1885 = vset.pattern.permute.xlu0 %v1895_v1  ;;  %v95_v3 = vunpack.c.l.s4 %v1896_v2  ;;  %1886 = vset.pattern.permute.xlu1 %v1895_v1  ;;  %v85_v6 = vld [vmem:[%s2424_s1] sm:$0xff]  ;;  %v1940_v7 = vld [vmem:[%s2424_s1 + $0x8] sm:$0xff]  ;;  %v1976_v35 = vld [vmem:[%s2424_s1 + $0x10] sm:$0xff]  ;;  %vm1393_vm1 = vcmask 1041409   ;;  %vm1395_vm2 = vcmask 1042434   ;;  %vm1397_vm3 = vcmask 1043459  }
   0x2   :  { %v1930_v4 = vshrl.u32 %v97_v0, 7  ;;  %1639 = vmatprep.mubr.bf16.mxu0 %v1895_v1  ;;  %1680 = vmatprep.mubr.bf16.mxu1 %v1895_v1  ;;  %v1945_v8 = vld [vmem:[%s2425_s2] sm:$0xff]  ;;  %v93_v21 = vcombine.high %v85_v6, %v85_v6  ;;  %v1989_v44 = vld [vmem:[%s2425_s2 + $0x8] sm:$0xff]  ;;  %v292_v48 = vld [vmem:[%s2425_s2 + $0x18] sm:$0xff]  ;;  %v142_v56 = vcombine.high %v1940_v7, %v1940_v7  ;;  %vm1399_vm4 = vcmask 1044484  }
   0x3   :  { %v96_v5 = vunpack.c.0.s8 %v95_v3  ;;  %v444_v2 = vcombine.high %v292_v48, %v292_v48  ;;  %vm1401_vm5 = vcmask 1045509   ;;  %vm1403_vm6 = vcmask 1046534  }
   0x4   :  { %v1952_v11 = vsub.s32 0, %v1930_v4  ;;  %vm1405_vm7 = vcmask 1047559   ;;  %vm1603_vm8 = vcmask 261120  }
   0x5   :  { %v1948_v9 = vsub.s32 %v96_v5, %v1930_v4 }
   0x7   :  { %v100_v10 = vrot.slane %v85_v6, %v1948_v9  ;;  %v149_v12 = vrot.slane %v1940_v7, %v1948_v9  ;;  %v304_v13 = vrot.slane %v1945_v8, %v1948_v9  ;;  %v107_v30 = vrot.slane %v93_v21, %v1948_v9 }
   0x8   :  { %v198_v41 = vrot.slane %v1976_v35, %v1948_v9  ;;  %v353_v51 = vrot.slane %v1989_v44, %v1948_v9  ;;  %v451_v54 = vrot.slane %v292_v48, %v1948_v9  ;;  %v156_v6 = vrot.slane %v142_v56, %v1948_v9 }
   0x9   :  { %v116_v14 = vrot.slane %v100_v10, %v1948_v9  ;;  %v165_v15 = vrot.slane %v149_v12, %v1948_v9  ;;  %v157_v16 = vcombine.high %v149_v12, %v149_v12  ;;  %v312_v20 = vcombine.high %v304_v13, %v304_v13 }
   0xa   :  { %v108_v22 = vcombine.high %v100_v10, %v100_v10  ;;  %v320_v25 = vrot.slane %v304_v13, %v1948_v9  ;;  %v123_v34 = vrot.slane %v107_v30, %v1948_v9  ;;  %v109_v38 = vcombine.high %v107_v30, %v107_v30 }
   0xb   :  { %v496_v17 = vrot.slane %v116_v14, %v1952_v11  ;;  %v138_v18 = vcombine.high %v116_v14, %v116_v14  ;;  %v179_v19 = vrot.slane %v157_v16, %v1948_v9  ;;  %v528_v24 = vrot.slane %v165_v15, %v1952_v11 }
   0xc   :  { %v334_v27 = vrot.slane %v312_v20, %v1948_v9  ;;  %v784_v28 = vrot.slane %v320_v25, %v1952_v11  ;;  %v130_v29 = vrot.slane %v108_v22, %v1948_v9  ;;  %v187_v32 = vcombine.high %v165_v15, %v165_v15 }
   0xd   :  { %622 = vperm.xlu0 %1885, %v496_v17   ;;  %v504_v23 = vrot.slane %v138_v18, %v1952_v11  ;;  %v532_v26 = vrot.slane %v179_v19, %v1952_v11  ;;  %v512_v39 = vrot.slane %v123_v34, %v1952_v11  ;;  %v342_v40 = vcombine.high %v320_v25, %v320_v25 }
   0xe   :  { %v788_v31 = vrot.slane %v334_v27, %v1952_v11  ;;  %v500_v33 = vrot.slane %v130_v29, %v1952_v11  ;;  %v536_v36 = vrot.slane %v187_v32, %v1952_v11  ;;  %v140_v37 = vcombine.high %v130_v29, %v130_v29 }
   0xf   :  { %630 = vperm.xlu1 %1886, %v504_v23   ;;  %v1984_v43 = vrot.slane %v109_v38, %v1948_v9  ;;  %v792_v45 = vrot.slane %v342_v40, %v1952_v11  ;;  %v189_v46 = vcombine.high %v179_v19, %v179_v19  ;;  %v206_v47 = vcombine.high %v198_v41, %v198_v41  ;;  %v2036_v23 = vld [vmem:[%s2424_s1 + $0x18] sm:$0xff] }
  0x10   :  { %v508_v42 = vrot.slane %v140_v37, %v1952_v11  ;;  %v214_v50 = vrot.slane %v198_v41, %v1948_v9  ;;  %v344_v55 = vcombine.high %v334_v27, %v334_v27  ;;  %v361_v58 = vcombine.high %v353_v51, %v353_v51 }
  0x11   :  { %654 = vperm.xlu0 %1885, %v528_v24   ;;  %v516_v49 = vrot.slane %v1984_v43, %v1952_v11  ;;  %v540_v52 = vrot.slane %v189_v46, %v1952_v11  ;;  %v228_v53 = vrot.slane %v206_v47, %v1948_v9  ;;  %v2007_v59 = vrot.slane %v451_v54, %v1948_v9 }
  0x12   :  { %v560_v57 = vrot.slane %v214_v50, %v1952_v11  ;;  %v459_v60 = vcombine.high %v451_v54, %v451_v54  ;;  %v369_v62 = vrot.slane %v353_v51, %v1948_v9  ;;  %v796_v3 = vrot.slane %v344_v55, %v1952_v11 }
  0x13   :  { %658 = vperm.xlu1 %1886, %v532_v26   ;;  %v564_v61 = vrot.slane %v228_v53, %v1952_v11  ;;  %v383_v5 = vrot.slane %v361_v58, %v1948_v9  ;;  %v297_v7 = vcombine.high %v1945_v8, %v1945_v8  ;;  %v139_v12 = vcombine.high %v123_v34, %v123_v34 }
  0x14   :  { %v2012_v63 = vrot.slane %v459_v60, %v1948_v9  ;;  %v816_v10 = vrot.slane %v369_v62, %v1952_v11  ;;  %v458_v13 = vrot.slane %v444_v2, %v1948_v9  ;;  %v172_v15 = vrot.slane %v156_v6, %v1948_v9 }
  0x15   :  { %910 = vperm.xlu0 %1885, %v784_v28   ;;  %v820_v14 = vrot.slane %v383_v5, %v1952_v11  ;;  %v311_v16 = vrot.slane %v297_v7, %v1948_v9  ;;  %v520_v18 = vrot.slane %v139_v12, %v1952_v11  ;;  %v236_v8 = vcombine.high %v214_v50, %v214_v50 }
  0x16   :  { %v2025_v17 = vrot.slane %v458_v13, %v1948_v9  ;;  %v460_v19 = vcombine.high %v458_v13, %v458_v13  ;;  %v544_v20 = vrot.slane %v172_v15, %v1952_v11  ;;  %v391_v25 = vcombine.high %v369_v62, %v369_v62 }
  0x17   :  { %914 = vperm.xlu1 %1886, %v788_v31   ;;  %v327_v21 = vrot.slane %v311_v16, %v1948_v9  ;;  %v568_v24 = vrot.slane %v236_v8, %v1952_v11  ;;  %v158_v26 = vcombine.high %v156_v6, %v156_v6  ;;  %v141_v28 = vcombine.high %v1984_v43, %v1984_v43 }
  0x18   :  { %v2031_v22 = vrot.slane %v460_v19, %v1948_v9  ;;  %v247_v29 = vrot.slane %v2036_v23, %v1948_v9  ;;  %v824_v30 = vrot.slane %v391_v25, %v1952_v11  ;;  %v393_v47 = vcombine.high %v383_v5, %v383_v5 }
  0x19   :  { %626 = vperm.xlu0 %1885, %v500_v33   ;;  %v800_v27 = vrot.slane %v327_v21, %v1952_v11  ;;  %v186_v31 = vrot.slane %v158_v26, %v1948_v9  ;;  %v524_v32 = vrot.slane %v141_v28, %v1952_v11  ;;  %v238_v33 = vcombine.high %v228_v53, %v228_v53 }
  0x1a   :  { %v255_v34 = vcombine.high %v247_v29, %v247_v29  ;;  %v263_v38 = vrot.slane %v247_v29, %v1948_v9  ;;  %v188_v56 = vcombine.high %v172_v15, %v172_v15 }
  0x1b   :  { %662 = vperm.xlu1 %1886, %v536_v36   ;;  %v2050_v36 = vld [vmem:[%s2425_s2 + $0x10] sm:$0xff]  ;;  %v548_v37 = vrot.slane %v186_v31, %v1952_v11  ;;  %v572_v40 = vrot.slane %v238_v33, %v1952_v11  ;;  %v190_v13 = vcombine.high %v186_v31, %v186_v31 }
  0x1c   :  { %v277_v41 = vrot.slane %v255_v34, %v1948_v9  ;;  %v592_v43 = vrot.slane %v263_v38, %v1952_v11  ;;  %v552_v60 = vrot.slane %v188_v56, %v1952_v11  ;;  %v395_v31 = vcombine.high %v2050_v36, %v2050_v36 }
  0x1d   :  { %638 = vperm.xlu0 %1885, %v512_v39   ;;  %v313_v39 = vcombine.high %v311_v16, %v311_v16  ;;  %v556_v16 = vrot.slane %v190_v13, %v1952_v11 }
  0x1e   :  { %v596_v46 = vrot.slane %v277_v41, %v1952_v11 }
  0x1f   :  { %634 = vperm.xlu1 %1886, %v508_v42   ;;  %v402_v42 = vrot.slane %v2050_v36, %v1948_v9 }
  0x21   :  { %918 = vperm.xlu0 %1885, %v792_v45   ;;  %v341_v45 = vrot.slane %v313_v39, %v1948_v9  ;;  %v410_v48 = vcombine.high %v402_v42, %v402_v42  ;;  %v418_v51 = vrot.slane %v402_v42, %v1948_v9  ;;  %v489_v42 = vcombine.high %v2007_v59, %v2007_v59 }
  0x23   :  { %642 = vperm.xlu1 %1886, %v516_v49   ;;  %v191_v49 = vcombine.high %v1976_v35, %v1976_v35  ;;  %v804_v50 = vrot.slane %v341_v45, %v1952_v11  ;;  %v432_v53 = vrot.slane %v410_v48, %v1948_v9  ;;  %v848_v55 = vrot.slane %v418_v51, %v1952_v11 }
  0x24   :  { %v440_v7 = vcombine.high %v418_v51, %v418_v51 }
  0x25   :  { %666 = vperm.xlu0 %1885, %v540_v52   ;;  %v828_v52 = vrot.slane %v393_v47, %v1952_v11  ;;  %v205_v54 = vrot.slane %v191_v49, %v1948_v9  ;;  %v852_v35 = vrot.slane %v432_v53, %v1952_v11  ;;  %v442_v26 = vcombine.high %v432_v53, %v432_v53 }
  0x26   :  { %v888_v47 = vrot.slane %v489_v42, %v1952_v11 }
  0x27   :  { %686 = vperm.xlu1 %1886, %v560_v57   ;;  %v346_v57 = vcombine.high %v1989_v44, %v1989_v44  ;;  %v221_v58 = vrot.slane %v205_v54, %v1948_v9  ;;  %v860_v29 = vrot.slane %v442_v26, %v1952_v11 }
  0x29   :  { %690 = vperm.xlu0 %1885, %v564_v61   ;;  %v285_v61 = vcombine.high %v263_v38, %v263_v38  ;;  %v360_v62 = vrot.slane %v346_v57, %v1948_v9  ;;  %v576_v2 = vrot.slane %v221_v58, %v1952_v11  ;;  %v237_v33 = vcombine.high %v221_v58, %v221_v58 }
  0x2b   :  { %922 = vperm.xlu1 %1886, %v796_v3   ;;  %v343_v3 = vcombine.high %v327_v21, %v327_v21  ;;  %v600_v5 = vrot.slane %v285_v61, %v1952_v11  ;;  %v376_v44 = vrot.slane %v360_v62, %v1948_v9  ;;  %v362_v8 = vcombine.high %v360_v62, %v360_v62 }
  0x2c   :  { %v584_v38 = vrot.slane %v237_v33, %v1952_v11  ;;  %v896_v61 = vrot.slane %v2025_v17, %v1952_v11 }
  0x2d   :  { %942 = vperm.xlu0 %1885, %v816_v10   ;;  %v808_v6 = vrot.slane %v343_v3, %v1952_v11  ;;  %v207_v10 = vcombine.high %v205_v54, %v205_v54  ;;  %v832_v12 = vrot.slane %v376_v44, %v1952_v11  ;;  %v392_v39 = vcombine.high %v376_v44, %v376_v44 }
  0x2e   :  { %v491_v54 = vcombine.high %v2012_v63, %v2012_v63  ;;  %v490_v3 = vcombine.high %v2025_v17, %v2025_v17  ;;  %v492_v44 = vcombine.high %v2031_v22, %v2031_v22 }
  0x2f   :  { %946 = vperm.xlu1 %1886, %v820_v14   ;;  %v856_v14 = vrot.slane %v440_v7, %v1952_v11  ;;  %v235_v15 = vrot.slane %v207_v10, %v1948_v9 }
  0x30   :  { %v892_v57 = vrot.slane %v491_v54, %v1952_v11  ;;  %v908_v7 = vrot.slane %v492_v44, %v1952_v11 }
  0x31   :  { %646 = vperm.xlu0 %1885, %v520_v18   ;;  %v287_v18 = vcombine.high %v277_v41, %v277_v41  ;;  %v580_v19 = vrot.slane %v235_v15, %v1952_v11  ;;  %v840_v41 = vrot.slane %v392_v39, %v1952_v11 }
  0x33   :  { %670 = vperm.xlu1 %1886, %v544_v20   ;;  %v345_v20 = vcombine.high %v341_v45, %v341_v45  ;;  %v604_v21 = vrot.slane %v287_v18, %v1952_v11  ;;  %v1804_v18 = vld [vmem:[%s2426_s0] sm:$0xff]  }
  0x35   :  { %694 = vperm.xlu0 %1885, %v568_v24   ;;  %v390_v24 = vrot.slane %v362_v8, %v1948_v9  ;;  %v812_v25 = vrot.slane %v345_v20, %v1952_v11  ;;  %v1867_v20 = vld [vmem:[%s2426_s0 + $0x8] sm:$0xff]  }
  0x36   :  { %v1809_v26 = vunpack.c.l.bf16 %v1867_v20  ;;  %v1810_v33 = vunpack.c.h.bf16 %v1867_v20 }
  0x37   :  { %926 = vperm.xlu1 %1886, %v800_v27   ;;  %v240_v27 = vcombine.high %v2036_v23, %v2036_v23  ;;  %v836_v28 = vrot.slane %v390_v24, %v1952_v11  ;;  %v884_v23 = vrot.slane %v2012_v63, %v1952_v11  ;;  %v394_v51 = vcombine.high %v390_v24, %v390_v24 }
  0x39   :  { %950 = vperm.xlu0 %1885, %v824_v30   ;;  %v254_v30 = vrot.slane %v240_v27, %v1948_v9  ;;  %v844_v53 = vrot.slane %v394_v51, %v1952_v11  ;;  %v1806_v27 = vunpack.c.h.bf16 %v1804_v18  ;;  %v1868_v51 = vld [vmem:[%s2426_s0 + $0x10] sm:$0xff]  }
  0x3b   :  { %650 = vperm.xlu1 %1886, %v524_v32   ;;  %v880_v32 = vrot.slane %v2007_v59, %v1952_v11  ;;  %v270_v34 = vrot.slane %v254_v30, %v1948_v9 }
  0x3d   :  { %674 = vperm.xlu0 %1885, %v548_v37   ;;  %v409_v37 = vrot.slane %v395_v31, %v1948_v9  ;;  %v608_v36 = vrot.slane %v270_v34, %v1952_v11  ;;  %v286_v56 = vcombine.high %v270_v34, %v270_v34 }
  0x3f   :  { %698 = vperm.xlu1 %1886, %v572_v40   ;;  %v425_v40 = vrot.slane %v409_v37, %v1948_v9  ;;  %v411_v49 = vcombine.high %v409_v37, %v409_v37  ;;  %v616_v58 = vrot.slane %v286_v56, %v1952_v11 }
  0x41   :  { %718 = vperm.xlu0 %1885, %v592_v43   ;;  %v256_v43 = vcombine.high %v254_v30, %v254_v30  ;;  %v864_v45 = vrot.slane %v425_v40, %v1952_v11  ;;  %v439_v59 = vrot.slane %v411_v49, %v1948_v9 }
  0x43   :  { %722 = vperm.xlu1 %1886, %v596_v46   ;;  %v239_v46 = vcombine.high %v235_v15, %v235_v15  ;;  %v284_v48 = vrot.slane %v256_v43, %v1948_v9  ;;  %v443_v63 = vcombine.high %v439_v59, %v439_v59 }
  0x45   :  { %930 = vperm.xlu0 %1885, %v804_v50   ;;  %v588_v50 = vrot.slane %v239_v46, %v1952_v11 }
  0x47   :  { %954 = vperm.xlu1 %1886, %v828_v52   ;;  %v612_v52 = vrot.slane %v284_v48, %v1952_v11 }
  0x49   :  { %974 = vperm.xlu0 %1885, %v848_v55   ;;  %v868_v55 = vrot.slane %v439_v59, %v1952_v11 }
  0x4b   :  { %978 = vperm.xlu1 %1886, %v852_v35   ;;  %v441_v35 = vcombine.high %v425_v40, %v425_v40 }
  0x4d   :  { %678 = vperm.xlu0 %1885, %v552_v60   ;;  %v872_v9 = vrot.slane %v441_v35, %v1952_v11  ;;  %v288_v60 = vcombine.high %v284_v48, %v284_v48 }
  0x4f   :  { %702 = vperm.xlu1 %1886, %v576_v2   ;;  %v620_v62 = vrot.slane %v288_v60, %v1952_v11  ;;  %v876_v2 = vrot.slane %v443_v63, %v1952_v11 }
  0x51   :  { %726 = vperm.xlu0 %1885, %v600_v5   ;;  %v900_v5 = vrot.slane %v2031_v22, %v1952_v11 }
  0x53   :  { %934 = vperm.xlu1 %1886, %v808_v6   ;;  %v904_v6 = vrot.slane %v490_v3, %v1952_v11 }
  0x55   :  { %958 = vperm.xlu0 %1885, %v832_v12  }
  0x57   :  { %982 = vperm.xlu1 %1886, %v856_v14  }
  0x59   :  { %682 = vperm.xlu0 %1885, %v556_v16  }
  0x5b   :  { %706 = vperm.xlu1 %1886, %v580_v19   ;;  %v1805_v19 = vunpack.c.l.bf16 %v1804_v18 }
  0x5d   :  { %730 = vperm.xlu0 %1885, %v604_v21  }
  0x5f   :  { %938 = vperm.xlu1 %1886, %v812_v25  }
  0x61   :  { %962 = vperm.xlu0 %1885, %v836_v28  }
  0x63   :  { %986 = vperm.xlu1 %1886, %v860_v29  }
  0x65   :  { %1006 = vperm.xlu0 %1885, %v880_v32   ;;  %v1870_v32 = vld [vmem:[%s2426_s0 + $0x20] sm:$0xff]  }
  0x66   :  { %v1821_v39 = vunpack.c.l.bf16 %v1870_v32  ;;  %v1822_v40 = vunpack.c.h.bf16 %v1870_v32 }
  0x67   :  { %1010 = vperm.xlu1 %1886, %v884_v23  }
  0x69   :  { %710 = vperm.xlu0 %1885, %v584_v38  }
  0x6b   :  { %734 = vperm.xlu1 %1886, %v608_v36  }
  0x6d   :  { %966 = vperm.xlu0 %1885, %v840_v41  }
  0x6f   :  { %990 = vperm.xlu1 %1886, %v864_v45  }
  0x71   :  { %1014 = vperm.xlu0 %1885, %v888_v47  }
  0x73   :  { %714 = vperm.xlu1 %1886, %v588_v50  }
  0x75   :  { %738 = vperm.xlu0 %1885, %v612_v52  }
  0x77   :  { %970 = vperm.xlu1 %1886, %v844_v53  }
  0x79   :  { %994 = vperm.xlu0 %1885, %v868_v55  }
  0x7b   :  { %1018 = vperm.xlu1 %1886, %v892_v57   ;;  %v1871_v57 = vld [vmem:[%s2426_s0 + $0x28] sm:$0xff]  }
  0x7c   :  { %v1825_v63 = vunpack.c.l.bf16 %v1871_v57 }
  0x7d   :  { %742 = vperm.xlu0 %1885, %v616_v58   ;;  %v1813_v58 = vunpack.c.l.bf16 %v1868_v51 }
  0x7f   :  { %998 = vperm.xlu1 %1886, %v872_v9  }
  0x81   :  { %1022 = vperm.xlu0 %1885, %v896_v61  }
  0x83   :  { %746 = vperm.xlu1 %1886, %v620_v62  }
  0x85   :  { %1002 = vperm.xlu0 %1885, %v876_v2  }
  0x87   :  { %1026 = vperm.xlu1 %1886, %v900_v5  }
  0x88   :  { %v623_v10 = vpop.permute.xlu0 %622 }
  0x89   :  { %1030 = vperm.xlu0 %1885, %v904_v6   ;;  %v749_v25 = vmul.f32 %v1805_v19, %v623_v10 }
  0x8a   :  { %v631_v12 = vpop.permute.xlu1 %630 }
  0x8b   :  { %1034 = vperm.xlu1 %1886, %v908_v7   ;;  %v751_v31 = vmul.f32 %v1809_v26, %v631_v12 }
  0x8c   :  { %v655_v13 = vpop.permute.xlu0 %654 }
  0x8d   :  { %v757_v48 = vmul.f32 %v1821_v39, %v655_v13 }
  0x8e   :  { %v659_v14 = vpop.permute.xlu1 %658 }
  0x8f   :  { %v758_v50 = vmul.f32 %v1822_v40, %v659_v14 }
  0x90   :  { %v911_v17 = vpop.permute.xlu0 %910 }
  0x91   :  { %v1037_v29 = vadd.f32 %v911_v17, %v749_v25  ;;  %v1826_v25 = vunpack.c.h.bf16 %v1871_v57 }
  0x92   :  { %v915_v15 = vpop.permute.xlu1 %914 }
  0x93   :  { %v1069_v37 = vmax.f32 %v1037_v29, 0.0 }
  0x94   :  { %v627_v16 = vpop.permute.xlu0 %626 }
  0x95   :  { %v750_v23 = vmul.f32 %v1806_v27, %v627_v16  ;;  %v1102_v47 = vsel %vm1101_vm0, %v1069_v37, 0.0 }
  0x96   :  { %v663_v22 = vpop.permute.xlu1 %662 }
  0x97   :  { %v1038_v42 = vadd.f32 %v915_v15, %v750_v23  ;;  %v759_v7 = vmul.f32 %v1825_v63, %v663_v22  ;;  %v1814_v22 = vunpack.c.h.bf16 %v1868_v51 }
  0x98   :  { %v639_v8 = vpop.permute.xlu0 %638 }
  0x99   :  { %v1070_v53 = vmax.f32 %v1038_v42, 0.0  ;;  %v753_v5 = vmul.f32 %v1813_v58, %v639_v8 }
  0x9a   :  { %v635_v21 = vpop.permute.xlu1 %634 }
  0x9b   :  { %v752_v41 = vmul.f32 %v1810_v33, %v635_v21  ;;  %v1105_v61 = vsel %vm1101_vm0, %v1070_v53, 0.0  ;;  %v1874_v21 = vld [vmem:[%s2426_s0 + $0x40] sm:$0xff]  }
  0x9c   :  { %v919_v24 = vpop.permute.xlu0 %918  ;;  %v1837_v29 = vunpack.c.l.bf16 %v1874_v21  ;;  %v1838_v33 = vunpack.c.h.bf16 %v1874_v21 }
  0x9d   :  { %v1039_v38 = vadd.f32 %v919_v24, %v751_v31 }
  0x9e   :  { %v2137_v28 = vpop.permute.xlu1 %642 }
  0x9f   :  { %v1071_v45 = vmax.f32 %v1039_v38, 0.0  ;;  %v754_v27 = vmul.f32 %v1814_v22, %v2137_v28  ;;  %v1869_v28 = vld [vmem:[%s2426_s0 + $0x18] sm:$0xff]  }
  0xa0   :  { %v2139_v30 = vpop.permute.xlu0 %666 }
  0xa1   :  { %v1108_v56 = vsel %vm1101_vm0, %v1071_v45, 0.0  ;;  %v760_v32 = vmul.f32 %v1826_v25, %v2139_v30 }
  0xa2   :  { %v2144_v34 = vpop.permute.xlu1 %686 }
  0xa3   :  { %v765_v38 = vmul.f32 %v1837_v29, %v2144_v34  ;;  %v1872_v34 = vld [vmem:[%s2426_s0 + $0x30] sm:$0xff]  }
  0xa4   :  { %v2146_v36 = vpop.permute.xlu0 %690 }
  0xa5   :  { %v766_v42 = vmul.f32 %v1838_v33, %v2146_v36  ;;  %v1817_v36 = vunpack.c.l.bf16 %v1869_v28 }
  0xa6   :  { %v923_v43 = vpop.permute.xlu1 %922 }
  0xa7   :  { %v1040_v46 = vadd.f32 %v923_v43, %v752_v41 }
  0xa8   :  { %v943_v49 = vpop.permute.xlu0 %942  ;;  %1103 = vadd.xlane.f32.xlu0 %v1102_v47 }
  0xa9   :  { %v1045_v52 = vadd.f32 %v943_v49, %v757_v48  ;;  %v1072_v54 = vmax.f32 %v1040_v46, 0.0 }
  0xaa   :  { %v947_v59 = vpop.permute.xlu1 %946 }
  0xab   :  { %v1046_v55 = vadd.f32 %v947_v59, %v758_v50  ;;  %v1077_v9 = vmax.f32 %v1045_v52, 0.0  ;;  %v1111_v2 = vsel %vm1101_vm0, %v1072_v54, 0.0  ;;  %v1875_v59 = vld [vmem:[%s2426_s0 + $0x48] sm:$0xff]   ;;  %v1829_v54 = vunpack.c.l.bf16 %v1872_v34 }
  0xac   :  { %v2156_v35 = vpop.permute.xlu0 %646  ;;  %1109 = vadd.xlane.f32.xlu0 %v1108_v56  ;;  %v1841_v58 = vunpack.c.l.bf16 %v1875_v59  ;;  %v1842_v21 = vunpack.c.h.bf16 %v1875_v59 }
  0xad   :  { %v1078_v62 = vmax.f32 %v1046_v55, 0.0  ;;  %v1126_v6 = vsel %vm1101_vm0, %v1077_v9, 0.0  ;;  %v755_v57 = vmul.f32 %v1817_v36, %v2156_v35  ;;  %v1879_v36 = vld [vmem:[%s2426_s0 + $0x68] sm:$0xff]  }
  0xae   :  { %v2158_v60 = vpop.permute.xlu1 %670 }
  0xaf   :  { %1106 = vadd.xlane.f32.xlu1 %v1105_v61  ;;  %v1129_v12 = vsel %vm1101_vm0, %v1078_v62, 0.0  ;;  %v761_v61 = vmul.f32 %v1829_v54, %v2158_v60  ;;  %v1830_v60 = vunpack.c.h.bf16 %v1872_v34 }
  0xb0   :  { %v2162_v3 = vpop.permute.xlu0 %694  ;;  %1112 = vadd.xlane.f32.xlu0 %v1111_v2 }
  0xb1   :  { %v767_v2 = vmul.f32 %v1841_v58, %v2162_v3 }
  0xb2   :  { %v927_v44 = vpop.permute.xlu1 %926 }
  0xb3   :  { %v1041_v10 = vadd.f32 %v927_v44, %v753_v5  ;;  %1127 = vadd.xlane.f32.xlu1 %v1126_v6 }
  0xb4   :  { %v951_v13 = vpop.permute.xlu0 %950  ;;  %1130 = vadd.xlane.f32.xlu0 %v1129_v12 }
  0xb5   :  { %v1073_v14 = vmax.f32 %v1041_v10, 0.0  ;;  %v1047_v17 = vadd.f32 %v951_v13, %v759_v7 }
  0xb6   :  { %v2166_v15 = vpop.permute.xlu1 %650 }
  0xb7   :  { %v1079_v16 = vmax.f32 %v1047_v17, 0.0  ;;  %v1114_v18 = vsel %vm1101_vm0, %v1073_v14, 0.0  ;;  %v1818_v14 = vunpack.c.h.bf16 %v1869_v28 }
  0xb8   :  { %v2169_v19 = vpop.permute.xlu0 %674  ;;  %1115 = vadd.xlane.f32.xlu1 %v1114_v18  ;;  %v1878_v18 = vld [vmem:[%s2426_s0 + $0x60] sm:$0xff]  }
  0xb9   :  { %v1132_v8 = vsel %vm1101_vm0, %v1079_v16, 0.0  ;;  %v756_v22 = vmul.f32 %v1818_v14, %v2166_v15  ;;  %v1853_v29 = vunpack.c.l.bf16 %v1878_v18  ;;  %v1873_v15 = vld [vmem:[%s2426_s0 + $0x38] sm:$0xff]  }
  0xba   :  { %v2172_v20 = vpop.permute.xlu1 %698  ;;  %1133 = vadd.xlane.f32.xlu0 %v1132_v8 }
  0xbb   :  { %v768_v33 = vmul.f32 %v1842_v21, %v2172_v20 }
  0xbc   :  { %v2177_v24 = vpop.permute.xlu0 %718 }
  0xbe   :  { %v2179_v26 = vpop.permute.xlu1 %722 }
  0xc0   :  { %v931_v31 = vpop.permute.xlu0 %930 }
  0xc1   :  { %v1042_v23 = vadd.f32 %v931_v31, %v754_v27  ;;  %v762_v27 = vmul.f32 %v1830_v60, %v2169_v19 }
  0xc2   :  { %v955_v37 = vpop.permute.xlu1 %954 }
  0xc3   :  { %v1074_v39 = vmax.f32 %v1042_v23, 0.0  ;;  %v1048_v40 = vadd.f32 %v955_v37, %v760_v32  ;;  %v1854_v23 = vunpack.c.h.bf16 %v1878_v18  ;;  %v1858_v18 = vunpack.c.h.bf16 %v1879_v36 }
  0xc4   :  { %v975_v41 = vpop.permute.xlu0 %974 }
  0xc5   :  { %v1080_v43 = vmax.f32 %v1048_v40, 0.0  ;;  %v1053_v45 = vadd.f32 %v975_v41, %v765_v38  ;;  %v1117_v46 = vsel %vm1101_vm0, %v1074_v39, 0.0  ;;  %v773_v40 = vmul.f32 %v1853_v29, %v2177_v24  ;;  %v1876_v24 = vld [vmem:[%s2426_s0 + $0x50] sm:$0xff]  }
  0xc6   :  { %v979_v47 = vpop.permute.xlu1 %978  ;;  %1118 = vadd.xlane.f32.xlu1 %v1117_v46  ;;  %v1880_v29 = vld [vmem:[%s2426_s0 + $0x70] sm:$0xff]  }
  0xc7   :  { %v1085_v30 = vmax.f32 %v1053_v45, 0.0  ;;  %v1054_v48 = vadd.f32 %v979_v47, %v766_v42  ;;  %v1135_v49 = vsel %vm1101_vm0, %v1080_v43, 0.0  ;;  %v774_v45 = vmul.f32 %v1854_v23, %v2179_v26 }
  0xc8   :  { %v2193_v50 = vpop.permute.xlu0 %678  ;;  %1136 = vadd.xlane.f32.xlu0 %v1135_v49 }
  0xc9   :  { %v1086_v51 = vmax.f32 %v1054_v48, 0.0  ;;  %v1150_v52 = vsel %vm1101_vm0, %v1085_v30, 0.0  ;;  %v1833_v30 = vunpack.c.l.bf16 %v1873_v15 }
  0xca   :  { %v2199_v53 = vpop.permute.xlu1 %702  ;;  %1151 = vadd.xlane.f32.xlu1 %v1150_v52 }
  0xcb   :  { %v1153_v55 = vsel %vm1101_vm0, %v1086_v51, 0.0  ;;  %v1845_v51 = vunpack.c.l.bf16 %v1876_v24 }
  0xcc   :  { %v2202_v56 = vpop.permute.xlu0 %726  ;;  %1154 = vadd.xlane.f32.xlu0 %v1153_v55  ;;  %v763_v55 = vmul.f32 %v1833_v30, %v2193_v50 }
  0xce   :  { %v935_v9 = vpop.permute.xlu1 %934 }
  0xcf   :  { %v1043_v63 = vadd.f32 %v935_v9, %v755_v57  ;;  %v1857_v57 = vunpack.c.l.bf16 %v1879_v36 }
  0xd0   :  { %v959_v62 = vpop.permute.xlu0 %958 }
  0xd1   :  { %v1075_v5 = vmax.f32 %v1043_v63, 0.0  ;;  %v1049_v44 = vadd.f32 %v959_v62, %v761_v61  ;;  %v769_v61 = vmul.f32 %v1845_v51, %v2199_v53 }
  0xd2   :  { %v983_v6 = vpop.permute.xlu1 %982 }
  0xd3   :  { %v1081_v7 = vmax.f32 %v1049_v44, 0.0  ;;  %v1055_v10 = vadd.f32 %v983_v6, %v767_v2  ;;  %v1120_v12 = vsel %vm1101_vm0, %v1075_v5, 0.0  ;;  %v775_v2 = vmul.f32 %v1857_v57, %v2202_v56 }
  0xd4   :  { %v2208_v13 = vpop.permute.xlu0 %682  ;;  %1121 = vadd.xlane.f32.xlu1 %v1120_v12 }
  0xd5   :  { %v1087_v35 = vmax.f32 %v1055_v10, 0.0  ;;  %v1138_v17 = vsel %vm1101_vm0, %v1081_v7, 0.0  ;;  %v1834_v7 = vunpack.c.h.bf16 %v1873_v15 }
  0xd6   :  { %v2211_v16 = vpop.permute.xlu1 %706  ;;  %1139 = vadd.xlane.f32.xlu0 %v1138_v17 }
  0xd7   :  { %v1156_v3 = vsel %vm1101_vm0, %v1087_v35, 0.0  ;;  %v1846_v35 = vunpack.c.h.bf16 %v1876_v24  ;;  %v764_v53 = vmul.f32 %v1834_v7, %v2208_v13 }
  0xd8   :  { %v2217_v8 = vpop.permute.xlu0 %730  ;;  %1157 = vadd.xlane.f32.xlu1 %v1156_v3 }
  0xda   :  { %v939_v25 = vpop.permute.xlu1 %938 }
  0xdb   :  { %v1044_v31 = vadd.f32 %v939_v25, %v756_v22  ;;  %v1877_v22 = vld [vmem:[%s2426_s0 + $0x58] sm:$0xff]   ;;  %v770_v25 = vmul.f32 %v1846_v35, %v2211_v16 }
  0xdc   :  { %v963_v32 = vpop.permute.xlu0 %962  ;;  %v1849_v13 = vunpack.c.l.bf16 %v1877_v22 }
  0xdd   :  { %v1076_v37 = vmax.f32 %v1044_v31, 0.0  ;;  %v1050_v38 = vadd.f32 %v963_v32, %v762_v27  ;;  %v776_v32 = vmul.f32 %v1858_v18, %v2217_v8 }
  0xde   :  { %v987_v39 = vpop.permute.xlu1 %986 }
  0xdf   :  { %v1082_v41 = vmax.f32 %v1050_v38, 0.0  ;;  %v1056_v42 = vadd.f32 %v987_v39, %v768_v33  ;;  %v1123_v43 = vsel %vm1101_vm0, %v1076_v37, 0.0  ;;  %v1861_v38 = vunpack.c.l.bf16 %v1880_v29 }
  0xe0   :  { %v1007_v19 = vpop.permute.xlu0 %1006  ;;  %1124 = vadd.xlane.f32.xlu0 %v1123_v43 }
  0xe1   :  { %v1088_v46 = vmax.f32 %v1056_v42, 0.0  ;;  %v1061_v20 = vadd.f32 %v1007_v19, %v773_v40  ;;  %v1141_v28 = vsel %vm1101_vm0, %v1082_v41, 0.0 }
  0xe2   :  { %v1011_v47 = vpop.permute.xlu1 %1010  ;;  %1142 = vadd.xlane.f32.xlu1 %v1141_v28  ;;  %v1881_v28 = vld [vmem:[%s2426_s0 + $0x78] sm:$0xff]  }
  0xe3   :  { %v1093_v48 = vmax.f32 %v1061_v20, 0.0  ;;  %v1062_v49 = vadd.f32 %v1011_v47, %v774_v45  ;;  %v1159_v34 = vsel %vm1101_vm0, %v1088_v46, 0.0  ;;  %v1850_v46 = vunpack.c.h.bf16 %v1877_v22 }
  0xe4   :  { %v711_v26 = vpop.permute.xlu0 %710  ;;  %1160 = vadd.xlane.f32.xlu0 %v1159_v34  ;;  %v1862_v47 = vunpack.c.h.bf16 %v1880_v29  ;;  %v1865_v36 = vunpack.c.l.bf16 %v1881_v28 }
  0xe5   :  { %v1094_v52 = vmax.f32 %v1062_v49, 0.0  ;;  %v1174_v59 = vsel %vm1101_vm0, %v1093_v48, 0.0  ;;  %v771_v16 = vmul.f32 %v1849_v13, %v711_v26  ;;  %v1470_v13 = vld [vmem:[%s2427_s3 + $0x28] sm:$0xff] }
  0xe6   :  { %v735_v54 = vpop.permute.xlu1 %734  ;;  %1175 = vadd.xlane.f32.xlu1 %v1174_v59 }
  0xe7   :  { %v1177_v58 = vsel %vm1101_vm0, %v1094_v52, 0.0  ;;  %v777_v45 = vmul.f32 %v1861_v38, %v735_v54  ;;  %v1866_v54 = vunpack.c.h.bf16 %v1881_v28 }
  0xe8   :  { %v967_v9 = vpop.permute.xlu0 %966  ;;  %1178 = vadd.xlane.f32.xlu0 %v1177_v58 }
  0xe9   :  { %v1051_v63 = vadd.f32 %v967_v9, %v763_v55 }
  0xea   :  { %v991_v62 = vpop.permute.xlu1 %990 }
  0xeb   :  { %v1083_v5 = vmax.f32 %v1051_v63, 0.0  ;;  %v1057_v44 = vadd.f32 %v991_v62, %v769_v61 }
  0xec   :  { %v1015_v6 = vpop.permute.xlu0 %1014 }
  0xed   :  { %v1089_v10 = vmax.f32 %v1057_v44, 0.0  ;;  %v1063_v12 = vadd.f32 %v1015_v6, %v775_v2  ;;  %v1144_v14 = vsel %vm1101_vm0, %v1083_v5, 0.0 }
  0xee   :  { %v715_v50 = vpop.permute.xlu1 %714  ;;  %1145 = vadd.xlane.f32.xlu1 %v1144_v14 }
  0xef   :  { %v1095_v17 = vmax.f32 %v1063_v12, 0.0  ;;  %v1162_v60 = vsel %vm1101_vm0, %v1089_v10, 0.0  ;;  %v772_v34 = vmul.f32 %v1850_v46, %v715_v50 }
  0xf0   :  { %v739_v3 = vpop.permute.xlu0 %738  ;;  %1163 = vadd.xlane.f32.xlu0 %v1162_v60  ;;  %v1473_v60 = vld [vmem:[%s2427_s3 + $0x40] sm:$0xff] }
  0xf1   :  { %v1180_v56 = vsel %vm1101_vm0, %v1095_v17, 0.0  ;;  %v778_v59 = vmul.f32 %v1862_v47, %v739_v3  ;;  %v1477_v3 = vld [vmem:[%s2427_s3 + $0x60] sm:$0xff] }
  0xf2   :  { %v971_v21 = vpop.permute.xlu1 %970  ;;  %1181 = vadd.xlane.f32.xlu1 %v1180_v56  ;;  %v1792_v18 = vcombine.high %v1473_v60, %v1477_v3  ;;  %v1478_v56 = vld [vmem:[%s2427_s3 + $0x68] sm:$0xff]  ;;  %v1791_v22 = vcombine.low %v1473_v60, %v1477_v3 }
  0xf3   :  { %v1052_v27 = vadd.f32 %v971_v21, %v764_v53  ;;  %v1474_v53 = vld [vmem:[%s2427_s3 + $0x48] sm:$0xff]  ;;  %v1465_v21 = vld [vmem:[%s2427_s3] sm:$0xff] }
  0xf4   :  { %v995_v31 = vpop.permute.xlu0 %994  ;;  %v1793_v29 = vcombine.low %v1474_v53, %v1478_v56  ;;  %1619 = vmatprep.subr.bf16.mxu0 %v1792_v18 }
  0xf5   :  { %v1084_v33 = vmax.f32 %v1052_v27, 0.0  ;;  %v1058_v23 = vadd.f32 %v995_v31, %v770_v25  ;;  %v1469_v25 = vld [vmem:[%s2427_s3 + $0x20] sm:$0xff]  ;;  %v1794_v27 = vcombine.high %v1474_v53, %v1478_v56  ;;  %1620 = vmatpush1.bf16.msra.mxu0 %v1791_v22 }
  0xf6   :  { %v1019_v37 = vpop.permute.xlu1 %1018  ;;  %v1784_v31 = vcombine.high %v1465_v21, %v1469_v25 }
  0xf7   :  { %v1090_v39 = vmax.f32 %v1058_v23, 0.0  ;;  %v1064_v40 = vadd.f32 %v1019_v37, %v776_v32  ;;  %v1147_v41 = vsel %vm1101_vm0, %v1084_v33, 0.0  ;;  %v1466_v32 = vld [vmem:[%s2427_s3 + $0x8] sm:$0xff]  ;;  %1660 = vmatprep.subr.bf16.mxu1 %v1794_v27  ;;  %v1783_v23 = vcombine.low %v1465_v21, %v1469_v25 }
  0xf8   :  { %v743_v42 = vpop.permute.xlu0 %742  ;;  %1148 = vadd.xlane.f32.xlu0 %v1147_v41  ;;  %v1786_v33 = vcombine.high %v1466_v32, %v1470_v13  ;;  %1661 = vmatpush1.bf16.msra.mxu1 %v1793_v29  ;;  %v1785_v37 = vcombine.low %v1466_v32, %v1470_v13 }
  0xf9   :  { %v1096_v43 = vmax.f32 %v1064_v40, 0.0  ;;  %v1165_v15 = vsel %vm1101_vm0, %v1090_v39, 0.0  ;;  %v779_v9 = vmul.f32 %v1865_v36, %v743_v42  ;;  %1621 = vmatprep.subr.bf16.mxu0 %v1784_v31 }
  0xfa   :  { %v999_v19 = vpop.permute.xlu1 %998  ;;  %1166 = vadd.xlane.f32.xlu1 %v1165_v15  ;;  %1662 = vmatprep.subr.bf16.mxu1 %v1786_v33 }
  0xfb   :  { %v1059_v8 = vadd.f32 %v999_v19, %v771_v16  ;;  %v1183_v20 = vsel %vm1101_vm0, %v1096_v43, 0.0  ;;  %1622 = vmatpush1.bf16.msra.mxu0 %v1783_v23 }
  0xfc   :  { %v1023_v24 = vpop.permute.xlu0 %1022  ;;  %1184 = vadd.xlane.f32.xlu0 %v1183_v20  ;;  %1663 = vmatpush1.bf16.msra.mxu1 %v1785_v37 }
  0xfd   :  { %v1091_v30 = vmax.f32 %v1059_v8, 0.0  ;;  %v1065_v48 = vadd.f32 %v1023_v24, %v777_v45  ;;  %v1264_v45 = vand.u32 127, %v97_v0 }
  0xfe   :  { %v747_v49 = vpop.permute.xlu1 %746 }
  0xff   :  { %v1097_v26 = vmax.f32 %v1065_v48, 0.0  ;;  %v1168_v51 = vsel %vm1101_vm0, %v1091_v30, 0.0  ;;  %v780_v2 = vmul.f32 %v1866_v54, %v747_v49  ;;  %v2291_v20 = vsub.s32 %v1264_v45, %v1930_v4 }
 0x100   :  { %v1003_v52 = vpop.permute.xlu0 %1002  ;;  %1169 = vadd.xlane.f32.xlu1 %v1168_v51 }
 0x101   :  { %v1060_v55 = vadd.f32 %v1003_v52, %v772_v34  ;;  %v1186_v57 = vsel %vm1101_vm0, %v1097_v26, 0.0 }
 0x102   :  { %v1027_v58 = vpop.permute.xlu1 %1026  ;;  %1187 = vadd.xlane.f32.xlu0 %v1186_v57 }
 0x103   :  { %v1092_v61 = vmax.f32 %v1060_v55, 0.0  ;;  %v1066_v63 = vadd.f32 %v1027_v58, %v778_v59 }
 0x104   :  { %v1031_v62 = vpop.permute.xlu0 %1030 }
 0x105   :  { %v1098_v5 = vmax.f32 %v1066_v63, 0.0  ;;  %v1067_v44 = vadd.f32 %v1031_v62, %v779_v9  ;;  %v1171_v6 = vsel %vm1101_vm0, %v1092_v61, 0.0 }
 0x106   :  { %v1035_v7 = vpop.permute.xlu1 %1034  ;;  %1172 = vadd.xlane.f32.xlu1 %v1171_v6 }
 0x107   :  { %v1099_v10 = vmax.f32 %v1067_v44, 0.0  ;;  %v1068_v12 = vadd.f32 %v1035_v7, %v780_v2  ;;  %v1189_v14 = vsel %vm1101_vm0, %v1098_v5, 0.0 }
 0x108   :  { %1190 = vadd.xlane.f32.xlu0 %v1189_v14 }
 0x109   :  { %v1100_v50 = vmax.f32 %v1068_v12, 0.0  ;;  %v1192_v35 = vsel %vm1101_vm0, %v1099_v10, 0.0 }
 0x10a   :  { %1193 = vadd.xlane.f32.xlu1 %v1192_v35 }
 0x10b   :  { %v1195_v17 = vsel %vm1101_vm0, %v1100_v50, 0.0 }
 0x10c   :  { %1196 = vadd.xlane.f32.xlu0 %v1195_v17 }
 0x131   :  { %v1104_v38 = vpop.xlane.xlu0 %1103 }
 0x132   :  { %v1199_v28 = vmul.f32 0.0625, %v1104_v38 }
 0x134   :  { %v1268_v49 = vrot.slane %v1199_v28, %v2291_v20 }
 0x135   :  { %v1110_v39 = vpop.xlane.xlu0 %1109 }
 0x136   :  { %v1201_v30 = vmul.f32 0.0625, %v1110_v39 }
 0x138   :  { %v1107_v40 = vpop.xlane.xlu1 %1106  ;;  %v1276_v52 = vrot.slane %v1201_v30, %v2291_v20 }
 0x139   :  { %v1113_v41 = vpop.xlane.xlu0 %1112  ;;  %v1200_v8 = vmul.f32 0.0625, %v1107_v40 }
 0x13a   :  { %v1202_v34 = vmul.f32 0.0625, %v1113_v41 }
 0x13b   :  { %v1272_v47 = vrot.slane %v1200_v8, %v2291_v20 }
 0x13c   :  { %v1128_v42 = vpop.xlane.xlu1 %1127  ;;  %v1280_v55 = vrot.slane %v1202_v34, %v2291_v20 }
 0x13d   :  { %v1131_v16 = vpop.xlane.xlu0 %1130  ;;  %v1394_v0 = vsel %vm1393_vm1, %v1272_v47, %v1268_v49  ;;  %v1207_v17 = vmul.f32 0.0625, %v1128_v42 }
 0x13e   :  { %v1396_v57 = vsel %vm1395_vm2, %v1276_v52, %v1394_v0  ;;  %v1208_v60 = vmul.f32 0.0625, %v1131_v16 }
 0x13f   :  { %v1398_v62 = vsel %vm1397_vm3, %v1280_v55, %v1396_v57  ;;  %v1300_v21 = vrot.slane %v1207_v17, %v2291_v20 }
 0x140   :  { %v1304_v25 = vrot.slane %v1208_v60, %v2291_v20 }
 0x141   :  { %v1116_v43 = vpop.xlane.xlu1 %1115 }
 0x142   :  { %v1203_v26 = vmul.f32 0.0625, %v1116_v43  ;;  %v1407_v23 = vsel %vm1393_vm1, %v1304_v25, %v1300_v21 }
 0x143   :  { %v1134_v15 = vpop.xlane.xlu0 %1133 }
 0x144   :  { %v1284_v58 = vrot.slane %v1203_v26, %v2291_v20  ;;  %v1209_v3 = vmul.f32 0.0625, %v1134_v15 }
 0x146   :  { %v1400_v5 = vsel %vm1399_vm4, %v1284_v58, %v1398_v62  ;;  %v1308_v29 = vrot.slane %v1209_v3, %v2291_v20  ;;  %v1475_v58 = vld [vmem:[%s2427_s3 + $0x50] sm:$0xff] }
 0x148   :  { %v1408_v38 = vsel %vm1395_vm2, %v1308_v29, %v1407_v23 }
 0x14f   :  { %v1119_v19 = vpop.xlane.xlu1 %1118 }
 0x150   :  { %v1204_v51 = vmul.f32 0.0625, %v1119_v19 }
 0x151   :  { %v1137_v46 = vpop.xlane.xlu0 %1136 }
 0x152   :  { %v1288_v9 = vrot.slane %v1204_v51, %v2291_v20  ;;  %v1210_v18 = vmul.f32 0.0625, %v1137_v46 }
 0x153   :  { %v2293_v24 = vpop.xlane.xlu1 %1151 }
 0x154   :  { %v1402_v7 = vsel %vm1401_vm5, %v1288_v9, %v1400_v5  ;;  %v1312_v13 = vrot.slane %v1210_v18, %v2291_v20  ;;  %v1215_v8 = vmul.f32 0.0625, %v2293_v24  ;;  %v1479_v9 = vld [vmem:[%s2427_s3 + $0x70] sm:$0xff] }
 0x155   :  { %v2296_v48 = vpop.xlane.xlu0 %1154  ;;  %v1796_v5 = vcombine.high %v1475_v58, %v1479_v9 }
 0x156   :  { %v1409_v42 = vsel %vm1397_vm3, %v1312_v13, %v1408_v38  ;;  %v1216_v28 = vmul.f32 0.0625, %v2296_v48  ;;  %v1332_v0 = vrot.slane %v1215_v8, %v2291_v20 }
 0x157   :  { %1701 = vmatprep.subr.bf16.mxu0 %v1796_v5  ;;  %v1509_v5 = vsub.s32 6, %v1930_v4 }
 0x158   :  { %v1336_v51 = vrot.slane %v1216_v28, %v2291_v20 }
 0x15d   :  { %v1122_v36 = vpop.xlane.xlu1 %1121 }
 0x15e   :  { %v1205_v59 = vmul.f32 0.0625, %v1122_v36 }
 0x15f   :  { %v1140_v54 = vpop.xlane.xlu0 %1139 }
 0x160   :  { %v1292_v61 = vrot.slane %v1205_v59, %v2291_v20  ;;  %v1211_v22 = vmul.f32 0.0625, %v1140_v54 }
 0x161   :  { %v1158_v44 = vpop.xlane.xlu1 %1157 }
 0x162   :  { %v1404_v10 = vsel %vm1403_vm6, %v1292_v61, %v1402_v7  ;;  %v1316_v33 = vrot.slane %v1211_v22, %v2291_v20  ;;  %v1217_v30 = vmul.f32 0.0625, %v1158_v44  ;;  %v1476_v61 = vld [vmem:[%s2427_s3 + $0x58] sm:$0xff] }
 0x163   :  { %v1480_v44 = vld [vmem:[%s2427_s3 + $0x78] sm:$0xff] }
 0x164   :  { %v1410_v43 = vsel %vm1399_vm4, %v1316_v33, %v1409_v42  ;;  %v1340_v54 = vrot.slane %v1217_v30, %v2291_v20  ;;  %v1471_v30 = vld [vmem:[%s2427_s3 + $0x30] sm:$0xff] }
 0x169   :  { %v1125_v63 = vpop.xlane.xlu0 %1124 }
 0x16a   :  { %v1206_v2 = vmul.f32 0.0625, %v1125_v63 }
 0x16b   :  { %v1143_v14 = vpop.xlane.xlu1 %1142 }
 0x16c   :  { %v1296_v6 = vrot.slane %v1206_v2, %v2291_v20  ;;  %v1212_v27 = vmul.f32 0.0625, %v1143_v14  ;;  %v1795_v2 = vcombine.low %v1475_v58, %v1479_v9  ;;  %v1414_v14 = vsel %vm1393_vm1, %v1336_v51, %v1332_v0 }
 0x16d   :  { %v1161_v50 = vpop.xlane.xlu0 %1160 }
 0x16e   :  { %v1406_v12 = vsel %vm1405_vm7, %v1296_v6, %v1404_v10  ;;  %v1320_v37 = vrot.slane %v1212_v27, %v2291_v20  ;;  %v1218_v49 = vmul.f32 0.0625, %v1161_v50  ;;  %v1797_v10 = vcombine.low %v1476_v61, %v1480_v44 }
 0x16f   :  { %1432 = vxpose.xlu1.b32.start [1/4] (short) (narrow) %v1406_v12, 8  ;;  %v1176_v35 = vpop.xlane.xlu1 %1175  ;;  %v1798_v12 = vcombine.high %v1476_v61, %v1480_v44 }
 0x170   :  { %v1411_v15 = vsel %vm1401_vm5, %v1320_v37, %v1410_v43  ;;  %v1344_v24 = vrot.slane %v1218_v49, %v2291_v20  ;;  %v1223_v63 = vmul.f32 0.0625, %v1176_v35  ;;  %v1415_v35 = vsel %vm1395_vm2, %v1340_v54, %v1414_v14  ;;  %v1468_v49 = vld [vmem:[%s2427_s3 + $0x18] sm:$0xff]  ;;  %v1481_v54 = vld [vmem:[%s2428_s4] sm:$0xff] }
 0x171   :  { %v1179_v53 = vpop.xlane.xlu0 %1178  ;;  %1742 = vmatprep.subr.bf16.mxu1 %v1798_v12  ;;  %v1513_v12 = vsub.s32 7, %v1930_v4 }
 0x172   :  { %v1224_v52 = vmul.f32 0.0625, %v1179_v53  ;;  %v1416_v18 = vsel %vm1397_vm3, %v1344_v24, %v1415_v35  ;;  %v1489_v24 = vsub.s32 1, %v1930_v4  ;;  %v1510_v35 = vrot.slane %v1481_v54, %v1509_v5 }
 0x174   :  { %v1368_v50 = vrot.slane %v1224_v52, %v2291_v20 }
 0x177   :  { %v1146_v56 = vpop.xlane.xlu1 %1145 }
 0x178   :  { %v1213_v31 = vmul.f32 0.0625, %v1146_v56  ;;  %v1364_v56 = vrot.slane %v1223_v63, %v2291_v20 }
 0x179   :  { %v1164_v32 = vpop.xlane.xlu0 %1163 }
 0x17a   :  { %v1324_v39 = vrot.slane %v1213_v31, %v2291_v20  ;;  %v1219_v36 = vmul.f32 0.0625, %v1164_v32  ;;  %v1421_v31 = vsel %vm1393_vm1, %v1368_v50, %v1364_v56 }
 0x17b   :  { %v1182_v40 = vpop.xlane.xlu1 %1181 }
 0x17c   :  { %v1412_v46 = vsel %vm1403_vm6, %v1324_v39, %v1411_v15  ;;  %v1225_v55 = vmul.f32 0.0625, %v1182_v40  ;;  %v1348_v6 = vrot.slane %v1219_v36, %v2291_v20 }
 0x17e   :  { %v1372_v60 = vrot.slane %v1225_v55, %v2291_v20  ;;  %v1417_v25 = vsel %vm1399_vm4, %v1348_v6, %v1416_v18  ;;  %v1497_v55 = vsub.s32 3, %v1930_v4  ;;  %v1514_v18 = vrot.slane %v1481_v54, %v1513_v12 }
 0x180   :  { %v1422_v23 = vsel %vm1395_vm2, %v1372_v60, %v1421_v31  ;;  %v1498_v58 = vrot.slane %v1481_v54, %v1497_v55 }
 0x181   :  { %v1149_v41 = vpop.xlane.xlu0 %1148 }
 0x182   :  { %v1214_v16 = vmul.f32 0.0625, %v1149_v41 }
 0x183   :  { %v1167_v45 = vpop.xlane.xlu1 %1166 }
 0x184   :  { %v1328_v19 = vrot.slane %v1214_v16, %v2291_v20  ;;  %v1220_v59 = vmul.f32 0.0625, %v1167_v45 }
 0x185   :  { %v1185_v34 = vpop.xlane.xlu0 %1184 }
 0x186   :  { %v1413_v47 = vsel %vm1405_vm7, %v1328_v19, %v1412_v46  ;;  %v1226_v62 = vmul.f32 0.0625, %v1185_v34  ;;  %v1352_v17 = vrot.slane %v1220_v59, %v2291_v20  ;;  %v1493_v59 = vsub.s32 2, %v1930_v4 }
 0x187   :  { %1433 = vxpose.xlu1.b32.cont [2/4] (short) (narrow) %v1413_v47, 8  ;;  %v1467_v47 = vld [vmem:[%s2427_s3 + $0x10] sm:$0xff] }
 0x188   :  { %v1376_v22 = vrot.slane %v1226_v62, %v2291_v20  ;;  %v1418_v32 = vsel %vm1401_vm5, %v1352_v17, %v1417_v25  ;;  %v1787_v51 = vcombine.low %v1467_v47, %v1471_v30 }
 0x189   :  { %v1170_v26 = vpop.xlane.xlu1 %1169 }
 0x18a   :  { %v1221_v48 = vmul.f32 0.0625, %v1170_v26  ;;  %v1423_v39 = vsel %vm1397_vm3, %v1376_v22, %v1422_v23  ;;  %v1788_v26 = vcombine.high %v1467_v47, %v1471_v30 }
 0x18b   :  { %v1188_v57 = vpop.xlane.xlu0 %1187 }
 0x18c   :  { %v1227_v7 = vmul.f32 0.0625, %v1188_v57  ;;  %v1356_v3 = vrot.slane %v1221_v48, %v2291_v20  ;;  %v1486_v48 = vrot.slane %v1481_v54, %v1952_v11  ;;  %v1494_v57 = vrot.slane %v1481_v54, %v1493_v59 }
 0x18e   :  { %v1380_v27 = vrot.slane %v1227_v7, %v2291_v20  ;;  %v1419_v38 = vsel %vm1403_vm6, %v1356_v3, %v1418_v32 }
 0x18f   :  { %v1173_v53 = vpop.xlane.xlu1 %1172 }
 0x190   :  { %v1222_v21 = vmul.f32 0.0625, %v1173_v53  ;;  %v1424_v16 = vsel %vm1399_vm4, %v1380_v27, %v1423_v39 }
 0x191   :  { %v1191_v29 = vpop.xlane.xlu0 %1190 }
 0x192   :  { %v1360_v13 = vrot.slane %v1222_v21, %v2291_v20  ;;  %v1228_v33 = vmul.f32 0.0625, %v1191_v29 }
 0x193   :  { %v1194_v37 = vpop.xlane.xlu1 %1193 }
 0x194   :  { %v1384_v40 = vrot.slane %v1228_v33, %v2291_v20  ;;  %v1229_v41 = vmul.f32 0.0625, %v1194_v37  ;;  %v1420_v42 = vsel %vm1405_vm7, %v1360_v13, %v1419_v38 }
 0x195   :  { %1434 = vxpose.xlu1.b32.cont [3/4] (short) (narrow) %v1420_v42, 8  ;;  %v1197_v43 = vpop.xlane.xlu0 %1196 }
 0x196   :  { %v1425_v15 = vsel %vm1401_vm5, %v1384_v40, %v1424_v16  ;;  %v1388_v19 = vrot.slane %v1229_v41, %v2291_v20  ;;  %v1230_v45 = vmul.f32 0.0625, %v1197_v43 }
 0x198   :  { %v1392_v46 = vrot.slane %v1230_v45, %v2291_v20  ;;  %v1426_v8 = vsel %vm1403_vm6, %v1388_v19, %v1425_v15  ;;  %v1472_v20 = vld [vmem:[%s2427_s3 + $0x38] sm:$0xff] }
 0x199   :  { %v1790_v0 = vcombine.high %v1468_v49, %v1472_v20  ;;  %v1789_v52 = vcombine.low %v1468_v49, %v1472_v20 }
 0x19a   :  { %v1427_v28 = vsel %vm1405_vm7, %v1392_v46, %v1426_v8 }
 0x19b   :  { %1435 = vxpose.xlu1.b32.end [4/4] (short) (narrow) %v1427_v28, 8 }
 0x20b   :  { %v1448_v34 = vpop.trf.xlu1 }
 0x20c   :  { %v1464_v36 = vpack.c.bf16 %v1448_v34, %v1448_v34 }
 0x20e   :  { %1799 = vmatmul.mubr.msk.bf16.vlgmr.msra.gmra.mxu0 %vm1603_vm8, %v1464_v36  ;;  %1800 = vmatmul.mubr.msk.bf16.vlgmr.msra.gmra.mxu1 %vm1603_vm8, %v1464_v36 }
 0x20f   :  { %1702 = vmatpush1.bf16.msra.mxu0 %v1795_v2  ;;  %1743 = vmatpush1.bf16.msra.mxu1 %v1797_v10  ;;  %v1501_v2 = vsub.s32 4, %v1930_v4  ;;  %v1505_v10 = vsub.s32 5, %v1930_v4 }
 0x210   :  { %1703 = vmatprep.subr.bf16.mxu0 %v1788_v26  ;;  %1744 = vmatprep.subr.bf16.mxu1 %v1790_v0 }
 0x211   :  { %1721 = vmatprep.mubr.bf16.mxu0 %v1895_v1  ;;  %1762 = vmatprep.mubr.bf16.mxu1 %v1895_v1  ;;  %v1490_v1 = vrot.slane %v1481_v54, %v1489_v24  ;;  %v1502_v17 = vrot.slane %v1481_v54, %v1501_v2  ;;  %v1506_v53 = vrot.slane %v1481_v54, %v1505_v10 }
 0x213   :  { %1704 = vmatpush1.bf16.msra.mxu0 %v1787_v51  ;;  %1745 = vmatpush1.bf16.msra.mxu1 %v1789_v52 }
 0x216   :  { %1801 = vmatmul.mubr.msk.bf16.vlgmr.msra.gmra.mxu0 %vm1603_vm8, %v1464_v36  ;;  %1802 = vmatmul.mubr.msk.bf16.vlgmr.msra.gmra.mxu1 %vm1603_vm8, %v1464_v36 }
 0x2ce   :  { %v1641_v9 = vpop.f32.mrf.mxu0  ;;  %v1682_v61 = vpop.f32.mrf.mxu1 }
 0x2cf   :  { %v1642_v63 = vadd.f32 %v1641_v9, %v1486_v48  ;;  %v1683_v62 = vadd.f32 %v1682_v61, %v1494_v57 }
 0x2d0   :  { %v1643_v44 = vpop.f32.mrf.mxu0  ;;  %v1684_v6 = vpop.f32.mrf.mxu1 }
 0x2d1   :  { %1771 = vst [vmem:[%s2429_s5] sm:$0xff] %v1642_v63  ;;  %1773 = vst [vmem:[%s2429_s5 + $0x10] sm:$0xff] %v1683_v62  ;;  %v1644_v11 = vadd.f32 %v1643_v44, %v1490_v1  ;;  %v1685_v7 = vadd.f32 %v1684_v6, %v1498_v58 }
 0x2d2   :  { %v1645_v14 = vpop.f32.mrf.mxu0  ;;  %v1686_v50 = vpop.f32.mrf.mxu1 }
 0x2d3   :  { %1772 = vst [vmem:[%s2429_s5 + $0x8] sm:$0xff] %v1644_v11  ;;  %1774 = vst [vmem:[%s2429_s5 + $0x18] sm:$0xff] %v1685_v7 }
 0x2d4   :  { %v1646_v60 = vpop.f32.mrf.mxu0  ;;  %v1687_v3 = vpop.f32.mrf.mxu1 }
 0x2d6   :  { %v1723_v56 = vpop.f32.mrf.mxu0  ;;  %v1764_v22 = vpop.f32.mrf.mxu1 }
 0x2d7   :  { %v1724_v21 = vadd.f32 %v1723_v56, %v1502_v17  ;;  %v1765_v4 = vadd.f32 %v1764_v22, %v1510_v35 }
 0x2d8   :  { %v1725_v25 = vpop.f32.mrf.mxu0  ;;  %v1766_v27 = vpop.f32.mrf.mxu1 }
 0x2d9   :  { %1775 = vst [vmem:[%s2429_s5 + $0x20] sm:$0xff] %v1724_v21  ;;  %1777 = vst [vmem:[%s2429_s5 + $0x30] sm:$0xff] %v1765_v4  ;;  %v1726_v29 = vadd.f32 %v1725_v25, %v1506_v53  ;;  %v1767_v31 = vadd.f32 %v1766_v27, %v1514_v18 }
 0x2da   :  { %v1727_v32 = vpop.f32.mrf.mxu0  ;;  %v1768_v13 = vpop.f32.mrf.mxu1 }
 0x2db   :  { %1776 = vst [vmem:[%s2429_s5 + $0x28] sm:$0xff] %v1726_v29  ;;  %1778 = vst [vmem:[%s2429_s5 + $0x38] sm:$0xff] %v1767_v31 }
 0x2dc   :  { %v1728_v33 = vpop.f32.mrf.mxu0  ;;  %v1769_v23 = vpop.f32.mrf.mxu1 }

// kernel: net_forward.27
= control target key start
LH: loop header
LB: loop body
LE: loop exit
PB: predicated region body
PF: predicated region fallthrough
CT: control target
= control target key end

     0   :  { %vm454_vm0 = vcmask 23552   ;;  %s1078_s0 = inlined_call_operand.vmem [shape: f32[8,1024], index: 0, kind: input, shape index: {}]   ;;  %s1079_s1 = inlined_call_operand.vmem [shape: f32[1024,3], index: 1, kind: input, shape index: {}]   ;;  %s1080_s2 = inlined_call_operand.vmem [shape: f32[8,3], index: 2, kind: output, shape index: {}]  }
   0x1   :  { %v620_v0 = vld [vmem:[%s1078_s0] sm:$0xff]  ;;  %v625_v1 = vld [vmem:[%s1078_s0 + $0x8] sm:$0xff]  ;;  %v630_v2 = vld [vmem:[%s1078_s0 + $0x10] sm:$0xff] }
   0x2   :  { %v635_v3 = vld [vmem:[%s1078_s0 + $0x18] sm:$0xff]  ;;  %v19_v4 = vmul.f32 %v620_v0, %v620_v0  ;;  %v20_v5 = vmul.f32 %v625_v1, %v625_v1  ;;  %v21_v6 = vmul.f32 %v630_v2, %v630_v2  ;;  %v646_v7 = vld [vmem:[%s1078_s0 + $0x20] sm:$0xff]  ;;  %v651_v8 = vld [vmem:[%s1078_s0 + $0x28] sm:$0xff] }
   0x3   :  { %v77_v9 = vld [vmem:[%s1079_s1 + $0xf8] sm:$0xff]  ;;  %v22_v10 = vmul.f32 %v635_v3, %v635_v3  ;;  %v670_v15 = vld [vmem:[%s1078_s0 + $0x30] sm:$0xff]  ;;  %v23_v19 = vmul.f32 %v646_v7, %v646_v7  ;;  %v75_v22 = vld [vmem:[%s1079_s1 + $0xe8] sm:$0xff]  ;;  %v24_v27 = vmul.f32 %v651_v8, %v651_v8 }
   0x4   :  { %v27_v11 = vadd.f32 %v20_v5, %v19_v4  ;;  %460 = vmatprep.subr.mxu0 %v77_v9  ;;  %v109_v12 = vld [vmem:[%s1079_s1 + $0x1f8] sm:$0xff]  ;;  %v76_v16 = vld [vmem:[%s1079_s1 + $0xf0] sm:$0xff]  ;;  %v107_v23 = vld [vmem:[%s1079_s1 + $0x1e8] sm:$0xff]  ;;  %v25_v34 = vmul.f32 %v670_v15, %v670_v15 }
   0x5   :  { %v61_v13 = vld [vmem:[%s1079_s1 + $0x78] sm:$0xff]  ;;  %495 = vmatprep.subr.mxu1 %v109_v12  ;;  %v108_v17 = vld [vmem:[%s1079_s1 + $0x1f0] sm:$0xff]  ;;  %v59_v24 = vld [vmem:[%s1079_s1 + $0x68] sm:$0xff] }
   0x6   :  { %v93_v14 = vld [vmem:[%s1079_s1 + $0x178] sm:$0xff]  ;;  %461 = vmatpush3.msra.mxu0 %v61_v13  ;;  %v60_v18 = vld [vmem:[%s1079_s1 + $0x70] sm:$0xff]  ;;  %v28_v20 = vadd.f32 %v27_v11, %v21_v6  ;;  %v91_v25 = vld [vmem:[%s1079_s1 + $0x168] sm:$0xff] }
   0x7   :  { %496 = vmatpush3.msra.mxu1 %v93_v14  ;;  %462 = vmatprep.subr.mxu0 %v76_v16  ;;  %v92_v21 = vld [vmem:[%s1079_s1 + $0x170] sm:$0xff]  ;;  %v74_v26 = vld [vmem:[%s1079_s1 + $0xe0] sm:$0xff]  ;;  %v712_v31 = vld [vmem:[%s1078_s0 + $0x38] sm:$0xff] }
   0x8   :  { %497 = vmatprep.subr.mxu1 %v108_v17  ;;  %463 = vmatpush3.msra.mxu0 %v60_v18  ;;  %v29_v28 = vadd.f32 %v28_v20, %v22_v10  ;;  %v106_v29 = vld [vmem:[%s1079_s1 + $0x1e0] sm:$0xff]  ;;  %v73_v33 = vld [vmem:[%s1079_s1 + $0xd8] sm:$0xff]  ;;  %v72_v39 = vld [vmem:[%s1079_s1 + $0xd0] sm:$0xff]  ;;  %v26_v40 = vmul.f32 %v712_v31, %v712_v31 }
   0x9   :  { %498 = vmatpush3.msra.mxu1 %v92_v21  ;;  %464 = vmatprep.subr.mxu0 %v75_v22  ;;  %v58_v30 = vld [vmem:[%s1079_s1 + $0x60] sm:$0xff]  ;;  %v105_v36 = vld [vmem:[%s1079_s1 + $0x1d8] sm:$0xff]  ;;  %v104_v42 = vld [vmem:[%s1079_s1 + $0x1d0] sm:$0xff] }
   0xa   :  { %499 = vmatprep.subr.mxu1 %v107_v23  ;;  %465 = vmatpush3.msra.mxu0 %v59_v24  ;;  %v90_v32 = vld [vmem:[%s1079_s1 + $0x160] sm:$0xff]  ;;  %v30_v35 = vadd.f32 %v29_v28, %v23_v19  ;;  %v57_v37 = vld [vmem:[%s1079_s1 + $0x58] sm:$0xff]  ;;  %v56_v43 = vld [vmem:[%s1079_s1 + $0x50] sm:$0xff] }
   0xb   :  { %500 = vmatpush3.msra.mxu1 %v91_v25  ;;  %466 = vmatprep.subr.mxu0 %v74_v26  ;;  %v89_v38 = vld [vmem:[%s1079_s1 + $0x158] sm:$0xff]  ;;  %v88_v44 = vld [vmem:[%s1079_s1 + $0x150] sm:$0xff]  ;;  %v71_v45 = vld [vmem:[%s1079_s1 + $0xc8] sm:$0xff] }
   0xc   :  { %501 = vmatprep.subr.mxu1 %v106_v29  ;;  %467 = vmatpush3.msra.mxu0 %v58_v30  ;;  %v31_v41 = vadd.f32 %v30_v35, %v24_v27  ;;  %v103_v47 = vld [vmem:[%s1079_s1 + $0x1c8] sm:$0xff]  ;;  %v70_v51 = vld [vmem:[%s1079_s1 + $0xc0] sm:$0xff]  ;;  %v69_v55 = vld [vmem:[%s1079_s1 + $0xb8] sm:$0xff] }
   0xd   :  { %502 = vmatpush3.msra.mxu1 %v90_v32  ;;  %468 = vmatprep.subr.mxu0 %v73_v33  ;;  %v55_v49 = vld [vmem:[%s1079_s1 + $0x48] sm:$0xff]  ;;  %v102_v52 = vld [vmem:[%s1079_s1 + $0x1c0] sm:$0xff]  ;;  %v101_v56 = vld [vmem:[%s1079_s1 + $0x1b8] sm:$0xff] }
   0xe   :  { %503 = vmatprep.subr.mxu1 %v105_v36  ;;  %469 = vmatpush3.msra.mxu0 %v57_v37  ;;  %v32_v46 = vadd.f32 %v31_v41, %v25_v34  ;;  %v87_v50 = vld [vmem:[%s1079_s1 + $0x148] sm:$0xff]  ;;  %v54_v53 = vld [vmem:[%s1079_s1 + $0x40] sm:$0xff]  ;;  %v53_v57 = vld [vmem:[%s1079_s1 + $0x38] sm:$0xff] }
   0xf   :  { %504 = vmatpush3.msra.mxu1 %v89_v38  ;;  %470 = vmatprep.subr.mxu0 %v72_v39  ;;  %v86_v54 = vld [vmem:[%s1079_s1 + $0x140] sm:$0xff]  ;;  %v85_v58 = vld [vmem:[%s1079_s1 + $0x138] sm:$0xff]  ;;  %v68_v59 = vld [vmem:[%s1079_s1 + $0xb0] sm:$0xff] }
  0x10   :  { %505 = vmatprep.subr.mxu1 %v104_v42  ;;  %471 = vmatpush3.msra.mxu0 %v56_v43  ;;  %v33_v48 = vadd.f32 %v32_v46, %v26_v40  ;;  %v100_v60 = vld [vmem:[%s1079_s1 + $0x1b0] sm:$0xff]  ;;  %v67_v63 = vld [vmem:[%s1079_s1 + $0xa8] sm:$0xff]  ;;  %v66_v9 = vld [vmem:[%s1079_s1 + $0xa0] sm:$0xff] }
  0x11   :  { %506 = vmatpush3.msra.mxu1 %v88_v44  ;;  %472 = vmatprep.subr.mxu0 %v71_v45  ;;  %v52_v61 = vld [vmem:[%s1079_s1 + $0x30] sm:$0xff]  ;;  %v99_v4 = vld [vmem:[%s1079_s1 + $0x1a8] sm:$0xff]  ;;  %v98_v10 = vld [vmem:[%s1079_s1 + $0x1a0] sm:$0xff] }
  0x12   :  { %507 = vmatprep.subr.mxu1 %v103_v47  ;;  %34 = vadd.xlane.f32.xlu0 %v33_v48  ;;  %v84_v62 = vld [vmem:[%s1079_s1 + $0x130] sm:$0xff]  ;;  %v51_v5 = vld [vmem:[%s1079_s1 + $0x28] sm:$0xff]  ;;  %v50_v11 = vld [vmem:[%s1079_s1 + $0x20] sm:$0xff] }
  0x13   :  { %473 = vmatpush3.msra.mxu0 %v55_v49  ;;  %508 = vmatpush3.msra.mxu1 %v87_v50  ;;  %v83_v6 = vld [vmem:[%s1079_s1 + $0x128] sm:$0xff]  ;;  %v82_v12 = vld [vmem:[%s1079_s1 + $0x120] sm:$0xff]  ;;  %v65_v13 = vld [vmem:[%s1079_s1 + $0x98] sm:$0xff] }
  0x14   :  { %474 = vmatprep.subr.mxu0 %v70_v51  ;;  %509 = vmatprep.subr.mxu1 %v102_v52  ;;  %v97_v14 = vld [vmem:[%s1079_s1 + $0x198] sm:$0xff]  ;;  %v64_v18 = vld [vmem:[%s1079_s1 + $0x90] sm:$0xff]  ;;  %v63_v22 = vld [vmem:[%s1079_s1 + $0x88] sm:$0xff] }
  0x15   :  { %475 = vmatpush3.msra.mxu0 %v54_v53  ;;  %510 = vmatpush3.msra.mxu1 %v86_v54  ;;  %v49_v16 = vld [vmem:[%s1079_s1 + $0x18] sm:$0xff]  ;;  %v96_v19 = vld [vmem:[%s1079_s1 + $0x190] sm:$0xff]  ;;  %v95_v23 = vld [vmem:[%s1079_s1 + $0x188] sm:$0xff] }
  0x16   :  { %476 = vmatprep.subr.mxu0 %v69_v55  ;;  %511 = vmatprep.subr.mxu1 %v101_v56  ;;  %v81_v17 = vld [vmem:[%s1079_s1 + $0x118] sm:$0xff]  ;;  %v48_v20 = vld [vmem:[%s1079_s1 + $0x10] sm:$0xff]  ;;  %v47_v24 = vld [vmem:[%s1079_s1 + $0x8] sm:$0xff] }
  0x17   :  { %477 = vmatpush3.msra.mxu0 %v53_v57  ;;  %512 = vmatpush3.msra.mxu1 %v85_v58  ;;  %v80_v21 = vld [vmem:[%s1079_s1 + $0x110] sm:$0xff]  ;;  %v79_v25 = vld [vmem:[%s1079_s1 + $0x108] sm:$0xff]  ;;  %v62_v26 = vld [vmem:[%s1079_s1 + $0x80] sm:$0xff] }
  0x18   :  { %478 = vmatprep.subr.mxu0 %v68_v59  ;;  %513 = vmatprep.subr.mxu1 %v100_v60  ;;  %v94_v27 = vld [vmem:[%s1079_s1 + $0x180] sm:$0xff]  ;;  %v141_v30 = vld [vmem:[%s1079_s1 + $0x2f8] sm:$0xff]  ;;  %v124_v42 = vld [vmem:[%s1079_s1 + $0x270] sm:$0xff] }
  0x19   :  { %479 = vmatpush3.msra.mxu0 %v52_v61  ;;  %514 = vmatpush3.msra.mxu1 %v84_v62  ;;  %v46_v28 = vld [vmem:[%s1079_s1] sm:$0xff]  ;;  %v173_v32 = vld [vmem:[%s1079_s1 + $0x3f8] sm:$0xff]  ;;  %v156_v43 = vld [vmem:[%s1079_s1 + $0x370] sm:$0xff] }
  0x1a   :  { %480 = vmatprep.subr.mxu0 %v67_v63  ;;  %515 = vmatprep.subr.mxu1 %v99_v4  ;;  %v78_v29 = vld [vmem:[%s1079_s1 + $0x100] sm:$0xff]  ;;  %v125_v40 = vld [vmem:[%s1079_s1 + $0x278] sm:$0xff]  ;;  %v171_v44 = vld [vmem:[%s1079_s1 + $0x3e8] sm:$0xff] }
  0x1b   :  { %481 = vmatpush3.msra.mxu0 %v51_v5  ;;  %516 = vmatpush3.msra.mxu1 %v83_v6  ;;  %v157_v41 = vld [vmem:[%s1079_s1 + $0x378] sm:$0xff]  ;;  %v155_v45 = vld [vmem:[%s1079_s1 + $0x368] sm:$0xff]  ;;  %v138_v46 = vld [vmem:[%s1079_s1 + $0x2e0] sm:$0xff] }
  0x1c   :  { %482 = vmatprep.subr.mxu0 %v66_v9  ;;  %517 = vmatprep.subr.mxu1 %v98_v10  ;;  %v170_v47 = vld [vmem:[%s1079_s1 + $0x3e0] sm:$0xff]  ;;  %v137_v50 = vld [vmem:[%s1079_s1 + $0x2d8] sm:$0xff]  ;;  %v136_v54 = vld [vmem:[%s1079_s1 + $0x2d0] sm:$0xff] }
  0x1d   :  { %483 = vmatpush3.msra.mxu0 %v50_v11  ;;  %518 = vmatpush3.msra.mxu1 %v82_v12  ;;  %v122_v48 = vld [vmem:[%s1079_s1 + $0x260] sm:$0xff]  ;;  %v169_v51 = vld [vmem:[%s1079_s1 + $0x3d8] sm:$0xff]  ;;  %v168_v55 = vld [vmem:[%s1079_s1 + $0x3d0] sm:$0xff] }
  0x1e   :  { %484 = vmatprep.subr.mxu0 %v65_v13  ;;  %519 = vmatprep.subr.mxu1 %v97_v14  ;;  %v154_v49 = vld [vmem:[%s1079_s1 + $0x360] sm:$0xff]  ;;  %v121_v52 = vld [vmem:[%s1079_s1 + $0x258] sm:$0xff]  ;;  %v120_v56 = vld [vmem:[%s1079_s1 + $0x250] sm:$0xff] }
  0x1f   :  { %485 = vmatpush3.msra.mxu0 %v49_v16  ;;  %520 = vmatpush3.msra.mxu1 %v81_v17  ;;  %v153_v53 = vld [vmem:[%s1079_s1 + $0x358] sm:$0xff]  ;;  %v152_v57 = vld [vmem:[%s1079_s1 + $0x350] sm:$0xff]  ;;  %v135_v58 = vld [vmem:[%s1079_s1 + $0x2c8] sm:$0xff] }
  0x20   :  { %486 = vmatprep.subr.mxu0 %v64_v18  ;;  %521 = vmatprep.subr.mxu1 %v96_v19  ;;  %v167_v59 = vld [vmem:[%s1079_s1 + $0x3c8] sm:$0xff]  ;;  %v134_v62 = vld [vmem:[%s1079_s1 + $0x2c0] sm:$0xff]  ;;  %v133_v6 = vld [vmem:[%s1079_s1 + $0x2b8] sm:$0xff] }
  0x21   :  { %487 = vmatpush3.msra.mxu0 %v48_v20  ;;  %522 = vmatpush3.msra.mxu1 %v80_v21  ;;  %v119_v60 = vld [vmem:[%s1079_s1 + $0x248] sm:$0xff]  ;;  %v166_v63 = vld [vmem:[%s1079_s1 + $0x3c0] sm:$0xff]  ;;  %v165_v9 = vld [vmem:[%s1079_s1 + $0x3b8] sm:$0xff] }
  0x22   :  { %488 = vmatprep.subr.mxu0 %v63_v22  ;;  %523 = vmatprep.subr.mxu1 %v95_v23  ;;  %v151_v61 = vld [vmem:[%s1079_s1 + $0x348] sm:$0xff]  ;;  %v118_v4 = vld [vmem:[%s1079_s1 + $0x240] sm:$0xff]  ;;  %v117_v10 = vld [vmem:[%s1079_s1 + $0x238] sm:$0xff] }
  0x23   :  { %489 = vmatpush3.msra.mxu0 %v47_v24  ;;  %524 = vmatpush3.msra.mxu1 %v79_v25  ;;  %v150_v5 = vld [vmem:[%s1079_s1 + $0x340] sm:$0xff]  ;;  %v149_v11 = vld [vmem:[%s1079_s1 + $0x338] sm:$0xff]  ;;  %v132_v12 = vld [vmem:[%s1079_s1 + $0x2b0] sm:$0xff] }
  0x24   :  { %490 = vmatprep.subr.mxu0 %v62_v26  ;;  %525 = vmatprep.subr.mxu1 %v94_v27  ;;  %v164_v13 = vld [vmem:[%s1079_s1 + $0x3b0] sm:$0xff]  ;;  %v131_v17 = vld [vmem:[%s1079_s1 + $0x2a8] sm:$0xff]  ;;  %v130_v21 = vld [vmem:[%s1079_s1 + $0x2a0] sm:$0xff] }
  0x25   :  { %491 = vmatpush3.msra.mxu0 %v46_v28  ;;  %526 = vmatpush3.msra.mxu1 %v78_v29  ;;  %v116_v14 = vld [vmem:[%s1079_s1 + $0x230] sm:$0xff]  ;;  %v163_v18 = vld [vmem:[%s1079_s1 + $0x3a8] sm:$0xff]  ;;  %v162_v22 = vld [vmem:[%s1079_s1 + $0x3a0] sm:$0xff] }
  0x26   :  { %530 = vmatprep.subr.mxu0 %v141_v30  ;;  %565 = vmatprep.subr.mxu1 %v173_v32  ;;  %v148_v16 = vld [vmem:[%s1079_s1 + $0x330] sm:$0xff]  ;;  %v115_v19 = vld [vmem:[%s1079_s1 + $0x228] sm:$0xff]  ;;  %v114_v23 = vld [vmem:[%s1079_s1 + $0x220] sm:$0xff] }
  0x27   :  { %v147_v20 = vld [vmem:[%s1079_s1 + $0x328] sm:$0xff]  ;;  %v146_v24 = vld [vmem:[%s1079_s1 + $0x320] sm:$0xff]  ;;  %v129_v25 = vld [vmem:[%s1079_s1 + $0x298] sm:$0xff] }
  0x28   :  { %v161_v26 = vld [vmem:[%s1079_s1 + $0x398] sm:$0xff]  ;;  %v128_v29 = vld [vmem:[%s1079_s1 + $0x290] sm:$0xff] }
  0x29   :  { %v113_v27 = vld [vmem:[%s1079_s1 + $0x218] sm:$0xff]  ;;  %v160_v30 = vld [vmem:[%s1079_s1 + $0x390] sm:$0xff] }
  0x2a   :  { %v145_v28 = vld [vmem:[%s1079_s1 + $0x318] sm:$0xff]  ;;  %v112_v32 = vld [vmem:[%s1079_s1 + $0x210] sm:$0xff] }
  0x9b   :  { %v35_v33 = vpop.xlane.xlu0 %34 }
  0x9c   :  { %v36_v34 = vadd.f32 1e-12, %v35_v33  ;;  %v144_v33 = vld [vmem:[%s1079_s1 + $0x310] sm:$0xff] }
  0x9e   :  { %600 = vrsqrt.f32 %v36_v34  ;;  %v127_v34 = vld [vmem:[%s1079_s1 + $0x288] sm:$0xff] }
  0xab   :  { %v871_v35 = vpop.eup %600 }
  0xac   :  { %v39_v36 = vmul.f32 %v871_v35, %v625_v1  ;;  %v41_v37 = vmul.f32 %v871_v35, %v635_v3  ;;  %v38_v38 = vmul.f32 %v871_v35, %v620_v0  ;;  %v40_v39 = vmul.f32 %v871_v35, %v630_v2  ;;  %v140_v1 = vld [vmem:[%s1079_s1 + $0x2f0] sm:$0xff] }
  0xad   :  { %v43_v0 = vmul.f32 %v871_v35, %v651_v8  ;;  %v172_v2 = vld [vmem:[%s1079_s1 + $0x3f0] sm:$0xff]  ;;  %v45_v3 = vmul.f32 %v871_v35, %v712_v31  ;;  %v139_v8 = vld [vmem:[%s1079_s1 + $0x2e8] sm:$0xff] }
  0xae   :  { %238 = vmatprep.mubr.f32.mxu0 %v39_v36  ;;  %308 = vmatprep.mubr.f32.mxu1 %v41_v37  ;;  %v123_v31 = vld [vmem:[%s1079_s1 + $0x268] sm:$0xff] }
  0xaf   :  { %239 = vmatmul.mubr.f32.vlgmr.msra.gmra.mxu0 %v38_v38  ;;  %309 = vmatmul.mubr.f32.vlgmr.msra.gmra.mxu1 %v40_v39  ;;  %v159_v36 = vld [vmem:[%s1079_s1 + $0x388] sm:$0xff]  ;;  %v126_v39 = vld [vmem:[%s1079_s1 + $0x280] sm:$0xff] }
  0xb0   :  { %531 = vmatpush3.msra.mxu0 %v125_v40  ;;  %566 = vmatpush3.msra.mxu1 %v157_v41  ;;  %v111_v37 = vld [vmem:[%s1079_s1 + $0x208] sm:$0xff]  ;;  %v158_v40 = vld [vmem:[%s1079_s1 + $0x380] sm:$0xff] }
  0xb1   :  { %532 = vmatprep.subr.mxu0 %v140_v1  ;;  %378 = vmatprep.mubr.f32.mxu0 %v43_v0  ;;  %v143_v38 = vld [vmem:[%s1079_s1 + $0x308] sm:$0xff]  ;;  %v110_v41 = vld [vmem:[%s1079_s1 + $0x200] sm:$0xff]  ;;  %v42_v0 = vmul.f32 %v871_v35, %v646_v7 }
  0xb2   :  { %567 = vmatprep.subr.mxu1 %v172_v2  ;;  %448 = vmatprep.mubr.f32.mxu1 %v45_v3  ;;  %v142_v1 = vld [vmem:[%s1079_s1 + $0x300] sm:$0xff]  ;;  %v44_v2 = vmul.f32 %v871_v35, %v670_v15 }
  0xb3   :  { %533 = vmatpush3.msra.mxu0 %v124_v42  ;;  %568 = vmatpush3.msra.mxu1 %v156_v43 }
  0xb4   :  { %534 = vmatprep.subr.mxu0 %v139_v8  ;;  %569 = vmatprep.subr.mxu1 %v171_v44 }
  0xb5   :  { %535 = vmatpush3.msra.mxu0 %v123_v31  ;;  %570 = vmatpush3.msra.mxu1 %v155_v45 }
  0xb6   :  { %536 = vmatprep.subr.mxu0 %v138_v46  ;;  %571 = vmatprep.subr.mxu1 %v170_v47 }
  0xb7   :  { %537 = vmatpush3.msra.mxu0 %v122_v48  ;;  %572 = vmatpush3.msra.mxu1 %v154_v49 }
  0xb8   :  { %538 = vmatprep.subr.mxu0 %v137_v50  ;;  %573 = vmatprep.subr.mxu1 %v169_v51 }
  0xb9   :  { %539 = vmatpush3.msra.mxu0 %v121_v52  ;;  %574 = vmatpush3.msra.mxu1 %v153_v53 }
  0xba   :  { %540 = vmatprep.subr.mxu0 %v136_v54  ;;  %575 = vmatprep.subr.mxu1 %v168_v55 }
  0xbb   :  { %541 = vmatpush3.msra.mxu0 %v120_v56  ;;  %576 = vmatpush3.msra.mxu1 %v152_v57 }
  0xbc   :  { %542 = vmatprep.subr.mxu0 %v135_v58  ;;  %577 = vmatprep.subr.mxu1 %v167_v59 }
  0xbd   :  { %543 = vmatpush3.msra.mxu0 %v119_v60  ;;  %578 = vmatpush3.msra.mxu1 %v151_v61 }
  0xbe   :  { %544 = vmatprep.subr.mxu0 %v134_v62  ;;  %579 = vmatprep.subr.mxu1 %v166_v63 }
  0xbf   :  { %545 = vmatpush3.msra.mxu0 %v118_v4  ;;  %580 = vmatpush3.msra.mxu1 %v150_v5 }
  0xc0   :  { %546 = vmatprep.subr.mxu0 %v133_v6  ;;  %581 = vmatprep.subr.mxu1 %v165_v9 }
  0xc1   :  { %547 = vmatpush3.msra.mxu0 %v117_v10  ;;  %582 = vmatpush3.msra.mxu1 %v149_v11 }
  0xc2   :  { %548 = vmatprep.subr.mxu0 %v132_v12  ;;  %583 = vmatprep.subr.mxu1 %v164_v13 }
  0xc3   :  { %549 = vmatpush3.msra.mxu0 %v116_v14  ;;  %584 = vmatpush3.msra.mxu1 %v148_v16 }
  0xc4   :  { %550 = vmatprep.subr.mxu0 %v131_v17  ;;  %585 = vmatprep.subr.mxu1 %v163_v18 }
  0xc5   :  { %551 = vmatpush3.msra.mxu0 %v115_v19  ;;  %586 = vmatpush3.msra.mxu1 %v147_v20 }
  0xc6   :  { %552 = vmatprep.subr.mxu0 %v130_v21  ;;  %587 = vmatprep.subr.mxu1 %v162_v22 }
  0xc7   :  { %553 = vmatpush3.msra.mxu0 %v114_v23  ;;  %588 = vmatpush3.msra.mxu1 %v146_v24 }
  0xc8   :  { %554 = vmatprep.subr.mxu0 %v129_v25  ;;  %589 = vmatprep.subr.mxu1 %v161_v26 }
  0xc9   :  { %555 = vmatpush3.msra.mxu0 %v113_v27  ;;  %590 = vmatpush3.msra.mxu1 %v145_v28 }
  0xca   :  { %556 = vmatprep.subr.mxu0 %v128_v29  ;;  %591 = vmatprep.subr.mxu1 %v160_v30 }
  0xcb   :  { %557 = vmatpush3.msra.mxu0 %v112_v32  ;;  %592 = vmatpush3.msra.mxu1 %v144_v33 }
  0xcc   :  { %558 = vmatprep.subr.mxu0 %v127_v34  ;;  %593 = vmatprep.subr.mxu1 %v159_v36 }
  0xcd   :  { %559 = vmatpush3.msra.mxu0 %v111_v37  ;;  %594 = vmatpush3.msra.mxu1 %v143_v38 }
  0xce   :  { %560 = vmatprep.subr.mxu0 %v126_v39  ;;  %595 = vmatprep.subr.mxu1 %v158_v40 }
  0xcf   :  { %561 = vmatpush3.msra.mxu0 %v110_v41  ;;  %596 = vmatpush3.msra.mxu1 %v142_v1 }
  0xd0   :  { %379 = vmatmul.mubr.f32.vlgmr.msra.gmra.mxu0 %v42_v0  ;;  %449 = vmatmul.mubr.f32.vlgmr.msra.gmra.mxu1 %v44_v2 }
 0x16f   :  { %v492_v3 = vpop.f32.mrf.mxu0  ;;  %v527_v42 = vpop.f32.mrf.mxu1 }
 0x171   :  { %v493_v43 = vpop.f32.mrf.mxu0  ;;  %v528_v8 = vpop.f32.mrf.mxu1 }
 0x172   :  { %v494_v44 = vadd.f32 %v493_v43, %v492_v3  ;;  %v529_v31 = vadd.f32 %v528_v8, %v527_v42 }
 0x174   :  { %v311_v49 = vadd.f32 %v529_v31, %v494_v44 }
 0x190   :  { %v562_v45 = vpop.f32.mrf.mxu0  ;;  %v597_v46 = vpop.f32.mrf.mxu1 }
 0x192   :  { %v563_v47 = vpop.f32.mrf.mxu0  ;;  %v598_v48 = vpop.f32.mrf.mxu1 }
 0x193   :  { %v564_v50 = vadd.f32 %v563_v47, %v562_v45  ;;  %v599_v51 = vadd.f32 %v598_v48, %v597_v46 }
 0x195   :  { %v381_v7 = vadd.f32 %v564_v50, %v311_v49 }
 0x197   :  { %v451_v15 = vadd.f32 %v599_v51, %v381_v7 }
 0x199   :  { %455 = vst.msk [vmem:[%s1080_s2] sm:$0xff] %vm454_vm0, %v451_v15 }

</bundles_post_ra>
